<compile_context>
chip_gen: v6e
topology: v6e:2x2x1
jax: 0.10.0
libtpu: 0.0.40
codegen_flags: <defaults>
</compile_context>

<pallas_src>
import jax
import jax.numpy as jnp
from jax.experimental import pallas as pl
from jax.experimental.pallas import tpu as pltpu

NEG_INF = -1e30          # plain Python floats -> never captured as traced consts
BN_EPS = 1e-5
LEAKY_SLOPE = 0.2
HEADS = 8

_VMEM = pl.BlockSpec(memory_space=pltpu.MemorySpace.VMEM)


# ----------------------------------------------------------------------------
# Fused kernel
# ----------------------------------------------------------------------------
def _gat_block(x, wa_ref, whm_ref, affa_ref, affb_ref, mask, attn_scr, z_scr):
    """One GATConv (concat=False -> mean over heads) + folded BN + ReLU.

    x:        [N, C_in]  f32
    wa_ref:   [C_in, 2H] bf16   host-folded W @ [att_dst_bd | att_src_bd]
    whm_ref:  [H, C_in, F] bf16 head-major projection slab
    affa/b:   [1, F] f32        folded (mean-over-heads + bias + BatchNorm) affine
    mask:     [N, N_pad] f32    additive mask (0 edge/self-loop, -1e30 otherwise & pad cols)
    attn_scr: [N, H*N_pad] bf16 VMEM scratch (128-aligned per-head slots)
    z_scr:    [H*N_pad, F] bf16 VMEM scratch (pad rows pre-zeroed)
    """
    n, n_pad = mask.shape
    heads = whm_ref.shape[0]
    x_b = x.astype(jnp.bfloat16)

    # attention logit halves for ALL heads in one tiny matmul -> [N, 2H]
    a2 = jnp.dot(x_b, wa_ref[...], preferred_element_type=jnp.float32)
    a_dst = a2[:, :heads]                                   # [N, H]
    a_src_t = jnp.transpose(a2[:, heads:])                  # [H, N]  (single small transpose)
    if n_pad > n:                                           # static pad to lane width
        a_src_t = jnp.concatenate(
            [a_src_t, jnp.zeros((heads, n_pad - n), jnp.float32)], axis=1)

    for h in range(heads):                                  # static unroll over heads
        # head-major projection recomputed on the MXU (avoids misaligned
        # 32-lane slices of a flat z); stored into its 128-aligned row slot.
        z_h = jnp.dot(x_b, whm_ref[h], preferred_element_type=jnp.float32)   # [N, F]
        z_scr[h * n_pad:h * n_pad + n, :] = z_h.astype(jnp.bfloat16)

        e = a_dst[:, h:h + 1] + a_src_t[h:h + 1, :]         # [N, N_pad] (i=dst, j=src)
        e = jnp.maximum(e, LEAKY_SLOPE * e)                 # LeakyReLU(0.2), no select
        e = e + mask                                        # additive adjacency mask
        p = jnp.exp(e - jnp.max(e, axis=-1, keepdims=True)) # masked/pad cols -> exactly 0
        p = p * pl.reciprocal(jnp.sum(p, axis=-1, keepdims=True), approx=True)
        # 128-aligned full-slot store (no lane rotation / relayout)
        attn_scr[:, h * n_pad:(h + 1) * n_pad] = p.astype(jnp.bfloat16)

    # all-heads aggregation in ONE filled-K matmul: [N, H*N_pad] @ [H*N_pad, F]
    acc = jnp.dot(attn_scr[...], z_scr[...], preferred_element_type=jnp.float32)
    # folded (mean over heads + GAT bias + BatchNorm) affine, then ReLU
    return jnp.maximum(acc * affa_ref[...] + affb_ref[...], 0.0)


def _fused_forward_kernel(
        # inputs
        x_ref, mask_ref, h0_ref,
        wa1_ref, whm1_ref, affa1_ref, affb1_ref,
        wa2_ref, whm2_ref, affa2_ref, affb2_ref,
        wih_ref, whh_ref, bih_ref, bhh_ref, wout_ref, bout_ref,
        # outputs
        out_ref, hnew_ref,
        # scratch
        attn_scr, z_scr):
    # zero the z scratch once: its pad rows must be 0.0 (the matching attention
    # pad columns are exactly 0 after the masked exp, but 0 * uninitialized
    # VMEM could still be NaN).  attn_scr is fully overwritten -> no zeroing.
    z_scr[...] = jnp.zeros(z_scr.shape, z_scr.dtype)

    x = x_ref[...]
    mask = mask_ref[...]
    h0 = h0_ref[...]        # read fully BEFORE hnew_ref is written (alias safety)

    # ---- GAT layer 1 (+ folded BN + ReLU, residual iff channels match) ----
    h1 = _gat_block(x, wa1_ref, whm1_ref, affa1_ref, affb1_ref,
                    mask, attn_scr, z_scr)
    if x.shape[-1] == h1.shape[-1]:        # static shape check
        h1 = h1 + x

    # ---- GAT layer 2 (+ folded BN + ReLU + residual) ----
    h2 = _gat_block(h1, wa2_ref, whm2_ref, affa2_ref, affb2_ref,
                    mask, attn_scr, z_scr) + h1

    # ---- GRUCell (PyTorch gate order r, z, n) + output Linear ----
    hc = h2.shape[1]
    gi = jnp.dot(h2.astype(jnp.bfloat16), wih_ref[...],
                 preferred_element_type=jnp.float32) + bih_ref[...]
    gh = jnp.dot(h0.astype(jnp.bfloat16), whh_ref[...],
                 preferred_element_type=jnp.float32) + bhh_ref[...]
    r = jax.nn.sigmoid(gi[:, 0 * hc:1 * hc] + gh[:, 0 * hc:1 * hc])
    zg = jax.nn.sigmoid(gi[:, 1 * hc:2 * hc] + gh[:, 1 * hc:2 * hc])
    ng = jnp.tanh(gi[:, 2 * hc:3 * hc] + r * gh[:, 2 * hc:3 * hc])
    hn = (1.0 - zg) * ng + zg * h0
    hnew_ref[...] = hn
    # output projection: W padded to 128 lanes on the host -> lane-dense store
    out_ref[...] = jnp.dot(hn.astype(jnp.bfloat16), wout_ref[...],
                           preferred_element_type=jnp.float32) + bout_ref[...]


# ----------------------------------------------------------------------------
# Host-side prep + wrapper
# ----------------------------------------------------------------------------
def _block_diag_att(att):
    """[H, F] attention vector -> block-diagonal [H*F, H] matrix."""
    h, f = att.shape
    return (att[:, :, None] * jnp.eye(h, dtype=att.dtype)[:, None, :]).reshape(h * f, h)


def _round_up(v, m):
    return ((v + m - 1) // m) * m


def edge_index_to_adj(edge_index, num_nodes):
    """Dense mask: adj[i, j] = 1 if edge j -> i exists (self-loops added)."""
    src, dst = edge_index[0], edge_index[1]
    adj = jnp.zeros((num_nodes, num_nodes), jnp.float32).at[dst, src].set(1.0)
    return jnp.maximum(adj, jnp.eye(num_nodes, dtype=jnp.float32))


def _fold_gat_layer(gp, bp, heads):
    """Host-side constant folding for one GAT layer."""
    c_in, hf = gp["W"].shape
    f = hf // heads
    # attention logits straight from x: wa = W @ [att_dst_bd | att_src_bd]  [C_in, 2H]
    acat = jnp.concatenate([_block_diag_att(gp["att_dst"]),
                            _block_diag_att(gp["att_src"])], axis=1)
    wa = (gp["W"] @ acat).astype(jnp.bfloat16)
    # head-major projection slab [H, C_in, F]
    whm = jnp.transpose(gp["W"].reshape(c_in, heads, f), (1, 0, 2)).astype(jnp.bfloat16)
    # fold mean-over-heads + GAT bias + BatchNorm (eval) into one affine
    scale = bp["gamma"] * jax.lax.rsqrt(bp["var"] + BN_EPS)
    shift = bp["beta"] - bp["mean"] * scale
    affa = scale / heads
    affb = gp["bias"] * scale + shift
    return wa, whm, affa, affb


def temporal_gnn_forward(params, x, adj, hidden_state=None):
    n = x.shape[0]
    hc = params["gru"]["whh"].shape[0]
    out_c = params["out"]["W"].shape[1]
    n_pad = _round_up(n, 128)
    out_pad = _round_up(out_c, 128)

    if hidden_state is None:
        hidden_state = jnp.zeros((n, hc), jnp.float32)

    # additive attention mask padded to a lane multiple
    # (0 on edges / self-loops, -1e30 elsewhere and on the pad columns)
    mask = jnp.full((n, n_pad), NEG_INF, jnp.float32)
    mask = mask.at[:, :n].set(jnp.where(adj > 0, 0.0, NEG_INF))

    prepped = []
    for gp, bp in zip(params["gat"], params["bn"]):
        prepped.extend(_fold_gat_layer(gp, bp, HEADS))

    # pad the output projection to 128 lanes -> lane-dense kernel store
    wout_pad = jnp.zeros((hc, out_pad), jnp.float32).at[:, :out_c].set(
        params["out"]["W"]).astype(jnp.bfloat16)
    bout_pad = jnp.zeros((1, out_pad), jnp.float32).at[:, :out_c].set(params["out"]["b"])

    inputs = (x, mask, hidden_state, *prepped,
              params["gru"]["wih"].astype(jnp.bfloat16),
              params["gru"]["whh"].astype(jnp.bfloat16),
              params["gru"]["bih"], params["gru"]["bhh"],
              wout_pad, bout_pad)

    out_padded, hnew = pl.pallas_call(
        _fused_forward_kernel,
        out_shape=(jax.ShapeDtypeStruct((n, out_pad), jnp.float32),
                   jax.ShapeDtypeStruct((n, hc), jnp.float32)),
        in_specs=[_VMEM] * len(inputs),
        out_specs=(_VMEM, _VMEM),
        scratch_shapes=[pltpu.VMEM((n, HEADS * n_pad), jnp.bfloat16),   # attention slots
                        pltpu.VMEM((HEADS * n_pad, hc), jnp.bfloat16)], # head-major z slots
        input_output_aliases={2: 1},   # hidden_state input -> updated hidden output
        compiler_params=pltpu.CompilerParams(vmem_limit_bytes=32 * 1024 * 1024),
    )(*inputs)
    return out_padded[:, :out_c], hnew


# ----------------------------------------------------------------------------
# Parameter init (matches the PyTorch module layout; eval mode)
# ----------------------------------------------------------------------------
def init_params(key, in_channels, hidden_channels, out_channels, heads=8, num_layers=2):
    params = {"gat": [], "bn": []}
    layer_in = in_channels
    for _ in range(num_layers):
        key, k1, k2, k3 = jax.random.split(key, 4)
        params["gat"].append(dict(
            W=0.1 * jax.random.normal(k1, (layer_in, heads * hidden_channels), jnp.float32),
            att_src=0.1 * jax.random.normal(k2, (heads, hidden_channels), jnp.float32),
            att_dst=0.1 * jax.random.normal(k3, (heads, hidden_channels), jnp.float32),
            bias=jnp.zeros((1, hidden_channels), jnp.float32),
        ))
        params["bn"].append(dict(
            gamma=jnp.ones((1, hidden_channels), jnp.float32),
            beta=jnp.zeros((1, hidden_channels), jnp.float32),
            mean=jnp.zeros((1, hidden_channels), jnp.float32),
            var=jnp.ones((1, hidden_channels), jnp.float32),
        ))
        layer_in = hidden_channels
    key, k1, k2, k3, k4 = jax.random.split(key, 5)
    params["gru"] = dict(
        wih=0.1 * jax.random.normal(k1, (hidden_channels, 3 * hidden_channels), jnp.float32),
        whh=0.1 * jax.random.normal(k2, (hidden_channels, 3 * hidden_channels), jnp.float32),
        bih=0.1 * jax.random.normal(k3, (1, 3 * hidden_channels), jnp.float32),
        bhh=0.1 * jax.random.normal(k4, (1, 3 * hidden_channels), jnp.float32),
    )
    key, k1, k2 = jax.random.split(key, 3)
    params["out"] = dict(
        W=0.1 * jax.random.normal(k1, (hidden_channels, out_channels), jnp.float32),
        b=0.1 * jax.random.normal(k2, (1, out_channels), jnp.float32),
    )
    return params


# ----------------------------------------------------------------------------
# Pure-JAX f32 reference (same math) for verification
# ----------------------------------------------------------------------------
def _ref_gat(x, W, a_src_w, a_dst_w, bias, adj):
    H, F = a_src_w.shape
    z = x @ W
    acc = jnp.zeros((x.shape[0], F), jnp.float32)
    for h in range(H):
        zh = z[:, h * F:(h + 1) * F]
        a_src = jnp.sum(zh * a_src_w[h], -1)
        a_dst = jnp.sum(zh * a_dst_w[h], -1)
        e = a_dst[:, None] + a_src[None, :]
        e = jnp.where(e > 0, e, LEAKY_SLOPE * e)
        e = jnp.where(adj > 0, e, -jnp.inf)
        attn = jax.nn.softmax(e, axis=-1)
        acc = acc + attn @ zh
    return acc / H + bias


def _ref_forward(params, x, adj, hidden_state=None):
    N = x.shape[0]
    Hc = params["gru"]["whh"].shape[0]
    if hidden_state is None:
        hidden_state = jnp.zeros((N, Hc), jnp.float32)
    h = x
    for gp, bp in zip(params["gat"], params["bn"]):
        h_new = _ref_gat(h, gp["W"], gp["att_src"], gp["att_dst"], gp["bias"], adj)
        h_new = (h_new - bp["mean"]) / jnp.sqrt(bp["var"] + BN_EPS) * bp["gamma"] + bp["beta"]
        h_new = jax.nn.relu(h_new)
        h = h + h_new if h.shape[-1] == h_new.shape[-1] else h_new
    gi = h @ params["gru"]["wih"] + params["gru"]["bih"]
    gh = hidden_state @ params["gru"]["whh"] + params["gru"]["bhh"]
    r = jax.nn.sigmoid(gi[:, :Hc] + gh[:, :Hc])
    z = jax.nn.sigmoid(gi[:, Hc:2 * Hc] + gh[:, Hc:2 * Hc])
    n = jnp.tanh(gi[:, 2 * Hc:] + r * gh[:, 2 * Hc:])
    hn = (1 - z) * n + z * hidden_state
    return hn @ params["out"]["W"] + params["out"]["b"], hn


# ----------------------------------------------------------------------------
if __name__ == "__main__":
    # TODO(synk): training-mode dropout / batch-statistics BN not implemented
    # (model evaluated in eval mode, matching module.eval() semantics).
    N, IN_C, HID_C, OUT_C, E = 64, 16, 32, 4, 256

    key = jax.random.PRNGKey(0)
    key, kx, ke = jax.random.split(key, 3)
    x = jax.random.normal(kx, (N, IN_C), jnp.float32)
    edge_index = jax.random.randint(ke, (2, E), 0, N, jnp.int32)   # [2, num_edges]
    adj = edge_index_to_adj(edge_index, N)

    params = init_params(key, IN_C, HID_C, OUT_C, heads=HEADS, num_layers=2)

    out, hidden = temporal_gnn_forward(params, x, adj)
    jax.block_until_ready((out, hidden))

    ref_out, ref_hidden = _ref_forward(params, x, adj)
    assert out.shape == (N, OUT_C) and hidden.shape == (N, HID_C)
    # bf16 MXU operands + approx reciprocal -> relaxed tolerance vs f32 reference
    assert jnp.allclose(out, ref_out, atol=1e-2, rtol=1e-2)
    assert jnp.allclose(hidden, ref_hidden, atol=1e-2, rtol=1e-2)

    print("KERNEL_OK")
</pallas_src>

<mosaic_0001>
module attributes {stable_mosaic.version = 11 : i64} {
  func.func @_fused_forward_kernel(%arg0: memref<64x16xf32, #tpu.memory_space<vmem>>, %arg1: memref<64x128xf32, #tpu.memory_space<vmem>>, %arg2: memref<64x32xf32, #tpu.memory_space<vmem>>, %arg3: memref<16x16xbf16, #tpu.memory_space<vmem>>, %arg4: memref<8x16x32xbf16, #tpu.memory_space<vmem>>, %arg5: memref<1x32xf32, #tpu.memory_space<vmem>>, %arg6: memref<1x32xf32, #tpu.memory_space<vmem>>, %arg7: memref<32x16xbf16, #tpu.memory_space<vmem>>, %arg8: memref<8x32x32xbf16, #tpu.memory_space<vmem>>, %arg9: memref<1x32xf32, #tpu.memory_space<vmem>>, %arg10: memref<1x32xf32, #tpu.memory_space<vmem>>, %arg11: memref<32x96xbf16, #tpu.memory_space<vmem>>, %arg12: memref<32x96xbf16, #tpu.memory_space<vmem>>, %arg13: memref<1x96xf32, #tpu.memory_space<vmem>>, %arg14: memref<1x96xf32, #tpu.memory_space<vmem>>, %arg15: memref<32x128xbf16, #tpu.memory_space<vmem>>, %arg16: memref<1x128xf32, #tpu.memory_space<vmem>>, %arg17: memref<64x128xf32, #tpu.memory_space<vmem>>, %arg18: memref<64x32xf32, #tpu.memory_space<vmem>>, %arg19: memref<64x1024xbf16, #tpu.memory_space<vmem>>, %arg20: memref<1024x32xbf16, #tpu.memory_space<vmem>>) attributes {dimension_semantics = [], scalar_prefetch = 0 : i64, scratch_operands = 2 : i64, tpu.core_type = #tpu.core_type<tc>} {
    %cst = arith.constant 0.000000e+00 : bf16
    %0 = vector.broadcast %cst : bf16 to vector<1024x32xbf16>
    %c0 = arith.constant 0 : index
    %c0_0 = arith.constant 0 : index
    %1 = vector.load %arg20[%c0, %c0_0] : memref<1024x32xbf16, #tpu.memory_space<vmem>>, vector<1024x32xbf16>
    tpu.vector_store %arg20[%c0, %c0_0], %0 {strides = array<i32>} : memref<1024x32xbf16, #tpu.memory_space<vmem>>, vector<1024x32xbf16>,
    %c0_1 = arith.constant 0 : index
    %c0_2 = arith.constant 0 : index
    %2 = vector.load %arg0[%c0_1, %c0_2] : memref<64x16xf32, #tpu.memory_space<vmem>>, vector<64x16xf32>
    %c0_3 = arith.constant 0 : index
    %c0_4 = arith.constant 0 : index
    %3 = vector.load %arg1[%c0_3, %c0_4] : memref<64x128xf32, #tpu.memory_space<vmem>>, vector<64x128xf32>
    %c0_5 = arith.constant 0 : index
    %c0_6 = arith.constant 0 : index
    %4 = vector.load %arg2[%c0_5, %c0_6] : memref<64x32xf32, #tpu.memory_space<vmem>>, vector<64x32xf32>
    %5 = arith.truncf %2 : vector<64x16xf32> to vector<64x16xbf16>
    %c0_7 = arith.constant 0 : index
    %c0_8 = arith.constant 0 : index
    %6 = vector.load %arg3[%c0_7, %c0_8] : memref<16x16xbf16, #tpu.memory_space<vmem>>, vector<16x16xbf16>
    %cst_9 = arith.constant dense<0.000000e+00> : vector<64x16xf32>
    %7 = tpu.matmul %5, %6, %cst_9 {dimension_numbers = #tpu.dot_dimension_numbers<[1], [0], [0], [1], [0, 0, 1, 1], [], []>} : vector<64x16xbf16>, vector<16x16xbf16>, vector<64x16xf32> -> vector<64x16xf32>
    %8 = vector.extract_strided_slice %7 {offsets = [0, 0], sizes = [64, 8], strides = [1, 1]} : vector<64x16xf32> to vector<64x8xf32>
    %9 = vector.extract_strided_slice %7 {offsets = [0, 8], sizes = [64, 8], strides = [1, 1]} : vector<64x16xf32> to vector<64x8xf32>
    %10 = tpu.transpose %9, [1, 0] : vector<64x8xf32> -> vector<8x64xf32>
    %cst_10 = arith.constant 0.000000e+00 : f32
    %11 = vector.broadcast %cst_10 : f32 to vector<8x64xf32>
    %12 = tpu.concatenate %10, %11 in 1 : vector<8x64xf32>, vector<8x64xf32> -> vector<8x128xf32>
    %c0_11 = arith.constant 0 : index
    %c0_12 = arith.constant 0 : index
    %c0_13 = arith.constant 0 : index
    %13 = vector.load %arg4[%c0_11, %c0_12, %c0_13] : memref<8x16x32xbf16, #tpu.memory_space<vmem>>, vector<1x16x32xbf16>
    %14 = vector.shape_cast %13 : vector<1x16x32xbf16> to vector<16x32xbf16>
    %cst_14 = arith.constant dense<0.000000e+00> : vector<64x32xf32>
    %15 = tpu.matmul %5, %14, %cst_14 {dimension_numbers = #tpu.dot_dimension_numbers<[1], [0], [0], [1], [0, 0, 1, 1], [], []>} : vector<64x16xbf16>, vector<16x32xbf16>, vector<64x32xf32> -> vector<64x32xf32>
    %16 = arith.truncf %15 : vector<64x32xf32> to vector<64x32xbf16>
    %c0_15 = arith.constant 0 : index
    %c0_16 = arith.constant 0 : index
    %17 = vector.load %arg20[%c0_15, %c0_16] : memref<1024x32xbf16, #tpu.memory_space<vmem>>, vector<64x32xbf16>
    tpu.vector_store %arg20[%c0_15, %c0_16], %16 {strides = array<i32>} : memref<1024x32xbf16, #tpu.memory_space<vmem>>, vector<64x32xbf16>,
    %18 = vector.extract_strided_slice %8 {offsets = [0, 0], sizes = [64, 1], strides = [1, 1]} : vector<64x8xf32> to vector<64x1xf32>
    %19 = vector.extract_strided_slice %12 {offsets = [0, 0], sizes = [1, 128], strides = [1, 1]} : vector<8x128xf32> to vector<1x128xf32>
    %20 = vector.broadcast %18 : vector<64x1xf32> to vector<64x128xf32>
    %21 = vector.broadcast %19 : vector<1x128xf32> to vector<64x128xf32>
    %22 = arith.addf %20, %21 : vector<64x128xf32>
    %cst_17 = arith.constant 2.000000e-01 : f32
    %23 = vector.broadcast %cst_17 : f32 to vector<64x128xf32>
    %24 = arith.mulf %23, %22 : vector<64x128xf32>
    %25 = arith.maximumf %22, %24 : vector<64x128xf32>
    %26 = arith.addf %25, %3 : vector<64x128xf32>
    %cst_18 = arith.constant dense<0xFF800000> : vector<64xf32>
    %27 = vector.multi_reduction <maximumf>, %26, %cst_18 [1] : vector<64x128xf32> to vector<64xf32>
    %28 = vector.shape_cast %27 : vector<64xf32> to vector<64x1xf32>
    %29 = vector.broadcast %28 : vector<64x1xf32> to vector<64x128xf32>
    %30 = arith.subf %26, %29 : vector<64x128xf32>
    %31 = math.exp %30 : vector<64x128xf32>
    %cst_19 = arith.constant dense<0.000000e+00> : vector<64xf32>
    %32 = vector.multi_reduction <add>, %31, %cst_19 [1] : vector<64x128xf32> to vector<64xf32>
    %33 = vector.shape_cast %32 : vector<64xf32> to vector<64x1xf32>
    %34 = tpu.reciprocal %33 {approx = true} : vector<64x1xf32> -> vector<64x1xf32>
    %35 = vector.broadcast %34 : vector<64x1xf32> to vector<64x128xf32>
    %36 = arith.mulf %31, %35 : vector<64x128xf32>
    %37 = arith.truncf %36 : vector<64x128xf32> to vector<64x128xbf16>
    %c0_20 = arith.constant 0 : index
    %c0_21 = arith.constant 0 : index
    %38 = vector.load %arg19[%c0_20, %c0_21] : memref<64x1024xbf16, #tpu.memory_space<vmem>>, vector<64x128xbf16>
    tpu.vector_store %arg19[%c0_20, %c0_21], %37 {strides = array<i32>} : memref<64x1024xbf16, #tpu.memory_space<vmem>>, vector<64x128xbf16>,
    %c1 = arith.constant 1 : index
    %c0_22 = arith.constant 0 : index
    %c0_23 = arith.constant 0 : index
    %39 = vector.load %arg4[%c1, %c0_22, %c0_23] : memref<8x16x32xbf16, #tpu.memory_space<vmem>>, vector<1x16x32xbf16>
    %40 = vector.shape_cast %39 : vector<1x16x32xbf16> to vector<16x32xbf16>
    %cst_24 = arith.constant dense<0.000000e+00> : vector<64x32xf32>
    %41 = tpu.matmul %5, %40, %cst_24 {dimension_numbers = #tpu.dot_dimension_numbers<[1], [0], [0], [1], [0, 0, 1, 1], [], []>} : vector<64x16xbf16>, vector<16x32xbf16>, vector<64x32xf32> -> vector<64x32xf32>
    %42 = arith.truncf %41 : vector<64x32xf32> to vector<64x32xbf16>
    %c128 = arith.constant 128 : index
    %c0_25 = arith.constant 0 : index
    %43 = vector.load %arg20[%c128, %c0_25] : memref<1024x32xbf16, #tpu.memory_space<vmem>>, vector<64x32xbf16>
    tpu.vector_store %arg20[%c128, %c0_25], %42 {strides = array<i32>} : memref<1024x32xbf16, #tpu.memory_space<vmem>>, vector<64x32xbf16>,
    %44 = vector.extract_strided_slice %8 {offsets = [0, 1], sizes = [64, 1], strides = [1, 1]} : vector<64x8xf32> to vector<64x1xf32>
    %45 = vector.extract_strided_slice %12 {offsets = [1, 0], sizes = [1, 128], strides = [1, 1]} : vector<8x128xf32> to vector<1x128xf32>
    %46 = vector.broadcast %44 : vector<64x1xf32> to vector<64x128xf32>
    %47 = vector.broadcast %45 : vector<1x128xf32> to vector<64x128xf32>
    %48 = arith.addf %46, %47 : vector<64x128xf32>
    %cst_26 = arith.constant 2.000000e-01 : f32
    %49 = vector.broadcast %cst_26 : f32 to vector<64x128xf32>
    %50 = arith.mulf %49, %48 : vector<64x128xf32>
    %51 = arith.maximumf %48, %50 : vector<64x128xf32>
    %52 = arith.addf %51, %3 : vector<64x128xf32>
    %cst_27 = arith.constant dense<0xFF800000> : vector<64xf32>
    %53 = vector.multi_reduction <maximumf>, %52, %cst_27 [1] : vector<64x128xf32> to vector<64xf32>
    %54 = vector.shape_cast %53 : vector<64xf32> to vector<64x1xf32>
    %55 = vector.broadcast %54 : vector<64x1xf32> to vector<64x128xf32>
    %56 = arith.subf %52, %55 : vector<64x128xf32>
    %57 = math.exp %56 : vector<64x128xf32>
    %cst_28 = arith.constant dense<0.000000e+00> : vector<64xf32>
    %58 = vector.multi_reduction <add>, %57, %cst_28 [1] : vector<64x128xf32> to vector<64xf32>
    %59 = vector.shape_cast %58 : vector<64xf32> to vector<64x1xf32>
    %60 = tpu.reciprocal %59 {approx = true} : vector<64x1xf32> -> vector<64x1xf32>
    %61 = vector.broadcast %60 : vector<64x1xf32> to vector<64x128xf32>
    %62 = arith.mulf %57, %61 : vector<64x128xf32>
    %63 = arith.truncf %62 : vector<64x128xf32> to vector<64x128xbf16>
    %c0_29 = arith.constant 0 : index
    %c128_30 = arith.constant 128 : index
    %64 = vector.load %arg19[%c0_29, %c128_30] : memref<64x1024xbf16, #tpu.memory_space<vmem>>, vector<64x128xbf16>
    tpu.vector_store %arg19[%c0_29, %c128_30], %63 {strides = array<i32>} : memref<64x1024xbf16, #tpu.memory_space<vmem>>, vector<64x128xbf16>,
    %c2 = arith.constant 2 : index
    %c0_31 = arith.constant 0 : index
    %c0_32 = arith.constant 0 : index
    %65 = vector.load %arg4[%c2, %c0_31, %c0_32] : memref<8x16x32xbf16, #tpu.memory_space<vmem>>, vector<1x16x32xbf16>
    %66 = vector.shape_cast %65 : vector<1x16x32xbf16> to vector<16x32xbf16>
    %cst_33 = arith.constant dense<0.000000e+00> : vector<64x32xf32>
    %67 = tpu.matmul %5, %66, %cst_33 {dimension_numbers = #tpu.dot_dimension_numbers<[1], [0], [0], [1], [0, 0, 1, 1], [], []>} : vector<64x16xbf16>, vector<16x32xbf16>, vector<64x32xf32> -> vector<64x32xf32>
    %68 = arith.truncf %67 : vector<64x32xf32> to vector<64x32xbf16>
    %c256 = arith.constant 256 : index
    %c0_34 = arith.constant 0 : index
    %69 = vector.load %arg20[%c256, %c0_34] : memref<1024x32xbf16, #tpu.memory_space<vmem>>, vector<64x32xbf16>
    tpu.vector_store %arg20[%c256, %c0_34], %68 {strides = array<i32>} : memref<1024x32xbf16, #tpu.memory_space<vmem>>, vector<64x32xbf16>,
    %70 = vector.extract_strided_slice %8 {offsets = [0, 2], sizes = [64, 1], strides = [1, 1]} : vector<64x8xf32> to vector<64x1xf32>
    %71 = vector.extract_strided_slice %12 {offsets = [2, 0], sizes = [1, 128], strides = [1, 1]} : vector<8x128xf32> to vector<1x128xf32>
    %72 = vector.broadcast %70 : vector<64x1xf32> to vector<64x128xf32>
    %73 = vector.broadcast %71 : vector<1x128xf32> to vector<64x128xf32>
    %74 = arith.addf %72, %73 : vector<64x128xf32>
    %cst_35 = arith.constant 2.000000e-01 : f32
    %75 = vector.broadcast %cst_35 : f32 to vector<64x128xf32>
    %76 = arith.mulf %75, %74 : vector<64x128xf32>
    %77 = arith.maximumf %74, %76 : vector<64x128xf32>
    %78 = arith.addf %77, %3 : vector<64x128xf32>
    %cst_36 = arith.constant dense<0xFF800000> : vector<64xf32>
    %79 = vector.multi_reduction <maximumf>, %78, %cst_36 [1] : vector<64x128xf32> to vector<64xf32>
    %80 = vector.shape_cast %79 : vector<64xf32> to vector<64x1xf32>
    %81 = vector.broadcast %80 : vector<64x1xf32> to vector<64x128xf32>
    %82 = arith.subf %78, %81 : vector<64x128xf32>
    %83 = math.exp %82 : vector<64x128xf32>
    %cst_37 = arith.constant dense<0.000000e+00> : vector<64xf32>
    %84 = vector.multi_reduction <add>, %83, %cst_37 [1] : vector<64x128xf32> to vector<64xf32>
    %85 = vector.shape_cast %84 : vector<64xf32> to vector<64x1xf32>
    %86 = tpu.reciprocal %85 {approx = true} : vector<64x1xf32> -> vector<64x1xf32>
    %87 = vector.broadcast %86 : vector<64x1xf32> to vector<64x128xf32>
    %88 = arith.mulf %83, %87 : vector<64x128xf32>
    %89 = arith.truncf %88 : vector<64x128xf32> to vector<64x128xbf16>
    %c0_38 = arith.constant 0 : index
    %c256_39 = arith.constant 256 : index
    %90 = vector.load %arg19[%c0_38, %c256_39] : memref<64x1024xbf16, #tpu.memory_space<vmem>>, vector<64x128xbf16>
    tpu.vector_store %arg19[%c0_38, %c256_39], %89 {strides = array<i32>} : memref<64x1024xbf16, #tpu.memory_space<vmem>>, vector<64x128xbf16>,
    %c3 = arith.constant 3 : index
    %c0_40 = arith.constant 0 : index
    %c0_41 = arith.constant 0 : index
    %91 = vector.load %arg4[%c3, %c0_40, %c0_41] : memref<8x16x32xbf16, #tpu.memory_space<vmem>>, vector<1x16x32xbf16>
    %92 = vector.shape_cast %91 : vector<1x16x32xbf16> to vector<16x32xbf16>
    %cst_42 = arith.constant dense<0.000000e+00> : vector<64x32xf32>
    %93 = tpu.matmul %5, %92, %cst_42 {dimension_numbers = #tpu.dot_dimension_numbers<[1], [0], [0], [1], [0, 0, 1, 1], [], []>} : vector<64x16xbf16>, vector<16x32xbf16>, vector<64x32xf32> -> vector<64x32xf32>
    %94 = arith.truncf %93 : vector<64x32xf32> to vector<64x32xbf16>
    %c384 = arith.constant 384 : index
    %c0_43 = arith.constant 0 : index
    %95 = vector.load %arg20[%c384, %c0_43] : memref<1024x32xbf16, #tpu.memory_space<vmem>>, vector<64x32xbf16>
    tpu.vector_store %arg20[%c384, %c0_43], %94 {strides = array<i32>} : memref<1024x32xbf16, #tpu.memory_space<vmem>>, vector<64x32xbf16>,
    %96 = vector.extract_strided_slice %8 {offsets = [0, 3], sizes = [64, 1], strides = [1, 1]} : vector<64x8xf32> to vector<64x1xf32>
    %97 = vector.extract_strided_slice %12 {offsets = [3, 0], sizes = [1, 128], strides = [1, 1]} : vector<8x128xf32> to vector<1x128xf32>
    %98 = vector.broadcast %96 : vector<64x1xf32> to vector<64x128xf32>
    %99 = vector.broadcast %97 : vector<1x128xf32> to vector<64x128xf32>
    %100 = arith.addf %98, %99 : vector<64x128xf32>
    %cst_44 = arith.constant 2.000000e-01 : f32
    %101 = vector.broadcast %cst_44 : f32 to vector<64x128xf32>
    %102 = arith.mulf %101, %100 : vector<64x128xf32>
    %103 = arith.maximumf %100, %102 : vector<64x128xf32>
    %104 = arith.addf %103, %3 : vector<64x128xf32>
    %cst_45 = arith.constant dense<0xFF800000> : vector<64xf32>
    %105 = vector.multi_reduction <maximumf>, %104, %cst_45 [1] : vector<64x128xf32> to vector<64xf32>
    %106 = vector.shape_cast %105 : vector<64xf32> to vector<64x1xf32>
    %107 = vector.broadcast %106 : vector<64x1xf32> to vector<64x128xf32>
    %108 = arith.subf %104, %107 : vector<64x128xf32>
    %109 = math.exp %108 : vector<64x128xf32>
    %cst_46 = arith.constant dense<0.000000e+00> : vector<64xf32>
    %110 = vector.multi_reduction <add>, %109, %cst_46 [1] : vector<64x128xf32> to vector<64xf32>
    %111 = vector.shape_cast %110 : vector<64xf32> to vector<64x1xf32>
    %112 = tpu.reciprocal %111 {approx = true} : vector<64x1xf32> -> vector<64x1xf32>
    %113 = vector.broadcast %112 : vector<64x1xf32> to vector<64x128xf32>
    %114 = arith.mulf %109, %113 : vector<64x128xf32>
    %115 = arith.truncf %114 : vector<64x128xf32> to vector<64x128xbf16>
    %c0_47 = arith.constant 0 : index
    %c384_48 = arith.constant 384 : index
    %116 = vector.load %arg19[%c0_47, %c384_48] : memref<64x1024xbf16, #tpu.memory_space<vmem>>, vector<64x128xbf16>
    tpu.vector_store %arg19[%c0_47, %c384_48], %115 {strides = array<i32>} : memref<64x1024xbf16, #tpu.memory_space<vmem>>, vector<64x128xbf16>,
    %c4 = arith.constant 4 : index
    %c0_49 = arith.constant 0 : index
    %c0_50 = arith.constant 0 : index
    %117 = vector.load %arg4[%c4, %c0_49, %c0_50] : memref<8x16x32xbf16, #tpu.memory_space<vmem>>, vector<1x16x32xbf16>
    %118 = vector.shape_cast %117 : vector<1x16x32xbf16> to vector<16x32xbf16>
    %cst_51 = arith.constant dense<0.000000e+00> : vector<64x32xf32>
    %119 = tpu.matmul %5, %118, %cst_51 {dimension_numbers = #tpu.dot_dimension_numbers<[1], [0], [0], [1], [0, 0, 1, 1], [], []>} : vector<64x16xbf16>, vector<16x32xbf16>, vector<64x32xf32> -> vector<64x32xf32>
    %120 = arith.truncf %119 : vector<64x32xf32> to vector<64x32xbf16>
    %c512 = arith.constant 512 : index
    %c0_52 = arith.constant 0 : index
    %121 = vector.load %arg20[%c512, %c0_52] : memref<1024x32xbf16, #tpu.memory_space<vmem>>, vector<64x32xbf16>
    tpu.vector_store %arg20[%c512, %c0_52], %120 {strides = array<i32>} : memref<1024x32xbf16, #tpu.memory_space<vmem>>, vector<64x32xbf16>,
    %122 = vector.extract_strided_slice %8 {offsets = [0, 4], sizes = [64, 1], strides = [1, 1]} : vector<64x8xf32> to vector<64x1xf32>
    %123 = vector.extract_strided_slice %12 {offsets = [4, 0], sizes = [1, 128], strides = [1, 1]} : vector<8x128xf32> to vector<1x128xf32>
    %124 = vector.broadcast %122 : vector<64x1xf32> to vector<64x128xf32>
    %125 = vector.broadcast %123 : vector<1x128xf32> to vector<64x128xf32>
    %126 = arith.addf %124, %125 : vector<64x128xf32>
    %cst_53 = arith.constant 2.000000e-01 : f32
    %127 = vector.broadcast %cst_53 : f32 to vector<64x128xf32>
    %128 = arith.mulf %127, %126 : vector<64x128xf32>
    %129 = arith.maximumf %126, %128 : vector<64x128xf32>
    %130 = arith.addf %129, %3 : vector<64x128xf32>
    %cst_54 = arith.constant dense<0xFF800000> : vector<64xf32>
    %131 = vector.multi_reduction <maximumf>, %130, %cst_54 [1] : vector<64x128xf32> to vector<64xf32>
    %132 = vector.shape_cast %131 : vector<64xf32> to vector<64x1xf32>
    %133 = vector.broadcast %132 : vector<64x1xf32> to vector<64x128xf32>
    %134 = arith.subf %130, %133 : vector<64x128xf32>
    %135 = math.exp %134 : vector<64x128xf32>
    %cst_55 = arith.constant dense<0.000000e+00> : vector<64xf32>
    %136 = vector.multi_reduction <add>, %135, %cst_55 [1] : vector<64x128xf32> to vector<64xf32>
    %137 = vector.shape_cast %136 : vector<64xf32> to vector<64x1xf32>
    %138 = tpu.reciprocal %137 {approx = true} : vector<64x1xf32> -> vector<64x1xf32>
    %139 = vector.broadcast %138 : vector<64x1xf32> to vector<64x128xf32>
    %140 = arith.mulf %135, %139 : vector<64x128xf32>
    %141 = arith.truncf %140 : vector<64x128xf32> to vector<64x128xbf16>
    %c0_56 = arith.constant 0 : index
    %c512_57 = arith.constant 512 : index
    %142 = vector.load %arg19[%c0_56, %c512_57] : memref<64x1024xbf16, #tpu.memory_space<vmem>>, vector<64x128xbf16>
    tpu.vector_store %arg19[%c0_56, %c512_57], %141 {strides = array<i32>} : memref<64x1024xbf16, #tpu.memory_space<vmem>>, vector<64x128xbf16>,
    %c5 = arith.constant 5 : index
    %c0_58 = arith.constant 0 : index
    %c0_59 = arith.constant 0 : index
    %143 = vector.load %arg4[%c5, %c0_58, %c0_59] : memref<8x16x32xbf16, #tpu.memory_space<vmem>>, vector<1x16x32xbf16>
    %144 = vector.shape_cast %143 : vector<1x16x32xbf16> to vector<16x32xbf16>
    %cst_60 = arith.constant dense<0.000000e+00> : vector<64x32xf32>
    %145 = tpu.matmul %5, %144, %cst_60 {dimension_numbers = #tpu.dot_dimension_numbers<[1], [0], [0], [1], [0, 0, 1, 1], [], []>} : vector<64x16xbf16>, vector<16x32xbf16>, vector<64x32xf32> -> vector<64x32xf32>
    %146 = arith.truncf %145 : vector<64x32xf32> to vector<64x32xbf16>
    %c640 = arith.constant 640 : index
    %c0_61 = arith.constant 0 : index
    %147 = vector.load %arg20[%c640, %c0_61] : memref<1024x32xbf16, #tpu.memory_space<vmem>>, vector<64x32xbf16>
    tpu.vector_store %arg20[%c640, %c0_61], %146 {strides = array<i32>} : memref<1024x32xbf16, #tpu.memory_space<vmem>>, vector<64x32xbf16>,
    %148 = vector.extract_strided_slice %8 {offsets = [0, 5], sizes = [64, 1], strides = [1, 1]} : vector<64x8xf32> to vector<64x1xf32>
    %149 = vector.extract_strided_slice %12 {offsets = [5, 0], sizes = [1, 128], strides = [1, 1]} : vector<8x128xf32> to vector<1x128xf32>
    %150 = vector.broadcast %148 : vector<64x1xf32> to vector<64x128xf32>
    %151 = vector.broadcast %149 : vector<1x128xf32> to vector<64x128xf32>
    %152 = arith.addf %150, %151 : vector<64x128xf32>
    %cst_62 = arith.constant 2.000000e-01 : f32
    %153 = vector.broadcast %cst_62 : f32 to vector<64x128xf32>
    %154 = arith.mulf %153, %152 : vector<64x128xf32>
    %155 = arith.maximumf %152, %154 : vector<64x128xf32>
    %156 = arith.addf %155, %3 : vector<64x128xf32>
    %cst_63 = arith.constant dense<0xFF800000> : vector<64xf32>
    %157 = vector.multi_reduction <maximumf>, %156, %cst_63 [1] : vector<64x128xf32> to vector<64xf32>
    %158 = vector.shape_cast %157 : vector<64xf32> to vector<64x1xf32>
    %159 = vector.broadcast %158 : vector<64x1xf32> to vector<64x128xf32>
    %160 = arith.subf %156, %159 : vector<64x128xf32>
    %161 = math.exp %160 : vector<64x128xf32>
    %cst_64 = arith.constant dense<0.000000e+00> : vector<64xf32>
    %162 = vector.multi_reduction <add>, %161, %cst_64 [1] : vector<64x128xf32> to vector<64xf32>
    %163 = vector.shape_cast %162 : vector<64xf32> to vector<64x1xf32>
    %164 = tpu.reciprocal %163 {approx = true} : vector<64x1xf32> -> vector<64x1xf32>
    %165 = vector.broadcast %164 : vector<64x1xf32> to vector<64x128xf32>
    %166 = arith.mulf %161, %165 : vector<64x128xf32>
    %167 = arith.truncf %166 : vector<64x128xf32> to vector<64x128xbf16>
    %c0_65 = arith.constant 0 : index
    %c640_66 = arith.constant 640 : index
    %168 = vector.load %arg19[%c0_65, %c640_66] : memref<64x1024xbf16, #tpu.memory_space<vmem>>, vector<64x128xbf16>
    tpu.vector_store %arg19[%c0_65, %c640_66], %167 {strides = array<i32>} : memref<64x1024xbf16, #tpu.memory_space<vmem>>, vector<64x128xbf16>,
    %c6 = arith.constant 6 : index
    %c0_67 = arith.constant 0 : index
    %c0_68 = arith.constant 0 : index
    %169 = vector.load %arg4[%c6, %c0_67, %c0_68] : memref<8x16x32xbf16, #tpu.memory_space<vmem>>, vector<1x16x32xbf16>
    %170 = vector.shape_cast %169 : vector<1x16x32xbf16> to vector<16x32xbf16>
    %cst_69 = arith.constant dense<0.000000e+00> : vector<64x32xf32>
    %171 = tpu.matmul %5, %170, %cst_69 {dimension_numbers = #tpu.dot_dimension_numbers<[1], [0], [0], [1], [0, 0, 1, 1], [], []>} : vector<64x16xbf16>, vector<16x32xbf16>, vector<64x32xf32> -> vector<64x32xf32>
    %172 = arith.truncf %171 : vector<64x32xf32> to vector<64x32xbf16>
    %c768 = arith.constant 768 : index
    %c0_70 = arith.constant 0 : index
    %173 = vector.load %arg20[%c768, %c0_70] : memref<1024x32xbf16, #tpu.memory_space<vmem>>, vector<64x32xbf16>
    tpu.vector_store %arg20[%c768, %c0_70], %172 {strides = array<i32>} : memref<1024x32xbf16, #tpu.memory_space<vmem>>, vector<64x32xbf16>,
    %174 = vector.extract_strided_slice %8 {offsets = [0, 6], sizes = [64, 1], strides = [1, 1]} : vector<64x8xf32> to vector<64x1xf32>
    %175 = vector.extract_strided_slice %12 {offsets = [6, 0], sizes = [1, 128], strides = [1, 1]} : vector<8x128xf32> to vector<1x128xf32>
    %176 = vector.broadcast %174 : vector<64x1xf32> to vector<64x128xf32>
    %177 = vector.broadcast %175 : vector<1x128xf32> to vector<64x128xf32>
    %178 = arith.addf %176, %177 : vector<64x128xf32>
    %cst_71 = arith.constant 2.000000e-01 : f32
    %179 = vector.broadcast %cst_71 : f32 to vector<64x128xf32>
    %180 = arith.mulf %179, %178 : vector<64x128xf32>
    %181 = arith.maximumf %178, %180 : vector<64x128xf32>
    %182 = arith.addf %181, %3 : vector<64x128xf32>
    %cst_72 = arith.constant dense<0xFF800000> : vector<64xf32>
    %183 = vector.multi_reduction <maximumf>, %182, %cst_72 [1] : vector<64x128xf32> to vector<64xf32>
    %184 = vector.shape_cast %183 : vector<64xf32> to vector<64x1xf32>
    %185 = vector.broadcast %184 : vector<64x1xf32> to vector<64x128xf32>
    %186 = arith.subf %182, %185 : vector<64x128xf32>
    %187 = math.exp %186 : vector<64x128xf32>
    %cst_73 = arith.constant dense<0.000000e+00> : vector<64xf32>
    %188 = vector.multi_reduction <add>, %187, %cst_73 [1] : vector<64x128xf32> to vector<64xf32>
    %189 = vector.shape_cast %188 : vector<64xf32> to vector<64x1xf32>
    %190 = tpu.reciprocal %189 {approx = true} : vector<64x1xf32> -> vector<64x1xf32>
    %191 = vector.broadcast %190 : vector<64x1xf32> to vector<64x128xf32>
    %192 = arith.mulf %187, %191 : vector<64x128xf32>
    %193 = arith.truncf %192 : vector<64x128xf32> to vector<64x128xbf16>
    %c0_74 = arith.constant 0 : index
    %c768_75 = arith.constant 768 : index
    %194 = vector.load %arg19[%c0_74, %c768_75] : memref<64x1024xbf16, #tpu.memory_space<vmem>>, vector<64x128xbf16>
    tpu.vector_store %arg19[%c0_74, %c768_75], %193 {strides = array<i32>} : memref<64x1024xbf16, #tpu.memory_space<vmem>>, vector<64x128xbf16>,
    %c7 = arith.constant 7 : index
    %c0_76 = arith.constant 0 : index
    %c0_77 = arith.constant 0 : index
    %195 = vector.load %arg4[%c7, %c0_76, %c0_77] : memref<8x16x32xbf16, #tpu.memory_space<vmem>>, vector<1x16x32xbf16>
    %196 = vector.shape_cast %195 : vector<1x16x32xbf16> to vector<16x32xbf16>
    %cst_78 = arith.constant dense<0.000000e+00> : vector<64x32xf32>
    %197 = tpu.matmul %5, %196, %cst_78 {dimension_numbers = #tpu.dot_dimension_numbers<[1], [0], [0], [1], [0, 0, 1, 1], [], []>} : vector<64x16xbf16>, vector<16x32xbf16>, vector<64x32xf32> -> vector<64x32xf32>
    %198 = arith.truncf %197 : vector<64x32xf32> to vector<64x32xbf16>
    %c896 = arith.constant 896 : index
    %c0_79 = arith.constant 0 : index
    %199 = vector.load %arg20[%c896, %c0_79] : memref<1024x32xbf16, #tpu.memory_space<vmem>>, vector<64x32xbf16>
    tpu.vector_store %arg20[%c896, %c0_79], %198 {strides = array<i32>} : memref<1024x32xbf16, #tpu.memory_space<vmem>>, vector<64x32xbf16>,
    %200 = vector.extract_strided_slice %8 {offsets = [0, 7], sizes = [64, 1], strides = [1, 1]} : vector<64x8xf32> to vector<64x1xf32>
    %201 = vector.extract_strided_slice %12 {offsets = [7, 0], sizes = [1, 128], strides = [1, 1]} : vector<8x128xf32> to vector<1x128xf32>
    %202 = vector.broadcast %200 : vector<64x1xf32> to vector<64x128xf32>
    %203 = vector.broadcast %201 : vector<1x128xf32> to vector<64x128xf32>
    %204 = arith.addf %202, %203 : vector<64x128xf32>
    %cst_80 = arith.constant 2.000000e-01 : f32
    %205 = vector.broadcast %cst_80 : f32 to vector<64x128xf32>
    %206 = arith.mulf %205, %204 : vector<64x128xf32>
    %207 = arith.maximumf %204, %206 : vector<64x128xf32>
    %208 = arith.addf %207, %3 : vector<64x128xf32>
    %cst_81 = arith.constant dense<0xFF800000> : vector<64xf32>
    %209 = vector.multi_reduction <maximumf>, %208, %cst_81 [1] : vector<64x128xf32> to vector<64xf32>
    %210 = vector.shape_cast %209 : vector<64xf32> to vector<64x1xf32>
    %211 = vector.broadcast %210 : vector<64x1xf32> to vector<64x128xf32>
    %212 = arith.subf %208, %211 : vector<64x128xf32>
    %213 = math.exp %212 : vector<64x128xf32>
    %cst_82 = arith.constant dense<0.000000e+00> : vector<64xf32>
    %214 = vector.multi_reduction <add>, %213, %cst_82 [1] : vector<64x128xf32> to vector<64xf32>
    %215 = vector.shape_cast %214 : vector<64xf32> to vector<64x1xf32>
    %216 = tpu.reciprocal %215 {approx = true} : vector<64x1xf32> -> vector<64x1xf32>
    %217 = vector.broadcast %216 : vector<64x1xf32> to vector<64x128xf32>
    %218 = arith.mulf %213, %217 : vector<64x128xf32>
    %219 = arith.truncf %218 : vector<64x128xf32> to vector<64x128xbf16>
    %c0_83 = arith.constant 0 : index
    %c896_84 = arith.constant 896 : index
    %220 = vector.load %arg19[%c0_83, %c896_84] : memref<64x1024xbf16, #tpu.memory_space<vmem>>, vector<64x128xbf16>
    tpu.vector_store %arg19[%c0_83, %c896_84], %219 {strides = array<i32>} : memref<64x1024xbf16, #tpu.memory_space<vmem>>, vector<64x128xbf16>,
    %c0_85 = arith.constant 0 : index
    %c0_86 = arith.constant 0 : index
    %221 = vector.load %arg19[%c0_85, %c0_86] : memref<64x1024xbf16, #tpu.memory_space<vmem>>, vector<64x1024xbf16>
    %c0_87 = arith.constant 0 : index
    %c0_88 = arith.constant 0 : index
    %222 = vector.load %arg20[%c0_87, %c0_88] : memref<1024x32xbf16, #tpu.memory_space<vmem>>, vector<1024x32xbf16>
    %cst_89 = arith.constant dense<0.000000e+00> : vector<64x32xf32>
    %223 = tpu.matmul %221, %222, %cst_89 {dimension_numbers = #tpu.dot_dimension_numbers<[1], [0], [0], [1], [0, 0, 1, 1], [], []>} : vector<64x1024xbf16>, vector<1024x32xbf16>, vector<64x32xf32> -> vector<64x32xf32>
    %c0_90 = arith.constant 0 : index
    %c0_91 = arith.constant 0 : index
    %224 = vector.load %arg5[%c0_90, %c0_91] : memref<1x32xf32, #tpu.memory_space<vmem>>, vector<1x32xf32>
    %225 = vector.broadcast %224 : vector<1x32xf32> to vector<64x32xf32>
    %226 = arith.mulf %223, %225 : vector<64x32xf32>
    %c0_92 = arith.constant 0 : index
    %c0_93 = arith.constant 0 : index
    %227 = vector.load %arg6[%c0_92, %c0_93] : memref<1x32xf32, #tpu.memory_space<vmem>>, vector<1x32xf32>
    %228 = vector.broadcast %227 : vector<1x32xf32> to vector<64x32xf32>
    %229 = arith.addf %226, %228 : vector<64x32xf32>
    %cst_94 = arith.constant 0.000000e+00 : f32
    %230 = vector.broadcast %cst_94 : f32 to vector<64x32xf32>
    %231 = arith.maximumf %229, %230 : vector<64x32xf32>
    %232 = arith.truncf %231 : vector<64x32xf32> to vector<64x32xbf16>
    %c0_95 = arith.constant 0 : index
    %c0_96 = arith.constant 0 : index
    %233 = vector.load %arg7[%c0_95, %c0_96] : memref<32x16xbf16, #tpu.memory_space<vmem>>, vector<32x16xbf16>
    %cst_97 = arith.constant dense<0.000000e+00> : vector<64x16xf32>
    %234 = tpu.matmul %232, %233, %cst_97 {dimension_numbers = #tpu.dot_dimension_numbers<[1], [0], [0], [1], [0, 0, 1, 1], [], []>} : vector<64x32xbf16>, vector<32x16xbf16>, vector<64x16xf32> -> vector<64x16xf32>
    %235 = vector.extract_strided_slice %234 {offsets = [0, 0], sizes = [64, 8], strides = [1, 1]} : vector<64x16xf32> to vector<64x8xf32>
    %236 = vector.extract_strided_slice %234 {offsets = [0, 8], sizes = [64, 8], strides = [1, 1]} : vector<64x16xf32> to vector<64x8xf32>
    %237 = tpu.transpose %236, [1, 0] : vector<64x8xf32> -> vector<8x64xf32>
    %cst_98 = arith.constant 0.000000e+00 : f32
    %238 = vector.broadcast %cst_98 : f32 to vector<8x64xf32>
    %239 = tpu.concatenate %237, %238 in 1 : vector<8x64xf32>, vector<8x64xf32> -> vector<8x128xf32>
    %c0_99 = arith.constant 0 : index
    %c0_100 = arith.constant 0 : index
    %c0_101 = arith.constant 0 : index
    %240 = vector.load %arg8[%c0_99, %c0_100, %c0_101] : memref<8x32x32xbf16, #tpu.memory_space<vmem>>, vector<1x32x32xbf16>
    %241 = vector.shape_cast %240 : vector<1x32x32xbf16> to vector<32x32xbf16>
    %cst_102 = arith.constant dense<0.000000e+00> : vector<64x32xf32>
    %242 = tpu.matmul %232, %241, %cst_102 {dimension_numbers = #tpu.dot_dimension_numbers<[1], [0], [0], [1], [0, 0, 1, 1], [], []>} : vector<64x32xbf16>, vector<32x32xbf16>, vector<64x32xf32> -> vector<64x32xf32>
    %243 = arith.truncf %242 : vector<64x32xf32> to vector<64x32xbf16>
    %c0_103 = arith.constant 0 : index
    %c0_104 = arith.constant 0 : index
    %244 = vector.load %arg20[%c0_103, %c0_104] : memref<1024x32xbf16, #tpu.memory_space<vmem>>, vector<64x32xbf16>
    tpu.vector_store %arg20[%c0_103, %c0_104], %243 {strides = array<i32>} : memref<1024x32xbf16, #tpu.memory_space<vmem>>, vector<64x32xbf16>,
    %245 = vector.extract_strided_slice %235 {offsets = [0, 0], sizes = [64, 1], strides = [1, 1]} : vector<64x8xf32> to vector<64x1xf32>
    %246 = vector.extract_strided_slice %239 {offsets = [0, 0], sizes = [1, 128], strides = [1, 1]} : vector<8x128xf32> to vector<1x128xf32>
    %247 = vector.broadcast %245 : vector<64x1xf32> to vector<64x128xf32>
    %248 = vector.broadcast %246 : vector<1x128xf32> to vector<64x128xf32>
    %249 = arith.addf %247, %248 : vector<64x128xf32>
    %cst_105 = arith.constant 2.000000e-01 : f32
    %250 = vector.broadcast %cst_105 : f32 to vector<64x128xf32>
    %251 = arith.mulf %250, %249 : vector<64x128xf32>
    %252 = arith.maximumf %249, %251 : vector<64x128xf32>
    %253 = arith.addf %252, %3 : vector<64x128xf32>
    %cst_106 = arith.constant dense<0xFF800000> : vector<64xf32>
    %254 = vector.multi_reduction <maximumf>, %253, %cst_106 [1] : vector<64x128xf32> to vector<64xf32>
    %255 = vector.shape_cast %254 : vector<64xf32> to vector<64x1xf32>
    %256 = vector.broadcast %255 : vector<64x1xf32> to vector<64x128xf32>
    %257 = arith.subf %253, %256 : vector<64x128xf32>
    %258 = math.exp %257 : vector<64x128xf32>
    %cst_107 = arith.constant dense<0.000000e+00> : vector<64xf32>
    %259 = vector.multi_reduction <add>, %258, %cst_107 [1] : vector<64x128xf32> to vector<64xf32>
    %260 = vector.shape_cast %259 : vector<64xf32> to vector<64x1xf32>
    %261 = tpu.reciprocal %260 {approx = true} : vector<64x1xf32> -> vector<64x1xf32>
    %262 = vector.broadcast %261 : vector<64x1xf32> to vector<64x128xf32>
    %263 = arith.mulf %258, %262 : vector<64x128xf32>
    %264 = arith.truncf %263 : vector<64x128xf32> to vector<64x128xbf16>
    %c0_108 = arith.constant 0 : index
    %c0_109 = arith.constant 0 : index
    %265 = vector.load %arg19[%c0_108, %c0_109] : memref<64x1024xbf16, #tpu.memory_space<vmem>>, vector<64x128xbf16>
    tpu.vector_store %arg19[%c0_108, %c0_109], %264 {strides = array<i32>} : memref<64x1024xbf16, #tpu.memory_space<vmem>>, vector<64x128xbf16>,
    %c1_110 = arith.constant 1 : index
    %c0_111 = arith.constant 0 : index
    %c0_112 = arith.constant 0 : index
    %266 = vector.load %arg8[%c1_110, %c0_111, %c0_112] : memref<8x32x32xbf16, #tpu.memory_space<vmem>>, vector<1x32x32xbf16>
    %267 = vector.shape_cast %266 : vector<1x32x32xbf16> to vector<32x32xbf16>
    %cst_113 = arith.constant dense<0.000000e+00> : vector<64x32xf32>
    %268 = tpu.matmul %232, %267, %cst_113 {dimension_numbers = #tpu.dot_dimension_numbers<[1], [0], [0], [1], [0, 0, 1, 1], [], []>} : vector<64x32xbf16>, vector<32x32xbf16>, vector<64x32xf32> -> vector<64x32xf32>
    %269 = arith.truncf %268 : vector<64x32xf32> to vector<64x32xbf16>
    %c128_114 = arith.constant 128 : index
    %c0_115 = arith.constant 0 : index
    %270 = vector.load %arg20[%c128_114, %c0_115] : memref<1024x32xbf16, #tpu.memory_space<vmem>>, vector<64x32xbf16>
    tpu.vector_store %arg20[%c128_114, %c0_115], %269 {strides = array<i32>} : memref<1024x32xbf16, #tpu.memory_space<vmem>>, vector<64x32xbf16>,
    %271 = vector.extract_strided_slice %235 {offsets = [0, 1], sizes = [64, 1], strides = [1, 1]} : vector<64x8xf32> to vector<64x1xf32>
    %272 = vector.extract_strided_slice %239 {offsets = [1, 0], sizes = [1, 128], strides = [1, 1]} : vector<8x128xf32> to vector<1x128xf32>
    %273 = vector.broadcast %271 : vector<64x1xf32> to vector<64x128xf32>
    %274 = vector.broadcast %272 : vector<1x128xf32> to vector<64x128xf32>
    %275 = arith.addf %273, %274 : vector<64x128xf32>
    %cst_116 = arith.constant 2.000000e-01 : f32
    %276 = vector.broadcast %cst_116 : f32 to vector<64x128xf32>
    %277 = arith.mulf %276, %275 : vector<64x128xf32>
    %278 = arith.maximumf %275, %277 : vector<64x128xf32>
    %279 = arith.addf %278, %3 : vector<64x128xf32>
    %cst_117 = arith.constant dense<0xFF800000> : vector<64xf32>
    %280 = vector.multi_reduction <maximumf>, %279, %cst_117 [1] : vector<64x128xf32> to vector<64xf32>
    %281 = vector.shape_cast %280 : vector<64xf32> to vector<64x1xf32>
    %282 = vector.broadcast %281 : vector<64x1xf32> to vector<64x128xf32>
    %283 = arith.subf %279, %282 : vector<64x128xf32>
    %284 = math.exp %283 : vector<64x128xf32>
    %cst_118 = arith.constant dense<0.000000e+00> : vector<64xf32>
    %285 = vector.multi_reduction <add>, %284, %cst_118 [1] : vector<64x128xf32> to vector<64xf32>
    %286 = vector.shape_cast %285 : vector<64xf32> to vector<64x1xf32>
    %287 = tpu.reciprocal %286 {approx = true} : vector<64x1xf32> -> vector<64x1xf32>
    %288 = vector.broadcast %287 : vector<64x1xf32> to vector<64x128xf32>
    %289 = arith.mulf %284, %288 : vector<64x128xf32>
    %290 = arith.truncf %289 : vector<64x128xf32> to vector<64x128xbf16>
    %c0_119 = arith.constant 0 : index
    %c128_120 = arith.constant 128 : index
    %291 = vector.load %arg19[%c0_119, %c128_120] : memref<64x1024xbf16, #tpu.memory_space<vmem>>, vector<64x128xbf16>
    tpu.vector_store %arg19[%c0_119, %c128_120], %290 {strides = array<i32>} : memref<64x1024xbf16, #tpu.memory_space<vmem>>, vector<64x128xbf16>,
    %c2_121 = arith.constant 2 : index
    %c0_122 = arith.constant 0 : index
    %c0_123 = arith.constant 0 : index
    %292 = vector.load %arg8[%c2_121, %c0_122, %c0_123] : memref<8x32x32xbf16, #tpu.memory_space<vmem>>, vector<1x32x32xbf16>
    %293 = vector.shape_cast %292 : vector<1x32x32xbf16> to vector<32x32xbf16>
    %cst_124 = arith.constant dense<0.000000e+00> : vector<64x32xf32>
    %294 = tpu.matmul %232, %293, %cst_124 {dimension_numbers = #tpu.dot_dimension_numbers<[1], [0], [0], [1], [0, 0, 1, 1], [], []>} : vector<64x32xbf16>, vector<32x32xbf16>, vector<64x32xf32> -> vector<64x32xf32>
    %295 = arith.truncf %294 : vector<64x32xf32> to vector<64x32xbf16>
    %c256_125 = arith.constant 256 : index
    %c0_126 = arith.constant 0 : index
    %296 = vector.load %arg20[%c256_125, %c0_126] : memref<1024x32xbf16, #tpu.memory_space<vmem>>, vector<64x32xbf16>
    tpu.vector_store %arg20[%c256_125, %c0_126], %295 {strides = array<i32>} : memref<1024x32xbf16, #tpu.memory_space<vmem>>, vector<64x32xbf16>,
    %297 = vector.extract_strided_slice %235 {offsets = [0, 2], sizes = [64, 1], strides = [1, 1]} : vector<64x8xf32> to vector<64x1xf32>
    %298 = vector.extract_strided_slice %239 {offsets = [2, 0], sizes = [1, 128], strides = [1, 1]} : vector<8x128xf32> to vector<1x128xf32>
    %299 = vector.broadcast %297 : vector<64x1xf32> to vector<64x128xf32>
    %300 = vector.broadcast %298 : vector<1x128xf32> to vector<64x128xf32>
    %301 = arith.addf %299, %300 : vector<64x128xf32>
    %cst_127 = arith.constant 2.000000e-01 : f32
    %302 = vector.broadcast %cst_127 : f32 to vector<64x128xf32>
    %303 = arith.mulf %302, %301 : vector<64x128xf32>
    %304 = arith.maximumf %301, %303 : vector<64x128xf32>
    %305 = arith.addf %304, %3 : vector<64x128xf32>
    %cst_128 = arith.constant dense<0xFF800000> : vector<64xf32>
    %306 = vector.multi_reduction <maximumf>, %305, %cst_128 [1] : vector<64x128xf32> to vector<64xf32>
    %307 = vector.shape_cast %306 : vector<64xf32> to vector<64x1xf32>
    %308 = vector.broadcast %307 : vector<64x1xf32> to vector<64x128xf32>
    %309 = arith.subf %305, %308 : vector<64x128xf32>
    %310 = math.exp %309 : vector<64x128xf32>
    %cst_129 = arith.constant dense<0.000000e+00> : vector<64xf32>
    %311 = vector.multi_reduction <add>, %310, %cst_129 [1] : vector<64x128xf32> to vector<64xf32>
    %312 = vector.shape_cast %311 : vector<64xf32> to vector<64x1xf32>
    %313 = tpu.reciprocal %312 {approx = true} : vector<64x1xf32> -> vector<64x1xf32>
    %314 = vector.broadcast %313 : vector<64x1xf32> to vector<64x128xf32>
    %315 = arith.mulf %310, %314 : vector<64x128xf32>
    %316 = arith.truncf %315 : vector<64x128xf32> to vector<64x128xbf16>
    %c0_130 = arith.constant 0 : index
    %c256_131 = arith.constant 256 : index
    %317 = vector.load %arg19[%c0_130, %c256_131] : memref<64x1024xbf16, #tpu.memory_space<vmem>>, vector<64x128xbf16>
    tpu.vector_store %arg19[%c0_130, %c256_131], %316 {strides = array<i32>} : memref<64x1024xbf16, #tpu.memory_space<vmem>>, vector<64x128xbf16>,
    %c3_132 = arith.constant 3 : index
    %c0_133 = arith.constant 0 : index
    %c0_134 = arith.constant 0 : index
    %318 = vector.load %arg8[%c3_132, %c0_133, %c0_134] : memref<8x32x32xbf16, #tpu.memory_space<vmem>>, vector<1x32x32xbf16>
    %319 = vector.shape_cast %318 : vector<1x32x32xbf16> to vector<32x32xbf16>
    %cst_135 = arith.constant dense<0.000000e+00> : vector<64x32xf32>
    %320 = tpu.matmul %232, %319, %cst_135 {dimension_numbers = #tpu.dot_dimension_numbers<[1], [0], [0], [1], [0, 0, 1, 1], [], []>} : vector<64x32xbf16>, vector<32x32xbf16>, vector<64x32xf32> -> vector<64x32xf32>
    %321 = arith.truncf %320 : vector<64x32xf32> to vector<64x32xbf16>
    %c384_136 = arith.constant 384 : index
    %c0_137 = arith.constant 0 : index
    %322 = vector.load %arg20[%c384_136, %c0_137] : memref<1024x32xbf16, #tpu.memory_space<vmem>>, vector<64x32xbf16>
    tpu.vector_store %arg20[%c384_136, %c0_137], %321 {strides = array<i32>} : memref<1024x32xbf16, #tpu.memory_space<vmem>>, vector<64x32xbf16>,
    %323 = vector.extract_strided_slice %235 {offsets = [0, 3], sizes = [64, 1], strides = [1, 1]} : vector<64x8xf32> to vector<64x1xf32>
    %324 = vector.extract_strided_slice %239 {offsets = [3, 0], sizes = [1, 128], strides = [1, 1]} : vector<8x128xf32> to vector<1x128xf32>
    %325 = vector.broadcast %323 : vector<64x1xf32> to vector<64x128xf32>
    %326 = vector.broadcast %324 : vector<1x128xf32> to vector<64x128xf32>
    %327 = arith.addf %325, %326 : vector<64x128xf32>
    %cst_138 = arith.constant 2.000000e-01 : f32
    %328 = vector.broadcast %cst_138 : f32 to vector<64x128xf32>
    %329 = arith.mulf %328, %327 : vector<64x128xf32>
    %330 = arith.maximumf %327, %329 : vector<64x128xf32>
    %331 = arith.addf %330, %3 : vector<64x128xf32>
    %cst_139 = arith.constant dense<0xFF800000> : vector<64xf32>
    %332 = vector.multi_reduction <maximumf>, %331, %cst_139 [1] : vector<64x128xf32> to vector<64xf32>
    %333 = vector.shape_cast %332 : vector<64xf32> to vector<64x1xf32>
    %334 = vector.broadcast %333 : vector<64x1xf32> to vector<64x128xf32>
    %335 = arith.subf %331, %334 : vector<64x128xf32>
    %336 = math.exp %335 : vector<64x128xf32>
    %cst_140 = arith.constant dense<0.000000e+00> : vector<64xf32>
    %337 = vector.multi_reduction <add>, %336, %cst_140 [1] : vector<64x128xf32> to vector<64xf32>
    %338 = vector.shape_cast %337 : vector<64xf32> to vector<64x1xf32>
    %339 = tpu.reciprocal %338 {approx = true} : vector<64x1xf32> -> vector<64x1xf32>
    %340 = vector.broadcast %339 : vector<64x1xf32> to vector<64x128xf32>
    %341 = arith.mulf %336, %340 : vector<64x128xf32>
    %342 = arith.truncf %341 : vector<64x128xf32> to vector<64x128xbf16>
    %c0_141 = arith.constant 0 : index
    %c384_142 = arith.constant 384 : index
    %343 = vector.load %arg19[%c0_141, %c384_142] : memref<64x1024xbf16, #tpu.memory_space<vmem>>, vector<64x128xbf16>
    tpu.vector_store %arg19[%c0_141, %c384_142], %342 {strides = array<i32>} : memref<64x1024xbf16, #tpu.memory_space<vmem>>, vector<64x128xbf16>,
    %c4_143 = arith.constant 4 : index
    %c0_144 = arith.constant 0 : index
    %c0_145 = arith.constant 0 : index
    %344 = vector.load %arg8[%c4_143, %c0_144, %c0_145] : memref<8x32x32xbf16, #tpu.memory_space<vmem>>, vector<1x32x32xbf16>
    %345 = vector.shape_cast %344 : vector<1x32x32xbf16> to vector<32x32xbf16>
    %cst_146 = arith.constant dense<0.000000e+00> : vector<64x32xf32>
    %346 = tpu.matmul %232, %345, %cst_146 {dimension_numbers = #tpu.dot_dimension_numbers<[1], [0], [0], [1], [0, 0, 1, 1], [], []>} : vector<64x32xbf16>, vector<32x32xbf16>, vector<64x32xf32> -> vector<64x32xf32>
    %347 = arith.truncf %346 : vector<64x32xf32> to vector<64x32xbf16>
    %c512_147 = arith.constant 512 : index
    %c0_148 = arith.constant 0 : index
    %348 = vector.load %arg20[%c512_147, %c0_148] : memref<1024x32xbf16, #tpu.memory_space<vmem>>, vector<64x32xbf16>
    tpu.vector_store %arg20[%c512_147, %c0_148], %347 {strides = array<i32>} : memref<1024x32xbf16, #tpu.memory_space<vmem>>, vector<64x32xbf16>,
    %349 = vector.extract_strided_slice %235 {offsets = [0, 4], sizes = [64, 1], strides = [1, 1]} : vector<64x8xf32> to vector<64x1xf32>
    %350 = vector.extract_strided_slice %239 {offsets = [4, 0], sizes = [1, 128], strides = [1, 1]} : vector<8x128xf32> to vector<1x128xf32>
    %351 = vector.broadcast %349 : vector<64x1xf32> to vector<64x128xf32>
    %352 = vector.broadcast %350 : vector<1x128xf32> to vector<64x128xf32>
    %353 = arith.addf %351, %352 : vector<64x128xf32>
    %cst_149 = arith.constant 2.000000e-01 : f32
    %354 = vector.broadcast %cst_149 : f32 to vector<64x128xf32>
    %355 = arith.mulf %354, %353 : vector<64x128xf32>
    %356 = arith.maximumf %353, %355 : vector<64x128xf32>
    %357 = arith.addf %356, %3 : vector<64x128xf32>
    %cst_150 = arith.constant dense<0xFF800000> : vector<64xf32>
    %358 = vector.multi_reduction <maximumf>, %357, %cst_150 [1] : vector<64x128xf32> to vector<64xf32>
    %359 = vector.shape_cast %358 : vector<64xf32> to vector<64x1xf32>
    %360 = vector.broadcast %359 : vector<64x1xf32> to vector<64x128xf32>
    %361 = arith.subf %357, %360 : vector<64x128xf32>
    %362 = math.exp %361 : vector<64x128xf32>
    %cst_151 = arith.constant dense<0.000000e+00> : vector<64xf32>
    %363 = vector.multi_reduction <add>, %362, %cst_151 [1] : vector<64x128xf32> to vector<64xf32>
    %364 = vector.shape_cast %363 : vector<64xf32> to vector<64x1xf32>
    %365 = tpu.reciprocal %364 {approx = true} : vector<64x1xf32> -> vector<64x1xf32>
    %366 = vector.broadcast %365 : vector<64x1xf32> to vector<64x128xf32>
    %367 = arith.mulf %362, %366 : vector<64x128xf32>
    %368 = arith.truncf %367 : vector<64x128xf32> to vector<64x128xbf16>
    %c0_152 = arith.constant 0 : index
    %c512_153 = arith.constant 512 : index
    %369 = vector.load %arg19[%c0_152, %c512_153] : memref<64x1024xbf16, #tpu.memory_space<vmem>>, vector<64x128xbf16>
    tpu.vector_store %arg19[%c0_152, %c512_153], %368 {strides = array<i32>} : memref<64x1024xbf16, #tpu.memory_space<vmem>>, vector<64x128xbf16>,
    %c5_154 = arith.constant 5 : index
    %c0_155 = arith.constant 0 : index
    %c0_156 = arith.constant 0 : index
    %370 = vector.load %arg8[%c5_154, %c0_155, %c0_156] : memref<8x32x32xbf16, #tpu.memory_space<vmem>>, vector<1x32x32xbf16>
    %371 = vector.shape_cast %370 : vector<1x32x32xbf16> to vector<32x32xbf16>
    %cst_157 = arith.constant dense<0.000000e+00> : vector<64x32xf32>
    %372 = tpu.matmul %232, %371, %cst_157 {dimension_numbers = #tpu.dot_dimension_numbers<[1], [0], [0], [1], [0, 0, 1, 1], [], []>} : vector<64x32xbf16>, vector<32x32xbf16>, vector<64x32xf32> -> vector<64x32xf32>
    %373 = arith.truncf %372 : vector<64x32xf32> to vector<64x32xbf16>
    %c640_158 = arith.constant 640 : index
    %c0_159 = arith.constant 0 : index
    %374 = vector.load %arg20[%c640_158, %c0_159] : memref<1024x32xbf16, #tpu.memory_space<vmem>>, vector<64x32xbf16>
    tpu.vector_store %arg20[%c640_158, %c0_159], %373 {strides = array<i32>} : memref<1024x32xbf16, #tpu.memory_space<vmem>>, vector<64x32xbf16>,
    %375 = vector.extract_strided_slice %235 {offsets = [0, 5], sizes = [64, 1], strides = [1, 1]} : vector<64x8xf32> to vector<64x1xf32>
    %376 = vector.extract_strided_slice %239 {offsets = [5, 0], sizes = [1, 128], strides = [1, 1]} : vector<8x128xf32> to vector<1x128xf32>
    %377 = vector.broadcast %375 : vector<64x1xf32> to vector<64x128xf32>
    %378 = vector.broadcast %376 : vector<1x128xf32> to vector<64x128xf32>
    %379 = arith.addf %377, %378 : vector<64x128xf32>
    %cst_160 = arith.constant 2.000000e-01 : f32
    %380 = vector.broadcast %cst_160 : f32 to vector<64x128xf32>
    %381 = arith.mulf %380, %379 : vector<64x128xf32>
    %382 = arith.maximumf %379, %381 : vector<64x128xf32>
    %383 = arith.addf %382, %3 : vector<64x128xf32>
    %cst_161 = arith.constant dense<0xFF800000> : vector<64xf32>
    %384 = vector.multi_reduction <maximumf>, %383, %cst_161 [1] : vector<64x128xf32> to vector<64xf32>
    %385 = vector.shape_cast %384 : vector<64xf32> to vector<64x1xf32>
    %386 = vector.broadcast %385 : vector<64x1xf32> to vector<64x128xf32>
    %387 = arith.subf %383, %386 : vector<64x128xf32>
    %388 = math.exp %387 : vector<64x128xf32>
    %cst_162 = arith.constant dense<0.000000e+00> : vector<64xf32>
    %389 = vector.multi_reduction <add>, %388, %cst_162 [1] : vector<64x128xf32> to vector<64xf32>
    %390 = vector.shape_cast %389 : vector<64xf32> to vector<64x1xf32>
    %391 = tpu.reciprocal %390 {approx = true} : vector<64x1xf32> -> vector<64x1xf32>
    %392 = vector.broadcast %391 : vector<64x1xf32> to vector<64x128xf32>
    %393 = arith.mulf %388, %392 : vector<64x128xf32>
    %394 = arith.truncf %393 : vector<64x128xf32> to vector<64x128xbf16>
    %c0_163 = arith.constant 0 : index
    %c640_164 = arith.constant 640 : index
    %395 = vector.load %arg19[%c0_163, %c640_164] : memref<64x1024xbf16, #tpu.memory_space<vmem>>, vector<64x128xbf16>
    tpu.vector_store %arg19[%c0_163, %c640_164], %394 {strides = array<i32>} : memref<64x1024xbf16, #tpu.memory_space<vmem>>, vector<64x128xbf16>,
    %c6_165 = arith.constant 6 : index
    %c0_166 = arith.constant 0 : index
    %c0_167 = arith.constant 0 : index
    %396 = vector.load %arg8[%c6_165, %c0_166, %c0_167] : memref<8x32x32xbf16, #tpu.memory_space<vmem>>, vector<1x32x32xbf16>
    %397 = vector.shape_cast %396 : vector<1x32x32xbf16> to vector<32x32xbf16>
    %cst_168 = arith.constant dense<0.000000e+00> : vector<64x32xf32>
    %398 = tpu.matmul %232, %397, %cst_168 {dimension_numbers = #tpu.dot_dimension_numbers<[1], [0], [0], [1], [0, 0, 1, 1], [], []>} : vector<64x32xbf16>, vector<32x32xbf16>, vector<64x32xf32> -> vector<64x32xf32>
    %399 = arith.truncf %398 : vector<64x32xf32> to vector<64x32xbf16>
    %c768_169 = arith.constant 768 : index
    %c0_170 = arith.constant 0 : index
    %400 = vector.load %arg20[%c768_169, %c0_170] : memref<1024x32xbf16, #tpu.memory_space<vmem>>, vector<64x32xbf16>
    tpu.vector_store %arg20[%c768_169, %c0_170], %399 {strides = array<i32>} : memref<1024x32xbf16, #tpu.memory_space<vmem>>, vector<64x32xbf16>,
    %401 = vector.extract_strided_slice %235 {offsets = [0, 6], sizes = [64, 1], strides = [1, 1]} : vector<64x8xf32> to vector<64x1xf32>
    %402 = vector.extract_strided_slice %239 {offsets = [6, 0], sizes = [1, 128], strides = [1, 1]} : vector<8x128xf32> to vector<1x128xf32>
    %403 = vector.broadcast %401 : vector<64x1xf32> to vector<64x128xf32>
    %404 = vector.broadcast %402 : vector<1x128xf32> to vector<64x128xf32>
    %405 = arith.addf %403, %404 : vector<64x128xf32>
    %cst_171 = arith.constant 2.000000e-01 : f32
    %406 = vector.broadcast %cst_171 : f32 to vector<64x128xf32>
    %407 = arith.mulf %406, %405 : vector<64x128xf32>
    %408 = arith.maximumf %405, %407 : vector<64x128xf32>
    %409 = arith.addf %408, %3 : vector<64x128xf32>
    %cst_172 = arith.constant dense<0xFF800000> : vector<64xf32>
    %410 = vector.multi_reduction <maximumf>, %409, %cst_172 [1] : vector<64x128xf32> to vector<64xf32>
    %411 = vector.shape_cast %410 : vector<64xf32> to vector<64x1xf32>
    %412 = vector.broadcast %411 : vector<64x1xf32> to vector<64x128xf32>
    %413 = arith.subf %409, %412 : vector<64x128xf32>
    %414 = math.exp %413 : vector<64x128xf32>
    %cst_173 = arith.constant dense<0.000000e+00> : vector<64xf32>
    %415 = vector.multi_reduction <add>, %414, %cst_173 [1] : vector<64x128xf32> to vector<64xf32>
    %416 = vector.shape_cast %415 : vector<64xf32> to vector<64x1xf32>
    %417 = tpu.reciprocal %416 {approx = true} : vector<64x1xf32> -> vector<64x1xf32>
    %418 = vector.broadcast %417 : vector<64x1xf32> to vector<64x128xf32>
    %419 = arith.mulf %414, %418 : vector<64x128xf32>
    %420 = arith.truncf %419 : vector<64x128xf32> to vector<64x128xbf16>
    %c0_174 = arith.constant 0 : index
    %c768_175 = arith.constant 768 : index
    %421 = vector.load %arg19[%c0_174, %c768_175] : memref<64x1024xbf16, #tpu.memory_space<vmem>>, vector<64x128xbf16>
    tpu.vector_store %arg19[%c0_174, %c768_175], %420 {strides = array<i32>} : memref<64x1024xbf16, #tpu.memory_space<vmem>>, vector<64x128xbf16>,
    %c7_176 = arith.constant 7 : index
    %c0_177 = arith.constant 0 : index
    %c0_178 = arith.constant 0 : index
    %422 = vector.load %arg8[%c7_176, %c0_177, %c0_178] : memref<8x32x32xbf16, #tpu.memory_space<vmem>>, vector<1x32x32xbf16>
    %423 = vector.shape_cast %422 : vector<1x32x32xbf16> to vector<32x32xbf16>
    %cst_179 = arith.constant dense<0.000000e+00> : vector<64x32xf32>
    %424 = tpu.matmul %232, %423, %cst_179 {dimension_numbers = #tpu.dot_dimension_numbers<[1], [0], [0], [1], [0, 0, 1, 1], [], []>} : vector<64x32xbf16>, vector<32x32xbf16>, vector<64x32xf32> -> vector<64x32xf32>
    %425 = arith.truncf %424 : vector<64x32xf32> to vector<64x32xbf16>
    %c896_180 = arith.constant 896 : index
    %c0_181 = arith.constant 0 : index
    %426 = vector.load %arg20[%c896_180, %c0_181] : memref<1024x32xbf16, #tpu.memory_space<vmem>>, vector<64x32xbf16>
    tpu.vector_store %arg20[%c896_180, %c0_181], %425 {strides = array<i32>} : memref<1024x32xbf16, #tpu.memory_space<vmem>>, vector<64x32xbf16>,
    %427 = vector.extract_strided_slice %235 {offsets = [0, 7], sizes = [64, 1], strides = [1, 1]} : vector<64x8xf32> to vector<64x1xf32>
    %428 = vector.extract_strided_slice %239 {offsets = [7, 0], sizes = [1, 128], strides = [1, 1]} : vector<8x128xf32> to vector<1x128xf32>
    %429 = vector.broadcast %427 : vector<64x1xf32> to vector<64x128xf32>
    %430 = vector.broadcast %428 : vector<1x128xf32> to vector<64x128xf32>
    %431 = arith.addf %429, %430 : vector<64x128xf32>
    %cst_182 = arith.constant 2.000000e-01 : f32
    %432 = vector.broadcast %cst_182 : f32 to vector<64x128xf32>
    %433 = arith.mulf %432, %431 : vector<64x128xf32>
    %434 = arith.maximumf %431, %433 : vector<64x128xf32>
    %435 = arith.addf %434, %3 : vector<64x128xf32>
    %cst_183 = arith.constant dense<0xFF800000> : vector<64xf32>
    %436 = vector.multi_reduction <maximumf>, %435, %cst_183 [1] : vector<64x128xf32> to vector<64xf32>
    %437 = vector.shape_cast %436 : vector<64xf32> to vector<64x1xf32>
    %438 = vector.broadcast %437 : vector<64x1xf32> to vector<64x128xf32>
    %439 = arith.subf %435, %438 : vector<64x128xf32>
    %440 = math.exp %439 : vector<64x128xf32>
    %cst_184 = arith.constant dense<0.000000e+00> : vector<64xf32>
    %441 = vector.multi_reduction <add>, %440, %cst_184 [1] : vector<64x128xf32> to vector<64xf32>
    %442 = vector.shape_cast %441 : vector<64xf32> to vector<64x1xf32>
    %443 = tpu.reciprocal %442 {approx = true} : vector<64x1xf32> -> vector<64x1xf32>
    %444 = vector.broadcast %443 : vector<64x1xf32> to vector<64x128xf32>
    %445 = arith.mulf %440, %444 : vector<64x128xf32>
    %446 = arith.truncf %445 : vector<64x128xf32> to vector<64x128xbf16>
    %c0_185 = arith.constant 0 : index
    %c896_186 = arith.constant 896 : index
    %447 = vector.load %arg19[%c0_185, %c896_186] : memref<64x1024xbf16, #tpu.memory_space<vmem>>, vector<64x128xbf16>
    tpu.vector_store %arg19[%c0_185, %c896_186], %446 {strides = array<i32>} : memref<64x1024xbf16, #tpu.memory_space<vmem>>, vector<64x128xbf16>,
    %c0_187 = arith.constant 0 : index
    %c0_188 = arith.constant 0 : index
    %448 = vector.load %arg19[%c0_187, %c0_188] : memref<64x1024xbf16, #tpu.memory_space<vmem>>, vector<64x1024xbf16>
    %c0_189 = arith.constant 0 : index
    %c0_190 = arith.constant 0 : index
    %449 = vector.load %arg20[%c0_189, %c0_190] : memref<1024x32xbf16, #tpu.memory_space<vmem>>, vector<1024x32xbf16>
    %cst_191 = arith.constant dense<0.000000e+00> : vector<64x32xf32>
    %450 = tpu.matmul %448, %449, %cst_191 {dimension_numbers = #tpu.dot_dimension_numbers<[1], [0], [0], [1], [0, 0, 1, 1], [], []>} : vector<64x1024xbf16>, vector<1024x32xbf16>, vector<64x32xf32> -> vector<64x32xf32>
    %c0_192 = arith.constant 0 : index
    %c0_193 = arith.constant 0 : index
    %451 = vector.load %arg9[%c0_192, %c0_193] : memref<1x32xf32, #tpu.memory_space<vmem>>, vector<1x32xf32>
    %452 = vector.broadcast %451 : vector<1x32xf32> to vector<64x32xf32>
    %453 = arith.mulf %450, %452 : vector<64x32xf32>
    %c0_194 = arith.constant 0 : index
    %c0_195 = arith.constant 0 : index
    %454 = vector.load %arg10[%c0_194, %c0_195] : memref<1x32xf32, #tpu.memory_space<vmem>>, vector<1x32xf32>
    %455 = vector.broadcast %454 : vector<1x32xf32> to vector<64x32xf32>
    %456 = arith.addf %453, %455 : vector<64x32xf32>
    %cst_196 = arith.constant 0.000000e+00 : f32
    %457 = vector.broadcast %cst_196 : f32 to vector<64x32xf32>
    %458 = arith.maximumf %456, %457 : vector<64x32xf32>
    %459 = arith.addf %458, %231 : vector<64x32xf32>
    %460 = arith.truncf %459 : vector<64x32xf32> to vector<64x32xbf16>
    %c0_197 = arith.constant 0 : index
    %c0_198 = arith.constant 0 : index
    %461 = vector.load %arg11[%c0_197, %c0_198] : memref<32x96xbf16, #tpu.memory_space<vmem>>, vector<32x96xbf16>
    %cst_199 = arith.constant dense<0.000000e+00> : vector<64x96xf32>
    %462 = tpu.matmul %460, %461, %cst_199 {dimension_numbers = #tpu.dot_dimension_numbers<[1], [0], [0], [1], [0, 0, 1, 1], [], []>} : vector<64x32xbf16>, vector<32x96xbf16>, vector<64x96xf32> -> vector<64x96xf32>
    %c0_200 = arith.constant 0 : index
    %c0_201 = arith.constant 0 : index
    %463 = vector.load %arg13[%c0_200, %c0_201] : memref<1x96xf32, #tpu.memory_space<vmem>>, vector<1x96xf32>
    %464 = vector.broadcast %463 : vector<1x96xf32> to vector<64x96xf32>
    %465 = arith.addf %462, %464 : vector<64x96xf32>
    %466 = arith.truncf %4 : vector<64x32xf32> to vector<64x32xbf16>
    %c0_202 = arith.constant 0 : index
    %c0_203 = arith.constant 0 : index
    %467 = vector.load %arg12[%c0_202, %c0_203] : memref<32x96xbf16, #tpu.memory_space<vmem>>, vector<32x96xbf16>
    %cst_204 = arith.constant dense<0.000000e+00> : vector<64x96xf32>
    %468 = tpu.matmul %466, %467, %cst_204 {dimension_numbers = #tpu.dot_dimension_numbers<[1], [0], [0], [1], [0, 0, 1, 1], [], []>} : vector<64x32xbf16>, vector<32x96xbf16>, vector<64x96xf32> -> vector<64x96xf32>
    %c0_205 = arith.constant 0 : index
    %c0_206 = arith.constant 0 : index
    %469 = vector.load %arg14[%c0_205, %c0_206] : memref<1x96xf32, #tpu.memory_space<vmem>>, vector<1x96xf32>
    %470 = vector.broadcast %469 : vector<1x96xf32> to vector<64x96xf32>
    %471 = arith.addf %468, %470 : vector<64x96xf32>
    %472 = vector.extract_strided_slice %465 {offsets = [0, 0], sizes = [64, 32], strides = [1, 1]} : vector<64x96xf32> to vector<64x32xf32>
    %473 = vector.extract_strided_slice %471 {offsets = [0, 0], sizes = [64, 32], strides = [1, 1]} : vector<64x96xf32> to vector<64x32xf32>
    %474 = arith.addf %472, %473 : vector<64x32xf32>
    %475 = arith.negf %474 : vector<64x32xf32>
    %476 = math.exp %475 : vector<64x32xf32>
    %cst_207 = arith.constant 1.000000e+00 : f32
    %477 = vector.broadcast %cst_207 : f32 to vector<64x32xf32>
    %478 = arith.addf %477, %476 : vector<64x32xf32>
    %479 = arith.divf %477, %478 : vector<64x32xf32>
    %480 = vector.extract_strided_slice %465 {offsets = [0, 32], sizes = [64, 32], strides = [1, 1]} : vector<64x96xf32> to vector<64x32xf32>
    %481 = vector.extract_strided_slice %471 {offsets = [0, 32], sizes = [64, 32], strides = [1, 1]} : vector<64x96xf32> to vector<64x32xf32>
    %482 = arith.addf %480, %481 : vector<64x32xf32>
    %483 = arith.negf %482 : vector<64x32xf32>
    %484 = math.exp %483 : vector<64x32xf32>
    %cst_208 = arith.constant 1.000000e+00 : f32
    %485 = vector.broadcast %cst_208 : f32 to vector<64x32xf32>
    %486 = arith.addf %485, %484 : vector<64x32xf32>
    %487 = arith.divf %485, %486 : vector<64x32xf32>
    %488 = vector.extract_strided_slice %465 {offsets = [0, 64], sizes = [64, 32], strides = [1, 1]} : vector<64x96xf32> to vector<64x32xf32>
    %489 = vector.extract_strided_slice %471 {offsets = [0, 64], sizes = [64, 32], strides = [1, 1]} : vector<64x96xf32> to vector<64x32xf32>
    %490 = arith.mulf %479, %489 : vector<64x32xf32>
    %491 = arith.addf %488, %490 : vector<64x32xf32>
    %492 = math.tanh %491 : vector<64x32xf32>
    %cst_209 = arith.constant 1.000000e+00 : f32
    %493 = vector.broadcast %cst_209 : f32 to vector<64x32xf32>
    %494 = arith.subf %493, %487 : vector<64x32xf32>
    %495 = arith.mulf %494, %492 : vector<64x32xf32>
    %496 = arith.mulf %487, %4 : vector<64x32xf32>
    %497 = arith.addf %495, %496 : vector<64x32xf32>
    %c0_210 = arith.constant 0 : index
    %c0_211 = arith.constant 0 : index
    %498 = vector.load %arg18[%c0_210, %c0_211] : memref<64x32xf32, #tpu.memory_space<vmem>>, vector<64x32xf32>
    tpu.vector_store %arg18[%c0_210, %c0_211], %497 {strides = array<i32>} : memref<64x32xf32, #tpu.memory_space<vmem>>, vector<64x32xf32>,
    %499 = arith.truncf %497 : vector<64x32xf32> to vector<64x32xbf16>
    %c0_212 = arith.constant 0 : index
    %c0_213 = arith.constant 0 : index
    %500 = vector.load %arg15[%c0_212, %c0_213] : memref<32x128xbf16, #tpu.memory_space<vmem>>, vector<32x128xbf16>
    %cst_214 = arith.constant dense<0.000000e+00> : vector<64x128xf32>
    %501 = tpu.matmul %499, %500, %cst_214 {dimension_numbers = #tpu.dot_dimension_numbers<[1], [0], [0], [1], [0, 0, 1, 1], [], []>} : vector<64x32xbf16>, vector<32x128xbf16>, vector<64x128xf32> -> vector<64x128xf32>
    %c0_215 = arith.constant 0 : index
    %c0_216 = arith.constant 0 : index
    %502 = vector.load %arg16[%c0_215, %c0_216] : memref<1x128xf32, #tpu.memory_space<vmem>>, vector<1x128xf32>
    %503 = vector.broadcast %502 : vector<1x128xf32> to vector<64x128xf32>
    %504 = arith.addf %501, %503 : vector<64x128xf32>
    %c0_217 = arith.constant 0 : index
    %c0_218 = arith.constant 0 : index
    %505 = vector.load %arg17[%c0_217, %c0_218] : memref<64x128xf32, #tpu.memory_space<vmem>>, vector<64x128xf32>
    tpu.vector_store %arg17[%c0_217, %c0_218], %504 {strides = array<i32>} : memref<64x128xf32, #tpu.memory_space<vmem>>, vector<64x128xf32>,
    return
  }
}

</mosaic_0001>

<bundles_post_ra>
// kernel: tpu_custom_call.1
= control target key start
LH: loop header
LB: loop body
LE: loop exit
PB: predicated region body
PF: predicated region fallthrough
CT: control target
= control target key end

     0   :  { %s13975_s0 = inlined_call_operand.vmem [shape: f32[64,16], index: 0, kind: input, shape index: {}]   ;;  %s13976_s1 = inlined_call_operand.vmem [shape: f32[64,128], index: 1, kind: input, shape index: {}]   ;;  %s13977_s2 = inlined_call_operand.vmem [shape: f32[64,32], index: 2, kind: input, shape index: {}, may-alias: {2,18}]   ;;  %s13978_s3 = inlined_call_operand.hbm [shape: bf16[16,16], index: 3, kind: input, shape index: {}]   ;;  %s13979_s4 = inlined_call_operand.hbm [shape: bf16[8,16,32], index: 4, kind: input, shape index: {}]   ;;  %s13980_s5 = inlined_call_operand.vmem [shape: f32[1,32], index: 5, kind: input, shape index: {}]   ;;  %s13981_s6 = inlined_call_operand.hbm [shape: f32[1,32], index: 6, kind: input, shape index: {}]   ;;  %s13982_s7 = inlined_call_operand.vmem [shape: bf16[32,16], index: 7, kind: input, shape index: {}]   ;;  %s13983_s8 = inlined_call_operand.vmem [shape: bf16[8,32,32], index: 8, kind: input, shape index: {}]   ;;  %s13984_s9 = inlined_call_operand.hbm [shape: f32[1,32], index: 9, kind: input, shape index: {}]   ;;  %s13985_s10 = inlined_call_operand.hbm [shape: f32[1,32], index: 10, kind: input, shape index: {}]   ;;  %s13986_s11 = inlined_call_operand.vmem [shape: bf16[32,96], index: 11, kind: input, shape index: {}]   ;;  %s13987_s12 = inlined_call_operand.hbm [shape: bf16[32,96], index: 12, kind: input, shape index: {}]   ;;  %s13988_s13 = inlined_call_operand.hbm [shape: f32[1,96], index: 13, kind: input, shape index: {}]   ;;  %s13989_s14 = inlined_call_operand.hbm [shape: f32[1,96], index: 14, kind: input, shape index: {}]   ;;  %s13990_s15 = inlined_call_operand.vmem [shape: bf16[32,128], index: 15, kind: input, shape index: {}]   ;;  %s13991_s16 = inlined_call_operand.vmem [shape: f32[1,128], index: 16, kind: input, shape index: {}]   ;;  %s13992_s17 = inlined_call_operand.hbm [shape: f32[64,128], index: 17, kind: output, shape index: {0}]   ;;  %s13993_s18 = inlined_call_operand.vmem [shape: f32[64,32], index: 18, kind: output, shape index: {1}, may-alias: {2,18}]  }
   0x1   :  { %14102 = sst [smem:[#allocation60_spill]] %s13975_s0 }
   0x2   :  { %14103 = sst [smem:[#allocation61_spill]] %s13976_s1 }
   0x3   :  { %14104 = sst [smem:[#allocation62_spill]] %s13977_s2 }
   0x4   :  { %24 = vsyncpa [#allocation5], 0 }
   0x5   :  { %25 = vsyncpa [#allocation8], 0 }
   0x6   :  { %26 = vsyncpa [#allocation11], 0 }
   0x7   :  { %27 = vsyncpa [#allocation14], 0 }
   0x8   :  { %28 = vsyncpa [#allocation17], 0 }
   0x9   :  { %29 = vsyncpa [#allocation6], 0  ;;  %s10654_s27 = smov [#allocation7]   ;;  %s10655_s29 = smov [#allocation10]  }
   0xa   :  { %s53_s28 = sshll.u32 %s10654_s27, 4  ;;  %s82_s30 = sshll.u32 %s10655_s29, 4  ;;  %s54_s28 = int_to_ptr.vmem [resolvable:$true] %s53_s28  ;;  %s83_s30 = int_to_ptr.vmem [resolvable:$true] %s82_s30 }
   0xb   :  { %s10470_s0 = scalar_lea.vmem %s54_s28, 1024  ;;  %p10475_p1 = scmp.lt.s32.totalorder %s54_s28, %s54_s28 }
   0xc   :  { %p10471_p0 = scmp.ne.s32.totalorder %s54_s28, %s10470_s0  ;;  %p10476_p2 = scmp.lt.s32.totalorder %s10470_s0, %s10470_s0 }
   0xe   :  { %p10477_p3 = por %p10476_p2, %p10475_p1 }
  0x10   :  { %p10478_p4 = pnand %p10477_p3, %p10471_p0 }
  0x12   :  { %10481 = shalt.err (!%p10478_p4)
}
  0x13   :  { %s10656_s19 = smov 64   ;;  %s10657_s1 = smov 4  }
  0x14   :  { %59 = dma.hbm_to_vmem [thread:$0]  %s13979_s4, 1024, %s54_s28, [#allocation8], %s10656_s19, %s10656_s19, %s10657_s1  }
  0x15   :  { %s10490_s22 = scalar_lea.vmem %s83_s30, 16  ;;  %s10494_s2 = scalar_lea.vmem %s83_s30, 32 }
  0x16   :  { %p10491_p5 = scmp.ne.s32.totalorder %s83_s30, %s10490_s22  ;;  %p10495_p6 = scmp.lt.s32.totalorder %s83_s30, %s83_s30 }
  0x17   :  { %p10496_p7 = scmp.lt.s32.totalorder %s10494_s2, %s10490_s22 }
  0x19   :  { %p10497_p8 = por %p10496_p7, %p10495_p6 }
  0x1b   :  { %p10498_p9 = pnand %p10497_p8, %p10491_p5 }
  0x1d   :  { %10501 = shalt.err (!%p10498_p9)
}
  0x1e   :  { %85 = dma.hbm_to_vmem [thread:$0]  %s13984_s9, 16, %s83_s30, [#allocation11]  }
  0x1f   :  { %s10658_s25 = smov [#allocation13]   ;;  %s10659_s27 = smov [#allocation4]  }
  0x20   :  { %s103_s26 = sshll.u32 %s10658_s25, 4  ;;  %s41_s29 = sshll.u32 %s10659_s27, 4  ;;  %s104_s26 = int_to_ptr.vmem [resolvable:$true] %s103_s26  ;;  %s42_s29 = int_to_ptr.vmem [resolvable:$true] %s41_s29 }
  0x21   :  { %s10510_s0 = scalar_lea.vmem %s104_s26, 256  ;;  %p10515_p11 = scmp.lt.s32.totalorder %s104_s26, %s104_s26 }
  0x22   :  { %p10511_p10 = scmp.ne.s32.totalorder %s104_s26, %s10510_s0  ;;  %p10516_p12 = scmp.lt.s32.totalorder %s10510_s0, %s10510_s0 }
  0x24   :  { %p10517_p13 = por %p10516_p12, %p10515_p11 }
  0x26   :  { %p10518_p0 = pnand %p10517_p13, %p10511_p10 }
  0x28   :  { %10521 = shalt.err (!%p10518_p0)
}
  0x29   :  { %109 = dma.hbm_to_vmem [thread:$0]  %s13987_s12, 256, %s104_s26, [#allocation14], %s10656_s19, %s10656_s19, %s10657_s1  }
  0x2a   :  { %s10530_s9 = scalar_lea.vmem %s42_s29, 128  ;;  %p10535_p2 = scmp.lt.s32.totalorder %s42_s29, %s42_s29 }
  0x2b   :  { %p10531_p1 = scmp.ne.s32.totalorder %s42_s29, %s10530_s9  ;;  %p10536_p3 = scmp.lt.s32.totalorder %s10530_s9, %s10530_s9 }
  0x2d   :  { %p10537_p4 = por %p10536_p3, %p10535_p2 }
  0x2f   :  { %p10538_p5 = pnand %p10537_p4, %p10531_p1 }
  0x31   :  { %10541 = shalt.err (!%p10538_p5)
}
  0x32   :  { %47 = dma.hbm_to_vmem [thread:$0]  %s13978_s3, 128, %s42_s29, [#allocation5], %s10656_s19, %s10656_s19, %s10657_s1  }
  0x33   :  { %s10660_s21 = smov [#allocation9]   ;;  %s10661_s2 = smov [#allocation12]  }
  0x34   :  { %s68_s22 = sshll.u32 %s10660_s21, 4  ;;  %s92_s23 = sshll.u32 %s10661_s2, 4  ;;  %s69_s22 = int_to_ptr.vmem [resolvable:$true] %s68_s22  ;;  %s93_s23 = int_to_ptr.vmem [resolvable:$true] %s92_s23 }
  0x35   :  { %s10550_s12 = scalar_lea.vmem %s69_s22, 16  ;;  %s10554_s24 = scalar_lea.vmem %s69_s22, 32 }
  0x36   :  { %p10551_p6 = scmp.ne.s32.totalorder %s69_s22, %s10550_s12  ;;  %p10555_p7 = scmp.lt.s32.totalorder %s69_s22, %s69_s22 }
  0x37   :  { %p10556_p8 = scmp.lt.s32.totalorder %s10554_s24, %s10550_s12 }
  0x39   :  { %p10557_p9 = por %p10556_p8, %p10555_p7 }
  0x3b   :  { %p10558_p10 = pnand %p10557_p9, %p10551_p6 }
  0x3d   :  { %10561 = shalt.err (!%p10558_p10)
}
  0x3e   :  { %71 = dma.hbm_to_vmem [thread:$0]  %s13981_s6, 16, %s69_s22, [#allocation8]  }
  0x3f   :  { %s10570_s27 = scalar_lea.vmem %s93_s23, 16  ;;  %s10574_s3 = scalar_lea.vmem %s93_s23, 32 }
  0x40   :  { %p10571_p11 = scmp.ne.s32.totalorder %s93_s23, %s10570_s27  ;;  %p10575_p12 = scmp.lt.s32.totalorder %s93_s23, %s93_s23 }
  0x41   :  { %p10576_p13 = scmp.lt.s32.totalorder %s10574_s3, %s10570_s27 }
  0x43   :  { %p10577_p0 = por %p10576_p13, %p10575_p12 }
  0x45   :  { %p10578_p1 = pnand %p10577_p0, %p10571_p11 }
  0x47   :  { %10581 = shalt.err (!%p10578_p1)
}
  0x48   :  { %95 = dma.hbm_to_vmem [thread:$0]  %s13985_s10, 16, %s93_s23, [#allocation11]  }
  0x49   :  { %s10662_s0 = smov [#allocation15]   ;;  %s10663_s28 = smov [#allocation16]  }
  0x4a   :  { %s116_s4 = sshll.u32 %s10662_s0, 4  ;;  %s126_s9 = sshll.u32 %s10663_s28, 4  ;;  %s117_s4 = int_to_ptr.vmem [resolvable:$true] %s116_s4  ;;  %s127_s9 = int_to_ptr.vmem [resolvable:$true] %s126_s9 }
  0x4b   :  { %s10590_s30 = scalar_lea.vmem %s117_s4, 16  ;;  %s10594_s6 = scalar_lea.vmem %s117_s4, 32 }
  0x4c   :  { %p10591_p2 = scmp.ne.s32.totalorder %s117_s4, %s10590_s30  ;;  %p10595_p3 = scmp.lt.s32.totalorder %s117_s4, %s117_s4 }
  0x4d   :  { %p10596_p4 = scmp.lt.s32.totalorder %s10594_s6, %s10590_s30 }
  0x4f   :  { %p10597_p5 = por %p10596_p4, %p10595_p3 }
  0x51   :  { %p10598_p6 = pnand %p10597_p5, %p10591_p2 }
  0x53   :  { %10601 = shalt.err (!%p10598_p6)
}
  0x54   :  { %119 = dma.hbm_to_vmem [thread:$0]  %s13988_s13, 16, %s117_s4, [#allocation14]  }
  0x55   :  { %s10610_s22 = scalar_lea.vmem %s127_s9, 16  ;;  %s10614_s10 = scalar_lea.vmem %s127_s9, 32 }
  0x56   :  { %p10611_p7 = scmp.ne.s32.totalorder %s127_s9, %s10610_s22  ;;  %p10615_p8 = scmp.lt.s32.totalorder %s127_s9, %s127_s9 }
  0x57   :  { %p10616_p9 = scmp.lt.s32.totalorder %s10614_s10, %s10610_s22 }
  0x59   :  { %p10617_p10 = por %p10616_p9, %p10615_p8 }
  0x5b   :  { %p10618_p11 = pnand %p10617_p10, %p10611_p7 }
  0x5d   :  { %10621 = shalt.err (!%p10618_p11)
}
  0x5e   :  { %129 = dma.hbm_to_vmem [thread:$0]  %s13989_s14, 16, %s127_s9, [#allocation17]  }
  0x5f   :  { %10642 = dma.done.wait [#allocation5], 128  }
  0x60   :  { %10643 = vsyncadd [#allocation5], 4294967168 }
  0x61   :  { %10644 = dma.done.wait [#allocation8], 1040  }
  0x62   :  { %10645 = vsyncadd [#allocation8], 4294966256 }
  0x63   :  { %10646 = dma.done.wait [#allocation11], 32  }
  0x64   :  { %10647 = vsyncadd [#allocation11], 4294967264 }
  0x65   :  { %10648 = dma.done.wait [#allocation14], 272  }
  0x66   :  { %10649 = vsyncadd [#allocation14], 4294967024 }
  0x67   :  { %10650 = dma.done.wait [#allocation17], 16  }
  0x68   :  { %10651 = vsyncadd [#allocation17], 4294967280  ;;  %v9733_v0 = vld [vmem:[#allocation4] sm:$0xff]   ;;  %s14105_s24 = sld [smem:[#allocation60_spill]]  ;;  %vm324_vm0 = vcmask 130048   ;;  %v14011_v13 = vmov 0  }
  0x69   :  { %9347 = vmatprep.subr.bf16.mxu0 %v9733_v0  ;;  %9581 = vmatprep.subr.bf16.mxu1 %v9733_v0  ;;  %s10665_s21 = smov 120   ;;  %v14003_v16 = vmov 3   ;;  %v14007_v17 = vmov 1   ;;  %v14009_v18 = vmov 4   ;;  %v14005_v19 = vmov 5   ;;  %s14132_s2 = sld [smem:[#allocation61_spill]] }
  0x6a   :  { %9348 = vmatpush3.bf16.msra.mxu0 %v9733_v0  ;;  %9582 = vmatpush3.bf16.msra.mxu1 %v9733_v0  ;;  %v13999_v20 = vmov 6   ;;  %v13997_v21 = vmov 2   ;;  %v14001_v22 = vmov 7   ;;  %vm466_vm1 = vcmask 523264  }
  0x6b   :  { %9611 = vset.pattern.permute.xlu0 %v14011_v13  ;;  %9608 = vset.pattern.permute.xlu1 %v14011_v13  ;;  %vm159_vm2 = vcmask 257024   ;;  %vm3841_vm3 = vcmask 261120  }
  0x6e   :  { %v288_v1 = vld [vmem:[%s14105_s24] sm:$0xff]  ;;  %v289_v2 = vld [vmem:[%s14105_s24 + $0x8] sm:$0xff]  ;;  %v290_v6 = vld [vmem:[%s14105_s24 + $0x10] sm:$0xff] }
  0x6f   :  { %v292_v3 = vld [vmem:[%s14105_s24 + $0x20] sm:$0xff]  ;;  %v10815_v4 = vpack.c.bf16 %v289_v2, %v288_v1  ;;  %v293_v5 = vld [vmem:[%s14105_s24 + $0x28] sm:$0xff]  ;;  %v291_v7 = vld [vmem:[%s14105_s24 + $0x18] sm:$0xff] }
  0x70   :  { %v10826_v8 = vpack.c.bf16 %v293_v5, %v292_v3  ;;  %v10828_v9 = vpack.c.bf16 %v291_v7, %v290_v6  ;;  %v294_v10 = vld [vmem:[%s14105_s24 + $0x30] sm:$0xff]  ;;  %v295_v11 = vld [vmem:[%s14105_s24 + $0x38] sm:$0xff]  ;;  %s14343_s24 = sld [smem:[#allocation62_spill]] }
  0x71   :  { %9349 = vmatprep.mubr.msk.bf16.mxu0 %vm324_vm0, %v10815_v4  ;;  %v10838_v12 = vpack.c.bf16 %v295_v11, %v294_v10 }
  0x72   :  { %9353 = vmatprep.mubr.msk.bf16.mxu1 %vm324_vm0, %v10826_v8  ;;  %9350 = vmatmul.mubr.msk.bf16.vlgmr.msra.gmra.mxu0 %vm324_vm0, %v10828_v9 }
  0x73   :  { %9354 = vmatmul.mubr.msk.bf16.vlgmr.msra.gmra.mxu1 %vm324_vm0, %v10838_v12  ;;  %9369 = vmatprep.mubr.msk.bf16.mxu0 %vm324_vm0, %v10815_v4 }
  0x74   :  { %9359 = vmatprep.mubr.msk.bf16.mxu1 %vm324_vm0, %v10815_v4 }
 0x132   :  { %v10852_v14 = vpop.f32.mrf.mxu0 }
 0x133   :  { %v10854_v15 = vpop.f32.mrf.mxu1  ;;  %414 = vrot.lane.b32.xlu1 %v10852_v14, %s10665_s21 }
 0x134   :  { %422 = vrot.lane.b32.xlu0 %v10854_v15, %s10665_s21  ;;  %v371_v23 = vpop.f32.mrf.mxu0 }
 0x135   :  { %v10889_v24 = vpop.f32.mrf.mxu1 }
 0x136   :  { %v9352_v25 = vpop.f32.mrf.mxu0 }
 0x137   :  { %590 = vperm.xlu1 %9608, %v10852_v14   ;;  %v10913_v26 = vpop.f32.mrf.mxu1 }
 0x138   :  { %606 = vperm.xlu0 %9611, %v10854_v15   ;;  %v374_v28 = vpop.f32.mrf.mxu0 }
 0x139   :  { %v10935_v27 = vpop.f32.mrf.mxu1 }
 0x13b   :  { %9609 = vset.pattern.permute.xlu1 %v14007_v17 }
 0x13c   :  { %9614 = vset.pattern.permute.xlu0 %v14003_v16  ;;  %884 = vperm.xlu1 %9609, %v10852_v14  }
 0x13d   :  { %1488 = vperm.xlu0 %9614, %v10854_v15  }
 0x140   :  { %9610 = vset.pattern.permute.xlu1 %v14003_v16 }
 0x141   :  { %9615 = vset.pattern.permute.xlu0 %v14009_v18  ;;  %1472 = vperm.xlu1 %9610, %v10852_v14  }
 0x142   :  { %1766 = vperm.xlu0 %9615, %v10852_v14  }
 0x145   :  { %9612 = vset.pattern.permute.xlu1 %v14007_v17 }
 0x146   :  { %9616 = vset.pattern.permute.xlu0 %v14005_v19  ;;  %900 = vperm.xlu1 %9612, %v10854_v15  }
 0x147   :  { %2060 = vperm.xlu0 %9616, %v10852_v14  }
 0x14a   :  { %9613 = vset.pattern.permute.xlu1 %v13997_v21 }
 0x14b   :  { %9617 = vset.pattern.permute.xlu0 %v13999_v20  ;;  %1194 = vperm.xlu1 %9613, %v10854_v15  }
 0x14c   :  { %2354 = vperm.xlu0 %9617, %v10852_v14  }
 0x14f   :  { %9619 = vset.pattern.permute.xlu1 %v14009_v18 }
 0x150   :  { %9618 = vset.pattern.permute.xlu0 %v14001_v22  ;;  %1782 = vperm.xlu1 %9619, %v10854_v15  }
 0x151   :  { %2648 = vperm.xlu0 %9618, %v10852_v14  }
 0x154   :  { %9620 = vset.pattern.permute.xlu1 %v14005_v19 }
 0x155   :  { %9621 = vset.pattern.permute.xlu0 %v13999_v20  ;;  %2076 = vperm.xlu1 %9620, %v10854_v15  }
 0x156   :  { %2370 = vperm.xlu0 %9621, %v10854_v15  }
 0x159   :  { %9623 = vset.pattern.permute.xlu1 %v14007_v17 }
 0x15a   :  { %410 = vrot.lane.b32.xlu0 %v371_v23, %s10665_s21  ;;  %876 = vperm.xlu1 %9623, %v371_v23  }
 0x15b   :  { %9622 = vset.pattern.permute.xlu0 %v14011_v13 }
 0x15e   :  { %418 = vrot.lane.b32.xlu0 %v10889_v24, %s10665_s21  ;;  %9624 = vset.pattern.permute.xlu1 %v13997_v21 }
 0x15f   :  { %1170 = vperm.xlu1 %9624, %v371_v23  }
 0x162   :  { %582 = vperm.xlu0 %9622, %v371_v23  }
 0x163   :  { %9626 = vset.pattern.permute.xlu1 %v14011_v13 }
 0x164   :  { %598 = vperm.xlu1 %9626, %v10889_v24  }
 0x166   :  { %9625 = vset.pattern.permute.xlu0 %v14003_v16 }
 0x167   :  { %1464 = vperm.xlu0 %9625, %v371_v23  }
 0x168   :  { %9628 = vset.pattern.permute.xlu1 %v13997_v21 }
 0x169   :  { %1186 = vperm.xlu1 %9628, %v10889_v24  }
 0x16b   :  { %9627 = vset.pattern.permute.xlu0 %v14007_v17 }
 0x16c   :  { %892 = vperm.xlu0 %9627, %v10889_v24  }
 0x16d   :  { %9629 = vset.pattern.permute.xlu1 %v14003_v16 }
 0x16e   :  { %1480 = vperm.xlu1 %9629, %v10889_v24  }
 0x170   :  { %9630 = vset.pattern.permute.xlu0 %v14009_v18 }
 0x171   :  { %1758 = vperm.xlu0 %9630, %v371_v23  }
 0x172   :  { %9635 = vset.pattern.permute.xlu1 %v14005_v19 }
 0x173   :  { %2068 = vperm.xlu1 %9635, %v10889_v24  }
 0x175   :  { %9631 = vset.pattern.permute.xlu0 %v14005_v19 }
 0x176   :  { %2052 = vperm.xlu0 %9631, %v371_v23  }
 0x177   :  { %9636 = vset.pattern.permute.xlu1 %v13999_v20 }
 0x178   :  { %2362 = vperm.xlu1 %9636, %v10889_v24  }
 0x17a   :  { %9632 = vset.pattern.permute.xlu0 %v13999_v20 }
 0x17b   :  { %2346 = vperm.xlu0 %9632, %v371_v23  }
 0x17c   :  { %416 = vrot.lane.b32.xlu1 %v9352_v25, %s10665_s21 }
 0x17d   :  { %9638 = vset.pattern.permute.xlu1 %v14007_v17 }
 0x17f   :  { %9633 = vset.pattern.permute.xlu0 %v14001_v22 }
 0x180   :  { %2640 = vperm.xlu0 %9633, %v371_v23   ;;  %424 = vrot.lane.b32.xlu1 %v10913_v26, %s10665_s21 }
 0x184   :  { %9634 = vset.pattern.permute.xlu0 %v14009_v18  ;;  %888 = vperm.xlu1 %9638, %v9352_v25  }
 0x185   :  { %1774 = vperm.xlu0 %9634, %v10889_v24  }
 0x188   :  { %9639 = vset.pattern.permute.xlu1 %v13997_v21 }
 0x189   :  { %9637 = vset.pattern.permute.xlu0 %v14011_v13  ;;  %1182 = vperm.xlu1 %9639, %v9352_v25  }
 0x18a   :  { %594 = vperm.xlu0 %9637, %v9352_v25  }
 0x18d   :  { %9641 = vset.pattern.permute.xlu1 %v14011_v13 }
 0x18e   :  { %9640 = vset.pattern.permute.xlu0 %v14003_v16  ;;  %610 = vperm.xlu1 %9641, %v10913_v26  }
 0x18f   :  { %1476 = vperm.xlu0 %9640, %v9352_v25  }
 0x192   :  { %9643 = vset.pattern.permute.xlu1 %v13997_v21 }
 0x193   :  { %9642 = vset.pattern.permute.xlu0 %v14007_v17  ;;  %1198 = vperm.xlu1 %9643, %v10913_v26  }
 0x194   :  { %904 = vperm.xlu0 %9642, %v10913_v26  }
 0x197   :  { %9644 = vset.pattern.permute.xlu1 %v14003_v16 }
 0x198   :  { %9645 = vset.pattern.permute.xlu0 %v14009_v18  ;;  %1492 = vperm.xlu1 %9644, %v10913_v26  }
 0x199   :  { %1770 = vperm.xlu0 %9645, %v9352_v25  }
 0x19c   :  { %9646 = vset.pattern.permute.xlu1 %v14005_v19 }
 0x19d   :  { %9647 = vset.pattern.permute.xlu0 %v13999_v20  ;;  %2064 = vperm.xlu1 %9646, %v9352_v25  }
 0x19e   :  { %2358 = vperm.xlu0 %9647, %v9352_v25  }
 0x1a1   :  { %2080 = vperm.xlu1 %9646, %v10913_v26  }
 0x1a2   :  { %9648 = vset.pattern.permute.xlu0 %v14001_v22 }
 0x1a3   :  { %2652 = vperm.xlu0 %9648, %v9352_v25  }
 0x1a5   :  { %420 = vrot.lane.b32.xlu1 %v10935_v27, %s10665_s21  ;;  %v10944_v29 = vpop.permute.xlu1 %414 }
 0x1a6   :  { %9650 = vset.pattern.permute.xlu1 %v14011_v13  ;;  %v10947_v30 = vpop.permute.xlu0 %422 }
 0x1a7   :  { %9649 = vset.pattern.permute.xlu0 %v14009_v18 }
 0x1a8   :  { %1786 = vperm.xlu0 %9649, %v10913_v26  }
 0x1a9   :  { %586 = vperm.xlu1 %9650, %v374_v28  }
 0x1ac   :  { %412 = vrot.lane.b32.xlu0 %v374_v28, %s10665_s21 }
 0x1ad   :  { %9651 = vset.pattern.permute.xlu0 %v14007_v17  ;;  %9652 = vset.pattern.permute.xlu1 %v13997_v21 }
 0x1ae   :  { %1174 = vperm.xlu1 %9652, %v374_v28  }
 0x1b0   :  { %880 = vperm.xlu0 %9651, %v374_v28  }
 0x1b2   :  { %9653 = vset.pattern.permute.xlu1 %v14003_v16  ;;  %v10952_v32 = vpop.permute.xlu1 %590 }
 0x1b3   :  { %v10949_v31 = vpop.permute.xlu0 %606  ;;  %1468 = vperm.xlu1 %9653, %v374_v28  }
 0x1b4   :  { %9657 = vset.pattern.permute.xlu0 %v14009_v18 }
 0x1b5   :  { %1762 = vperm.xlu0 %9657, %v374_v28  }
 0x1b7   :  { %9654 = vset.pattern.permute.xlu1 %v14011_v13  ;;  %v10958_v34 = vpop.permute.xlu1 %884 }
 0x1b8   :  { %v10955_v33 = vpop.permute.xlu0 %1488  ;;  %602 = vperm.xlu1 %9654, %v10935_v27  }
 0x1b9   :  { %9658 = vset.pattern.permute.xlu0 %v14005_v19 }
 0x1ba   :  { %2056 = vperm.xlu0 %9658, %v374_v28  }
 0x1bc   :  { %v10964_v36 = vpop.permute.xlu1 %1472  ;;  %9655 = vset.pattern.permute.xlu1 %v14007_v17 }
 0x1bd   :  { %v10962_v35 = vpop.permute.xlu0 %1766  ;;  %896 = vperm.xlu1 %9655, %v10935_v27  }
 0x1be   :  { %14106 = vst [vmem:[#allocation25_spill] sm:$0xff] %v10962_v35  ;;  %9659 = vset.pattern.permute.xlu0 %v13999_v20 }
 0x1bf   :  { %2350 = vperm.xlu0 %9659, %v374_v28  }
 0x1c1   :  { %v10971_v38 = vpop.permute.xlu1 %900  ;;  %9656 = vset.pattern.permute.xlu1 %v14003_v16 }
 0x1c2   :  { %v10969_v37 = vpop.permute.xlu0 %2060  ;;  %1484 = vperm.xlu1 %9656, %v10935_v27  }
 0x1c3   :  { %14107 = vst [vmem:[#allocation26_spill] sm:$0xff] %v10969_v37  ;;  %9660 = vset.pattern.permute.xlu0 %v14001_v22 }
 0x1c4   :  { %2644 = vperm.xlu0 %9660, %v374_v28  }
 0x1c6   :  { %v10978_v40 = vpop.permute.xlu1 %1194  ;;  %9661 = vset.pattern.permute.xlu1 %v14009_v18 }
 0x1c7   :  { %v10976_v39 = vpop.permute.xlu0 %2354  ;;  %1778 = vperm.xlu1 %9661, %v10935_v27  }
 0x1c8   :  { %14108 = vst [vmem:[#allocation27_spill] sm:$0xff] %v10976_v39  ;;  %9662 = vset.pattern.permute.xlu0 %v14005_v19  ;;  %v9739_v39 = vld [vmem:[#allocation7 + $0x20] sm:$0xff]  }
 0x1c9   :  { %2072 = vperm.xlu0 %9662, %v10935_v27  }
 0x1cb   :  { %v10986_v42 = vpop.permute.xlu1 %1782  ;;  %9664 = vset.pattern.permute.xlu1 %v13999_v20 }
 0x1cc   :  { %v10984_v41 = vpop.permute.xlu0 %2648  ;;  %14110 = vst [vmem:[#allocation29_spill] sm:$0xff] %v10986_v42  ;;  %2374 = vperm.xlu1 %9664, %v10913_v26  }
 0x1cd   :  { %14109 = vst [vmem:[#allocation28_spill] sm:$0xff] %v10984_v41  ;;  %9663 = vset.pattern.permute.xlu0 %v14001_v22 }
 0x1ce   :  { %2656 = vperm.xlu0 %9663, %v10889_v24  }
 0x1d0   :  { %v10994_v44 = vpop.permute.xlu1 %2076  ;;  %9665 = vset.pattern.permute.xlu1 %v14001_v22 }
 0x1d1   :  { %v10992_v43 = vpop.permute.xlu0 %2370  ;;  %14112 = vst [vmem:[#allocation31_spill] sm:$0xff] %v10994_v44  ;;  %2664 = vperm.xlu1 %9665, %v10854_v15  }
 0x1d2   :  { %14111 = vst [vmem:[#allocation30_spill] sm:$0xff] %v10992_v43  ;;  %2668 = vperm.xlu0 %9663, %v10913_v26  }
 0x1d5   :  { %v411_v45 = vpop.permute.xlu0 %410  ;;  %9667 = vset.pattern.permute.xlu1 %v13999_v20  ;;  %v11001_v46 = vpop.permute.xlu1 %876 }
 0x1d6   :  { %9666 = vset.pattern.permute.xlu0 %v13997_v21  ;;  %2366 = vperm.xlu1 %9667, %v10935_v27  }
 0x1d7   :  { %1178 = vperm.xlu0 %9666, %v10852_v14  }
 0x1d9   :  { %v419_v47 = vpop.permute.xlu0 %418 }
 0x1da   :  { %9668 = vset.pattern.permute.xlu1 %v14001_v22  ;;  %v11008_v48 = vpop.permute.xlu1 %1170 }
 0x1db   :  { %1190 = vperm.xlu0 %9666, %v10935_v27   ;;  %2660 = vperm.xlu1 %9668, %v10935_v27  }
 0x1dd   :  { %v11010_v49 = vpop.permute.xlu0 %582 }
 0x1df   :  { %v11014_v51 = vpop.permute.xlu1 %598 }
 0x1e2   :  { %v11012_v50 = vpop.permute.xlu0 %1464 }
 0x1e4   :  { %v11018_v53 = vpop.permute.xlu1 %1186 }
 0x1e7   :  { %v11016_v52 = vpop.permute.xlu0 %892 }
 0x1e9   :  { %v11022_v55 = vpop.permute.xlu1 %1480 }
 0x1ec   :  { %v11020_v54 = vpop.permute.xlu0 %1758 }
 0x1ee   :  { %v11026_v57 = vpop.permute.xlu1 %2068 }
 0x1ef   :  { %14113 = vst [vmem:[#allocation32_spill] sm:$0xff] %v11026_v57 }
 0x1f1   :  { %v11024_v56 = vpop.permute.xlu0 %2052 }
 0x1f3   :  { %v11030_v59 = vpop.permute.xlu1 %2362 }
 0x1f4   :  { %14114 = vst [vmem:[#allocation33_spill] sm:$0xff] %v11030_v59 }
 0x1f6   :  { %v11028_v58 = vpop.permute.xlu0 %2346 }
 0x1f7   :  { %v417_v62 = vpop.permute.xlu1 %416 }
 0x1fb   :  { %v11032_v60 = vpop.permute.xlu0 %2640  ;;  %v425_v0 = vpop.permute.xlu1 %424 }
 0x1fc   :  { %14115 = vst [vmem:[#allocation34_spill] sm:$0xff] %v11032_v60 }
 0x1ff   :  { %v11040_v2 = vpop.permute.xlu1 %888 }
 0x200   :  { %v11034_v61 = vpop.permute.xlu0 %1774 }
 0x201   :  { %14116 = vst [vmem:[#allocation35_spill] sm:$0xff] %v11034_v61 }
 0x204   :  { %434 = vxpose.xlu1.b32.start [1/8] (short) (narrow) %v411_v45, 8  ;;  %v11044_v5 = vpop.permute.xlu1 %1182 }
 0x205   :  { %v11036_v63 = vpop.permute.xlu0 %594 }
 0x209   :  { %v11048_v7 = vpop.permute.xlu1 %610 }
 0x20a   :  { %v11038_v1 = vpop.permute.xlu0 %1476 }
 0x20e   :  { %v11054_v14 = vpop.permute.xlu1 %1198 }
 0x20f   :  { %v11042_v3 = vpop.permute.xlu0 %904 }
 0x213   :  { %v11058_v23 = vpop.permute.xlu1 %1492 }
 0x214   :  { %v11046_v6 = vpop.permute.xlu0 %1770 }
 0x215   :  { %14117 = vst [vmem:[#allocation36_spill] sm:$0xff] %v11046_v6 }
 0x218   :  { %v11060_v25 = vpop.permute.xlu1 %2064 }
 0x219   :  { %v11050_v10 = vpop.permute.xlu0 %2358  ;;  %14121 = vst [vmem:[#allocation40_spill] sm:$0xff] %v11060_v25 }
 0x21a   :  { %14118 = vst [vmem:[#allocation37_spill] sm:$0xff] %v11050_v10  ;;  %v9738_v10 = vld [vmem:[#allocation7 + $0x28] sm:$0xff]  }
 0x21c   :  { %v11063_v26 = vpop.permute.xlu1 %2080 }
 0x21d   :  { %14122 = vst [vmem:[#allocation41_spill] sm:$0xff] %v11063_v26 }
 0x21e   :  { %v11052_v11 = vpop.permute.xlu0 %2652 }
 0x21f   :  { %14119 = vst [vmem:[#allocation38_spill] sm:$0xff] %v11052_v11 }
 0x220   :  { %v421_v27 = vpop.permute.xlu1 %420 }
 0x223   :  { %v11056_v15 = vpop.permute.xlu0 %1786 }
 0x224   :  { %14120 = vst [vmem:[#allocation39_spill] sm:$0xff] %v11056_v15  ;;  %v587_v28 = vpop.permute.xlu1 %586 }
 0x227   :  { %v413_v24 = vpop.permute.xlu0 %412 }
 0x228   :  { %435 = vxpose.xlu1.b32.cont [2/8] (short) (narrow) %v413_v24, 8 }
 0x229   :  { %v1175_v45 = vpop.permute.xlu1 %1174 }
 0x22c   :  { %436 = vxpose.xlu1.b32.cont [3/8] (short) (narrow) %v10944_v29, 8  ;;  %v9734_v29 = vld [vmem:[#allocation7 + $0x8] sm:$0xff]  }
 0x22d   :  { %9367 = vmatprep.subr.bf16.mxu0 %v9734_v29 }
 0x22e   :  { %v11067_v21 = vpop.permute.xlu1 %1468  ;;  %9368 = vmatpush3.bf16.msra.mxu0 %v9734_v29  ;;  %v9736_v29 = vld [vmem:[#allocation7 + $0x18] sm:$0xff]  }
 0x22f   :  { %9387 = vmatprep.subr.bf16.mxu0 %v9736_v29 }
 0x230   :  { %437 = vxpose.xlu1.b32.cont [4/8] (short) (narrow) %v417_v62, 8  ;;  %v9735_v62 = vld [vmem:[#allocation7] sm:$0xff]  }
 0x231   :  { %9357 = vmatprep.subr.bf16.mxu1 %v9735_v62  ;;  %9370 = vmatmul.mubr.msk.bf16.vlgmr.msra.gmra.mxu0 %vm324_vm0, %v10828_v9 }
 0x232   :  { %9358 = vmatpush3.bf16.msra.mxu1 %v9735_v62  ;;  %9373 = vmatprep.mubr.msk.bf16.mxu0 %vm324_vm0, %v10826_v8  ;;  %v9737_v62 = vld [vmem:[#allocation7 + $0x10] sm:$0xff]  }
 0x233   :  { %v11069_v24 = vpop.permute.xlu1 %602  ;;  %9377 = vmatprep.subr.bf16.mxu1 %v9737_v62  ;;  %9388 = vmatpush3.bf16.msra.mxu0 %v9736_v29 }
 0x234   :  { %438 = vxpose.xlu1.b32.cont [5/8] (short) (narrow) %v419_v47, 8  ;;  %9407 = vmatprep.subr.bf16.mxu0 %v9738_v10 }
 0x235   :  { %9360 = vmatmul.mubr.msk.bf16.vlgmr.msra.gmra.mxu1 %vm324_vm0, %v10828_v9 }
 0x236   :  { %9363 = vmatprep.mubr.msk.bf16.mxu1 %vm324_vm0, %v10826_v8  ;;  %9378 = vmatpush3.bf16.msra.mxu1 %v9737_v62  ;;  %v613_v62 = vlaneseq }
 0x237   :  { %9397 = vmatprep.subr.bf16.mxu1 %v9739_v39 }
 0x238   :  { %439 = vxpose.xlu1.b32.cont [6/8] (short) (narrow) %v421_v27, 8  ;;  %v11071_v20 = vpop.permute.xlu1 %896  ;;  %v11113_v18 = vshrl.u32 %v613_v62, 7 }
 0x239   :  { %9374 = vmatmul.mubr.msk.bf16.gmra.mxu0 %vm324_vm0, %v10838_v12 }
 0x23a   :  { %9389 = vmatprep.mubr.msk.bf16.mxu0 %vm324_vm0, %v10815_v4  ;;  %14127 = vst [vmem:[#allocation46_spill] sm:$0xff] %v11113_v18  ;;  %v14013_v62 = vsub.s32 0, %v11113_v18  ;;  %v14015_v43 = vsub.s32 2, %v11113_v18 }
 0x23c   :  { %440 = vxpose.xlu1.b32.cont [7/8] (short) (narrow) %v10947_v30, 8  ;;  %v881_v30 = vpop.permute.xlu0 %880 }
 0x23d   :  { %v11073_v22 = vpop.permute.xlu1 %1484  ;;  %9364 = vmatmul.mubr.msk.bf16.gmra.mxu1 %vm324_vm0, %v10838_v12 }
 0x23e   :  { %9379 = vmatprep.mubr.msk.bf16.mxu1 %vm324_vm0, %v10815_v4 }
 0x240   :  { %441 = vxpose.xlu1.b32.end [8/8] (short) (narrow) %v425_v0, 8  ;;  %v11085_v0 = vpop.permute.xlu0 %1762 }
 0x241   :  { %9390 = vmatmul.mubr.msk.bf16.vlgmr.msra.gmra.mxu0 %vm324_vm0, %v10828_v9 }
 0x242   :  { %v11083_v47 = vpop.permute.xlu1 %1778  ;;  %9393 = vmatprep.mubr.msk.bf16.mxu0 %vm324_vm0, %v10826_v8  ;;  %9408 = vmatpush3.bf16.msra.mxu0 %v9738_v10 }
 0x243   :  { %14123 = vst [vmem:[#allocation42_spill] sm:$0xff] %v11083_v47 }
 0x244   :  { %v11097_v16 = vpop.permute.xlu0 %2056 }
 0x245   :  { %9380 = vmatmul.mubr.msk.bf16.vlgmr.msra.gmra.mxu1 %vm324_vm0, %v10828_v9 }
 0x246   :  { %9383 = vmatprep.mubr.msk.bf16.mxu1 %vm324_vm0, %v10826_v8  ;;  %9398 = vmatpush3.bf16.msra.mxu1 %v9739_v39 }
 0x247   :  { %v11087_v27 = vpop.permute.xlu1 %2374 }
 0x248   :  { %14124 = vst [vmem:[#allocation43_spill] sm:$0xff] %v11087_v27  ;;  %v11109_v17 = vpop.permute.xlu0 %2350  ;;  %v14014_v27 = vsub.s32 1, %v11113_v18 }
 0x249   :  { %9394 = vmatmul.mubr.msk.bf16.gmra.mxu0 %vm324_vm0, %v10838_v12 }
 0x24a   :  { %9409 = vmatprep.mubr.msk.bf16.mxu0 %vm324_vm0, %v10815_v4 }
 0x24c   :  { %v11099_v19 = vpop.permute.xlu1 %2664 }
 0x24d   :  { %14125 = vst [vmem:[#allocation44_spill] sm:$0xff] %v11099_v19  ;;  %9384 = vmatmul.mubr.msk.bf16.gmra.mxu1 %vm324_vm0, %v10838_v12 }
 0x24e   :  { %9399 = vmatprep.mubr.msk.bf16.mxu1 %vm324_vm0, %v10815_v4 }
 0x251   :  { %v11111_v29 = vpop.permute.xlu1 %2366  ;;  %9410 = vmatmul.mubr.msk.bf16.vlgmr.msra.gmra.mxu0 %vm324_vm0, %v10828_v9 }
 0x252   :  { %14126 = vst [vmem:[#allocation45_spill] sm:$0xff] %v11111_v29  ;;  %9413 = vmatprep.mubr.msk.bf16.mxu0 %vm324_vm0, %v10826_v8 }
 0x255   :  { %9400 = vmatmul.mubr.msk.bf16.vlgmr.msra.gmra.mxu1 %vm324_vm0, %v10828_v9 }
 0x256   :  { %v11125_v19 = vpop.permute.xlu1 %2660  ;;  %9403 = vmatprep.mubr.msk.bf16.mxu1 %vm324_vm0, %v10826_v8 }
 0x257   :  { %14129 = vst [vmem:[#allocation48_spill] sm:$0xff] %v11125_v19 }
 0x259   :  { %9414 = vmatmul.mubr.msk.bf16.gmra.mxu0 %vm324_vm0, %v10838_v12 }
 0x25a   :  { %9429 = vmatprep.mubr.msk.bf16.mxu0 %vm324_vm0, %v10815_v4 }
 0x25d   :  { %9404 = vmatmul.mubr.msk.bf16.gmra.mxu1 %vm324_vm0, %v10838_v12 }
 0x25e   :  { %9669 = vset.pattern.permute.xlu1 %v14011_v13  ;;  %v11123_v13 = vpop.permute.xlu0 %2644  ;;  %9419 = vmatprep.mubr.msk.bf16.mxu1 %vm324_vm0, %v10815_v4 }
 0x25f   :  { %14128 = vst [vmem:[#allocation47_spill] sm:$0xff] %v11123_v13 }
 0x262   :  { %v11134_v42 = vpop.permute.xlu0 %2072 }
 0x263   :  { %14130 = vst [vmem:[#allocation49_spill] sm:$0xff] %v11134_v42 }
 0x2a0   :  { %v450_v44 = vpop.trf.xlu1 }
 0x2a1   :  { %v11132_v15 = vsel %vm466_vm1, %v450_v44, 0.0  ;;  %v14131_v44 = vsub.s32 3, %v11113_v18 }
 0x2a2   :  { %v11139_v29 = vrot.slane %v11132_v15, %v14013_v62  ;;  %v11144_v19 = vrot.slane %v11132_v15, %v14014_v27  ;;  %v11149_v26 = vrot.slane %v11132_v15, %v14015_v43 }
 0x2a3   :  { %v11154_v59 = vrot.slane %v11132_v15, %v14131_v44 }
 0x2a4   :  { %v618_v42 = vadd.f32 %v11139_v29, %v587_v28  ;;  %v617_v62 = vadd.f32 %v11139_v29, %v11010_v49  ;;  %v911_v57 = vadd.f32 %v11144_v19, %v11001_v46  ;;  %v912_v27 = vadd.f32 %v11144_v19, %v881_v30  ;;  %v11168_v28 = vld [vmem:[%s14132_s2 + $0x8] sm:$0xff]  ;;  %v11173_v49 = vld [vmem:[%s14132_s2] sm:$0xff]  ;;  %v11175_v30 = vpop.permute.xlu0 %2656 }
 0x2a5   :  { %v1205_v47 = vadd.f32 %v11149_v26, %v11008_v48  ;;  %v1206_v43 = vadd.f32 %v11149_v26, %v1175_v45  ;;  %14133 = vst [vmem:[#allocation50_spill] sm:$0xff] %v11175_v30  ;;  %v1499_v45 = vadd.f32 %v11154_v59, %v11012_v50  ;;  %v1500_v6 = vadd.f32 %v11154_v59, %v11067_v21 }
 0x2a6   :  { %v626_v61 = vmul.f32 0.2, %v618_v42  ;;  %v625_v11 = vmul.f32 0.2, %v617_v62  ;;  %v919_v41 = vmul.f32 0.2, %v911_v57  ;;  %v621_v4 = vadd.f32 %v11139_v29, %v11014_v51 }
 0x2a7   :  { %v920_v46 = vmul.f32 0.2, %v912_v27  ;;  %v1213_v25 = vmul.f32 0.2, %v1205_v47  ;;  %v1214_v37 = vmul.f32 0.2, %v1206_v43  ;;  %v915_v51 = vadd.f32 %v11144_v19, %v11016_v52 }
 0x2a8   :  { %v634_v44 = vmax.f32 %v618_v42, %v626_v61  ;;  %v633_v48 = vmax.f32 %v617_v62, %v625_v11  ;;  %v927_v60 = vmax.f32 %v911_v57, %v919_v41  ;;  %v1507_v42 = vmul.f32 0.2, %v1499_v45  ;;  %v11189_v21 = vpop.permute.xlu0 %2668 }
 0x2a9   :  { %v928_v30 = vmax.f32 %v912_v27, %v920_v46  ;;  %v1221_v50 = vmax.f32 %v1205_v47, %v1213_v25  ;;  %v1222_v61 = vmax.f32 %v1206_v43, %v1214_v37  ;;  %v1508_v11 = vmul.f32 0.2, %v1500_v6 }
 0x2aa   :  { %v11182_v35 = vadd.f32 %v634_v44, %v11168_v28  ;;  %v11185_v13 = vadd.f32 %v633_v48, %v11173_v49  ;;  %v11192_v62 = vadd.f32 %v927_v60, %v11173_v49  ;;  %v619_v41 = vadd.f32 %v11139_v29, %v10952_v32 }
 0x2ab   :  { %v11195_v44 = vadd.f32 %v928_v30, %v11168_v28  ;;  %v620_v57 = vadd.f32 %v11139_v29, %v11036_v63  ;;  %v1515_v37 = vmax.f32 %v1499_v45, %v1507_v42  ;;  %v11204_v43 = vadd.f32 %v1221_v50, %v11173_v49  ;;  %v11235_v42 = vld [vmem:[%s14132_s2 + $0x10] sm:$0xff]  ;;  %v11240_v50 = vld [vmem:[%s14132_s2 + $0x18] sm:$0xff] }
 0x2ac   :  { %651 = vmax.xlane.f32.xlu0 %v11182_v35  ;;  %649 = vmax.xlane.f32.xlu1 %v11185_v13  ;;  %v11207_v60 = vadd.f32 %v1222_v61, %v11168_v28  ;;  %v1516_v10 = vmax.f32 %v1500_v6, %v1508_v11  ;;  %v627_v32 = vmul.f32 0.2, %v619_v41  ;;  %v913_v63 = vadd.f32 %v11144_v19, %v10958_v34  ;;  %v1179_v6 = vpop.permute.xlu0 %1178 }
 0x2ad   :  { %v628_v39 = vmul.f32 0.2, %v620_v57  ;;  %v914_v25 = vadd.f32 %v11144_v19, %v11040_v2  ;;  %v11224_v47 = vadd.f32 %v1515_v37, %v11173_v49  ;;  %v1208_v34 = vadd.f32 %v11149_v26, %v11044_v5 }
 0x2ae   :  { %v11227_v27 = vadd.f32 %v1516_v10, %v11168_v28  ;;  %v1207_v2 = vadd.f32 %v11149_v26, %v1179_v6  ;;  %v635_v46 = vmax.f32 %v619_v41, %v627_v32  ;;  %v921_v48 = vmul.f32 0.2, %v913_v63 }
 0x2af   :  { %v636_v30 = vmax.f32 %v620_v57, %v628_v39  ;;  %v922_v45 = vmul.f32 0.2, %v914_v25  ;;  %v1216_v5 = vmul.f32 0.2, %v1208_v34  ;;  %v1502_v11 = vadd.f32 %v11154_v59, %v11038_v1 }
 0x2b0   :  { %943 = vmax.xlane.f32.xlu0 %v11192_v62  ;;  %945 = vmax.xlane.f32.xlu1 %v11195_v44  ;;  %v1215_v61 = vmul.f32 0.2, %v1207_v2  ;;  %v1501_v41 = vadd.f32 %v11154_v59, %v10964_v36  ;;  %v11253_v57 = vadd.f32 %v635_v46, %v11235_v42  ;;  %v929_v10 = vmax.f32 %v913_v63, %v921_v48 }
 0x2b1   :  { %v11256_v37 = vadd.f32 %v636_v30, %v11240_v50  ;;  %v930_v32 = vmax.f32 %v914_v25, %v922_v45  ;;  %v1224_v36 = vmax.f32 %v1208_v34, %v1216_v5  ;;  %v1510_v39 = vmul.f32 0.2, %v1502_v11  ;;  %v9740_v34 = vld [vmem:[#allocation7 + $0x38] sm:$0xff]  }
 0x2b2   :  { %v1223_v1 = vmax.f32 %v1207_v2, %v1215_v61  ;;  %v1509_v6 = vmul.f32 0.2, %v1501_v41  ;;  %v11265_v46 = vadd.f32 %v929_v10, %v11235_v42  ;;  %v622_v25 = vadd.f32 %v11139_v29, %v11069_v24  ;;  %9427 = vmatprep.subr.bf16.mxu0 %v9740_v34  ;;  %v9741_v10 = vld [vmem:[#allocation7 + $0x30] sm:$0xff]  }
 0x2b3   :  { %v11268_v63 = vadd.f32 %v930_v32, %v11240_v50  ;;  %v11277_v2 = vadd.f32 %v1224_v36, %v11240_v50  ;;  %v1518_v48 = vmax.f32 %v1502_v11, %v1510_v39  ;;  %v629_v61 = vmul.f32 0.2, %v621_v4  ;;  %9428 = vmatpush3.bf16.msra.mxu0 %v9740_v34  ;;  %v1191_v32 = vpop.permute.xlu0 %1190  ;;  %9417 = vmatprep.subr.bf16.mxu1 %v9741_v10  ;;  %v11302_v34 = vld [vmem:[%s14132_s2 + $0x28] sm:$0xff] }
 0x2b4   :  { %1237 = vmax.xlane.f32.xlu0 %v11204_v43  ;;  %1239 = vmax.xlane.f32.xlu1 %v11207_v60  ;;  %v11280_v30 = vadd.f32 %v1223_v1, %v11235_v42  ;;  %v1517_v45 = vmax.f32 %v1501_v41, %v1509_v6  ;;  %v630_v5 = vmul.f32 0.2, %v622_v25  ;;  %v916_v24 = vadd.f32 %v11144_v19, %v11071_v20 }
 0x2b5   :  { %v11289_v36 = vadd.f32 %v1518_v48, %v11240_v50  ;;  %v1209_v20 = vadd.f32 %v11149_v26, %v11018_v53  ;;  %v1210_v41 = vadd.f32 %v11149_v26, %v1191_v32  ;;  %v637_v1 = vmax.f32 %v621_v4, %v629_v61  ;;  %9418 = vmatpush3.bf16.msra.mxu1 %v9741_v10  ;;  %v11307_v53 = vld [vmem:[%s14132_s2 + $0x20] sm:$0xff] }
 0x2b6   :  { %v11292_v11 = vadd.f32 %v1517_v45, %v11235_v42  ;;  %v638_v52 = vmax.f32 %v622_v25, %v630_v5  ;;  %v924_v39 = vmul.f32 0.2, %v916_v24  ;;  %v923_v6 = vmul.f32 0.2, %v915_v51  ;;  %9430 = vmatmul.mubr.msk.bf16.vlgmr.msra.gmra.mxu0 %vm324_vm0, %v10828_v9 }
 0x2b7   :  { %14134 = vst [vmem:[#allocation51_spill] sm:$0xff] %v11289_v36  ;;  %9433 = vmatprep.mubr.msk.bf16.mxu0 %vm324_vm0, %v10826_v8  ;;  %v1217_v25 = vmul.f32 0.2, %v1209_v20  ;;  %v1218_v4 = vmul.f32 0.2, %v1210_v41  ;;  %v1503_v48 = vadd.f32 %v11154_v59, %v11022_v55  ;;  %v1504_v45 = vadd.f32 %v11154_v59, %v11073_v22 }
 0x2b8   :  { %1531 = vmax.xlane.f32.xlu0 %v11224_v47  ;;  %1533 = vmax.xlane.f32.xlu1 %v11227_v27  ;;  %14135 = vst [vmem:[#allocation52_spill] sm:$0xff] %v11292_v11  ;;  %v11320_v5 = vadd.f32 %v638_v52, %v11302_v34  ;;  %v11323_v61 = vadd.f32 %v637_v1, %v11307_v53 }
 0x2b9   :  { %9420 = vmatmul.mubr.msk.bf16.vlgmr.msra.gmra.mxu1 %vm324_vm0, %v10828_v9  ;;  %v932_v10 = vmax.f32 %v916_v24, %v924_v39  ;;  %v931_v32 = vmax.f32 %v915_v51, %v923_v6  ;;  %v1225_v55 = vmax.f32 %v1209_v20, %v1217_v25  ;;  %v1226_v22 = vmax.f32 %v1210_v41, %v1218_v4 }
 0x2ba   :  { %9423 = vmatprep.mubr.msk.bf16.mxu1 %vm324_vm0, %v10826_v8  ;;  %v623_v24 = vadd.f32 %v11139_v29, %v10949_v31  ;;  %v624_v8 = vadd.f32 %v11139_v29, %v11048_v7  ;;  %v917_v29 = vadd.f32 %v11144_v19, %v10971_v38  ;;  %v918_v39 = vadd.f32 %v11144_v19, %v11042_v3 }
 0x2bb   :  { %v11330_v9 = vadd.f32 %v932_v10, %v11302_v34  ;;  %v11333_v52 = vadd.f32 %v931_v32, %v11307_v53  ;;  %v11344_v51 = vadd.f32 %v1225_v55, %v11307_v53  ;;  %v11347_v20 = vadd.f32 %v1226_v22, %v11302_v34 }
 0x2bc   :  { %653 = vmax.xlane.f32.xlu0 %v11253_v57  ;;  %655 = vmax.xlane.f32.xlu1 %v11256_v37  ;;  %v631_v31 = vmul.f32 0.2, %v623_v24  ;;  %v632_v7 = vmul.f32 0.2, %v624_v8  ;;  %v14021_v6 = vsub.s32 4, %v11113_v18  ;;  %v1212_v38 = vadd.f32 %v11149_v26, %v11054_v14 }
 0x2bd   :  { %v925_v3 = vmul.f32 0.2, %v917_v29  ;;  %v926_v4 = vmul.f32 0.2, %v918_v39  ;;  %v14020_v10 = vsub.s32 5, %v11113_v18  ;;  %v1505_v32 = vadd.f32 %v11154_v59, %v10955_v33 }
 0x2be   :  { %9434 = vmatmul.mubr.msk.bf16.gmra.mxu0 %vm324_vm0, %v10838_v12  ;;  %v639_v25 = vmax.f32 %v623_v24, %v631_v31  ;;  %v640_v19 = vmax.f32 %v624_v8, %v632_v7  ;;  %v1506_v55 = vadd.f32 %v11154_v59, %v11058_v23 }
 0x2bf   :  { %v933_v8 = vmax.f32 %v917_v29, %v925_v3  ;;  %v11400_v31 = vrot.slane %v11132_v15, %v14020_v10  ;;  %v1513_v23 = vmul.f32 0.2, %v1505_v32  ;;  %v14019_v3 = vsub.s32 7, %v11113_v18  ;;  %v14139_v10 = vld [vmem:[#allocation47_spill] sm:$0xff] }
 0x2c0   :  { %947 = vmax.xlane.f32.xlu0 %v11265_v46  ;;  %949 = vmax.xlane.f32.xlu1 %v11268_v63  ;;  %v1514_v7 = vmul.f32 0.2, %v1506_v55 }
 0x2c1   :  { %9424 = vmatmul.mubr.msk.bf16.gmra.mxu1 %vm324_vm0, %v10838_v12  ;;  %v1211_v12 = vadd.f32 %v11149_v26, %v10978_v40  ;;  %v11382_v40 = vrot.slane %v11132_v15, %v14021_v6  ;;  %v1220_v26 = vmul.f32 0.2, %v1212_v38 }
 0x2c3   :  { %v1219_v14 = vmul.f32 0.2, %v1211_v12  ;;  %v1228_v59 = vmax.f32 %v1212_v38, %v1220_v26 }
 0x2c4   :  { %1243 = vmax.xlane.f32.xlu1 %v11277_v2  ;;  %1241 = vmax.xlane.f32.xlu0 %v11280_v30 }
 0x2c5   :  { %v1227_v33 = vmax.f32 %v1211_v12, %v1219_v14  ;;  %v1522_v14 = vmax.f32 %v1506_v55, %v1514_v7 }
 0x2c8   :  { %1537 = vmax.xlane.f32.xlu1 %v11289_v36  ;;  %1535 = vmax.xlane.f32.xlu0 %v11292_v11  ;;  %v1511_v11 = vmul.f32 0.2, %v1503_v48  ;;  %v1512_v36 = vmul.f32 0.2, %v1504_v45 }
 0x2ca   :  { %v1519_v41 = vmax.f32 %v1503_v48, %v1511_v11  ;;  %v1520_v1 = vmax.f32 %v1504_v45, %v1512_v36  ;;  %v11371_v48 = vld [vmem:[%s14132_s2 + $0x30] sm:$0xff]  ;;  %v11376_v45 = vld [vmem:[%s14132_s2 + $0x38] sm:$0xff] }
 0x2cb   :  { %v11391_v22 = vadd.f32 %v639_v25, %v11371_v48  ;;  %v11394_v24 = vadd.f32 %v640_v19, %v11376_v45  ;;  %v11405_v25 = vadd.f32 %v933_v8, %v11371_v48  ;;  %v1794_v19 = vadd.f32 %v11382_v40, %v11085_v0 }
 0x2cc   :  { %659 = vmax.xlane.f32.xlu1 %v11320_v5  ;;  %657 = vmax.xlane.f32.xlu0 %v11323_v61  ;;  %v11359_v11 = vadd.f32 %v1519_v41, %v11307_v53  ;;  %v11362_v36 = vadd.f32 %v1520_v1, %v11302_v34  ;;  %v934_v41 = vmax.f32 %v918_v39, %v926_v4  ;;  %v14018_v1 = vsub.s32 6, %v11113_v18 }
 0x2cd   :  { %v1793_v39 = vadd.f32 %v11382_v40, %v11020_v54  ;;  %v11423_v38 = vadd.f32 %v1227_v33, %v11371_v48  ;;  %v11426_v4 = vadd.f32 %v1228_v59, %v11376_v45  ;;  %v1521_v54 = vmax.f32 %v1505_v32, %v1513_v23 }
 0x2ce   :  { %v11408_v29 = vadd.f32 %v934_v41, %v11376_v45  ;;  %v11418_v12 = vrot.slane %v11132_v15, %v14018_v1  ;;  %v1802_v26 = vmul.f32 0.2, %v1794_v19  ;;  %v2087_v8 = vadd.f32 %v11400_v31, %v11024_v56 }
 0x2cf   :  { %v1801_v0 = vmul.f32 0.2, %v1793_v39  ;;  %v2088_v41 = vadd.f32 %v11400_v31, %v11097_v16  ;;  %v11435_v1 = vrot.slane %v11132_v15, %v14019_v3  ;;  %v11440_v32 = vadd.f32 %v1521_v54, %v11371_v48  ;;  %v14138_v3 = vld [vmem:[#allocation34_spill] sm:$0xff] }
 0x2d0   :  { %953 = vmax.xlane.f32.xlu1 %v11330_v9  ;;  %951 = vmax.xlane.f32.xlu0 %v11333_v52  ;;  %v11443_v55 = vadd.f32 %v1522_v14, %v11376_v45  ;;  %v2381_v56 = vadd.f32 %v11418_v12, %v11028_v58  ;;  %v2382_v16 = vadd.f32 %v11418_v12, %v11109_v17  ;;  %v2095_v15 = vmul.f32 0.2, %v2087_v8 }
 0x2d1   :  { %14136 = vst [vmem:[#allocation53_spill] sm:$0xff] %v11440_v32  ;;  %v1809_v33 = vmax.f32 %v1793_v39, %v1801_v0  ;;  %v1810_v59 = vmax.f32 %v1794_v19, %v1802_v26  ;;  %v2096_v23 = vmul.f32 0.2, %v2088_v41  ;;  %v2675_v14 = vadd.f32 %v11435_v1, %v14138_v3 }
 0x2d2   :  { %14137 = vst [vmem:[#allocation54_spill] sm:$0xff] %v11443_v55  ;;  %v2389_v7 = vmul.f32 0.2, %v2381_v56  ;;  %v2390_v54 = vmul.f32 0.2, %v2382_v16  ;;  %v2676_v6 = vadd.f32 %v11435_v1, %v14139_v10  ;;  %v2103_v39 = vmax.f32 %v2087_v8, %v2095_v15 }
 0x2d3   :  { %v11456_v58 = vadd.f32 %v1809_v33, %v11173_v49  ;;  %v11459_v17 = vadd.f32 %v1810_v59, %v11168_v28  ;;  %v2104_v19 = vmax.f32 %v2088_v41, %v2096_v23  ;;  %v2683_v18 = vmul.f32 0.2, %v2675_v14  ;;  %v14142_v33 = vld [vmem:[#allocation25_spill] sm:$0xff] }
 0x2d4   :  { %1245 = vmax.xlane.f32.xlu0 %v11344_v51  ;;  %1247 = vmax.xlane.f32.xlu1 %v11347_v20  ;;  %v2397_v0 = vmax.f32 %v2381_v56, %v2389_v7  ;;  %v2398_v26 = vmax.f32 %v2382_v16, %v2390_v54  ;;  %v11464_v3 = vadd.f32 %v2103_v39, %v11173_v49  ;;  %v14146_v54 = vld [vmem:[#allocation26_spill] sm:$0xff] }
 0x2d5   :  { %v11467_v10 = vadd.f32 %v2104_v19, %v11168_v28  ;;  %v1795_v59 = vadd.f32 %v11382_v40, %v14142_v33  ;;  %v2691_v16 = vmax.f32 %v2675_v14, %v2683_v18  ;;  %v2089_v39 = vadd.f32 %v11400_v31, %v14146_v54  ;;  %v14147_v19 = vld [vmem:[#allocation40_spill] sm:$0xff]  ;;  %v14150_v18 = vld [vmem:[#allocation27_spill] sm:$0xff] }
 0x2d6   :  { %14140 = vst [vmem:[#allocation34_spill] sm:$0xff] %v11464_v3  ;;  %v11476_v41 = vadd.f32 %v2397_v0, %v11173_v49  ;;  %v11479_v56 = vadd.f32 %v2398_v26, %v11168_v28 }
 0x2d7   :  { %14141 = vst [vmem:[#allocation47_spill] sm:$0xff] %v11467_v10  ;;  %v1803_v23 = vmul.f32 0.2, %v1795_v59  ;;  %v11488_v0 = vadd.f32 %v2691_v16, %v11173_v49  ;;  %v14152_v16 = vld [vmem:[#allocation28_spill] sm:$0xff] }
 0x2d8   :  { %1539 = vmax.xlane.f32.xlu0 %v11359_v11  ;;  %1541 = vmax.xlane.f32.xlu1 %v11362_v36  ;;  %14144 = vst [vmem:[#allocation25_spill] sm:$0xff] %v11476_v41 }
 0x2d9   :  { %14148 = vst [vmem:[#allocation26_spill] sm:$0xff] %v11488_v0  ;;  %v1811_v33 = vmax.f32 %v1795_v59, %v1803_v23 }
 0x2dc   :  { %661 = vmax.xlane.f32.xlu0 %v11391_v22  ;;  %663 = vmax.xlane.f32.xlu1 %v11394_v24 }
 0x2e0   :  { %955 = vmax.xlane.f32.xlu0 %v11405_v25  ;;  %957 = vmax.xlane.f32.xlu1 %v11408_v29 }
 0x2e4   :  { %1249 = vmax.xlane.f32.xlu0 %v11423_v38  ;;  %1251 = vmax.xlane.f32.xlu1 %v11426_v4 }
 0x2e8   :  { %1543 = vmax.xlane.f32.xlu0 %v11440_v32  ;;  %1545 = vmax.xlane.f32.xlu1 %v11443_v55  ;;  %v2684_v32 = vmul.f32 0.2, %v2676_v6  ;;  %v14143_v55 = vld [vmem:[#allocation36_spill] sm:$0xff] }
 0x2e9   :  { %v1796_v8 = vadd.f32 %v11382_v40, %v14143_v55  ;;  %14145 = vst [vmem:[#allocation36_spill] sm:$0xff] %v11479_v56  ;;  %v2090_v55 = vadd.f32 %v11400_v31, %v14147_v19 }
 0x2ea   :  { %v2692_v15 = vmax.f32 %v2676_v6, %v2684_v32  ;;  %v2383_v6 = vadd.f32 %v11418_v12, %v14150_v18  ;;  %v14151_v32 = vld [vmem:[#allocation37_spill] sm:$0xff]  ;;  %v11504_v18 = vadd.f32 %v1811_v33, %v11235_v42  ;;  %v14156_v33 = vld [vmem:[#allocation35_spill] sm:$0xff] }
 0x2eb   :  { %v1804_v7 = vmul.f32 0.2, %v1796_v8  ;;  %v2384_v14 = vadd.f32 %v11418_v12, %v14151_v32  ;;  %v2098_v19 = vmul.f32 0.2, %v2090_v55 }
 0x2ec   :  { %1825 = vmax.xlane.f32.xlu0 %v11456_v58  ;;  %1827 = vmax.xlane.f32.xlu1 %v11459_v17  ;;  %v11491_v26 = vadd.f32 %v2692_v15, %v11168_v28  ;;  %v2677_v28 = vadd.f32 %v11435_v1, %v14152_v16  ;;  %v14153_v15 = vld [vmem:[#allocation38_spill] sm:$0xff] }
 0x2ed   :  { %v1812_v54 = vmax.f32 %v1796_v8, %v1804_v7  ;;  %v2392_v49 = vmul.f32 0.2, %v2384_v14  ;;  %v2106_v23 = vmax.f32 %v2090_v55, %v2098_v19 }
 0x2ee   :  { %14149 = vst [vmem:[#allocation40_spill] sm:$0xff] %v11491_v26 }
 0x2ef   :  { %v11507_v59 = vadd.f32 %v1812_v54, %v11240_v50  ;;  %v2400_v32 = vmax.f32 %v2384_v14, %v2392_v49  ;;  %v1797_v54 = vadd.f32 %v11382_v40, %v14156_v33  ;;  %v14160_v49 = vld [vmem:[#allocation32_spill] sm:$0xff] }
 0x2f0   :  { %2119 = vmax.xlane.f32.xlu0 %v11464_v3  ;;  %2121 = vmax.xlane.f32.xlu1 %v11467_v10  ;;  %v2097_v3 = vmul.f32 0.2, %v2089_v39  ;;  %v14157_v10 = vld [vmem:[#allocation42_spill] sm:$0xff] }
 0x2f1   :  { %v1805_v14 = vmul.f32 0.2, %v1797_v54 }
 0x2f2   :  { %v2105_v8 = vmax.f32 %v2089_v39, %v2097_v3  ;;  %v1798_v3 = vadd.f32 %v11382_v40, %v14157_v10  ;;  %v11527_v39 = vadd.f32 %v2400_v32, %v11240_v50 }
 0x2f3   :  { %v1813_v33 = vmax.f32 %v1797_v54, %v1805_v14 }
 0x2f4   :  { %2413 = vmax.xlane.f32.xlu0 %v11476_v41  ;;  %2415 = vmax.xlane.f32.xlu1 %v11479_v56  ;;  %v2391_v41 = vmul.f32 0.2, %v2383_v6  ;;  %v2678_v56 = vadd.f32 %v11435_v1, %v14153_v15  ;;  %v11512_v16 = vadd.f32 %v2105_v8, %v11235_v42  ;;  %v11515_v15 = vadd.f32 %v2106_v23, %v11240_v50  ;;  %v14161_v23 = vld [vmem:[#allocation49_spill] sm:$0xff] }
 0x2f5   :  { %14159 = vst [vmem:[#allocation38_spill] sm:$0xff] %v11527_v39  ;;  %v1806_v19 = vmul.f32 0.2, %v1798_v3  ;;  %v2091_v8 = vadd.f32 %v11400_v31, %v14160_v49  ;;  %v2092_v10 = vadd.f32 %v11400_v31, %v14161_v23 }
 0x2f6   :  { %v2399_v7 = vmax.f32 %v2383_v6, %v2391_v41  ;;  %14154 = vst [vmem:[#allocation27_spill] sm:$0xff] %v11512_v16  ;;  %14155 = vst [vmem:[#allocation37_spill] sm:$0xff] %v11515_v15 }
 0x2f7   :  { %v1814_v49 = vmax.f32 %v1798_v3, %v1806_v19  ;;  %v2100_v23 = vmul.f32 0.2, %v2092_v10 }
 0x2f8   :  { %2707 = vmax.xlane.f32.xlu0 %v11488_v0  ;;  %2709 = vmax.xlane.f32.xlu1 %v11491_v26  ;;  %v2685_v0 = vmul.f32 0.2, %v2677_v28  ;;  %v2686_v26 = vmul.f32 0.2, %v2678_v56  ;;  %v11524_v41 = vadd.f32 %v2399_v7, %v11235_v42 }
 0x2f9   :  { %v11555_v54 = vadd.f32 %v1814_v49, %v11302_v34  ;;  %v2108_v14 = vmax.f32 %v2092_v10, %v2100_v23 }
 0x2fa   :  { %14158 = vst [vmem:[#allocation28_spill] sm:$0xff] %v11524_v41  ;;  %v2693_v55 = vmax.f32 %v2677_v28, %v2685_v0  ;;  %v2694_v6 = vmax.f32 %v2678_v56, %v2686_v26  ;;  %v14164_v0 = vld [vmem:[#allocation33_spill] sm:$0xff] }
 0x2fb   :  { %v2385_v56 = vadd.f32 %v11418_v12, %v14164_v0  ;;  %v14165_v26 = vld [vmem:[#allocation45_spill] sm:$0xff]  ;;  %v11552_v0 = vadd.f32 %v1813_v33, %v11307_v53 }
 0x2fc   :  { %1829 = vmax.xlane.f32.xlu0 %v11504_v18  ;;  %1831 = vmax.xlane.f32.xlu1 %v11507_v59  ;;  %v11536_v7 = vadd.f32 %v2693_v55, %v11235_v42  ;;  %v11539_v32 = vadd.f32 %v2694_v6, %v11240_v50  ;;  %v2386_v28 = vadd.f32 %v11418_v12, %v14165_v26  ;;  %v14166_v55 = vld [vmem:[#allocation50_spill] sm:$0xff]  ;;  %v14167_v6 = vld [vmem:[#allocation48_spill] sm:$0xff]  ;;  %v14168_v33 = vld [vmem:[#allocation29_spill] sm:$0xff] }
 0x2fd   :  { %v2679_v50 = vadd.f32 %v11435_v1, %v14166_v55  ;;  %v1799_v49 = vadd.f32 %v11382_v40, %v14168_v33 }
 0x2fe   :  { %14162 = vst [vmem:[#allocation35_spill] sm:$0xff] %v11536_v7  ;;  %14163 = vst [vmem:[#allocation42_spill] sm:$0xff] %v11539_v32  ;;  %v2394_v42 = vmul.f32 0.2, %v2386_v28 }
 0x300   :  { %2123 = vmax.xlane.f32.xlu0 %v11512_v16  ;;  %2125 = vmax.xlane.f32.xlu1 %v11515_v15  ;;  %v2099_v16 = vmul.f32 0.2, %v2091_v8  ;;  %v2402_v26 = vmax.f32 %v2386_v28, %v2394_v42  ;;  %v14169_v15 = vld [vmem:[#allocation39_spill] sm:$0xff]  ;;  %v1807_v28 = vmul.f32 0.2, %v1799_v49 }
 0x301   :  { %v14170_v42 = vld [vmem:[#allocation31_spill] sm:$0xff] }
 0x302   :  { %v2107_v3 = vmax.f32 %v2091_v8, %v2099_v16  ;;  %v1800_v16 = vadd.f32 %v11382_v40, %v14169_v15  ;;  %v11575_v8 = vadd.f32 %v2402_v26, %v11302_v34  ;;  %v1815_v26 = vmax.f32 %v1799_v49, %v1807_v28 }
 0x304   :  { %2417 = vmax.xlane.f32.xlu0 %v11524_v41  ;;  %2419 = vmax.xlane.f32.xlu1 %v11527_v39  ;;  %v2393_v41 = vmul.f32 0.2, %v2385_v56  ;;  %v2680_v39 = vadd.f32 %v11435_v1, %v14167_v6  ;;  %v11560_v55 = vadd.f32 %v2107_v3, %v11307_v53  ;;  %v11563_v6 = vadd.f32 %v2108_v14, %v11302_v34  ;;  %v14171_v14 = vld [vmem:[#allocation41_spill] sm:$0xff] }
 0x305   :  { %v1808_v23 = vmul.f32 0.2, %v1800_v16  ;;  %v2093_v3 = vadd.f32 %v11400_v31, %v14170_v42  ;;  %v2094_v40 = vadd.f32 %v11400_v31, %v14171_v14 }
 0x306   :  { %v2401_v19 = vmax.f32 %v2385_v56, %v2393_v41 }
 0x307   :  { %v1816_v33 = vmax.f32 %v1800_v16, %v1808_v23  ;;  %v2101_v42 = vmul.f32 0.2, %v2093_v3  ;;  %v2102_v31 = vmul.f32 0.2, %v2094_v40 }
 0x308   :  { %2711 = vmax.xlane.f32.xlu0 %v11536_v7  ;;  %2713 = vmax.xlane.f32.xlu1 %v11539_v32  ;;  %v2687_v7 = vmul.f32 0.2, %v2679_v50  ;;  %v2688_v32 = vmul.f32 0.2, %v2680_v39  ;;  %v11572_v41 = vadd.f32 %v2401_v19, %v11307_v53 }
 0x309   :  { %v2109_v49 = vmax.f32 %v2093_v3, %v2101_v42  ;;  %v2110_v16 = vmax.f32 %v2094_v40, %v2102_v31 }
 0x30a   :  { %v2695_v10 = vmax.f32 %v2679_v50, %v2687_v7  ;;  %v2696_v56 = vmax.f32 %v2680_v39, %v2688_v32  ;;  %v14172_v7 = vld [vmem:[#allocation30_spill] sm:$0xff]  ;;  %v14173_v32 = vld [vmem:[#allocation43_spill] sm:$0xff] }
 0x30b   :  { %v2387_v39 = vadd.f32 %v11418_v12, %v14172_v7  ;;  %v2388_v50 = vadd.f32 %v11418_v12, %v14173_v32  ;;  %v11600_v7 = vadd.f32 %v1815_v26, %v11371_v48  ;;  %v11603_v12 = vadd.f32 %v1816_v33, %v11376_v45 }
 0x30c   :  { %1833 = vmax.xlane.f32.xlu0 %v11552_v0  ;;  %1835 = vmax.xlane.f32.xlu1 %v11555_v54  ;;  %v11584_v15 = vadd.f32 %v2695_v10, %v11307_v53  ;;  %v11587_v19 = vadd.f32 %v2696_v56, %v11302_v34  ;;  %v14174_v10 = vld [vmem:[#allocation44_spill] sm:$0xff]  ;;  %v2682_v56 = vadd.f32 %v11435_v1, %v11189_v21 }
 0x30d   :  { %v2395_v14 = vmul.f32 0.2, %v2387_v39  ;;  %v2396_v53 = vmul.f32 0.2, %v2388_v50  ;;  %v2681_v34 = vadd.f32 %v11435_v1, %v14174_v10  ;;  %v11608_v32 = vadd.f32 %v2109_v49, %v11371_v48 }
 0x30e   :  { %v11611_v10 = vadd.f32 %v2110_v16, %v11376_v45  ;;  %v2690_v1 = vmul.f32 0.2, %v2682_v56 }
 0x30f   :  { %v2403_v28 = vmax.f32 %v2387_v39, %v2395_v14  ;;  %v2689_v23 = vmul.f32 0.2, %v2681_v34  ;;  %v2404_v21 = vmax.f32 %v2388_v50, %v2396_v53 }
 0x310   :  { %2127 = vmax.xlane.f32.xlu0 %v11560_v55  ;;  %2129 = vmax.xlane.f32.xlu1 %v11563_v6  ;;  %v2698_v26 = vmax.f32 %v2682_v56, %v2690_v1 }
 0x311   :  { %v11616_v3 = vadd.f32 %v2403_v28, %v11371_v48  ;;  %v11619_v40 = vadd.f32 %v2404_v21, %v11376_v45  ;;  %v2697_v39 = vmax.f32 %v2681_v34, %v2689_v23 }
 0x312   :  { %v11627_v50 = vadd.f32 %v2698_v26, %v11376_v45 }
 0x313   :  { %v11624_v33 = vadd.f32 %v2697_v39, %v11371_v48 }
 0x314   :  { %2421 = vmax.xlane.f32.xlu0 %v11572_v41  ;;  %2423 = vmax.xlane.f32.xlu1 %v11575_v8 }
 0x318   :  { %2715 = vmax.xlane.f32.xlu0 %v11584_v15  ;;  %2717 = vmax.xlane.f32.xlu1 %v11587_v19 }
 0x31c   :  { %1837 = vmax.xlane.f32.xlu0 %v11600_v7  ;;  %1839 = vmax.xlane.f32.xlu1 %v11603_v12 }
 0x320   :  { %2131 = vmax.xlane.f32.xlu0 %v11608_v32  ;;  %2133 = vmax.xlane.f32.xlu1 %v11611_v10 }
 0x324   :  { %2425 = vmax.xlane.f32.xlu0 %v11616_v3  ;;  %2427 = vmax.xlane.f32.xlu1 %v11619_v40 }
 0x328   :  { %2719 = vmax.xlane.f32.xlu0 %v11624_v33  ;;  %2721 = vmax.xlane.f32.xlu1 %v11627_v50 }
 0x335   :  { %v650_v42 = vpop.xlane.xlu1 %649  ;;  %v652_v31 = vpop.xlane.xlu0 %651 }
 0x336   :  { %v665_v14 = vsub.f32 %v11185_v13, %v650_v42  ;;  %v666_v53 = vsub.f32 %v11182_v35, %v652_v31 }
 0x338   :  { %v673_v34 = vmul.f32 1.442695, %v665_v14  ;;  %v675_v56 = vmul.f32 1.442695, %v666_v53  ;;  %v14175_v14 = vmov 0  }
 0x339   :  { %v946_v49 = vpop.xlane.xlu1 %945  ;;  %v944_v16 = vpop.xlane.xlu0 %943  ;;  %178 = vst.msk [vmem:[#allocation3 + $0x48] sm:$0xf] %vm159_vm2, %v14175_v14  ;;  %160 = vst.msk [vmem:[#allocation3] sm:$0xf] %vm159_vm2, %v14175_v14 }
 0x33a   :  { %9894 = vpow2.f32 %v673_v34  ;;  %v960_v48 = vsub.f32 %v11195_v44, %v946_v49  ;;  %v959_v45 = vsub.f32 %v11192_v62, %v944_v16  ;;  %161 = vst.msk [vmem:[#allocation3 + $0x4] sm:$0xf] %vm159_vm2, %v14175_v14  ;;  %162 = vst.msk [vmem:[#allocation3 + $0x8] sm:$0xf] %vm159_vm2, %v14175_v14 }
 0x33b   :  { %9896 = vpow2.f32 %v675_v56  ;;  %163 = vst.msk [vmem:[#allocation3 + $0xc] sm:$0xf] %vm159_vm2, %v14175_v14  ;;  %164 = vst.msk [vmem:[#allocation3 + $0x10] sm:$0xf] %vm159_vm2, %v14175_v14 }
 0x33c   :  { %v969_v28 = vmul.f32 1.442695, %v960_v48  ;;  %v967_v23 = vmul.f32 1.442695, %v959_v45  ;;  %165 = vst.msk [vmem:[#allocation3 + $0x14] sm:$0xf] %vm159_vm2, %v14175_v14 }
 0x33d   :  { %v1240_v21 = vpop.xlane.xlu1 %1239  ;;  %v1238_v1 = vpop.xlane.xlu0 %1237  ;;  %166 = vst.msk [vmem:[#allocation3 + $0x18] sm:$0xf] %vm159_vm2, %v14175_v14  ;;  %167 = vst.msk [vmem:[#allocation3 + $0x1c] sm:$0xf] %vm159_vm2, %v14175_v14 }
 0x33e   :  { %9898 = vpow2.f32 %v969_v28  ;;  %v1254_v39 = vsub.f32 %v11207_v60, %v1240_v21  ;;  %v1253_v13 = vsub.f32 %v11204_v43, %v1238_v1  ;;  %v11649_v43 = vpop.f32.mrf.mxu0  ;;  %168 = vst.msk [vmem:[#allocation3 + $0x20] sm:$0xf] %vm159_vm2, %v14175_v14  ;;  %169 = vst.msk [vmem:[#allocation3 + $0x24] sm:$0xf] %vm159_vm2, %v14175_v14  ;;  %v9361_v60 = vpop.f32.mrf.mxu1 }
 0x33f   :  { %9900 = vpow2.f32 %v967_v23  ;;  %170 = vst.msk [vmem:[#allocation3 + $0x28] sm:$0xf] %vm159_vm2, %v14175_v14  ;;  %171 = vst.msk [vmem:[#allocation3 + $0x2c] sm:$0xf] %vm159_vm2, %v14175_v14  ;;  %v8672_v53 = vpack.c.bf16 %v11649_v43, %v11649_v43  ;;  %v8656_v34 = vpack.c.bf16 %v9361_v60, %v9361_v60 }
 0x340   :  { %v1263_v35 = vmul.f32 1.442695, %v1254_v39  ;;  %v11637_v26 = vmul.f32 1.442695, %v1253_v13  ;;  %172 = vst.msk [vmem:[#allocation3 + $0x30] sm:$0xf] %vm159_vm2, %v14175_v14  ;;  %v804_v23 = vpop.f32.mrf.mxu0  ;;  %v510_v21 = vpop.f32.mrf.mxu1 }
 0x341   :  { %v11639_v42 = vpop.xlane.xlu1 %1533  ;;  %v11641_v31 = vpop.xlane.xlu0 %1531  ;;  %173 = vst.msk [vmem:[#allocation3 + $0x34] sm:$0xf] %vm159_vm2, %v14175_v14  ;;  %174 = vst.msk [vmem:[#allocation3 + $0x38] sm:$0xf] %vm159_vm2, %v14175_v14  ;;  %v8654_v39 = vpack.c.bf16 %v510_v21, %v510_v21 }
 0x342   :  { %9902 = vpow2.f32 %v1263_v35  ;;  %v1548_v62 = vsub.f32 %v11227_v27, %v11639_v42  ;;  %v1547_v44 = vsub.f32 %v11224_v47, %v11641_v31  ;;  %175 = vst.msk [vmem:[#allocation3 + $0x3c] sm:$0xf] %vm159_vm2, %v14175_v14  ;;  %176 = vst.msk [vmem:[#allocation3 + $0x40] sm:$0xf] %vm159_vm2, %v14175_v14  ;;  %v8670_v27 = vpack.c.bf16 %v804_v23, %v804_v23  ;;  %v9362_v42 = vpop.f32.mrf.mxu1 }
 0x343   :  { %177 = vst.msk [vmem:[#allocation3 + $0x44] sm:$0xf] %vm159_vm2, %v14175_v14  ;;  %179 = vst.msk [vmem:[#allocation3 + $0x4c] sm:$0xf] %vm159_vm2, %v14175_v14  ;;  %9904 = vpow2.f32 %v11637_v26  ;;  %v9372_v26 = vpop.f32.mrf.mxu0 }
 0x344   :  { %180 = vst.msk [vmem:[#allocation3 + $0x50] sm:$0xf] %vm159_vm2, %v14175_v14  ;;  %181 = vst.msk [vmem:[#allocation3 + $0x54] sm:$0xf] %vm159_vm2, %v14175_v14  ;;  %v1557_v56 = vmul.f32 1.442695, %v1548_v62  ;;  %v8657_v62 = vpack.c.bf16 %v9362_v42, %v9362_v42 }
 0x345   :  { %182 = vst.msk [vmem:[#allocation3 + $0x58] sm:$0xf] %vm159_vm2, %v14175_v14  ;;  %183 = vst.msk [vmem:[#allocation3 + $0x5c] sm:$0xf] %vm159_vm2, %v14175_v14  ;;  %v1555_v49 = vmul.f32 1.442695, %v1547_v44  ;;  %v656_v16 = vpop.xlane.xlu1 %655  ;;  %v654_v48 = vpop.xlane.xlu0 %653 }
 0x346   :  { %184 = vst.msk [vmem:[#allocation3 + $0x60] sm:$0xf] %vm159_vm2, %v14175_v14  ;;  %185 = vst.msk [vmem:[#allocation3 + $0x64] sm:$0xf] %vm159_vm2, %v14175_v14  ;;  %9906 = vpow2.f32 %v1557_v56  ;;  %v668_v45 = vsub.f32 %v11256_v37, %v656_v16  ;;  %v667_v28 = vsub.f32 %v11253_v57, %v654_v48  ;;  %v8673_v57 = vpack.c.bf16 %v9372_v26, %v9372_v26  ;;  %v807_v60 = vpop.f32.mrf.mxu0 }
 0x347   :  { %186 = vst.msk [vmem:[#allocation3 + $0x68] sm:$0xf] %vm159_vm2, %v14175_v14  ;;  %187 = vst.msk [vmem:[#allocation3 + $0x6c] sm:$0xf] %vm159_vm2, %v14175_v14  ;;  %v11918_v1 = vpop.eup %9894  ;;  %9908 = vpow2.f32 %v1555_v49  ;;  %v8671_v56 = vpack.c.bf16 %v807_v60, %v807_v60 }
 0x348   :  { %188 = vst.msk [vmem:[#allocation3 + $0x70] sm:$0xf] %vm159_vm2, %v14175_v14  ;;  %189 = vst.msk [vmem:[#allocation3 + $0x74] sm:$0xf] %vm159_vm2, %v14175_v14  ;;  %v11920_v47 = vpop.eup %9896  ;;  %v679_v13 = vmul.f32 1.442695, %v668_v45  ;;  %689 = vadd.xlane.f32.xlu0 %v11918_v1 }
 0x349   :  { %190 = vst.msk [vmem:[#allocation3 + $0x78] sm:$0xf] %vm159_vm2, %v14175_v14  ;;  %191 = vst.msk [vmem:[#allocation3 + $0x7c] sm:$0xf] %vm159_vm2, %v14175_v14  ;;  %v677_v35 = vmul.f32 1.442695, %v667_v28  ;;  %691 = vadd.xlane.f32.xlu1 %v11920_v47  ;;  %v950_v37 = vpop.xlane.xlu1 %949  ;;  %v948_v31 = vpop.xlane.xlu0 %947 }
 0x34a   :  { %192 = vst.msk [vmem:[#allocation3 + $0x80] sm:$0xf] %vm159_vm2, %v14175_v14  ;;  %193 = vst.msk [vmem:[#allocation3 + $0x84] sm:$0xf] %vm159_vm2, %v14175_v14  ;;  %9910 = vpow2.f32 %v679_v13  ;;  %v962_v44 = vsub.f32 %v11268_v63, %v950_v37  ;;  %v961_v43 = vsub.f32 %v11265_v46, %v948_v31  ;;  %v9375_v28 = vpop.f32.mrf.mxu0 }
 0x34b   :  { %194 = vst.msk [vmem:[#allocation3 + $0x88] sm:$0xf] %vm159_vm2, %v14175_v14  ;;  %195 = vst.msk [vmem:[#allocation3 + $0x8c] sm:$0xf] %vm159_vm2, %v14175_v14  ;;  %9912 = vpow2.f32 %v677_v35  ;;  %v8676_v21 = vpack.c.bf16 %v9375_v28, %v9375_v28 }
 0x34c   :  { %196 = vst.msk [vmem:[#allocation3 + $0x90] sm:$0xf] %vm159_vm2, %v14175_v14  ;;  %197 = vst.msk [vmem:[#allocation3 + $0x94] sm:$0xf] %vm159_vm2, %v14175_v14  ;;  %v973_v48 = vmul.f32 1.442695, %v962_v44  ;;  %v820_v35 = vpop.f32.mrf.mxu0 }
 0x34d   :  { %198 = vst.msk [vmem:[#allocation3 + $0x98] sm:$0xf] %vm159_vm2, %v14175_v14  ;;  %199 = vst.msk [vmem:[#allocation3 + $0x9c] sm:$0xf] %vm159_vm2, %v14175_v14  ;;  %v971_v45 = vmul.f32 1.442695, %v961_v43  ;;  %v1244_v46 = vpop.xlane.xlu1 %1243  ;;  %v1242_v63 = vpop.xlane.xlu0 %1241  ;;  %v8674_v37 = vpack.c.bf16 %v820_v35, %v820_v35 }
 0x34e   :  { %200 = vst.msk [vmem:[#allocation3 + $0xa0] sm:$0xf] %vm159_vm2, %v14175_v14  ;;  %201 = vst.msk [vmem:[#allocation3 + $0xa4] sm:$0xf] %vm159_vm2, %v14175_v14  ;;  %9914 = vpow2.f32 %v973_v48  ;;  %v1255_v13 = vsub.f32 %v11280_v30, %v1242_v63  ;;  %v9376_v43 = vpop.f32.mrf.mxu0 }
 0x34f   :  { %202 = vst.msk [vmem:[#allocation3 + $0xa8] sm:$0xf] %vm159_vm2, %v14175_v14  ;;  %203 = vst.msk [vmem:[#allocation3 + $0xac] sm:$0xf] %vm159_vm2, %v14175_v14  ;;  %9916 = vpow2.f32 %v971_v45  ;;  %v14177_v45 = vld [vmem:[#allocation52_spill] sm:$0xff] }
 0x350   :  { %204 = vst.msk [vmem:[#allocation3 + $0xb0] sm:$0xf] %vm159_vm2, %v14175_v14  ;;  %205 = vst.msk [vmem:[#allocation3 + $0xb4] sm:$0xf] %vm159_vm2, %v14175_v14  ;;  %v1265_v44 = vmul.f32 1.442695, %v1255_v13 }
 0x351   :  { %206 = vst.msk [vmem:[#allocation3 + $0xb8] sm:$0xf] %vm159_vm2, %v14175_v14  ;;  %207 = vst.msk [vmem:[#allocation3 + $0xbc] sm:$0xf] %vm159_vm2, %v14175_v14  ;;  %v1536_v30 = vpop.xlane.xlu0 %1535 }
 0x352   :  { %208 = vst.msk [vmem:[#allocation3 + $0xc0] sm:$0xf] %vm159_vm2, %v14175_v14  ;;  %209 = vst.msk [vmem:[#allocation3 + $0xc4] sm:$0xf] %vm159_vm2, %v14175_v14  ;;  %v1549_v28 = vsub.f32 %v14177_v45, %v1536_v30 }
 0x353   :  { %210 = vst.msk [vmem:[#allocation3 + $0xc8] sm:$0xf] %vm159_vm2, %v14175_v14  ;;  %211 = vst.msk [vmem:[#allocation3 + $0xcc] sm:$0xf] %vm159_vm2, %v14175_v14 }
 0x354   :  { %212 = vst.msk [vmem:[#allocation3 + $0xd0] sm:$0xf] %vm159_vm2, %v14175_v14  ;;  %213 = vst.msk [vmem:[#allocation3 + $0xd4] sm:$0xf] %vm159_vm2, %v14175_v14  ;;  %v1559_v35 = vmul.f32 1.442695, %v1549_v28 }
 0x355   :  { %214 = vst.msk [vmem:[#allocation3 + $0xd8] sm:$0xf] %vm159_vm2, %v14175_v14  ;;  %215 = vst.msk [vmem:[#allocation3 + $0xdc] sm:$0xf] %vm159_vm2, %v14175_v14 }
 0x356   :  { %216 = vst.msk [vmem:[#allocation3 + $0xe0] sm:$0xf] %vm159_vm2, %v14175_v14  ;;  %217 = vst.msk [vmem:[#allocation3 + $0xe4] sm:$0xf] %vm159_vm2, %v14175_v14 }
 0x357   :  { %218 = vst.msk [vmem:[#allocation3 + $0xe8] sm:$0xf] %vm159_vm2, %v14175_v14  ;;  %219 = vst.msk [vmem:[#allocation3 + $0xec] sm:$0xf] %vm159_vm2, %v14175_v14 }
 0x358   :  { %220 = vst.msk [vmem:[#allocation3 + $0xf0] sm:$0xf] %vm159_vm2, %v14175_v14  ;;  %221 = vst.msk [vmem:[#allocation3 + $0xf4] sm:$0xf] %vm159_vm2, %v14175_v14 }
 0x359   :  { %222 = vst.msk [vmem:[#allocation3 + $0xf8] sm:$0xf] %vm159_vm2, %v14175_v14  ;;  %223 = vst.msk [vmem:[#allocation3 + $0xfc] sm:$0xf] %vm159_vm2, %v14175_v14 }
 0x35a   :  { %224 = vst.msk [vmem:[#allocation3 + $0x100] sm:$0xf] %vm159_vm2, %v14175_v14  ;;  %225 = vst.msk [vmem:[#allocation3 + $0x104] sm:$0xf] %vm159_vm2, %v14175_v14 }
 0x35b   :  { %226 = vst.msk [vmem:[#allocation3 + $0x108] sm:$0xf] %vm159_vm2, %v14175_v14  ;;  %227 = vst.msk [vmem:[#allocation3 + $0x10c] sm:$0xf] %vm159_vm2, %v14175_v14 }
 0x35c   :  { %228 = vst.msk [vmem:[#allocation3 + $0x110] sm:$0xf] %vm159_vm2, %v14175_v14  ;;  %229 = vst.msk [vmem:[#allocation3 + $0x114] sm:$0xf] %vm159_vm2, %v14175_v14 }
 0x35d   :  { %230 = vst.msk [vmem:[#allocation3 + $0x118] sm:$0xf] %vm159_vm2, %v14175_v14  ;;  %231 = vst.msk [vmem:[#allocation3 + $0x11c] sm:$0xf] %vm159_vm2, %v14175_v14 }
 0x35e   :  { %232 = vst.msk [vmem:[#allocation3 + $0x120] sm:$0xf] %vm159_vm2, %v14175_v14  ;;  %233 = vst.msk [vmem:[#allocation3 + $0x124] sm:$0xf] %vm159_vm2, %v14175_v14 }
 0x35f   :  { %234 = vst.msk [vmem:[#allocation3 + $0x128] sm:$0xf] %vm159_vm2, %v14175_v14  ;;  %235 = vst.msk [vmem:[#allocation3 + $0x12c] sm:$0xf] %vm159_vm2, %v14175_v14 }
 0x360   :  { %236 = vst.msk [vmem:[#allocation3 + $0x130] sm:$0xf] %vm159_vm2, %v14175_v14  ;;  %237 = vst.msk [vmem:[#allocation3 + $0x134] sm:$0xf] %vm159_vm2, %v14175_v14 }
 0x361   :  { %238 = vst.msk [vmem:[#allocation3 + $0x138] sm:$0xf] %vm159_vm2, %v14175_v14  ;;  %239 = vst.msk [vmem:[#allocation3 + $0x13c] sm:$0xf] %vm159_vm2, %v14175_v14 }
 0x362   :  { %240 = vst.msk [vmem:[#allocation3 + $0x140] sm:$0xf] %vm159_vm2, %v14175_v14  ;;  %241 = vst.msk [vmem:[#allocation3 + $0x144] sm:$0xf] %vm159_vm2, %v14175_v14 }
 0x363   :  { %242 = vst.msk [vmem:[#allocation3 + $0x148] sm:$0xf] %vm159_vm2, %v14175_v14  ;;  %243 = vst.msk [vmem:[#allocation3 + $0x14c] sm:$0xf] %vm159_vm2, %v14175_v14 }
 0x364   :  { %244 = vst.msk [vmem:[#allocation3 + $0x150] sm:$0xf] %vm159_vm2, %v14175_v14  ;;  %245 = vst.msk [vmem:[#allocation3 + $0x154] sm:$0xf] %vm159_vm2, %v14175_v14 }
 0x365   :  { %246 = vst.msk [vmem:[#allocation3 + $0x158] sm:$0xf] %vm159_vm2, %v14175_v14  ;;  %247 = vst.msk [vmem:[#allocation3 + $0x15c] sm:$0xf] %vm159_vm2, %v14175_v14 }
 0x366   :  { %248 = vst.msk [vmem:[#allocation3 + $0x160] sm:$0xf] %vm159_vm2, %v14175_v14  ;;  %249 = vst.msk [vmem:[#allocation3 + $0x164] sm:$0xf] %vm159_vm2, %v14175_v14 }
 0x367   :  { %250 = vst.msk [vmem:[#allocation3 + $0x168] sm:$0xf] %vm159_vm2, %v14175_v14  ;;  %251 = vst.msk [vmem:[#allocation3 + $0x16c] sm:$0xf] %vm159_vm2, %v14175_v14 }
 0x368   :  { %252 = vst.msk [vmem:[#allocation3 + $0x170] sm:$0xf] %vm159_vm2, %v14175_v14  ;;  %253 = vst.msk [vmem:[#allocation3 + $0x174] sm:$0xf] %vm159_vm2, %v14175_v14 }
 0x369   :  { %254 = vst.msk [vmem:[#allocation3 + $0x178] sm:$0xf] %vm159_vm2, %v14175_v14  ;;  %255 = vst.msk [vmem:[#allocation3 + $0x17c] sm:$0xf] %vm159_vm2, %v14175_v14 }
 0x36a   :  { %256 = vst.msk [vmem:[#allocation3 + $0x180] sm:$0xf] %vm159_vm2, %v14175_v14  ;;  %257 = vst.msk [vmem:[#allocation3 + $0x184] sm:$0xf] %vm159_vm2, %v14175_v14 }
 0x36b   :  { %258 = vst.msk [vmem:[#allocation3 + $0x188] sm:$0xf] %vm159_vm2, %v14175_v14  ;;  %259 = vst.msk [vmem:[#allocation3 + $0x18c] sm:$0xf] %vm159_vm2, %v14175_v14 }
 0x36c   :  { %260 = vst.msk [vmem:[#allocation3 + $0x190] sm:$0xf] %vm159_vm2, %v14175_v14  ;;  %261 = vst.msk [vmem:[#allocation3 + $0x194] sm:$0xf] %vm159_vm2, %v14175_v14 }
 0x36d   :  { %262 = vst.msk [vmem:[#allocation3 + $0x198] sm:$0xf] %vm159_vm2, %v14175_v14  ;;  %263 = vst.msk [vmem:[#allocation3 + $0x19c] sm:$0xf] %vm159_vm2, %v14175_v14 }
 0x36e   :  { %264 = vst.msk [vmem:[#allocation3 + $0x1a0] sm:$0xf] %vm159_vm2, %v14175_v14  ;;  %265 = vst.msk [vmem:[#allocation3 + $0x1a4] sm:$0xf] %vm159_vm2, %v14175_v14 }
 0x36f   :  { %266 = vst.msk [vmem:[#allocation3 + $0x1a8] sm:$0xf] %vm159_vm2, %v14175_v14  ;;  %267 = vst.msk [vmem:[#allocation3 + $0x1ac] sm:$0xf] %vm159_vm2, %v14175_v14 }
 0x370   :  { %268 = vst.msk [vmem:[#allocation3 + $0x1b0] sm:$0xf] %vm159_vm2, %v14175_v14  ;;  %269 = vst.msk [vmem:[#allocation3 + $0x1b4] sm:$0xf] %vm159_vm2, %v14175_v14 }
 0x371   :  { %270 = vst.msk [vmem:[#allocation3 + $0x1b8] sm:$0xf] %vm159_vm2, %v14175_v14  ;;  %271 = vst.msk [vmem:[#allocation3 + $0x1bc] sm:$0xf] %vm159_vm2, %v14175_v14 }
 0x372   :  { %272 = vst.msk [vmem:[#allocation3 + $0x1c0] sm:$0xf] %vm159_vm2, %v14175_v14  ;;  %273 = vst.msk [vmem:[#allocation3 + $0x1c4] sm:$0xf] %vm159_vm2, %v14175_v14 }
 0x373   :  { %274 = vst.msk [vmem:[#allocation3 + $0x1c8] sm:$0xf] %vm159_vm2, %v14175_v14  ;;  %275 = vst.msk [vmem:[#allocation3 + $0x1cc] sm:$0xf] %vm159_vm2, %v14175_v14 }
 0x374   :  { %276 = vst.msk [vmem:[#allocation3 + $0x1d0] sm:$0xf] %vm159_vm2, %v14175_v14  ;;  %277 = vst.msk [vmem:[#allocation3 + $0x1d4] sm:$0xf] %vm159_vm2, %v14175_v14 }
 0x375   :  { %278 = vst.msk [vmem:[#allocation3 + $0x1d8] sm:$0xf] %vm159_vm2, %v14175_v14  ;;  %279 = vst.msk [vmem:[#allocation3 + $0x1dc] sm:$0xf] %vm159_vm2, %v14175_v14 }
 0x376   :  { %280 = vst.msk [vmem:[#allocation3 + $0x1e0] sm:$0xf] %vm159_vm2, %v14175_v14  ;;  %281 = vst.msk [vmem:[#allocation3 + $0x1e4] sm:$0xf] %vm159_vm2, %v14175_v14 }
 0x377   :  { %282 = vst.msk [vmem:[#allocation3 + $0x1e8] sm:$0xf] %vm159_vm2, %v14175_v14  ;;  %283 = vst.msk [vmem:[#allocation3 + $0x1ec] sm:$0xf] %vm159_vm2, %v14175_v14 }
 0x378   :  { %284 = vst.msk [vmem:[#allocation3 + $0x1f0] sm:$0xf] %vm159_vm2, %v14175_v14  ;;  %285 = vst.msk [vmem:[#allocation3 + $0x1f4] sm:$0xf] %vm159_vm2, %v14175_v14 }
 0x379   :  { %286 = vst.msk [vmem:[#allocation3 + $0x1f8] sm:$0xf] %vm159_vm2, %v14175_v14  ;;  %287 = vst.msk [vmem:[#allocation3 + $0x1fc] sm:$0xf] %vm159_vm2, %v14175_v14 }
 0x37a   :  { %869 = vst.msk [vmem:[#allocation3 + $0x48] sm:$0xf] %vm159_vm2, %v8672_v53  ;;  %575 = vst.msk [vmem:[#allocation3 + $0x8] sm:$0xf] %vm159_vm2, %v8656_v34  ;;  %v513_v53 = vpop.f32.mrf.mxu1  ;;  %v11928_v34 = vpop.eup %9898 }
 0x37b   :  { %867 = vst.msk [vmem:[#allocation3 + $0x40] sm:$0xf] %vm159_vm2, %v8670_v27  ;;  %573 = vst.msk [vmem:[#allocation3] sm:$0xf] %vm159_vm2, %v8654_v39  ;;  %v8655_v49 = vpack.c.bf16 %v513_v53, %v513_v53  ;;  %v11932_v16 = vpop.eup %9900  ;;  %985 = vadd.xlane.f32.xlu1 %v11928_v34  ;;  %v1256_v39 = vsub.f32 %v11277_v2, %v1244_v46  ;;  %v1538_v2 = vpop.xlane.xlu1 %1537  ;;  %v8677_v53 = vpack.c.bf16 %v9376_v43, %v9376_v43 }
 0x37c   :  { %870 = vst.msk [vmem:[#allocation3 + $0x4c] sm:$0xf] %vm159_vm2, %v8673_v57  ;;  %576 = vst.msk [vmem:[#allocation3 + $0xc] sm:$0xf] %vm159_vm2, %v8657_v62  ;;  %v9365_v23 = vpop.f32.mrf.mxu1  ;;  %983 = vadd.xlane.f32.xlu0 %v11932_v16  ;;  %v11940_v42 = vpop.eup %9902 }
 0x37d   :  { %868 = vst.msk [vmem:[#allocation3 + $0x44] sm:$0xf] %vm159_vm2, %v8671_v56  ;;  %574 = vst.msk [vmem:[#allocation3 + $0x4] sm:$0xf] %vm159_vm2, %v8655_v49  ;;  %v8660_v27 = vpack.c.bf16 %v9365_v23, %v9365_v23  ;;  %v11944_v57 = vpop.eup %9904  ;;  %v1267_v62 = vmul.f32 1.442695, %v1256_v39  ;;  %v823_v23 = vpop.f32.mrf.mxu0 }
 0x37e   :  { %v526_v26 = vpop.f32.mrf.mxu1  ;;  %873 = vst.msk [vmem:[#allocation3 + $0x58] sm:$0xf] %vm159_vm2, %v8676_v21  ;;  %871 = vst.msk [vmem:[#allocation3 + $0x50] sm:$0xf] %vm159_vm2, %v8674_v37  ;;  %v14176_v49 = vld [vmem:[#allocation51_spill] sm:$0xff]  ;;  %v11952_v63 = vpop.eup %9906  ;;  %v8675_v21 = vpack.c.bf16 %v823_v23, %v823_v23 }
 0x37f   :  { %579 = vst.msk [vmem:[#allocation3 + $0x18] sm:$0xf] %vm159_vm2, %v8660_v27  ;;  %v8658_v31 = vpack.c.bf16 %v526_v26, %v526_v26  ;;  %1279 = vadd.xlane.f32.xlu1 %v11940_v42  ;;  %9918 = vpow2.f32 %v1267_v62  ;;  %v1550_v48 = vsub.f32 %v14176_v49, %v1538_v2  ;;  %874 = vst.msk [vmem:[#allocation3 + $0x5c] sm:$0xf] %vm159_vm2, %v8677_v53  ;;  %v11956_v39 = vpop.eup %9908  ;;  %v660_v26 = vpop.xlane.xlu1 %659 }
 0x380   :  { %v9366_v60 = vpop.f32.mrf.mxu1  ;;  %1277 = vadd.xlane.f32.xlu0 %v11944_v57  ;;  %9920 = vpow2.f32 %v1265_v44  ;;  %v658_v37 = vpop.xlane.xlu0 %657  ;;  %872 = vst.msk [vmem:[#allocation3 + $0x54] sm:$0xf] %vm159_vm2, %v8675_v21 }
 0x381   :  { %577 = vst.msk [vmem:[#allocation3 + $0x10] sm:$0xf] %vm159_vm2, %v8658_v31  ;;  %v8661_v56 = vpack.c.bf16 %v9366_v60, %v9366_v60  ;;  %v1561_v13 = vmul.f32 1.442695, %v1550_v48  ;;  %v670_v31 = vsub.f32 %v11320_v5, %v660_v26  ;;  %v669_v62 = vsub.f32 %v11323_v61, %v658_v37  ;;  %v11964_v44 = vpop.eup %9910 }
 0x382   :  { %v529_v46 = vpop.f32.mrf.mxu1  ;;  %v11966_v43 = vpop.eup %9912 }
 0x383   :  { %580 = vst.msk [vmem:[#allocation3 + $0x1c] sm:$0xf] %vm159_vm2, %v8661_v56  ;;  %v8659_v27 = vpack.c.bf16 %v529_v46, %v529_v46  ;;  %1573 = vadd.xlane.f32.xlu1 %v11952_v63  ;;  %9922 = vpow2.f32 %v1561_v13  ;;  %v683_v60 = vmul.f32 1.442695, %v670_v31  ;;  %v681_v2 = vmul.f32 1.442695, %v669_v62  ;;  %v954_v30 = vpop.xlane.xlu1 %953  ;;  %v11972_v49 = vpop.eup %9914 }
 0x384   :  { %1571 = vadd.xlane.f32.xlu0 %v11956_v39  ;;  %9924 = vpow2.f32 %v1559_v35  ;;  %v952_v53 = vpop.xlane.xlu0 %951  ;;  %v964_v56 = vsub.f32 %v11330_v9, %v954_v30  ;;  %v11974_v61 = vpop.eup %9916 }
 0x385   :  { %578 = vst.msk [vmem:[#allocation3 + $0x14] sm:$0xf] %vm159_vm2, %v8659_v27  ;;  %9926 = vpow2.f32 %v683_v60  ;;  %v963_v5 = vsub.f32 %v11333_v52, %v952_v53  ;;  %v9742_v53 = vld [vmem:[#allocation3 + $0x78] sm:$0xff]  }
 0x386   :  { %9928 = vpow2.f32 %v681_v2  ;;  %v977_v48 = vmul.f32 1.442695, %v964_v56  ;;  %v9743_v56 = vld [vmem:[#allocation3 + $0x38] sm:$0xff]   ;;  %8955 = vmatprep.subr.bf16.mxu1 %v9742_v53  ;;  %v9745_v53 = vld [vmem:[#allocation3 + $0x30] sm:$0xff]  }
 0x387   :  { %695 = vadd.xlane.f32.xlu1 %v11964_v44  ;;  %v975_v45 = vmul.f32 1.442695, %v963_v5  ;;  %v1248_v28 = vpop.xlane.xlu1 %1247  ;;  %v9391_v5 = vpop.f32.mrf.mxu0  ;;  %8956 = vmatpush3.bf16.msra.mxu1 %v9743_v56 }
 0x388   :  { %693 = vadd.xlane.f32.xlu0 %v11966_v43  ;;  %v1246_v23 = vpop.xlane.xlu0 %1245  ;;  %9930 = vpow2.f32 %v977_v48  ;;  %v1258_v46 = vsub.f32 %v11347_v20, %v1248_v28  ;;  %v9381_v48 = vpop.f32.mrf.mxu1  ;;  %v8704_v28 = vpack.c.bf16 %v9391_v5, %v9391_v5 }
 0x389   :  { %v1257_v9 = vsub.f32 %v11344_v51, %v1246_v23  ;;  %9932 = vpow2.f32 %v975_v45  ;;  %v8688_v23 = vpack.c.bf16 %v9381_v48, %v9381_v48 }
 0x38a   :  { %v1271_v27 = vmul.f32 1.442695, %v1258_v46  ;;  %1457 = vst.msk [vmem:[#allocation3 + $0xc8] sm:$0xf] %vm159_vm2, %v8704_v28 }
 0x38b   :  { %989 = vadd.xlane.f32.xlu1 %v11972_v49  ;;  %v1269_v13 = vmul.f32 1.442695, %v1257_v9  ;;  %v1542_v35 = vpop.xlane.xlu1 %1541  ;;  %1163 = vst.msk [vmem:[#allocation3 + $0x88] sm:$0xf] %vm159_vm2, %v8688_v23 }
 0x38c   :  { %987 = vadd.xlane.f32.xlu0 %v11974_v61  ;;  %v11980_v21 = vpop.eup %9918  ;;  %v1540_v26 = vpop.xlane.xlu0 %1539  ;;  %9934 = vpow2.f32 %v1271_v27  ;;  %v1552_v37 = vsub.f32 %v11362_v36, %v1542_v35 }
 0x38d   :  { %v11982_v52 = vpop.eup %9920  ;;  %v1551_v20 = vsub.f32 %v11359_v11, %v1540_v26  ;;  %9936 = vpow2.f32 %v1269_v13  ;;  %v1392_v13 = vpop.f32.mrf.mxu0 }
 0x38e   :  { %v1565_v62 = vmul.f32 1.442695, %v1552_v37  ;;  %v1098_v35 = vpop.f32.mrf.mxu1  ;;  %v8702_v26 = vpack.c.bf16 %v1392_v13, %v1392_v13 }
 0x38f   :  { %1283 = vadd.xlane.f32.xlu1 %v11980_v21  ;;  %v1563_v60 = vmul.f32 1.442695, %v1551_v20  ;;  %v664_v2 = vpop.xlane.xlu1 %663  ;;  %v8686_v37 = vpack.c.bf16 %v1098_v35, %v1098_v35 }
 0x390   :  { %1281 = vadd.xlane.f32.xlu0 %v11982_v52  ;;  %v11988_v31 = vpop.eup %9922  ;;  %v662_v30 = vpop.xlane.xlu0 %661  ;;  %9938 = vpow2.f32 %v1565_v62  ;;  %v672_v36 = vsub.f32 %v11394_v24, %v664_v2  ;;  %1455 = vst.msk [vmem:[#allocation3 + $0xc0] sm:$0xf] %vm159_vm2, %v8702_v26 }
 0x391   :  { %v11990_v51 = vpop.eup %9924  ;;  %v671_v11 = vsub.f32 %v11391_v22, %v662_v30  ;;  %9940 = vpow2.f32 %v1563_v60  ;;  %v9392_v60 = vpop.f32.mrf.mxu0  ;;  %v9744_v30 = vld [vmem:[#allocation3 + $0x70] sm:$0xff]   ;;  %1161 = vst.msk [vmem:[#allocation3 + $0x80] sm:$0xf] %vm159_vm2, %v8686_v37  ;;  %v9746_v37 = vld [vmem:[#allocation3 + $0x68] sm:$0xff]  }
 0x392   :  { %v11996_v45 = vpop.eup %9926  ;;  %v687_v9 = vmul.f32 1.442695, %v672_v36  ;;  %v9382_v2 = vpop.f32.mrf.mxu1  ;;  %v8705_v36 = vpack.c.bf16 %v9392_v60, %v9392_v60  ;;  %8957 = vmatprep.subr.bf16.mxu1 %v9744_v30 }
 0x393   :  { %1577 = vadd.xlane.f32.xlu1 %v11988_v31  ;;  %v11998_v46 = vpop.eup %9928  ;;  %v685_v27 = vmul.f32 1.442695, %v671_v11  ;;  %v958_v22 = vpop.xlane.xlu1 %957  ;;  %v8689_v11 = vpack.c.bf16 %v9382_v2, %v9382_v2  ;;  %8958 = vmatpush3.bf16.msra.mxu1 %v9745_v53 }
 0x394   :  { %1575 = vadd.xlane.f32.xlu0 %v11990_v51  ;;  %v956_v24 = vpop.xlane.xlu0 %955  ;;  %9942 = vpow2.f32 %v687_v9  ;;  %v966_v20 = vsub.f32 %v11408_v29, %v958_v22  ;;  %v1395_v29 = vpop.f32.mrf.mxu0  ;;  %1458 = vst.msk [vmem:[#allocation3 + $0xcc] sm:$0xf] %vm159_vm2, %v8705_v36  ;;  %v9749_v36 = vld [vmem:[#allocation3 + $0xb8] sm:$0xff]   ;;  %8959 = vmatprep.subr.bf16.mxu1 %v9746_v37  ;;  %v9751_v37 = vld [vmem:[#allocation3 + $0xf0] sm:$0xff]  }
 0x395   :  { %v965_v62 = vsub.f32 %v11405_v25, %v956_v24  ;;  %v12006_v56 = vpop.eup %9930  ;;  %9944 = vpow2.f32 %v685_v27  ;;  %v1101_v25 = vpop.f32.mrf.mxu1  ;;  %1164 = vst.msk [vmem:[#allocation3 + $0x8c] sm:$0xf] %vm159_vm2, %v8689_v11  ;;  %v8703_v27 = vpack.c.bf16 %v1395_v29, %v1395_v29 }
 0x396   :  { %v12010_v5 = vpop.eup %9932  ;;  %v981_v48 = vmul.f32 1.442695, %v966_v20  ;;  %v8687_v13 = vpack.c.bf16 %v1101_v25, %v1101_v25  ;;  %v9395_v24 = vpop.f32.mrf.mxu0  ;;  %v9747_v20 = vld [vmem:[#allocation3 + $0xf8] sm:$0xff]  }
 0x397   :  { %699 = vadd.xlane.f32.xlu1 %v11996_v45  ;;  %v979_v28 = vmul.f32 1.442695, %v965_v62  ;;  %v1252_v23 = vpop.xlane.xlu1 %1251  ;;  %v9385_v26 = vpop.f32.mrf.mxu1  ;;  %v9748_v62 = vld [vmem:[#allocation3 + $0x28] sm:$0xff]   ;;  %1456 = vst.msk [vmem:[#allocation3 + $0xc4] sm:$0xf] %vm159_vm2, %v8703_v27  ;;  %v8708_v2 = vpack.c.bf16 %v9395_v24, %v9395_v24  ;;  %8995 = vmatprep.subr.bf16.mxu0 %v9747_v20  ;;  %v9752_v20 = vld [vmem:[#allocation3 + $0x20] sm:$0xff]  }
 0x398   :  { %697 = vadd.xlane.f32.xlu0 %v11998_v46  ;;  %v1250_v9 = vpop.xlane.xlu0 %1249  ;;  %9946 = vpow2.f32 %v981_v48  ;;  %v1260_v35 = vsub.f32 %v11426_v4, %v1252_v23  ;;  %1162 = vst.msk [vmem:[#allocation3 + $0x84] sm:$0xf] %vm159_vm2, %v8687_v13  ;;  %v8692_v30 = vpack.c.bf16 %v9385_v26, %v9385_v26  ;;  %v1408_v53 = vpop.f32.mrf.mxu0  ;;  %v14179_v13 = vld [vmem:[#allocation53_spill] sm:$0xff]  ;;  %8960 = vmatpush3.bf16.msra.mxu1 %v9748_v62 }
 0x399   :  { %v1259_v22 = vsub.f32 %v11423_v38, %v1250_v9  ;;  %v12018_v60 = vpop.eup %9934  ;;  %9948 = vpow2.f32 %v979_v28  ;;  %v1114_v48 = vpop.f32.mrf.mxu1  ;;  %1461 = vst.msk [vmem:[#allocation3 + $0xd8] sm:$0xf] %vm159_vm2, %v8708_v2  ;;  %v8706_v25 = vpack.c.bf16 %v1408_v53, %v1408_v53  ;;  %v14178_v9 = vld [vmem:[#allocation54_spill] sm:$0xff]  ;;  %8996 = vmatpush3.bf16.msra.mxu0 %v9749_v36  ;;  %v9750_v26 = vld [vmem:[#allocation3 + $0x60] sm:$0xff]  }
 0x39a   :  { %v12022_v11 = vpop.eup %9936  ;;  %v1275_v4 = vmul.f32 1.442695, %v1260_v35  ;;  %1167 = vst.msk [vmem:[#allocation3 + $0x98] sm:$0xf] %vm159_vm2, %v8692_v30  ;;  %v8690_v23 = vpack.c.bf16 %v1114_v48, %v1114_v48  ;;  %8961 = vmatprep.subr.bf16.mxu1 %v9750_v26  ;;  %8997 = vmatprep.subr.bf16.mxu0 %v9751_v37  ;;  %v9757_v26 = vld [vmem:[#allocation3 + $0xa8] sm:$0xff]  }
 0x39b   :  { %993 = vadd.xlane.f32.xlu1 %v12006_v56  ;;  %v1273_v38 = vmul.f32 1.442695, %v1259_v22  ;;  %v1546_v28 = vpop.xlane.xlu1 %1545  ;;  %v9396_v22 = vpop.f32.mrf.mxu0  ;;  %1459 = vst.msk [vmem:[#allocation3 + $0xd0] sm:$0xf] %vm159_vm2, %v8706_v25 }
 0x39c   :  { %991 = vadd.xlane.f32.xlu0 %v12010_v5  ;;  %v1544_v29 = vpop.xlane.xlu0 %1543  ;;  %9950 = vpow2.f32 %v1275_v4  ;;  %v1554_v27 = vsub.f32 %v14178_v9, %v1546_v28  ;;  %v9386_v24 = vpop.f32.mrf.mxu1  ;;  %1165 = vst.msk [vmem:[#allocation3 + $0x90] sm:$0xf] %vm159_vm2, %v8690_v23  ;;  %v8709_v2 = vpack.c.bf16 %v9396_v22, %v9396_v22  ;;  %v9753_v4 = vld [vmem:[#allocation3 + $0xb0] sm:$0xff]   ;;  %8962 = vmatpush3.bf16.msra.mxu1 %v9752_v20  ;;  %v9754_v9 = vld [vmem:[#allocation3 + $0x58] sm:$0xff]  }
 0x39d   :  { %v1553_v35 = vsub.f32 %v14179_v13, %v1544_v29  ;;  %v12030_v14 = vpop.eup %9938  ;;  %9952 = vpow2.f32 %v1273_v38  ;;  %v8693_v30 = vpack.c.bf16 %v9386_v24, %v9386_v24  ;;  %8998 = vmatpush3.bf16.msra.mxu0 %v9753_v4  ;;  %v1411_v25 = vpop.f32.mrf.mxu0  ;;  %v9756_v13 = vld [vmem:[#allocation3 + $0x18] sm:$0xff]   ;;  %8963 = vmatprep.subr.bf16.mxu1 %v9754_v9 }
 0x39e   :  { %v12034_v53 = vpop.eup %9940  ;;  %v1569_v48 = vmul.f32 1.442695, %v1554_v27  ;;  %1462 = vst.msk [vmem:[#allocation3 + $0xdc] sm:$0xf] %vm159_vm2, %v8709_v2  ;;  %v1117_v23 = vpop.f32.mrf.mxu1  ;;  %v9755_v27 = vld [vmem:[#allocation3 + $0xe8] sm:$0xff]   ;;  %v8707_v22 = vpack.c.bf16 %v1411_v25, %v1411_v25  ;;  %v14180_v20 = vld [vmem:[#allocation47_spill] sm:$0xff] }
 0x39f   :  { %1287 = vadd.xlane.f32.xlu1 %v12018_v60  ;;  %v1567_v62 = vmul.f32 1.442695, %v1553_v35  ;;  %v1828_v36 = vpop.xlane.xlu1 %1827  ;;  %1168 = vst.msk [vmem:[#allocation3 + $0x9c] sm:$0xf] %vm159_vm2, %v8693_v30  ;;  %v8691_v24 = vpack.c.bf16 %v1117_v23, %v1117_v23  ;;  %8999 = vmatprep.subr.bf16.mxu0 %v9755_v27  ;;  %v9761_v25 = vld [vmem:[#allocation3 + $0xa0] sm:$0xff]  }
 0x3a0   :  { %1285 = vadd.xlane.f32.xlu0 %v12022_v11  ;;  %v1826_v28 = vpop.xlane.xlu0 %1825  ;;  %9954 = vpow2.f32 %v1569_v48  ;;  %v1842_v38 = vsub.f32 %v11459_v17, %v1828_v36  ;;  %1460 = vst.msk [vmem:[#allocation3 + $0xd4] sm:$0xf] %vm159_vm2, %v8707_v22  ;;  %v14181_v48 = vld [vmem:[#allocation34_spill] sm:$0xff]  ;;  %8964 = vmatpush3.bf16.msra.mxu1 %v9756_v13 }
 0x3a1   :  { %v1841_v29 = vsub.f32 %v11456_v58, %v1826_v28  ;;  %v12042_v35 = vpop.eup %9942  ;;  %9956 = vpow2.f32 %v1567_v62  ;;  %1166 = vst.msk [vmem:[#allocation3 + $0x94] sm:$0xf] %vm159_vm2, %v8691_v24  ;;  %9000 = vmatpush3.bf16.msra.mxu0 %v9757_v26  ;;  %v9758_v36 = vld [vmem:[#allocation3 + $0x50] sm:$0xff]   ;;  %v9759_v28 = vld [vmem:[#allocation3 + $0xe0] sm:$0xff]  }
 0x3a2   :  { %v12044_v37 = vpop.eup %9944  ;;  %v1851_v2 = vmul.f32 1.442695, %v1842_v38  ;;  %v9760_v38 = vld [vmem:[#allocation3 + $0x10] sm:$0xff]   ;;  %8965 = vmatprep.subr.bf16.mxu1 %v9758_v36  ;;  %9001 = vmatprep.subr.bf16.mxu0 %v9759_v28  ;;  %v14183_v24 = vld [vmem:[#allocation36_spill] sm:$0xff] }
 0x3a3   :  { %1581 = vadd.xlane.f32.xlu1 %v12030_v14  ;;  %v1849_v30 = vmul.f32 1.442695, %v1841_v29  ;;  %v2122_v58 = vpop.xlane.xlu1 %2121 }
 0x3a4   :  { %1579 = vadd.xlane.f32.xlu0 %v12034_v53  ;;  %v2120_v17 = vpop.xlane.xlu0 %2119  ;;  %9958 = vpow2.f32 %v1851_v2  ;;  %v2136_v4 = vsub.f32 %v14180_v20, %v2122_v58  ;;  %v14184_v2 = vld [vmem:[#allocation25_spill] sm:$0xff]  ;;  %8966 = vmatpush3.bf16.msra.mxu1 %v9760_v38 }
 0x3a5   :  { %v2135_v62 = vsub.f32 %v14181_v48, %v2120_v17  ;;  %v12052_v29 = vpop.eup %9946  ;;  %9960 = vpow2.f32 %v1849_v30  ;;  %9002 = vmatpush3.bf16.msra.mxu0 %v9761_v25  ;;  %v9762_v30 = vld [vmem:[#allocation3 + $0x48] sm:$0xff]   ;;  %v9763_v17 = vld [vmem:[#allocation3 + $0xd8] sm:$0xff]  }
 0x3a6   :  { %v12054_v23 = vpop.eup %9948  ;;  %v2145_v9 = vmul.f32 1.442695, %v2136_v4  ;;  %v9764_v20 = vld [vmem:[#allocation3 + $0x8] sm:$0xff]   ;;  %v9765_v48 = vld [vmem:[#allocation3 + $0x98] sm:$0xff]   ;;  %8967 = vmatprep.subr.bf16.mxu1 %v9762_v30  ;;  %9003 = vmatprep.subr.bf16.mxu0 %v9763_v17 }
 0x3a7   :  { %703 = vadd.xlane.f32.xlu1 %v12042_v35  ;;  %14182 = vst [vmem:[#allocation32_spill] sm:$0xff] %v12054_v23  ;;  %v2143_v27 = vmul.f32 1.442695, %v2135_v62  ;;  %v2416_v22 = vpop.xlane.xlu1 %2415  ;;  %v14187_v25 = vld [vmem:[#allocation40_spill] sm:$0xff] }
 0x3a8   :  { %701 = vadd.xlane.f32.xlu0 %v12044_v37  ;;  %v2414_v13 = vpop.xlane.xlu0 %2413  ;;  %9962 = vpow2.f32 %v2145_v9  ;;  %v2430_v26 = vsub.f32 %v14183_v24, %v2416_v22  ;;  %8968 = vmatpush3.bf16.msra.mxu1 %v9764_v20 }
 0x3a9   :  { %v2429_v58 = vsub.f32 %v14184_v2, %v2414_v13  ;;  %v12060_v4 = vpop.eup %9950  ;;  %9964 = vpow2.f32 %v2143_v27  ;;  %v14188_v13 = vld [vmem:[#allocation26_spill] sm:$0xff]  ;;  %9004 = vmatpush3.bf16.msra.mxu0 %v9765_v48  ;;  %v9766_v27 = vld [vmem:[#allocation3 + $0x40] sm:$0xff]  }
 0x3aa   :  { %14185 = vst [vmem:[#allocation49_spill] sm:$0xff] %v12060_v4  ;;  %v12062_v62 = vpop.eup %9952  ;;  %v2439_v36 = vmul.f32 1.442695, %v2430_v26  ;;  %v9767_v2 = vld [vmem:[#allocation3 + $0xd0] sm:$0xff]   ;;  %8969 = vmatprep.subr.bf16.mxu1 %v9766_v27 }
 0x3ab   :  { %997 = vadd.xlane.f32.xlu1 %v12052_v29  ;;  %14186 = vst [vmem:[#allocation33_spill] sm:$0xff] %v12062_v62  ;;  %v2437_v28 = vmul.f32 1.442695, %v2429_v58  ;;  %v2710_v9 = vpop.xlane.xlu1 %2709  ;;  %v9769_v58 = vld [vmem:[#allocation3 + $0x90] sm:$0xff]   ;;  %9005 = vmatprep.subr.bf16.mxu0 %v9767_v2 }
 0x3ac   :  { %995 = vadd.xlane.f32.xlu0 %v12054_v23  ;;  %v2708_v38 = vpop.xlane.xlu0 %2707  ;;  %9966 = vpow2.f32 %v2439_v36  ;;  %v2724_v22 = vsub.f32 %v14187_v25, %v2710_v9  ;;  %v9768_v23 = vld [vmem:[#allocation3] sm:$0xff]   ;;  %v9770_v25 = vld [vmem:[#allocation3 + $0xc8] sm:$0xff]  }
 0x3ad   :  { %v2723_v24 = vsub.f32 %v14188_v13, %v2708_v38  ;;  %v12068_v26 = vpop.eup %9954  ;;  %9968 = vpow2.f32 %v2437_v28  ;;  %8970 = vmatpush3.bf16.msra.mxu1 %v9768_v23  ;;  %9006 = vmatpush3.bf16.msra.mxu0 %v9769_v58  ;;  %v9411_v28 = vpop.f32.mrf.mxu0 }
 0x3ae   :  { %14189 = vst [vmem:[#allocation45_spill] sm:$0xff] %v12068_v26  ;;  %v12070_v30 = vpop.eup %9956  ;;  %v2733_v17 = vmul.f32 1.442695, %v2724_v22  ;;  %v9401_v38 = vpop.f32.mrf.mxu1  ;;  %v9771_v22 = vld [vmem:[#allocation3 + $0x88] sm:$0xff]   ;;  %9007 = vmatprep.subr.bf16.mxu0 %v9770_v25  ;;  %v9772_v25 = vld [vmem:[#allocation3 + $0xc0] sm:$0xff]  }
 0x3af   :  { %1291 = vadd.xlane.f32.xlu1 %v12060_v4  ;;  %14190 = vst [vmem:[#allocation50_spill] sm:$0xff] %v12070_v30  ;;  %v1832_v36 = vpop.xlane.xlu1 %1831  ;;  %v8720_v27 = vpack.c.bf16 %v9401_v38, %v9401_v38 }
 0x3b0   :  { %1289 = vadd.xlane.f32.xlu0 %v12062_v62  ;;  %v2731_v62 = vmul.f32 1.442695, %v2723_v24  ;;  %v1830_v20 = vpop.xlane.xlu0 %1829  ;;  %9970 = vpow2.f32 %v2733_v17  ;;  %v1844_v48 = vsub.f32 %v11507_v59, %v1832_v36  ;;  %v8736_v24 = vpack.c.bf16 %v9411_v28, %v9411_v28  ;;  %v1980_v17 = vpop.f32.mrf.mxu0  ;;  %v14192_v36 = vld [vmem:[#allocation37_spill] sm:$0xff] }
 0x3b1   :  { %v1843_v9 = vsub.f32 %v11504_v18, %v1830_v20  ;;  %v12076_v13 = vpop.eup %9958  ;;  %v1686_v59 = vpop.f32.mrf.mxu1  ;;  %1751 = vst.msk [vmem:[#allocation3 + $0x108] sm:$0xf] %vm159_vm2, %v8720_v27  ;;  %9008 = vmatpush3.bf16.msra.mxu0 %v9771_v22 }
 0x3b2   :  { %14191 = vst [vmem:[#allocation48_spill] sm:$0xff] %v12076_v13  ;;  %9972 = vpow2.f32 %v2731_v62  ;;  %v12078_v2 = vpop.eup %9960  ;;  %2045 = vst.msk [vmem:[#allocation3 + $0x148] sm:$0xf] %vm159_vm2, %v8736_v24  ;;  %v8734_v62 = vpack.c.bf16 %v1980_v17, %v1980_v17  ;;  %v8718_v58 = vpack.c.bf16 %v1686_v59, %v1686_v59  ;;  %v9412_v28 = vpop.f32.mrf.mxu0  ;;  %9009 = vmatprep.subr.bf16.mxu0 %v9772_v25  ;;  %v9774_v25 = vld [vmem:[#allocation3 + $0x178] sm:$0xff]  }
 0x3b3   :  { %1585 = vadd.xlane.f32.xlu1 %v12068_v26  ;;  %v1853_v26 = vmul.f32 1.442695, %v1843_v9  ;;  %v2126_v18 = vpop.xlane.xlu1 %2125  ;;  %v9402_v38 = vpop.f32.mrf.mxu1  ;;  %v8737_v24 = vpack.c.bf16 %v9412_v28, %v9412_v28  ;;  %9035 = vmatprep.subr.bf16.mxu1 %v9774_v25 }
 0x3b4   :  { %1583 = vadd.xlane.f32.xlu0 %v12070_v30  ;;  %v1855_v30 = vmul.f32 1.442695, %v1844_v48  ;;  %v2124_v23 = vpop.xlane.xlu0 %2123  ;;  %v2138_v20 = vsub.f32 %v14192_v36, %v2126_v18  ;;  %v14193_v48 = vld [vmem:[#allocation27_spill] sm:$0xff]  ;;  %2043 = vst.msk [vmem:[#allocation3 + $0x140] sm:$0xf] %vm159_vm2, %v8734_v62  ;;  %v8721_v27 = vpack.c.bf16 %v9402_v38, %v9402_v38  ;;  %v1983_v18 = vpop.f32.mrf.mxu0 }
 0x3b5   :  { %v2137_v9 = vsub.f32 %v14193_v48, %v2124_v23  ;;  %v12086_v4 = vpop.eup %9962  ;;  %1749 = vst.msk [vmem:[#allocation3 + $0x100] sm:$0xf] %vm159_vm2, %v8718_v58  ;;  %v1689_v22 = vpop.f32.mrf.mxu1  ;;  %2046 = vst.msk [vmem:[#allocation3 + $0x14c] sm:$0xf] %vm159_vm2, %v8737_v24  ;;  %v14195_v58 = vld [vmem:[#allocation38_spill] sm:$0xff] }
 0x3b6   :  { %9974 = vpow2.f32 %v1855_v30  ;;  %14194 = vst [vmem:[#allocation29_spill] sm:$0xff] %v12086_v4  ;;  %v12090_v17 = vpop.eup %9964  ;;  %v2149_v30 = vmul.f32 1.442695, %v2138_v20  ;;  %1752 = vst.msk [vmem:[#allocation3 + $0x10c] sm:$0xf] %vm159_vm2, %v8721_v27  ;;  %v8719_v62 = vpack.c.bf16 %v1689_v22, %v1689_v22  ;;  %v14196_v20 = vld [vmem:[#allocation28_spill] sm:$0xff]  ;;  %v9415_v28 = vpop.f32.mrf.mxu0 }
 0x3b7   :  { %1867 = vadd.xlane.f32.xlu1 %v12076_v13  ;;  %v9773_v13 = vld [vmem:[#allocation3 + $0x80] sm:$0xff]   ;;  %9976 = vpow2.f32 %v1853_v26  ;;  %v2147_v59 = vmul.f32 1.442695, %v2137_v9  ;;  %v2420_v23 = vpop.xlane.xlu1 %2419  ;;  %v8735_v26 = vpack.c.bf16 %v1983_v18, %v1983_v18  ;;  %v9405_v38 = vpop.f32.mrf.mxu1  ;;  %v8740_v24 = vpack.c.bf16 %v9415_v28, %v9415_v28 }
 0x3b8   :  { %1865 = vadd.xlane.f32.xlu0 %v12078_v2  ;;  %v2418_v36 = vpop.xlane.xlu0 %2417  ;;  %9978 = vpow2.f32 %v2149_v30  ;;  %v2432_v48 = vsub.f32 %v14195_v58, %v2420_v23  ;;  %9010 = vmatpush3.bf16.msra.mxu0 %v9773_v13  ;;  %1750 = vst.msk [vmem:[#allocation3 + $0x104] sm:$0xf] %vm159_vm2, %v8719_v62  ;;  %v8724_v27 = vpack.c.bf16 %v9405_v38, %v9405_v38  ;;  %v1996_v23 = vpop.f32.mrf.mxu0  ;;  %v14199_v62 = vld [vmem:[#allocation42_spill] sm:$0xff] }
 0x3b9   :  { %v2431_v9 = vsub.f32 %v14196_v20, %v2418_v36  ;;  %9980 = vpow2.f32 %v2147_v59  ;;  %2044 = vst.msk [vmem:[#allocation3 + $0x144] sm:$0xf] %vm159_vm2, %v8735_v26  ;;  %v1702_v36 = vpop.f32.mrf.mxu1  ;;  %2049 = vst.msk [vmem:[#allocation3 + $0x158] sm:$0xf] %vm159_vm2, %v8740_v24  ;;  %v8738_v59 = vpack.c.bf16 %v1996_v23, %v1996_v23 }
 0x3ba   :  { %v2443_v30 = vmul.f32 1.442695, %v2432_v48  ;;  %1755 = vst.msk [vmem:[#allocation3 + $0x118] sm:$0xf] %vm159_vm2, %v8724_v27  ;;  %v8722_v26 = vpack.c.bf16 %v1702_v36, %v1702_v36  ;;  %v14200_v48 = vld [vmem:[#allocation35_spill] sm:$0xff]  ;;  %v9416_v28 = vpop.f32.mrf.mxu0 }
 0x3bb   :  { %2161 = vadd.xlane.f32.xlu1 %v12086_v4  ;;  %v12098_v4 = vpop.eup %9966  ;;  %v2441_v22 = vmul.f32 1.442695, %v2431_v9  ;;  %v2714_v13 = vpop.xlane.xlu1 %2713  ;;  %2047 = vst.msk [vmem:[#allocation3 + $0x150] sm:$0xf] %vm159_vm2, %v8738_v59 }
 0x3bc   :  { %2159 = vadd.xlane.f32.xlu0 %v12090_v17  ;;  %14197 = vst [vmem:[#allocation39_spill] sm:$0xff] %v12098_v4  ;;  %v12102_v18 = vpop.eup %9968  ;;  %v2712_v58 = vpop.xlane.xlu0 %2711  ;;  %9982 = vpow2.f32 %v2443_v30  ;;  %v2726_v20 = vsub.f32 %v14199_v62, %v2714_v13  ;;  %1753 = vst.msk [vmem:[#allocation3 + $0x110] sm:$0xf] %vm159_vm2, %v8722_v26 }
 0x3bd   :  { %14198 = vst [vmem:[#allocation31_spill] sm:$0xff] %v12102_v18  ;;  %v2725_v9 = vsub.f32 %v14200_v48, %v2712_v58  ;;  %v9406_v38 = vpop.f32.mrf.mxu1  ;;  %v12110_v25 = vpop.eup %9970  ;;  %9984 = vpow2.f32 %v2441_v22 }
 0x3be   :  { %v8725_v24 = vpack.c.bf16 %v9406_v38, %v9406_v38  ;;  %v2737_v27 = vmul.f32 1.442695, %v2726_v20  ;;  %v1999_v30 = vpop.f32.mrf.mxu0 }
 0x3bf   :  { %2455 = vadd.xlane.f32.xlu1 %v12098_v4  ;;  %v12114_v4 = vpop.eup %9972  ;;  %v2735_v23 = vmul.f32 1.442695, %v2725_v9  ;;  %v1705_v36 = vpop.f32.mrf.mxu1  ;;  %v8739_v22 = vpack.c.bf16 %v1999_v30, %v1999_v30 }
 0x3c0   :  { %2453 = vadd.xlane.f32.xlu0 %v12102_v18  ;;  %v8741_v18 = vpack.c.bf16 %v9416_v28, %v9416_v28  ;;  %v1836_v13 = vpop.xlane.xlu1 %1835  ;;  %v1834_v58 = vpop.xlane.xlu0 %1833  ;;  %1756 = vst.msk [vmem:[#allocation3 + $0x11c] sm:$0xf] %vm159_vm2, %v8725_v24  ;;  %v8723_v59 = vpack.c.bf16 %v1705_v36, %v1705_v36  ;;  %9986 = vpow2.f32 %v2737_v27 }
 0x3c1   :  { %v1846_v26 = vsub.f32 %v11555_v54, %v1836_v13  ;;  %v1845_v62 = vsub.f32 %v11552_v0, %v1834_v58  ;;  %v9431_v20 = vpop.f32.mrf.mxu0  ;;  %v9421_v48 = vpop.f32.mrf.mxu1  ;;  %9988 = vpow2.f32 %v2735_v23  ;;  %2048 = vst.msk [vmem:[#allocation3 + $0x154] sm:$0xf] %vm159_vm2, %v8739_v22 }
 0x3c2   :  { %2050 = vst.msk [vmem:[#allocation3 + $0x15c] sm:$0xf] %vm159_vm2, %v8741_v18  ;;  %1754 = vst.msk [vmem:[#allocation3 + $0x114] sm:$0xf] %vm159_vm2, %v8723_v59  ;;  %v8768_v28 = vpack.c.bf16 %v9431_v20, %v9431_v20  ;;  %v8752_v18 = vpack.c.bf16 %v9421_v48, %v9421_v48 }
 0x3c3   :  { %2749 = vadd.xlane.f32.xlu1 %v12110_v25  ;;  %v12122_v9 = vpop.eup %9974  ;;  %v1859_v24 = vmul.f32 1.442695, %v1846_v26  ;;  %v1857_v30 = vmul.f32 1.442695, %v1845_v62  ;;  %v2568_v27 = vpop.f32.mrf.mxu0 }
 0x3c4   :  { %2747 = vadd.xlane.f32.xlu0 %v12114_v4  ;;  %v12126_v38 = vpop.eup %9976  ;;  %v2274_v36 = vpop.f32.mrf.mxu1  ;;  %2633 = vst.msk [vmem:[#allocation3 + $0x1c8] sm:$0xf] %vm159_vm2, %v8768_v28  ;;  %2339 = vst.msk [vmem:[#allocation3 + $0x188] sm:$0xf] %vm159_vm2, %v8752_v18  ;;  %v8766_v23 = vpack.c.bf16 %v2568_v27, %v2568_v27 }
 0x3c5   :  { %v2130_v0 = vpop.xlane.xlu1 %2129  ;;  %v2128_v54 = vpop.xlane.xlu0 %2127  ;;  %v8750_v13 = vpack.c.bf16 %v2274_v36, %v2274_v36  ;;  %9990 = vpow2.f32 %v1859_v24 }
 0x3c6   :  { %v2140_v58 = vsub.f32 %v11563_v6, %v2130_v0  ;;  %v2139_v22 = vsub.f32 %v11560_v55, %v2128_v54  ;;  %v9432_v59 = vpop.f32.mrf.mxu0  ;;  %v9422_v26 = vpop.f32.mrf.mxu1  ;;  %9992 = vpow2.f32 %v1857_v30  ;;  %2631 = vst.msk [vmem:[#allocation3 + $0x1c0] sm:$0xf] %vm159_vm2, %v8766_v23 }
 0x3c7   :  { %1871 = vadd.xlane.f32.xlu1 %v12122_v9  ;;  %v12134_v62 = vpop.eup %9978  ;;  %2337 = vst.msk [vmem:[#allocation3 + $0x180] sm:$0xf] %vm159_vm2, %v8750_v13  ;;  %v8769_v20 = vpack.c.bf16 %v9432_v59, %v9432_v59  ;;  %v8753_v48 = vpack.c.bf16 %v9422_v26, %v9422_v26 }
 0x3c8   :  { %1869 = vadd.xlane.f32.xlu0 %v12126_v38  ;;  %v12138_v28 = vpop.eup %9980  ;;  %v2153_v18 = vmul.f32 1.442695, %v2140_v58  ;;  %v2151_v27 = vmul.f32 1.442695, %v2139_v22  ;;  %v2571_v24 = vpop.f32.mrf.mxu0  ;;  %v9783_v22 = vld [vmem:[#allocation3 + $0x1f8] sm:$0xff]  }
 0x3c9   :  { %v2277_v36 = vpop.f32.mrf.mxu1  ;;  %v2424_v55 = vpop.xlane.xlu1 %2423  ;;  %2634 = vst.msk [vmem:[#allocation3 + $0x1cc] sm:$0xf] %vm159_vm2, %v8769_v20  ;;  %2340 = vst.msk [vmem:[#allocation3 + $0x18c] sm:$0xf] %vm159_vm2, %v8753_v48  ;;  %v8767_v30 = vpack.c.bf16 %v2571_v24, %v2571_v24  ;;  %9075 = vmatprep.subr.bf16.mxu0 %v9783_v22 }
 0x3ca   :  { %v2422_v6 = vpop.xlane.xlu0 %2421  ;;  %v8751_v0 = vpack.c.bf16 %v2277_v36, %v2277_v36  ;;  %9994 = vpow2.f32 %v2153_v18  ;;  %v2434_v54 = vsub.f32 %v11575_v8, %v2424_v55  ;;  %v9435_v13 = vpop.f32.mrf.mxu0 }
 0x3cb   :  { %2165 = vadd.xlane.f32.xlu1 %v12134_v62  ;;  %v2433_v23 = vsub.f32 %v11572_v41, %v2422_v6  ;;  %v9425_v58 = vpop.f32.mrf.mxu1  ;;  %v12146_v59 = vpop.eup %9982  ;;  %9996 = vpow2.f32 %v2151_v27  ;;  %2632 = vst.msk [vmem:[#allocation3 + $0x1c4] sm:$0xf] %vm159_vm2, %v8767_v30  ;;  %v8772_v26 = vpack.c.bf16 %v9435_v13, %v9435_v13 }
 0x3cc   :  { %2163 = vadd.xlane.f32.xlu0 %v12138_v28  ;;  %2338 = vst.msk [vmem:[#allocation3 + $0x184] sm:$0xf] %vm159_vm2, %v8751_v0  ;;  %v8756_v20 = vpack.c.bf16 %v9425_v58, %v9425_v58  ;;  %v12150_v48 = vpop.eup %9984  ;;  %v2447_v24 = vmul.f32 1.442695, %v2434_v54  ;;  %v2584_v8 = vpop.f32.mrf.mxu0 }
 0x3cd   :  { %v2445_v18 = vmul.f32 1.442695, %v2433_v23  ;;  %v2290_v36 = vpop.f32.mrf.mxu1  ;;  %v2718_v41 = vpop.xlane.xlu1 %2717  ;;  %2637 = vst.msk [vmem:[#allocation3 + $0x1d8] sm:$0xf] %vm159_vm2, %v8772_v26  ;;  %v8770_v27 = vpack.c.bf16 %v2584_v8, %v2584_v8 }
 0x3ce   :  { %v2716_v55 = vpop.xlane.xlu0 %2715  ;;  %2343 = vst.msk [vmem:[#allocation3 + $0x198] sm:$0xf] %vm159_vm2, %v8756_v20  ;;  %v8754_v6 = vpack.c.bf16 %v2290_v36, %v2290_v36  ;;  %9998 = vpow2.f32 %v2447_v24  ;;  %v2728_v30 = vsub.f32 %v11587_v19, %v2718_v41  ;;  %v9436_v54 = vpop.f32.mrf.mxu0 }
 0x3cf   :  { %2459 = vadd.xlane.f32.xlu1 %v12146_v59  ;;  %v2727_v0 = vsub.f32 %v11584_v15, %v2716_v55  ;;  %v9426_v23 = vpop.f32.mrf.mxu1  ;;  %v12158_v13 = vpop.eup %9986  ;;  %10000 = vpow2.f32 %v2445_v18  ;;  %2635 = vst.msk [vmem:[#allocation3 + $0x1d0] sm:$0xf] %vm159_vm2, %v8770_v27  ;;  %v8773_v58 = vpack.c.bf16 %v9436_v54, %v9436_v54 }
 0x3d0   :  { %2457 = vadd.xlane.f32.xlu0 %v12150_v48  ;;  %2341 = vst.msk [vmem:[#allocation3 + $0x190] sm:$0xf] %vm159_vm2, %v8754_v6  ;;  %v8757_v22 = vpack.c.bf16 %v9426_v23, %v9426_v23  ;;  %v12162_v26 = vpop.eup %9988  ;;  %v2741_v20 = vmul.f32 1.442695, %v2728_v30  ;;  %v2587_v36 = vpop.f32.mrf.mxu0 }
 0x3d1   :  { %v2739_v8 = vmul.f32 1.442695, %v2727_v0  ;;  %v1840_v15 = vpop.xlane.xlu1 %1839  ;;  %2638 = vst.msk [vmem:[#allocation3 + $0x1dc] sm:$0xf] %vm159_vm2, %v8773_v58  ;;  %v2293_v41 = vpop.f32.mrf.mxu1  ;;  %v8771_v27 = vpack.c.bf16 %v2587_v36, %v2587_v36 }
 0x3d2   :  { %v1838_v19 = vpop.xlane.xlu0 %1837  ;;  %2344 = vst.msk [vmem:[#allocation3 + $0x19c] sm:$0xf] %vm159_vm2, %v8757_v22  ;;  %10002 = vpow2.f32 %v2741_v20  ;;  %v1848_v24 = vsub.f32 %v11603_v12, %v1840_v15  ;;  %v12170_v55 = vpop.eup %9990  ;;  %v8755_v6 = vpack.c.bf16 %v2293_v41, %v2293_v41 }
 0x3d3   :  { %2753 = vadd.xlane.f32.xlu1 %v12158_v13  ;;  %v1847_v18 = vsub.f32 %v11600_v7, %v1838_v19  ;;  %10004 = vpow2.f32 %v2739_v8  ;;  %v12172_v30 = vpop.eup %9992  ;;  %2636 = vst.msk [vmem:[#allocation3 + $0x1d4] sm:$0xf] %vm159_vm2, %v8771_v27 }
 0x3d4   :  { %2751 = vadd.xlane.f32.xlu0 %v12162_v26  ;;  %v1863_v0 = vmul.f32 1.442695, %v1848_v24  ;;  %2342 = vst.msk [vmem:[#allocation3 + $0x194] sm:$0xf] %vm159_vm2, %v8755_v6 }
 0x3d5   :  { %v1861_v54 = vmul.f32 1.442695, %v1847_v18  ;;  %v2134_v23 = vpop.xlane.xlu1 %2133 }
 0x3d6   :  { %v2132_v58 = vpop.xlane.xlu0 %2131  ;;  %10006 = vpow2.f32 %v1863_v0  ;;  %v2142_v7 = vsub.f32 %v11611_v10, %v2134_v23 }
 0x3d7   :  { %1875 = vadd.xlane.f32.xlu1 %v12170_v55  ;;  %v2141_v12 = vsub.f32 %v11608_v32, %v2132_v58  ;;  %v12180_v22 = vpop.eup %9994  ;;  %10008 = vpow2.f32 %v1861_v54 }
 0x3d8   :  { %1873 = vadd.xlane.f32.xlu0 %v12172_v30  ;;  %v12182_v20 = vpop.eup %9996  ;;  %v2157_v8 = vmul.f32 1.442695, %v2142_v7 }
 0x3d9   :  { %v2155_v15 = vmul.f32 1.442695, %v2141_v12  ;;  %v2428_v19 = vpop.xlane.xlu1 %2427 }
 0x3da   :  { %v2426_v24 = vpop.xlane.xlu0 %2425  ;;  %10010 = vpow2.f32 %v2157_v8  ;;  %v2436_v18 = vsub.f32 %v11619_v40, %v2428_v19 }
 0x3db   :  { %2169 = vadd.xlane.f32.xlu1 %v12180_v22  ;;  %v2435_v10 = vsub.f32 %v11616_v3, %v2426_v24  ;;  %v12188_v36 = vpop.eup %9998  ;;  %10012 = vpow2.f32 %v2155_v15 }
 0x3dc   :  { %2167 = vadd.xlane.f32.xlu0 %v12182_v20  ;;  %v12190_v32 = vpop.eup %10000  ;;  %v2451_v41 = vmul.f32 1.442695, %v2436_v18 }
 0x3dd   :  { %v2449_v27 = vmul.f32 1.442695, %v2435_v10  ;;  %v2722_v6 = vpop.xlane.xlu1 %2721 }
 0x3de   :  { %v2720_v0 = vpop.xlane.xlu0 %2719  ;;  %10014 = vpow2.f32 %v2451_v41  ;;  %v2730_v54 = vsub.f32 %v11627_v50, %v2722_v6 }
 0x3df   :  { %2463 = vadd.xlane.f32.xlu1 %v12188_v36  ;;  %v2729_v40 = vsub.f32 %v11624_v33, %v2720_v0  ;;  %v12196_v23 = vpop.eup %10002  ;;  %10016 = vpow2.f32 %v2449_v27 }
 0x3e0   :  { %2461 = vadd.xlane.f32.xlu0 %v12190_v32  ;;  %v12198_v3 = vpop.eup %10004  ;;  %v2745_v58 = vmul.f32 1.442695, %v2730_v54 }
 0x3e1   :  { %v2743_v7 = vmul.f32 1.442695, %v2729_v40  ;;  %v692_v41 = vpop.xlane.xlu1 %691 }
 0x3e2   :  { %10018 = vpow2.f32 %v2745_v58  ;;  %v690_v10 = vpop.xlane.xlu0 %689 }
 0x3e3   :  { %2757 = vadd.xlane.f32.xlu1 %v12196_v23  ;;  %v12202_v12 = vpop.eup %10006  ;;  %10020 = vpow2.f32 %v2743_v7 }
 0x3e4   :  { %2755 = vadd.xlane.f32.xlu0 %v12198_v3  ;;  %v12204_v8 = vpop.eup %10008  ;;  %10022 = vrcp.f32 %v690_v10 }
 0x3e5   :  { %10024 = vrcp.f32 %v692_v41 }
 0x3e7   :  { %1879 = vadd.xlane.f32.xlu1 %v12202_v12  ;;  %v12208_v33 = vpop.eup %10010 }
 0x3e8   :  { %1877 = vadd.xlane.f32.xlu0 %v12204_v8  ;;  %14201 = vst [vmem:[#allocation41_spill] sm:$0xff] %v12208_v33  ;;  %v12210_v50 = vpop.eup %10012 }
 0x3e9   :  { %14202 = vst [vmem:[#allocation30_spill] sm:$0xff] %v12210_v50 }
 0x3eb   :  { %2173 = vadd.xlane.f32.xlu1 %v12208_v33  ;;  %v12214_v15 = vpop.eup %10014 }
 0x3ec   :  { %2171 = vadd.xlane.f32.xlu0 %v12210_v50  ;;  %14203 = vst [vmem:[#allocation43_spill] sm:$0xff] %v12214_v15  ;;  %v12216_v19 = vpop.eup %10016 }
 0x3ed   :  { %14204 = vst [vmem:[#allocation44_spill] sm:$0xff] %v12216_v19 }
 0x3ef   :  { %2467 = vadd.xlane.f32.xlu1 %v12214_v15  ;;  %v12220_v24 = vpop.eup %10018 }
 0x3f0   :  { %2465 = vadd.xlane.f32.xlu0 %v12216_v19  ;;  %14205 = vst [vmem:[#allocation51_spill] sm:$0xff] %v12220_v24  ;;  %v12222_v18 = vpop.eup %10020 }
 0x3f1   :  { %14206 = vst [vmem:[#allocation52_spill] sm:$0xff] %v12222_v18  ;;  %v10023_v7 = vpop.eup %10022 }
 0x3f2   :  { %v10025_v19 = vpop.eup %10024 }
 0x3f3   :  { %2761 = vadd.xlane.f32.xlu1 %v12220_v24  ;;  %v713_v24 = vmul.f32 %v10023_v7, %v11918_v1 }
 0x3f4   :  { %2759 = vadd.xlane.f32.xlu0 %v12222_v18  ;;  %v714_v18 = vmul.f32 %v10025_v19, %v11920_v47 }
 0x3f5   :  { %v8662_v10 = vpack.c.bf16 %v713_v24, %v713_v24 }
 0x3f6   :  { %v8663_v50 = vpack.c.bf16 %v714_v18, %v714_v18 }
 0x3f7   :  { %753 = vst [vmem:[#allocation2] sm:$0xf] %v8662_v10 }
 0x3f8   :  { %754 = vst [vmem:[#allocation2 + $0x20] sm:$0xf] %v8663_v50 }
 0x404   :  { %v986_v27 = vpop.xlane.xlu1 %985 }
 0x405   :  { %v984_v6 = vpop.xlane.xlu0 %983  ;;  %10026 = vrcp.f32 %v986_v27 }
 0x406   :  { %10028 = vrcp.f32 %v984_v6 }
 0x408   :  { %v1280_v0 = vpop.xlane.xlu1 %1279 }
 0x409   :  { %v1278_v54 = vpop.xlane.xlu0 %1277  ;;  %10030 = vrcp.f32 %v1280_v0 }
 0x40a   :  { %10032 = vrcp.f32 %v1278_v54 }
 0x40c   :  { %v1574_v40 = vpop.xlane.xlu1 %1573 }
 0x40d   :  { %v1572_v58 = vpop.xlane.xlu0 %1571  ;;  %10034 = vrcp.f32 %v1574_v40 }
 0x40e   :  { %10036 = vrcp.f32 %v1572_v58 }
 0x410   :  { %v696_v41 = vpop.xlane.xlu1 %695 }
 0x411   :  { %v694_v15 = vpop.xlane.xlu0 %693  ;;  %10038 = vrcp.f32 %v696_v41 }
 0x412   :  { %v10027_v27 = vpop.eup %10026  ;;  %10040 = vrcp.f32 %v694_v15 }
 0x413   :  { %v10029_v6 = vpop.eup %10028  ;;  %v1008_v0 = vmul.f32 %v10027_v27, %v11928_v34 }
 0x414   :  { %v1007_v54 = vmul.f32 %v10029_v6, %v11932_v16  ;;  %v990_v40 = vpop.xlane.xlu1 %989 }
 0x415   :  { %v988_v33 = vpop.xlane.xlu0 %987  ;;  %v8679_v1 = vpack.c.bf16 %v1008_v0, %v1008_v0  ;;  %10042 = vrcp.f32 %v990_v40 }
 0x416   :  { %v10031_v58 = vpop.eup %10030  ;;  %v8678_v47 = vpack.c.bf16 %v1007_v54, %v1007_v54  ;;  %10044 = vrcp.f32 %v988_v33 }
 0x417   :  { %v10033_v19 = vpop.eup %10032  ;;  %1048 = vst [vmem:[#allocation2 + $0x24] sm:$0xf] %v8679_v1  ;;  %v1302_v24 = vmul.f32 %v10031_v58, %v11940_v42 }
 0x418   :  { %1047 = vst [vmem:[#allocation2 + $0x4] sm:$0xf] %v8678_v47  ;;  %v1301_v15 = vmul.f32 %v10033_v19, %v11944_v57  ;;  %v1284_v18 = vpop.xlane.xlu1 %1283 }
 0x419   :  { %v1282_v50 = vpop.xlane.xlu0 %1281  ;;  %v8695_v7 = vpack.c.bf16 %v1302_v24, %v1302_v24  ;;  %10046 = vrcp.f32 %v1284_v18 }
 0x41a   :  { %v10035_v34 = vpop.eup %10034  ;;  %v8694_v16 = vpack.c.bf16 %v1301_v15, %v1301_v15  ;;  %10048 = vrcp.f32 %v1282_v50  ;;  %v9775_v15 = vld [vmem:[#allocation3 + $0x138] sm:$0xff]   ;;  %v9776_v50 = vld [vmem:[#allocation3 + $0x170] sm:$0xff]  }
 0x41b   :  { %v10037_v10 = vpop.eup %10036  ;;  %1342 = vst [vmem:[#allocation2 + $0x28] sm:$0xf] %v8695_v7  ;;  %v1596_v41 = vmul.f32 %v10035_v34, %v11952_v63 }
 0x41c   :  { %1341 = vst [vmem:[#allocation2 + $0x8] sm:$0xf] %v8694_v16  ;;  %v1595_v33 = vmul.f32 %v10037_v10, %v11956_v39  ;;  %v1578_v27 = vpop.xlane.xlu1 %1577 }
 0x41d   :  { %v1576_v6 = vpop.xlane.xlu0 %1575  ;;  %v8711_v42 = vpack.c.bf16 %v1596_v41, %v1596_v41  ;;  %10050 = vrcp.f32 %v1578_v27 }
 0x41e   :  { %v10039_v0 = vpop.eup %10038  ;;  %v8710_v57 = vpack.c.bf16 %v1595_v33, %v1595_v33  ;;  %10052 = vrcp.f32 %v1576_v6  ;;  %v2823_v54 = vld [vmem:[#allocation2 + $0x20] sm:$0xff]  ;;  %v9777_v33 = vld [vmem:[#allocation3 + $0x130] sm:$0xff]   ;;  %v9778_v6 = vld [vmem:[#allocation3 + $0x168] sm:$0xff]  }
 0x41f   :  { %v10041_v40 = vpop.eup %10040  ;;  %1636 = vst [vmem:[#allocation2 + $0x2c] sm:$0xf] %v8711_v42  ;;  %v716_v1 = vmul.f32 %v10039_v0, %v11964_v44  ;;  %v2819_v58 = vld [vmem:[#allocation2] sm:$0xff] }
 0x420   :  { %1635 = vst [vmem:[#allocation2 + $0xc] sm:$0xf] %v8710_v57  ;;  %v715_v47 = vmul.f32 %v10041_v40, %v11966_v43  ;;  %v700_v63 = vpop.xlane.xlu1 %699  ;;  %v8220_v24 = vcombine.high %v2819_v58, %v2823_v54  ;;  %v8219_v39 = vcombine.low %v2819_v58, %v2823_v54 }
 0x421   :  { %v698_v19 = vpop.xlane.xlu0 %697  ;;  %v8665_v18 = vpack.c.bf16 %v716_v1, %v716_v1  ;;  %10054 = vrcp.f32 %v700_v63 }
 0x422   :  { %v10043_v7 = vpop.eup %10042  ;;  %v8664_v34 = vpack.c.bf16 %v715_v47, %v715_v47  ;;  %10056 = vrcp.f32 %v698_v19  ;;  %3555 = vmatprep.mubr.bf16.mxu1 %v8220_v24  ;;  %v9779_v19 = vld [vmem:[#allocation3 + $0x128] sm:$0xff]   ;;  %v9785_v24 = vld [vmem:[#allocation3 + $0x1b8] sm:$0xff]  }
 0x423   :  { %v10045_v16 = vpop.eup %10044  ;;  %756 = vst [vmem:[#allocation2 + $0x60] sm:$0xf] %v8665_v18  ;;  %v1010_v44 = vmul.f32 %v10043_v7, %v11972_v49  ;;  %3556 = vmatmul.mubr.bf16.vlgmr.msra.gmra.mxu1 %v8219_v39  ;;  %v9787_v18 = vld [vmem:[#allocation3 + $0x1f0] sm:$0xff]  }
 0x424   :  { %755 = vst [vmem:[#allocation2 + $0x40] sm:$0xf] %v8664_v34  ;;  %v1009_v43 = vmul.f32 %v10045_v16, %v11974_v61  ;;  %v994_v10 = vpop.xlane.xlu1 %993  ;;  %9036 = vmatpush3.bf16.msra.mxu1 %v9775_v15  ;;  %v9780_v15 = vld [vmem:[#allocation3 + $0x160] sm:$0xff]  }
 0x425   :  { %v992_v41 = vpop.xlane.xlu0 %991  ;;  %v8681_v27 = vpack.c.bf16 %v1010_v44, %v1010_v44  ;;  %10058 = vrcp.f32 %v994_v10  ;;  %9037 = vmatprep.subr.bf16.mxu1 %v9776_v50  ;;  %v9789_v10 = vld [vmem:[#allocation3 + $0x1b0] sm:$0xff]  }
 0x426   :  { %v10047_v42 = vpop.eup %10046  ;;  %v8680_v0 = vpack.c.bf16 %v1009_v43, %v1009_v43  ;;  %10060 = vrcp.f32 %v992_v41  ;;  %v2824_v57 = vld [vmem:[#allocation2 + $0x28] sm:$0xff]  ;;  %v9781_v43 = vld [vmem:[#allocation3 + $0x120] sm:$0xff]  }
 0x427   :  { %v10049_v54 = vpop.eup %10048  ;;  %1050 = vst [vmem:[#allocation2 + $0x64] sm:$0xf] %v8681_v27  ;;  %v1304_v49 = vmul.f32 %v10047_v42, %v11980_v21  ;;  %v2820_v40 = vld [vmem:[#allocation2 + $0x8] sm:$0xff] }
 0x428   :  { %1049 = vst [vmem:[#allocation2 + $0x44] sm:$0xf] %v8680_v0  ;;  %v1303_v61 = vmul.f32 %v10049_v54, %v11982_v52  ;;  %v1288_v1 = vpop.xlane.xlu1 %1287  ;;  %v8222_v47 = vcombine.high %v2820_v40, %v2824_v57  ;;  %v8221_v63 = vcombine.low %v2820_v40, %v2824_v57  ;;  %9038 = vmatpush3.bf16.msra.mxu1 %v9777_v33  ;;  %v9782_v33 = vld [vmem:[#allocation3 + $0x158] sm:$0xff]   ;;  %v9791_v27 = vld [vmem:[#allocation3 + $0x1e8] sm:$0xff]  }
 0x429   :  { %v1286_v58 = vpop.xlane.xlu0 %1285  ;;  %v8697_v39 = vpack.c.bf16 %v1304_v49, %v1304_v49  ;;  %10062 = vrcp.f32 %v1288_v1  ;;  %9039 = vmatprep.subr.bf16.mxu1 %v9778_v6 }
 0x42a   :  { %v10051_v50 = vpop.eup %10050  ;;  %v8696_v7 = vpack.c.bf16 %v1303_v61, %v1303_v61  ;;  %10064 = vrcp.f32 %v1286_v58  ;;  %3620 = vmatprep.mubr.bf16.mxu0 %v8222_v47  ;;  %v9784_v58 = vld [vmem:[#allocation3 + $0x118] sm:$0xff]   ;;  %v9793_v47 = vld [vmem:[#allocation3 + $0x1a8] sm:$0xff]  }
 0x42b   :  { %v10053_v21 = vpop.eup %10052  ;;  %1344 = vst [vmem:[#allocation2 + $0x68] sm:$0xf] %v8697_v39  ;;  %v1598_v52 = vmul.f32 %v10051_v50, %v11988_v31  ;;  %3621 = vmatmul.mubr.bf16.vlgmr.msra.gmra.mxu0 %v8221_v63 }
 0x42c   :  { %1343 = vst [vmem:[#allocation2 + $0x48] sm:$0xf] %v8696_v7  ;;  %v1597_v34 = vmul.f32 %v10053_v21, %v11990_v51  ;;  %v1582_v16 = vpop.xlane.xlu1 %1581  ;;  %9040 = vmatpush3.bf16.msra.mxu1 %v9779_v19  ;;  %9076 = vmatpush3.bf16.msra.mxu0 %v9785_v24  ;;  %v9786_v19 = vld [vmem:[#allocation3 + $0x150] sm:$0xff]   ;;  %v9795_v24 = vld [vmem:[#allocation3 + $0x1e0] sm:$0xff]  }
 0x42d   :  { %v1580_v44 = vpop.xlane.xlu0 %1579  ;;  %v8713_v41 = vpack.c.bf16 %v1598_v52, %v1598_v52  ;;  %10066 = vrcp.f32 %v1582_v16  ;;  %9041 = vmatprep.subr.bf16.mxu1 %v9780_v15  ;;  %9077 = vmatprep.subr.bf16.mxu0 %v9787_v18  ;;  %v9788_v21 = vld [vmem:[#allocation3 + $0x110] sm:$0xff]   ;;  %v9797_v52 = vld [vmem:[#allocation3 + $0x1a0] sm:$0xff]   ;;  %v9790_v16 = vld [vmem:[#allocation3 + $0x148] sm:$0xff]  }
 0x42e   :  { %v10055_v6 = vpop.eup %10054  ;;  %v8712_v42 = vpack.c.bf16 %v1597_v34, %v1597_v34  ;;  %10068 = vrcp.f32 %v1580_v44  ;;  %v2831_v31 = vld [vmem:[#allocation2 + $0x60] sm:$0xff]  ;;  %v9798_v44 = vld [vmem:[#allocation3 + $0x1d8] sm:$0xff]  }
 0x42f   :  { %v10057_v0 = vpop.eup %10056  ;;  %1638 = vst [vmem:[#allocation2 + $0x6c] sm:$0xf] %v8713_v41  ;;  %v718_v51 = vmul.f32 %v10055_v6, %v11996_v45  ;;  %v2827_v57 = vld [vmem:[#allocation2 + $0x40] sm:$0xff] }
 0x430   :  { %1637 = vst [vmem:[#allocation2 + $0x4c] sm:$0xf] %v8712_v42  ;;  %v717_v54 = vmul.f32 %v10057_v0, %v11998_v46  ;;  %v704_v49 = vpop.xlane.xlu1 %703  ;;  %v8228_v61 = vcombine.high %v2827_v57, %v2831_v31  ;;  %v8227_v1 = vcombine.low %v2827_v57, %v2831_v31  ;;  %9042 = vmatpush3.bf16.msra.mxu1 %v9781_v43  ;;  %v9799_v57 = vld [vmem:[#allocation3 + $0x198] sm:$0xff]  }
 0x431   :  { %v702_v40 = vpop.xlane.xlu0 %701  ;;  %9078 = vmatpush3.bf16.msra.mxu0 %v9789_v10  ;;  %v8667_v63 = vpack.c.bf16 %v718_v51, %v718_v51  ;;  %10070 = vrcp.f32 %v704_v49  ;;  %9043 = vmatprep.subr.bf16.mxu1 %v9782_v33  ;;  %v9792_v51 = vld [vmem:[#allocation3 + $0x108] sm:$0xff]   ;;  %v9794_v49 = vld [vmem:[#allocation3 + $0x140] sm:$0xff]  }
 0x432   :  { %9079 = vmatprep.subr.bf16.mxu0 %v9791_v27  ;;  %v10059_v39 = vpop.eup %10058  ;;  %v8666_v45 = vpack.c.bf16 %v717_v54, %v717_v54  ;;  %10072 = vrcp.f32 %v702_v40  ;;  %3563 = vmatprep.mubr.bf16.mxu1 %v8228_v61  ;;  %v9800_v40 = vld [vmem:[#allocation3 + $0x1d0] sm:$0xff]  }
 0x433   :  { %v10061_v15 = vpop.eup %10060  ;;  %758 = vst [vmem:[#allocation2 + $0xa0] sm:$0xf] %v8667_v63  ;;  %v1012_v46 = vmul.f32 %v10059_v39, %v12006_v56  ;;  %3564 = vmatmul.mubr.bf16.gmra.mxu1 %v8227_v1 }
 0x434   :  { %757 = vst [vmem:[#allocation2 + $0x80] sm:$0xf] %v8666_v45  ;;  %v1011_v18 = vmul.f32 %v10061_v15, %v12010_v5  ;;  %v998_v50 = vpop.xlane.xlu1 %997  ;;  %9044 = vmatpush3.bf16.msra.mxu1 %v9784_v58  ;;  %v9802_v45 = vld [vmem:[#allocation3 + $0x1c8] sm:$0xff]  }
 0x435   :  { %v996_v7 = vpop.xlane.xlu0 %995  ;;  %9080 = vmatpush3.bf16.msra.mxu0 %v9793_v47  ;;  %v8683_v34 = vpack.c.bf16 %v1012_v46, %v1012_v46  ;;  %10074 = vrcp.f32 %v998_v50  ;;  %9045 = vmatprep.subr.bf16.mxu1 %v9786_v19  ;;  %v9796_v19 = vld [vmem:[#allocation3 + $0x100] sm:$0xff]  }
 0x436   :  { %9081 = vmatprep.subr.bf16.mxu0 %v9795_v24  ;;  %v10063_v43 = vpop.eup %10062  ;;  %v8682_v10 = vpack.c.bf16 %v1011_v18, %v1011_v18  ;;  %10076 = vrcp.f32 %v996_v7  ;;  %v2832_v56 = vld [vmem:[#allocation2 + $0x68] sm:$0xff]  ;;  %v9801_v24 = vld [vmem:[#allocation3 + $0x190] sm:$0xff]  }
 0x437   :  { %v10065_v41 = vpop.eup %10064  ;;  %1052 = vst [vmem:[#allocation2 + $0xa4] sm:$0xf] %v8683_v34  ;;  %v1306_v5 = vmul.f32 %v10063_v43, %v12018_v60  ;;  %v2828_v33 = vld [vmem:[#allocation2 + $0x48] sm:$0xff] }
 0x438   :  { %1051 = vst [vmem:[#allocation2 + $0x84] sm:$0xf] %v8682_v10  ;;  %v1305_v27 = vmul.f32 %v10065_v41, %v12022_v11  ;;  %v1292_v6 = vpop.xlane.xlu1 %1291  ;;  %v8230_v31 = vcombine.high %v2828_v33, %v2832_v56  ;;  %v8229_v0 = vcombine.low %v2828_v33, %v2832_v56  ;;  %9046 = vmatpush3.bf16.msra.mxu1 %v9788_v21  ;;  %v9804_v10 = vld [vmem:[#allocation3 + $0x1c0] sm:$0xff]  }
 0x439   :  { %v1290_v42 = vpop.xlane.xlu0 %1289  ;;  %9082 = vmatpush3.bf16.msra.mxu0 %v9797_v52  ;;  %v8699_v54 = vpack.c.bf16 %v1306_v5, %v1306_v5  ;;  %10078 = vrcp.f32 %v1292_v6  ;;  %9047 = vmatprep.subr.bf16.mxu1 %v9790_v16 }
 0x43a   :  { %9083 = vmatprep.subr.bf16.mxu0 %v9798_v44  ;;  %v10067_v61 = vpop.eup %10066  ;;  %v8698_v60 = vpack.c.bf16 %v1305_v27, %v1305_v27  ;;  %10080 = vrcp.f32 %v1290_v42  ;;  %3628 = vmatprep.mubr.bf16.mxu0 %v8230_v31  ;;  %v9803_v44 = vld [vmem:[#allocation3 + $0x188] sm:$0xff]   ;;  %v9805_v42 = vld [vmem:[#allocation3 + $0x180] sm:$0xff]  }
 0x43b   :  { %v10069_v1 = vpop.eup %10068  ;;  %1346 = vst [vmem:[#allocation2 + $0xa8] sm:$0xf] %v8699_v54  ;;  %v1600_v11 = vmul.f32 %v10067_v61, %v12030_v14  ;;  %3629 = vmatmul.mubr.bf16.gmra.mxu0 %v8229_v0  ;;  %v14209_v61 = vld [vmem:[#allocation33_spill] sm:$0xff] }
 0x43c   :  { %1345 = vst [vmem:[#allocation2 + $0x88] sm:$0xf] %v8698_v60  ;;  %v1599_v58 = vmul.f32 %v10069_v1, %v12034_v53  ;;  %v1586_v47 = vpop.xlane.xlu1 %1585  ;;  %9048 = vmatpush3.bf16.msra.mxu1 %v9792_v51 }
 0x43d   :  { %v1584_v63 = vpop.xlane.xlu0 %1583  ;;  %9084 = vmatpush3.bf16.msra.mxu0 %v9799_v57  ;;  %v8715_v39 = vpack.c.bf16 %v1600_v11, %v1600_v11  ;;  %10082 = vrcp.f32 %v1586_v47  ;;  %9049 = vmatprep.subr.bf16.mxu1 %v9794_v49  ;;  %v14208_v49 = vld [vmem:[#allocation49_spill] sm:$0xff] }
 0x43e   :  { %9085 = vmatprep.subr.bf16.mxu0 %v9800_v40  ;;  %v10071_v15 = vpop.eup %10070  ;;  %v8714_v46 = vpack.c.bf16 %v1599_v58, %v1599_v58  ;;  %10084 = vrcp.f32 %v1584_v63  ;;  %v2839_v18 = vld [vmem:[#allocation2 + $0xa0] sm:$0xff] }
 0x43f   :  { %v10073_v14 = vpop.eup %10072  ;;  %1640 = vst [vmem:[#allocation2 + $0xac] sm:$0xf] %v8715_v39  ;;  %v720_v50 = vmul.f32 %v10071_v15, %v12042_v35  ;;  %v2835_v53 = vld [vmem:[#allocation2 + $0x80] sm:$0xff] }
 0x440   :  { %1639 = vst [vmem:[#allocation2 + $0x8c] sm:$0xf] %v8714_v46  ;;  %v719_v7 = vmul.f32 %v10073_v14, %v12044_v37  ;;  %v1868_v21 = vpop.xlane.xlu1 %1867  ;;  %v8236_v34 = vcombine.high %v2835_v53, %v2839_v18  ;;  %v8235_v16 = vcombine.low %v2835_v53, %v2839_v18  ;;  %9050 = vmatpush3.bf16.msra.mxu1 %v9796_v19  ;;  %v14207_v37 = vld [vmem:[#allocation32_spill] sm:$0xff]  ;;  %v14211_v46 = vld [vmem:[#allocation50_spill] sm:$0xff] }
 0x441   :  { %v1866_v52 = vpop.xlane.xlu0 %1865  ;;  %9086 = vmatpush3.bf16.msra.mxu0 %v9801_v24  ;;  %v8669_v43 = vpack.c.bf16 %v720_v50, %v720_v50  ;;  %10086 = vrcp.f32 %v1868_v21 }
 0x442   :  { %9087 = vmatprep.subr.bf16.mxu0 %v9802_v45  ;;  %v10075_v56 = vpop.eup %10074  ;;  %v8668_v41 = vpack.c.bf16 %v719_v7, %v719_v7  ;;  %10088 = vrcp.f32 %v1866_v52  ;;  %3571 = vmatprep.mubr.bf16.mxu1 %v8236_v34  ;;  %v14210_v45 = vld [vmem:[#allocation45_spill] sm:$0xff] }
 0x443   :  { %v10077_v35 = vpop.eup %10076  ;;  %760 = vst [vmem:[#allocation2 + $0xe0] sm:$0xf] %v8669_v43  ;;  %v1014_v5 = vmul.f32 %v10075_v56, %v12052_v29  ;;  %3572 = vmatmul.mubr.bf16.gmra.mxu1 %v8235_v16  ;;  %v14212_v16 = vld [vmem:[#allocation48_spill] sm:$0xff] }
 0x444   :  { %759 = vst [vmem:[#allocation2 + $0xc0] sm:$0xf] %v8668_v41  ;;  %v1013_v33 = vmul.f32 %v10077_v35, %v14207_v37  ;;  %v2162_v27 = vpop.xlane.xlu1 %2161 }
 0x445   :  { %v2160_v6 = vpop.xlane.xlu0 %2159  ;;  %9088 = vmatpush3.bf16.msra.mxu0 %v9803_v44  ;;  %v8685_v31 = vpack.c.bf16 %v1014_v5, %v1014_v5  ;;  %10090 = vrcp.f32 %v2162_v27 }
 0x446   :  { %9089 = vmatprep.subr.bf16.mxu0 %v9804_v10  ;;  %v10079_v0 = vpop.eup %10078  ;;  %v8684_v51 = vpack.c.bf16 %v1013_v33, %v1013_v33  ;;  %10092 = vrcp.f32 %v2160_v6  ;;  %v2840_v57 = vld [vmem:[#allocation2 + $0xa8] sm:$0xff] }
 0x447   :  { %v10081_v54 = vpop.eup %10080  ;;  %1054 = vst [vmem:[#allocation2 + $0xe4] sm:$0xf] %v8685_v31  ;;  %v1308_v40 = vmul.f32 %v10079_v0, %v14208_v49  ;;  %v2836_v29 = vld [vmem:[#allocation2 + $0x88] sm:$0xff] }
 0x448   :  { %1053 = vst [vmem:[#allocation2 + $0xc4] sm:$0xf] %v8684_v51  ;;  %v1307_v60 = vmul.f32 %v10081_v54, %v14209_v61  ;;  %v2456_v1 = vpop.xlane.xlu1 %2455  ;;  %v8238_v58 = vcombine.high %v2836_v29, %v2840_v57  ;;  %v8237_v47 = vcombine.low %v2836_v29, %v2840_v57  ;;  %v14214_v61 = vld [vmem:[#allocation39_spill] sm:$0xff] }
 0x449   :  { %v2454_v11 = vpop.xlane.xlu0 %2453  ;;  %9090 = vmatpush3.bf16.msra.mxu0 %v9805_v42  ;;  %v8701_v63 = vpack.c.bf16 %v1308_v40, %v1308_v40  ;;  %10094 = vrcp.f32 %v2456_v1  ;;  %v14213_v42 = vld [vmem:[#allocation29_spill] sm:$0xff] }
 0x44a   :  { %v10083_v19 = vpop.eup %10082  ;;  %v8700_v24 = vpack.c.bf16 %v1307_v60, %v1307_v60  ;;  %10096 = vrcp.f32 %v2454_v11  ;;  %3636 = vmatprep.mubr.bf16.mxu0 %v8238_v58  ;;  %v14215_v11 = vld [vmem:[#allocation31_spill] sm:$0xff] }
 0x44b   :  { %v10085_v39 = vpop.eup %10084  ;;  %1348 = vst [vmem:[#allocation2 + $0xe8] sm:$0xf] %v8701_v63  ;;  %v1602_v15 = vmul.f32 %v10083_v19, %v14210_v45  ;;  %3637 = vmatmul.mubr.bf16.gmra.mxu0 %v8237_v47 }
 0x44c   :  { %1347 = vst [vmem:[#allocation2 + $0xc8] sm:$0xf] %v8700_v24  ;;  %v1601_v18 = vmul.f32 %v10085_v39, %v14211_v46  ;;  %v2750_v14 = vpop.xlane.xlu1 %2749 }
 0x44d   :  { %v2748_v50 = vpop.xlane.xlu0 %2747  ;;  %v8717_v53 = vpack.c.bf16 %v1602_v15, %v1602_v15  ;;  %10098 = vrcp.f32 %v2750_v14 }
 0x44e   :  { %v10087_v7 = vpop.eup %10086  ;;  %v8716_v21 = vpack.c.bf16 %v1601_v18, %v1601_v18  ;;  %10100 = vrcp.f32 %v2748_v50  ;;  %v2847_v52 = vld [vmem:[#allocation2 + $0xe0] sm:$0xff] }
 0x44f   :  { %v10089_v34 = vpop.eup %10088  ;;  %1642 = vst [vmem:[#allocation2 + $0xec] sm:$0xf] %v8717_v53  ;;  %v1890_v44 = vmul.f32 %v10087_v7, %v14212_v16  ;;  %v2843_v43 = vld [vmem:[#allocation2 + $0xc0] sm:$0xff] }
 0x450   :  { %1641 = vst [vmem:[#allocation2 + $0xcc] sm:$0xf] %v8716_v21  ;;  %v1889_v10 = vmul.f32 %v10089_v34, %v12078_v2  ;;  %v1872_v56 = vpop.xlane.xlu1 %1871  ;;  %v8244_v35 = vcombine.high %v2843_v43, %v2847_v52  ;;  %v8243_v5 = vcombine.low %v2843_v43, %v2847_v52 }
 0x451   :  { %v1870_v41 = vpop.xlane.xlu0 %1869  ;;  %v8727_v37 = vpack.c.bf16 %v1890_v44, %v1890_v44  ;;  %10102 = vrcp.f32 %v1872_v56 }
 0x452   :  { %v10091_v33 = vpop.eup %10090  ;;  %v8726_v27 = vpack.c.bf16 %v1889_v10, %v1889_v10  ;;  %10104 = vrcp.f32 %v1870_v41  ;;  %3579 = vmatprep.mubr.bf16.mxu1 %v8244_v35 }
 0x453   :  { %v10093_v6 = vpop.eup %10092  ;;  %1930 = vst [vmem:[#allocation2 + $0x30] sm:$0xf] %v8727_v37  ;;  %v2184_v31 = vmul.f32 %v10091_v33, %v14213_v42  ;;  %3580 = vmatmul.mubr.bf16.gmra.mxu1 %v8243_v5 }
 0x454   :  { %1929 = vst [vmem:[#allocation2 + $0x10] sm:$0xf] %v8726_v27  ;;  %v2183_v0 = vmul.f32 %v10093_v6, %v12090_v17  ;;  %v2166_v51 = vpop.xlane.xlu1 %2165 }
 0x455   :  { %v2164_v2 = vpop.xlane.xlu0 %2163  ;;  %v8743_v57 = vpack.c.bf16 %v2184_v31, %v2184_v31  ;;  %10106 = vrcp.f32 %v2166_v51 }
 0x456   :  { %v10095_v54 = vpop.eup %10094  ;;  %v8742_v49 = vpack.c.bf16 %v2183_v0, %v2183_v0  ;;  %10108 = vrcp.f32 %v2164_v2  ;;  %v2848_v40 = vld [vmem:[#allocation2 + $0xe8] sm:$0xff] }
 0x457   :  { %v10097_v29 = vpop.eup %10096  ;;  %2224 = vst [vmem:[#allocation2 + $0x34] sm:$0xf] %v8743_v57  ;;  %v2478_v60 = vmul.f32 %v10095_v54, %v14214_v61  ;;  %v2844_v1 = vld [vmem:[#allocation2 + $0xc8] sm:$0xff] }
 0x458   :  { %2223 = vst [vmem:[#allocation2 + $0x14] sm:$0xf] %v8742_v49  ;;  %v2477_v58 = vmul.f32 %v10097_v29, %v14215_v11  ;;  %v2460_v47 = vpop.xlane.xlu1 %2459  ;;  %v8246_v19 = vcombine.high %v2844_v1, %v2848_v40  ;;  %v8245_v17 = vcombine.low %v2844_v1, %v2848_v40 }
 0x459   :  { %v2458_v63 = vpop.xlane.xlu0 %2457  ;;  %v8759_v24 = vpack.c.bf16 %v2478_v60, %v2478_v60  ;;  %10110 = vrcp.f32 %v2460_v47 }
 0x45a   :  { %v10099_v39 = vpop.eup %10098  ;;  %v8758_v45 = vpack.c.bf16 %v2477_v58, %v2477_v58  ;;  %10112 = vrcp.f32 %v2458_v63  ;;  %3644 = vmatprep.mubr.bf16.mxu0 %v8246_v19 }
 0x45b   :  { %v10101_v15 = vpop.eup %10100  ;;  %2518 = vst [vmem:[#allocation2 + $0x38] sm:$0xf] %v8759_v24  ;;  %v2772_v46 = vmul.f32 %v10099_v39, %v12110_v25  ;;  %3645 = vmatmul.mubr.bf16.gmra.mxu0 %v8245_v17 }
 0x45c   :  { %2517 = vst [vmem:[#allocation2 + $0x18] sm:$0xf] %v8758_v45  ;;  %v2771_v18 = vmul.f32 %v10101_v15, %v12114_v4  ;;  %v2754_v14 = vpop.xlane.xlu1 %2753 }
 0x45d   :  { %v2752_v50 = vpop.xlane.xlu0 %2751  ;;  %v8775_v53 = vpack.c.bf16 %v2772_v46, %v2772_v46  ;;  %10114 = vrcp.f32 %v2754_v14 }
 0x45e   :  { %v10103_v7 = vpop.eup %10102  ;;  %v8774_v21 = vpack.c.bf16 %v2771_v18, %v2771_v18  ;;  %10116 = vrcp.f32 %v2752_v50  ;;  %v2825_v52 = vld [vmem:[#allocation2 + $0x30] sm:$0xff] }
 0x45f   :  { %v10105_v34 = vpop.eup %10104  ;;  %2812 = vst [vmem:[#allocation2 + $0x3c] sm:$0xf] %v8775_v53  ;;  %v1892_v16 = vmul.f32 %v10103_v7, %v12122_v9  ;;  %v2821_v44 = vld [vmem:[#allocation2 + $0x10] sm:$0xff] }
 0x460   :  { %2811 = vst [vmem:[#allocation2 + $0x1c] sm:$0xf] %v8774_v21  ;;  %v1891_v25 = vmul.f32 %v10105_v34, %v12126_v38  ;;  %v1876_v43 = vpop.xlane.xlu1 %1875  ;;  %v8224_v56 = vcombine.high %v2821_v44, %v2825_v52  ;;  %v8223_v4 = vcombine.low %v2821_v44, %v2825_v52 }
 0x461   :  { %v1874_v10 = vpop.xlane.xlu0 %1873  ;;  %v8729_v41 = vpack.c.bf16 %v1892_v16, %v1892_v16  ;;  %10118 = vrcp.f32 %v1876_v43 }
 0x462   :  { %v10107_v35 = vpop.eup %10106  ;;  %v8728_v5 = vpack.c.bf16 %v1891_v25, %v1891_v25  ;;  %10120 = vrcp.f32 %v1874_v10  ;;  %3685 = vmatprep.mubr.bf16.mxu1 %v8224_v56 }
 0x463   :  { %v10109_v37 = vpop.eup %10108  ;;  %1932 = vst [vmem:[#allocation2 + $0x70] sm:$0xf] %v8729_v41  ;;  %v2186_v33 = vmul.f32 %v10107_v35, %v12134_v62  ;;  %3686 = vmatmul.mubr.bf16.vlgmr.msra.gmra.mxu1 %v8223_v4 }
 0x464   :  { %1931 = vst [vmem:[#allocation2 + $0x50] sm:$0xf] %v8728_v5  ;;  %v2185_v9 = vmul.f32 %v10109_v37, %v12138_v28  ;;  %v2170_v27 = vpop.xlane.xlu1 %2169 }
 0x465   :  { %v2168_v38 = vpop.xlane.xlu0 %2167  ;;  %v8745_v6 = vpack.c.bf16 %v2186_v33, %v2186_v33  ;;  %10122 = vrcp.f32 %v2170_v27 }
 0x466   :  { %v10111_v42 = vpop.eup %10110  ;;  %v8744_v31 = vpack.c.bf16 %v2185_v9, %v2185_v9  ;;  %10124 = vrcp.f32 %v2168_v38  ;;  %v2826_v0 = vld [vmem:[#allocation2 + $0x38] sm:$0xff] }
 0x467   :  { %v10113_v51 = vpop.eup %10112  ;;  %2226 = vst [vmem:[#allocation2 + $0x74] sm:$0xf] %v8745_v6  ;;  %v2480_v2 = vmul.f32 %v10111_v42, %v12146_v59  ;;  %v2822_v57 = vld [vmem:[#allocation2 + $0x18] sm:$0xff] }
 0x468   :  { %2225 = vst [vmem:[#allocation2 + $0x54] sm:$0xf] %v8744_v31  ;;  %v2479_v62 = vmul.f32 %v10113_v51, %v12150_v48  ;;  %v2464_v54 = vpop.xlane.xlu1 %2463  ;;  %v8226_v40 = vcombine.high %v2822_v57, %v2826_v0  ;;  %v8225_v28 = vcombine.low %v2822_v57, %v2826_v0 }
 0x469   :  { %v2462_v49 = vpop.xlane.xlu0 %2461  ;;  %v8761_v29 = vpack.c.bf16 %v2480_v2, %v2480_v2  ;;  %10126 = vrcp.f32 %v2464_v54 }
 0x46a   :  { %v10115_v61 = vpop.eup %10114  ;;  %v8760_v60 = vpack.c.bf16 %v2479_v62, %v2479_v62  ;;  %10128 = vrcp.f32 %v2462_v49  ;;  %3750 = vmatprep.mubr.bf16.mxu0 %v8226_v40 }
 0x46b   :  { %v10117_v1 = vpop.eup %10116  ;;  %2520 = vst [vmem:[#allocation2 + $0x78] sm:$0xf] %v8761_v29  ;;  %v2774_v11 = vmul.f32 %v10115_v61, %v12158_v13  ;;  %3751 = vmatmul.mubr.bf16.vlgmr.msra.gmra.mxu0 %v8225_v28  ;;  %v14216_v29 = vld [vmem:[#allocation41_spill] sm:$0xff] }
 0x46c   :  { %2519 = vst [vmem:[#allocation2 + $0x58] sm:$0xf] %v8760_v60  ;;  %v2773_v59 = vmul.f32 %v10117_v1, %v12162_v26  ;;  %v2758_v58 = vpop.xlane.xlu1 %2757  ;;  %v14217_v60 = vld [vmem:[#allocation30_spill] sm:$0xff] }
 0x46d   :  { %v2756_v48 = vpop.xlane.xlu0 %2755  ;;  %v8777_v47 = vpack.c.bf16 %v2774_v11, %v2774_v11  ;;  %10130 = vrcp.f32 %v2758_v58 }
 0x46e   :  { %v10119_v63 = vpop.eup %10118  ;;  %v8776_v19 = vpack.c.bf16 %v2773_v59, %v2773_v59  ;;  %10132 = vrcp.f32 %v2756_v48  ;;  %v2833_v17 = vld [vmem:[#allocation2 + $0x70] sm:$0xff] }
 0x46f   :  { %v10121_v24 = vpop.eup %10120  ;;  %2814 = vst [vmem:[#allocation2 + $0x7c] sm:$0xf] %v8777_v47  ;;  %v1894_v39 = vmul.f32 %v10119_v63, %v12170_v55  ;;  %v2829_v45 = vld [vmem:[#allocation2 + $0x50] sm:$0xff] }
 0x470   :  { %2813 = vst [vmem:[#allocation2 + $0x5c] sm:$0xf] %v8776_v19  ;;  %v1893_v13 = vmul.f32 %v10121_v24, %v12172_v30  ;;  %v1880_v15 = vpop.xlane.xlu1 %1879  ;;  %v8232_v18 = vcombine.high %v2829_v45, %v2833_v17  ;;  %v8231_v26 = vcombine.low %v2829_v45, %v2833_v17  ;;  %v14219_v19 = vld [vmem:[#allocation44_spill] sm:$0xff] }
 0x471   :  { %v1878_v46 = vpop.xlane.xlu0 %1877  ;;  %v8731_v14 = vpack.c.bf16 %v1894_v39, %v1894_v39  ;;  %10134 = vrcp.f32 %v1880_v15 }
 0x472   :  { %v10123_v50 = vpop.eup %10122  ;;  %v8730_v53 = vpack.c.bf16 %v1893_v13, %v1893_v13  ;;  %10136 = vrcp.f32 %v1878_v46  ;;  %3693 = vmatprep.mubr.bf16.mxu1 %v8232_v18  ;;  %v14220_v18 = vld [vmem:[#allocation51_spill] sm:$0xff] }
 0x473   :  { %v10125_v7 = vpop.eup %10124  ;;  %1934 = vst [vmem:[#allocation2 + $0xb0] sm:$0xf] %v8731_v14  ;;  %v2188_v21 = vmul.f32 %v10123_v50, %v12180_v22  ;;  %3694 = vmatmul.mubr.bf16.gmra.mxu1 %v8231_v26  ;;  %v14221_v14 = vld [vmem:[#allocation52_spill] sm:$0xff] }
 0x474   :  { %1933 = vst [vmem:[#allocation2 + $0x90] sm:$0xf] %v8730_v53  ;;  %v2187_v55 = vmul.f32 %v10125_v7, %v12182_v20  ;;  %v2174_v52 = vpop.xlane.xlu1 %2173 }
 0x475   :  { %v2172_v30 = vpop.xlane.xlu0 %2171  ;;  %v8747_v34 = vpack.c.bf16 %v2188_v21, %v2188_v21  ;;  %10138 = vrcp.f32 %v2174_v52 }
 0x476   :  { %v10127_v16 = vpop.eup %10126  ;;  %v8746_v44 = vpack.c.bf16 %v2187_v55, %v2187_v55  ;;  %10140 = vrcp.f32 %v2172_v30  ;;  %v2834_v25 = vld [vmem:[#allocation2 + $0x78] sm:$0xff] }
 0x477   :  { %v10129_v43 = vpop.eup %10128  ;;  %2228 = vst [vmem:[#allocation2 + $0xb4] sm:$0xf] %v8747_v34  ;;  %v2482_v10 = vmul.f32 %v10127_v16, %v12188_v36  ;;  %v2830_v56 = vld [vmem:[#allocation2 + $0x58] sm:$0xff] }
 0x478   :  { %2227 = vst [vmem:[#allocation2 + $0x94] sm:$0xf] %v8746_v44  ;;  %v2481_v22 = vmul.f32 %v10129_v43, %v12190_v32  ;;  %v2468_v4 = vpop.xlane.xlu1 %2467  ;;  %v8234_v35 = vcombine.high %v2830_v56, %v2834_v25  ;;  %v8233_v20 = vcombine.low %v2830_v56, %v2834_v25  ;;  %v9806_v43 = vld [vmem:[%s13982_s7 + $0x8] sm:$0xff]  }
 0x479   :  { %v2466_v41 = vpop.xlane.xlu0 %2465  ;;  %v8763_v5 = vpack.c.bf16 %v2482_v10, %v2482_v10  ;;  %10142 = vrcp.f32 %v2468_v4  ;;  %9437 = vmatprep.subr.bf16.mxu1 %v9806_v43  ;;  %v9807_v10 = vld [vmem:[%s13982_s7] sm:$0xff]   ;;  %v9808_v56 = vld [vmem:[%s13983_s8 + $0x8] sm:$0xff]  }
 0x47a   :  { %v10131_v37 = vpop.eup %10130  ;;  %v8762_v33 = vpack.c.bf16 %v2481_v22, %v2481_v22  ;;  %10144 = vrcp.f32 %v2466_v41  ;;  %3758 = vmatprep.mubr.bf16.mxu0 %v8234_v35  ;;  %9438 = vmatpush3.bf16.msra.mxu1 %v9806_v43  ;;  %v9809_v22 = vld [vmem:[%s13983_s8] sm:$0xff]   ;;  %v12305_v41 = vld [vmem:[%s13983_s8 + $0x18] sm:$0xff]   ;;  %v12310_v35 = vld [vmem:[%s13983_s8 + $0x28] sm:$0xff]  }
 0x47b   :  { %v10133_v9 = vpop.eup %10132  ;;  %2522 = vst [vmem:[#allocation2 + $0xb8] sm:$0xf] %v8763_v5  ;;  %v2776_v27 = vmul.f32 %v10131_v37, %v12196_v23  ;;  %3759 = vmatmul.mubr.bf16.gmra.mxu0 %v8233_v20  ;;  %9439 = vmatprep.subr.bf16.mxu1 %v9807_v10 }
 0x47c   :  { %2521 = vst [vmem:[#allocation2 + $0x98] sm:$0xf] %v8762_v33  ;;  %v2775_v36 = vmul.f32 %v10133_v9, %v12198_v3  ;;  %v2762_v38 = vpop.xlane.xlu1 %2761  ;;  %9449 = vmatprep.subr.bf16.mxu0 %v9808_v56 }
 0x47d   :  { %v2760_v32 = vpop.xlane.xlu0 %2759  ;;  %v8779_v6 = vpack.c.bf16 %v2776_v27, %v2776_v27  ;;  %10146 = vrcp.f32 %v2762_v38  ;;  %9450 = vmatpush3.bf16.msra.mxu0 %v9808_v56 }
 0x47e   :  { %v10135_v42 = vpop.eup %10134  ;;  %v8778_v31 = vpack.c.bf16 %v2775_v36, %v2775_v36  ;;  %10148 = vrcp.f32 %v2760_v32  ;;  %v2841_v0 = vld [vmem:[#allocation2 + $0xb0] sm:$0xff]  ;;  %9440 = vmatpush3.bf16.msra.mxu1 %v9807_v10  ;;  %9451 = vmatprep.subr.bf16.mxu0 %v9809_v22 }
 0x47f   :  { %v10137_v51 = vpop.eup %10136  ;;  %2816 = vst [vmem:[#allocation2 + $0xbc] sm:$0xf] %v8779_v6  ;;  %v1896_v2 = vmul.f32 %v10135_v42, %v12202_v12  ;;  %v2837_v57 = vld [vmem:[#allocation2 + $0x90] sm:$0xff]  ;;  %9461 = vmatprep.subr.bf16.mxu1 %v12305_v41 }
 0x480   :  { %2815 = vst [vmem:[#allocation2 + $0x9c] sm:$0xf] %v8778_v31  ;;  %v1895_v23 = vmul.f32 %v10137_v51, %v12204_v8  ;;  %v8240_v62 = vcombine.high %v2837_v57, %v2841_v0  ;;  %v8239_v54 = vcombine.low %v2837_v57, %v2841_v0  ;;  %v14218_v8 = vld [vmem:[#allocation43_spill] sm:$0xff] }
 0x481   :  { %v8733_v49 = vpack.c.bf16 %v1896_v2, %v1896_v2  ;;  %9452 = vmatpush3.bf16.msra.mxu0 %v9809_v22 }
 0x482   :  { %v10139_v3 = vpop.eup %10138  ;;  %v8732_v40 = vpack.c.bf16 %v1895_v23, %v1895_v23  ;;  %3701 = vmatprep.mubr.bf16.mxu1 %v8240_v62  ;;  %9473 = vmatprep.subr.bf16.mxu0 %v12310_v35 }
 0x483   :  { %v10141_v28 = vpop.eup %10140  ;;  %1936 = vst [vmem:[#allocation2 + $0xf0] sm:$0xf] %v8733_v49  ;;  %v2190_v61 = vmul.f32 %v10139_v3, %v14216_v29  ;;  %3702 = vmatmul.mubr.bf16.gmra.mxu1 %v8239_v54 }
 0x484   :  { %1935 = vst [vmem:[#allocation2 + $0xd0] sm:$0xf] %v8732_v40  ;;  %v2189_v1 = vmul.f32 %v10141_v28, %v14217_v60 }
 0x485   :  { %v8749_v11 = vpack.c.bf16 %v2190_v61, %v2190_v61 }
 0x486   :  { %v10143_v12 = vpop.eup %10142  ;;  %v8748_v59 = vpack.c.bf16 %v2189_v1, %v2189_v1  ;;  %v2842_v58 = vld [vmem:[#allocation2 + $0xb8] sm:$0xff] }
 0x487   :  { %v10145_v48 = vpop.eup %10144  ;;  %2230 = vst [vmem:[#allocation2 + $0xf4] sm:$0xf] %v8749_v11  ;;  %v2484_v47 = vmul.f32 %v10143_v12, %v14218_v8  ;;  %v2838_v63 = vld [vmem:[#allocation2 + $0x98] sm:$0xff] }
 0x488   :  { %2229 = vst [vmem:[#allocation2 + $0xd4] sm:$0xf] %v8748_v59  ;;  %v2483_v17 = vmul.f32 %v10145_v48, %v14219_v19  ;;  %v8242_v24 = vcombine.high %v2838_v63, %v2842_v58  ;;  %v8241_v39 = vcombine.low %v2838_v63, %v2842_v58 }
 0x489   :  { %v8765_v45 = vpack.c.bf16 %v2484_v47, %v2484_v47 }
 0x48a   :  { %v10147_v13 = vpop.eup %10146  ;;  %v8764_v15 = vpack.c.bf16 %v2483_v17, %v2483_v17  ;;  %3766 = vmatprep.mubr.bf16.mxu0 %v8242_v24 }
 0x48b   :  { %v10149_v46 = vpop.eup %10148  ;;  %2524 = vst [vmem:[#allocation2 + $0xf8] sm:$0xf] %v8765_v45  ;;  %v2778_v26 = vmul.f32 %v10147_v13, %v14220_v18  ;;  %3767 = vmatmul.mubr.bf16.gmra.mxu0 %v8241_v39 }
 0x48c   :  { %2523 = vst [vmem:[#allocation2 + $0xd8] sm:$0xf] %v8764_v15  ;;  %v2777_v50 = vmul.f32 %v10149_v46, %v14221_v14 }
 0x48d   :  { %v8781_v53 = vpack.c.bf16 %v2778_v26, %v2778_v26 }
 0x48e   :  { %v8780_v7 = vpack.c.bf16 %v2777_v50, %v2777_v50  ;;  %v2849_v21 = vld [vmem:[#allocation2 + $0xf0] sm:$0xff]  ;;  %v12351_v50 = vld [vmem:[%s13980_s5] ss:$0 sm:$0xff] }
 0x48f   :  { %2818 = vst [vmem:[#allocation2 + $0xfc] sm:$0xf] %v8781_v53  ;;  %v2845_v55 = vld [vmem:[#allocation2 + $0xd0] sm:$0xff] }
 0x490   :  { %2817 = vst [vmem:[#allocation2 + $0xdc] sm:$0xf] %v8780_v7  ;;  %v8248_v52 = vcombine.high %v2845_v55, %v2849_v21  ;;  %v8247_v30 = vcombine.low %v2845_v55, %v2849_v21 }
 0x492   :  { %3709 = vmatprep.mubr.bf16.mxu1 %v8248_v52 }
 0x493   :  { %3710 = vmatmul.mubr.bf16.gmra.mxu1 %v8247_v30 }
 0x496   :  { %v2850_v34 = vld [vmem:[#allocation2 + $0xf8] sm:$0xff] }
 0x497   :  { %v2846_v16 = vld [vmem:[#allocation2 + $0xd8] sm:$0xff] }
 0x498   :  { %v8250_v44 = vcombine.high %v2846_v16, %v2850_v34  ;;  %v8249_v25 = vcombine.low %v2846_v16, %v2850_v34  ;;  %v12354_v16 = vld [vmem:[#allocation9] ss:$0 sm:$0xff] }
 0x49a   :  { %3774 = vmatprep.mubr.bf16.mxu0 %v8250_v44 }
 0x49b   :  { %3775 = vmatmul.mubr.bf16.gmra.mxu0 %v8249_v25 }
 0x4e3   :  { %v8971_v4 = vpop.f32.mrf.mxu1 }
 0x4e5   :  { %v8972_v20 = vpop.f32.mrf.mxu1 }
 0x4e6   :  { %v8973_v19 = vadd.f32 %v8972_v20, %v8971_v4 }
 0x4e7   :  { %v8974_v5 = vpop.f32.mrf.mxu1 }
 0x4e9   :  { %v8975_v33 = vpop.f32.mrf.mxu1 }
 0x4ea   :  { %v8976_v46 = vadd.f32 %v8975_v33, %v8974_v5 }
 0x4eb   :  { %v9011_v37 = vpop.f32.mrf.mxu0 }
 0x4ed   :  { %v9012_v9 = vpop.f32.mrf.mxu0 }
 0x4ee   :  { %v9013_v47 = vadd.f32 %v9012_v9, %v9011_v37 }
 0x4ef   :  { %v9014_v36 = vpop.f32.mrf.mxu0 }
 0x4f0   :  { %v3623_v45 = vadd.f32 %v9013_v47, %v8973_v19 }
 0x4f1   :  { %v9015_v32 = vpop.f32.mrf.mxu0 }
 0x4f2   :  { %v9016_v13 = vadd.f32 %v9015_v32, %v9014_v36 }
 0x4f3   :  { %v8977_v27 = vpop.f32.mrf.mxu1 }
 0x4f4   :  { %v3626_v7 = vadd.f32 %v9016_v13, %v8976_v46 }
 0x4f5   :  { %v8978_v38 = vpop.f32.mrf.mxu1 }
 0x4f6   :  { %v8979_v5 = vadd.f32 %v8978_v38, %v8977_v27 }
 0x4f7   :  { %v12314_v6 = vpop.f32.mrf.mxu1 }
 0x4f9   :  { %v8981_v31 = vpop.f32.mrf.mxu1 }
 0x4fb   :  { %v9017_v42 = vpop.f32.mrf.mxu0 }
 0x4fd   :  { %v9018_v0 = vpop.f32.mrf.mxu0 }
 0x4fe   :  { %v9019_v4 = vadd.f32 %v9018_v0, %v9017_v42  ;;  %v8982_v42 = vadd.f32 %v8981_v31, %v12314_v6 }
 0x4ff   :  { %v9020_v2 = vpop.f32.mrf.mxu0 }
 0x501   :  { %v9021_v23 = vpop.f32.mrf.mxu0 }
 0x503   :  { %v12316_v51 = vpop.f32.mrf.mxu1 }
 0x505   :  { %v12318_v57 = vpop.f32.mrf.mxu1 }
 0x507   :  { %v12320_v62 = vpop.f32.mrf.mxu1 }
 0x509   :  { %v12324_v49 = vpop.f32.mrf.mxu1 }
 0x50b   :  { %v12322_v54 = vpop.f32.mrf.mxu0 }
 0x50d   :  { %v12326_v3 = vpop.f32.mrf.mxu0 }
 0x50f   :  { %v12330_v28 = vpop.f32.mrf.mxu0 }
 0x511   :  { %v12334_v61 = vpop.f32.mrf.mxu0 }
 0x513   :  { %v12328_v40 = vpop.f32.mrf.mxu1 }
 0x515   :  { %v12332_v29 = vpop.f32.mrf.mxu1 }
 0x517   :  { %v12336_v60 = vpop.f32.mrf.mxu1 }
 0x519   :  { %v12340_v11 = vpop.f32.mrf.mxu1 }
 0x51b   :  { %v12338_v1 = vpop.f32.mrf.mxu0 }
 0x51d   :  { %v12342_v12 = vpop.f32.mrf.mxu0 }
 0x51f   :  { %v12344_v58 = vpop.f32.mrf.mxu0 }
 0x521   :  { %v12346_v63 = vpop.f32.mrf.mxu0 }
 0x523   :  { %v9051_v59 = vpop.f32.mrf.mxu1 }
 0x525   :  { %v9052_v48 = vpop.f32.mrf.mxu1 }
 0x526   :  { %v9053_v17 = vadd.f32 %v9052_v48, %v9051_v59  ;;  %v3631_v59 = vadd.f32 %v9019_v4, %v8979_v5  ;;  %v9022_v48 = vadd.f32 %v9021_v23, %v9020_v2 }
 0x527   :  { %v9054_v8 = vpop.f32.mrf.mxu1 }
 0x528   :  { %v3688_v18 = vadd.f32 %v9053_v17, %v3623_v45  ;;  %v3634_v2 = vadd.f32 %v9022_v48, %v8982_v42 }
 0x529   :  { %v9055_v24 = vpop.f32.mrf.mxu1 }
 0x52a   :  { %v9056_v26 = vadd.f32 %v9055_v24, %v9054_v8 }
 0x52b   :  { %v9091_v39 = vpop.f32.mrf.mxu0 }
 0x52c   :  { %v3691_v52 = vadd.f32 %v9056_v26, %v3626_v7  ;;  %v9025_v26 = vadd.f32 %v12326_v3, %v12322_v54  ;;  %v8988_v3 = vadd.f32 %v12324_v49, %v12320_v62  ;;  %v9814_v62 = vld [vmem:[%s13983_s8 + $0x38] sm:$0xff]   ;;  %v9815_v49 = vld [vmem:[%s13983_s8 + $0x48] sm:$0xff]  }
 0x52d   :  { %v9092_v15 = vpop.f32.mrf.mxu0 }
 0x52e   :  { %v9093_v14 = vadd.f32 %v9092_v15, %v9091_v39 }
 0x52f   :  { %v9094_v53 = vpop.f32.mrf.mxu0 }
 0x530   :  { %v3753_v21 = vadd.f32 %v9093_v14, %v3688_v18 }
 0x531   :  { %v9095_v55 = vpop.f32.mrf.mxu0 }
 0x532   :  { %v3790_v30 = vmul.f32 %v12351_v50, %v3753_v21  ;;  %v9096_v34 = vadd.f32 %v9095_v55, %v9094_v53  ;;  %v8985_v53 = vadd.f32 %v12318_v57, %v12316_v51  ;;  %v9812_v51 = vld [vmem:[%s13983_s8 + $0x10] sm:$0xff]   ;;  %v9813_v57 = vld [vmem:[%s13983_s8 + $0x20] sm:$0xff]  }
 0x533   :  { %v9057_v44 = vpop.f32.mrf.mxu1 }
 0x534   :  { %v3756_v25 = vadd.f32 %v9096_v34, %v3691_v52  ;;  %v12357_v10 = vadd.f32 %v12354_v16, %v3790_v30  ;;  %v3639_v34 = vadd.f32 %v9025_v26, %v8985_v53 }
 0x535   :  { %v9058_v43 = vpop.f32.mrf.mxu1 }
 0x536   :  { %14222 = vst [vmem:[#allocation54_spill] sm:$0xff] %v12357_v10  ;;  %v3791_v56 = vmul.f32 %v12351_v50, %v3756_v25  ;;  %v14061_v37 = vmax.f32 %v12357_v10, 0.0  ;;  %v9059_v9 = vadd.f32 %v9058_v43, %v9057_v44  ;;  %v9028_v44 = vadd.f32 %v12334_v61, %v12330_v28 }
 0x537   :  { %v9060_v22 = vpop.f32.mrf.mxu1 }
 0x538   :  { %v12361_v20 = vadd.f32 %v12354_v16, %v3791_v56  ;;  %v3696_v27 = vadd.f32 %v9059_v9, %v3631_v59 }
 0x539   :  { %v9061_v36 = vpop.f32.mrf.mxu1 }
 0x53a   :  { %14223 = vst [vmem:[#allocation53_spill] sm:$0xff] %v12361_v20  ;;  %v14060_v33 = vmax.f32 %v12361_v20, 0.0  ;;  %v9062_v38 = vadd.f32 %v9061_v36, %v9060_v22  ;;  %v3642_v22 = vadd.f32 %v9028_v44, %v8988_v3  ;;  %v9820_v3 = vld [vmem:[%s13983_s8 + $0x50] sm:$0xff]  }
 0x53b   :  { %v9097_v32 = vpop.f32.mrf.mxu0  ;;  %v14254_v20 = vld [vmem:[#allocation46_spill] sm:$0xff] }
 0x53c   :  { %v12369_v8 = vpack.c.bf16 %v14060_v33, %v14061_v37  ;;  %v3699_v24 = vadd.f32 %v9062_v38, %v3634_v2 }
 0x53d   :  { %v9098_v0 = vpop.f32.mrf.mxu0 }
 0x53e   :  { %v9099_v47 = vadd.f32 %v9098_v0, %v9097_v32  ;;  %9441 = vmatprep.mubr.msk.bf16.mxu1 %vm3841_vm3, %v12369_v8  ;;  %9453 = vmatprep.mubr.msk.bf16.mxu0 %vm3841_vm3, %v12369_v8 }
 0x53f   :  { %v9100_v19 = vpop.f32.mrf.mxu0 }
 0x540   :  { %v3761_v23 = vadd.f32 %v9099_v47, %v3696_v27  ;;  %v9031_v27 = vadd.f32 %v12342_v12, %v12338_v1  ;;  %v8991_v47 = vadd.f32 %v12332_v29, %v12328_v40  ;;  %v8994_v40 = vadd.f32 %v12340_v11, %v12336_v60 }
 0x541   :  { %v9101_v17 = vpop.f32.mrf.mxu0 }
 0x542   :  { %v3792_v39 = vmul.f32 %v12351_v50, %v3761_v23  ;;  %v9102_v45 = vadd.f32 %v9101_v17, %v9100_v19 }
 0x543   :  { %v9063_v13 = vpop.f32.mrf.mxu1 }
 0x544   :  { %v3764_v6 = vadd.f32 %v9102_v45, %v3699_v24  ;;  %v12378_v15 = vadd.f32 %v12354_v16, %v3792_v39  ;;  %v3647_v39 = vadd.f32 %v9031_v27, %v8991_v47  ;;  %v9034_v45 = vadd.f32 %v12346_v63, %v12344_v58 }
 0x545   :  { %v9064_v31 = vpop.f32.mrf.mxu1 }
 0x546   :  { %14224 = vst [vmem:[#allocation47_spill] sm:$0xff] %v12378_v15  ;;  %v3793_v46 = vmul.f32 %v12351_v50, %v3764_v6  ;;  %v14059_v7 = vmax.f32 %v12378_v15, 0.0  ;;  %v9065_v55 = vadd.f32 %v9064_v31, %v9063_v13  ;;  %v3650_v63 = vadd.f32 %v9034_v45, %v8994_v40 }
 0x547   :  { %v9066_v18 = vpop.f32.mrf.mxu1  ;;  %v14230_v45 = vmov 4  }
 0x548   :  { %v12384_v14 = vadd.f32 %v12354_v16, %v3793_v46  ;;  %v3704_v43 = vadd.f32 %v9065_v55, %v3639_v34 }
 0x549   :  { %v9067_v52 = vpop.f32.mrf.mxu1 }
 0x54a   :  { %14225 = vst [vmem:[#allocation34_spill] sm:$0xff] %v12384_v14  ;;  %v14058_v21 = vmax.f32 %v12384_v14, 0.0  ;;  %v9068_v28 = vadd.f32 %v9067_v52, %v9066_v18 }
 0x54b   :  { %v9103_v30 = vpop.f32.mrf.mxu0 }
 0x54c   :  { %v12396_v54 = vpack.c.bf16 %v14058_v21, %v14059_v7  ;;  %v3707_v9 = vadd.f32 %v9068_v28, %v3642_v22  ;;  %v9823_v28 = vld [vmem:[%s13983_s8 + $0x70] sm:$0xff]  }
 0x54d   :  { %v9104_v25 = vpop.f32.mrf.mxu0  ;;  %v9826_v22 = vld [vmem:[#allocation3 + $0x70] sm:$0xff]  }
 0x54e   :  { %v9105_v61 = vadd.f32 %v9104_v25, %v9103_v30  ;;  %9442 = vmatmul.mubr.msk.bf16.vlgmr.msra.gmra.mxu1 %vm3841_vm3, %v12396_v54  ;;  %9454 = vmatmul.mubr.msk.bf16.vlgmr.msra.gmra.mxu0 %vm3841_vm3, %v12396_v54  ;;  %v9821_v25 = vld [vmem:[%s13983_s8 + $0x60] sm:$0xff]  }
 0x54f   :  { %v9106_v56 = vpop.f32.mrf.mxu0  ;;  %9462 = vmatpush3.bf16.msra.mxu1 %v12305_v41  ;;  %9474 = vmatpush3.bf16.msra.mxu0 %v12310_v35 }
 0x550   :  { %v3769_v4 = vadd.f32 %v9105_v61, %v3704_v43  ;;  %9463 = vmatprep.subr.bf16.mxu1 %v9812_v51  ;;  %9475 = vmatprep.subr.bf16.mxu0 %v9813_v57  ;;  %v9822_v43 = vld [vmem:[%s13983_s8 + $0x78] sm:$0xff]  }
 0x551   :  { %v9107_v5 = vpop.f32.mrf.mxu0  ;;  %v9824_v61 = vld [vmem:[#allocation3 + $0x78] sm:$0xff]  }
 0x552   :  { %v3794_v36 = vmul.f32 %v12351_v50, %v3769_v4  ;;  %v9108_v32 = vadd.f32 %v9107_v5, %v9106_v56  ;;  %v9825_v56 = vld [vmem:[#allocation3 + $0x38] sm:$0xff]   ;;  %v9827_v4 = vld [vmem:[#allocation3 + $0x30] sm:$0xff]  }
 0x553   :  { %v9069_v41 = vpop.f32.mrf.mxu1  ;;  %9464 = vmatpush3.bf16.msra.mxu1 %v9812_v51  ;;  %9476 = vmatpush3.bf16.msra.mxu0 %v9813_v57  ;;  %v9818_v51 = vld [vmem:[%s13983_s8 + $0x58] sm:$0xff]   ;;  %v9819_v57 = vld [vmem:[%s13983_s8 + $0x68] sm:$0xff]  }
 0x554   :  { %v3772_v35 = vadd.f32 %v9108_v32, %v3707_v9  ;;  %9485 = vmatprep.subr.bf16.mxu1 %v9814_v62  ;;  %9497 = vmatprep.subr.bf16.mxu0 %v9815_v49  ;;  %v12420_v48 = vadd.f32 %v12354_v16, %v3794_v36  ;;  %v9832_v5 = vld [vmem:[#allocation3 + $0xf8] sm:$0xff]   ;;  %v9837_v36 = vld [vmem:[#allocation3 + $0xf0] sm:$0xff]  }
 0x555   :  { %v9070_v59 = vpop.f32.mrf.mxu1  ;;  %v9834_v9 = vld [vmem:[#allocation3 + $0xb8] sm:$0xff]   ;;  %v9838_v32 = vld [vmem:[#allocation3 + $0xb0] sm:$0xff]  }
 0x556   :  { %14226 = vst [vmem:[#allocation36_spill] sm:$0xff] %v12420_v48  ;;  %v3795_v42 = vmul.f32 %v12351_v50, %v3772_v35  ;;  %v14057_v19 = vmax.f32 %v12420_v48, 0.0  ;;  %v9071_v23 = vadd.f32 %v9070_v59, %v9069_v41  ;;  %v9841_v41 = vld [vmem:[#allocation3 + $0xe8] sm:$0xff]   ;;  %v9845_v59 = vld [vmem:[#allocation3 + $0xe0] sm:$0xff]  }
 0x557   :  { %v9072_v0 = vpop.f32.mrf.mxu1  ;;  %v9842_v35 = vld [vmem:[#allocation3 + $0xa8] sm:$0xff]  }
 0x558   :  { %v12426_v38 = vadd.f32 %v12354_v16, %v3795_v42  ;;  %v3712_v12 = vadd.f32 %v9071_v23, %v3647_v39  ;;  %v9846_v42 = vld [vmem:[#allocation3 + $0xa0] sm:$0xff]  }
 0x559   :  { %v9073_v17 = vpop.f32.mrf.mxu1 }
 0x55a   :  { %14227 = vst [vmem:[#allocation25_spill] sm:$0xff] %v12426_v38  ;;  %v14056_v2 = vmax.f32 %v12426_v38, 0.0  ;;  %v9074_v13 = vadd.f32 %v9073_v17, %v9072_v0 }
 0x55b   :  { %v9109_v24 = vpop.f32.mrf.mxu0 }
 0x55c   :  { %v12438_v1 = vpack.c.bf16 %v14056_v2, %v14057_v19  ;;  %v3715_v18 = vadd.f32 %v9074_v13, %v3650_v63  ;;  %v14233_v13 = vmov 3   ;;  %v14235_v63 = vmov 6  }
 0x55d   :  { %v9110_v29 = vpop.f32.mrf.mxu0 }
 0x55e   :  { %v9111_v6 = vadd.f32 %v9110_v29, %v9109_v24  ;;  %9445 = vmatprep.mubr.msk.bf16.mxu1 %vm3841_vm3, %v12438_v1  ;;  %9457 = vmatprep.mubr.msk.bf16.mxu0 %vm3841_vm3, %v12438_v1  ;;  %v14231_v29 = vmov 1  }
 0x55f   :  { %v9112_v58 = vpop.f32.mrf.mxu0 }
 0x560   :  { %v3777_v31 = vadd.f32 %v9111_v6, %v3712_v12  ;;  %v14232_v12 = vmov 5   ;;  %v14234_v6 = vmov 7  }
 0x561   :  { %v9113_v46 = vpop.f32.mrf.mxu0 }
 0x562   :  { %v3796_v26 = vmul.f32 %v12351_v50, %v3777_v31  ;;  %v9114_v53 = vadd.f32 %v9113_v46, %v9112_v58  ;;  %v14236_v31 = vmov 0  }
 0x564   :  { %v3780_v55 = vadd.f32 %v9114_v53, %v3715_v18  ;;  %v12448_v60 = vadd.f32 %v12354_v16, %v3796_v26  ;;  %v14237_v18 = vmov 2  }
 0x566   :  { %14228 = vst [vmem:[#allocation40_spill] sm:$0xff] %v12448_v60  ;;  %v3797_v11 = vmul.f32 %v12351_v50, %v3780_v55  ;;  %v14055_v30 = vmax.f32 %v12448_v60, 0.0  ;;  %v9816_v50 = vld [vmem:[%s13983_s8 + $0x30] sm:$0xff]  }
 0x568   :  { %v12452_v52 = vadd.f32 %v12354_v16, %v3797_v11  ;;  %v9817_v16 = vld [vmem:[%s13983_s8 + $0x40] sm:$0xff]  }
 0x56a   :  { %14229 = vst [vmem:[#allocation26_spill] sm:$0xff] %v12452_v52  ;;  %v14054_v34 = vmax.f32 %v12452_v52, 0.0 }
 0x56c   :  { %v3824_v44 = vpack.c.bf16 %v14054_v34, %v14055_v30 }
 0x56e   :  { %9446 = vmatmul.mubr.msk.bf16.gmra.mxu1 %vm3841_vm3, %v3824_v44  ;;  %9458 = vmatmul.mubr.msk.bf16.gmra.mxu0 %vm3841_vm3, %v3824_v44 }
 0x56f   :  { %9465 = vmatprep.mubr.msk.bf16.mxu1 %vm3841_vm3, %v12369_v8  ;;  %9477 = vmatprep.mubr.msk.bf16.mxu0 %vm3841_vm3, %v12369_v8 }
 0x576   :  { %9466 = vmatmul.mubr.msk.bf16.vlgmr.msra.gmra.mxu1 %vm3841_vm3, %v12396_v54  ;;  %9478 = vmatmul.mubr.msk.bf16.vlgmr.msra.gmra.mxu0 %vm3841_vm3, %v12396_v54 }
 0x577   :  { %9469 = vmatprep.mubr.msk.bf16.mxu1 %vm3841_vm3, %v12438_v1  ;;  %9481 = vmatprep.mubr.msk.bf16.mxu0 %vm3841_vm3, %v12438_v1 }
 0x578   :  { %9486 = vmatpush3.bf16.msra.mxu1 %v9814_v62  ;;  %9498 = vmatpush3.bf16.msra.mxu0 %v9815_v49  ;;  %v9828_v62 = vld [vmem:[#allocation3 + $0x68] sm:$0xff]  }
 0x579   :  { %9487 = vmatprep.subr.bf16.mxu1 %v9816_v50  ;;  %9499 = vmatprep.subr.bf16.mxu0 %v9817_v16  ;;  %v9829_v49 = vld [vmem:[#allocation3 + $0x28] sm:$0xff]  }
 0x57c   :  { %9488 = vmatpush3.bf16.msra.mxu1 %v9816_v50  ;;  %9500 = vmatpush3.bf16.msra.mxu0 %v9817_v16 }
 0x57d   :  { %9509 = vmatprep.subr.bf16.mxu1 %v9818_v51  ;;  %9521 = vmatprep.subr.bf16.mxu0 %v9819_v57 }
 0x57e   :  { %9470 = vmatmul.mubr.msk.bf16.gmra.mxu1 %vm3841_vm3, %v3824_v44  ;;  %9482 = vmatmul.mubr.msk.bf16.gmra.mxu0 %vm3841_vm3, %v3824_v44 }
 0x57f   :  { %9489 = vmatprep.mubr.msk.bf16.mxu1 %vm3841_vm3, %v12369_v8  ;;  %9501 = vmatprep.mubr.msk.bf16.mxu0 %vm3841_vm3, %v12369_v8 }
 0x586   :  { %9490 = vmatmul.mubr.msk.bf16.vlgmr.msra.gmra.mxu1 %vm3841_vm3, %v12396_v54  ;;  %9502 = vmatmul.mubr.msk.bf16.vlgmr.msra.gmra.mxu0 %vm3841_vm3, %v12396_v54 }
 0x587   :  { %9493 = vmatprep.mubr.msk.bf16.mxu1 %vm3841_vm3, %v12438_v1  ;;  %9505 = vmatprep.mubr.msk.bf16.mxu0 %vm3841_vm3, %v12438_v1 }
 0x588   :  { %9510 = vmatpush3.bf16.msra.mxu1 %v9818_v51  ;;  %9522 = vmatpush3.bf16.msra.mxu0 %v9819_v57 }
 0x589   :  { %9511 = vmatprep.subr.bf16.mxu1 %v9820_v3  ;;  %9523 = vmatprep.subr.bf16.mxu0 %v9821_v25 }
 0x58c   :  { %9512 = vmatpush3.bf16.msra.mxu1 %v9820_v3  ;;  %9524 = vmatpush3.bf16.msra.mxu0 %v9821_v25 }
 0x58d   :  { %9533 = vmatprep.subr.bf16.mxu1 %v9822_v43  ;;  %9169 = vmatprep.subr.bf16.mxu0 %v9824_v61 }
 0x58e   :  { %9494 = vmatmul.mubr.msk.bf16.gmra.mxu1 %vm3841_vm3, %v3824_v44  ;;  %9506 = vmatmul.mubr.msk.bf16.gmra.mxu0 %vm3841_vm3, %v3824_v44 }
 0x58f   :  { %9513 = vmatprep.mubr.msk.bf16.mxu1 %vm3841_vm3, %v12369_v8  ;;  %9525 = vmatprep.mubr.msk.bf16.mxu0 %vm3841_vm3, %v12369_v8 }
 0x596   :  { %9514 = vmatmul.mubr.msk.bf16.vlgmr.msra.gmra.mxu1 %vm3841_vm3, %v12396_v54  ;;  %9526 = vmatmul.mubr.msk.bf16.vlgmr.msra.gmra.mxu0 %vm3841_vm3, %v12396_v54 }
 0x597   :  { %9517 = vmatprep.mubr.msk.bf16.mxu1 %vm3841_vm3, %v12438_v1  ;;  %9529 = vmatprep.mubr.msk.bf16.mxu0 %vm3841_vm3, %v12438_v1 }
 0x598   :  { %9534 = vmatpush3.bf16.msra.mxu1 %v9822_v43  ;;  %9170 = vmatpush3.bf16.msra.mxu0 %v9825_v56 }
 0x599   :  { %9535 = vmatprep.subr.bf16.mxu1 %v9823_v28  ;;  %9171 = vmatprep.subr.bf16.mxu0 %v9826_v22 }
 0x59c   :  { %9536 = vmatpush3.bf16.msra.mxu1 %v9823_v28  ;;  %9172 = vmatpush3.bf16.msra.mxu0 %v9827_v4 }
 0x59d   :  { %9173 = vmatprep.subr.bf16.mxu0 %v9828_v62  ;;  %9209 = vmatprep.subr.bf16.mxu1 %v9832_v5 }
 0x59e   :  { %9518 = vmatmul.mubr.msk.bf16.gmra.mxu1 %vm3841_vm3, %v3824_v44  ;;  %9530 = vmatmul.mubr.msk.bf16.gmra.mxu0 %vm3841_vm3, %v3824_v44 }
 0x59f   :  { %9537 = vmatprep.mubr.msk.bf16.mxu1 %vm3841_vm3, %v12369_v8  ;;  %v9830_v8 = vld [vmem:[#allocation3 + $0x60] sm:$0xff]  }
 0x5a0   :  { %9174 = vmatpush3.bf16.msra.mxu0 %v9829_v49 }
 0x5a1   :  { %9175 = vmatprep.subr.bf16.mxu0 %v9830_v8 }
 0x5a6   :  { %9538 = vmatmul.mubr.msk.bf16.vlgmr.msra.gmra.mxu1 %vm3841_vm3, %v12396_v54  ;;  %v9831_v54 = vld [vmem:[#allocation3 + $0x20] sm:$0xff]  }
 0x5a7   :  { %9541 = vmatprep.mubr.msk.bf16.mxu1 %vm3841_vm3, %v12438_v1  ;;  %9176 = vmatpush3.bf16.msra.mxu0 %v9831_v54 }
 0x5a8   :  { %9210 = vmatpush3.bf16.msra.mxu1 %v9834_v9 }
 0x5a9   :  { %9211 = vmatprep.subr.bf16.mxu1 %v9837_v36 }
 0x5ac   :  { %9212 = vmatpush3.bf16.msra.mxu1 %v9838_v32 }
 0x5ad   :  { %9213 = vmatprep.subr.bf16.mxu1 %v9841_v41 }
 0x5ae   :  { %9542 = vmatmul.mubr.msk.bf16.gmra.mxu1 %vm3841_vm3, %v3824_v44 }
 0x5b0   :  { %9214 = vmatpush3.bf16.msra.mxu1 %v9842_v35 }
 0x5b1   :  { %9215 = vmatprep.subr.bf16.mxu1 %v9845_v59 }
 0x5b4   :  { %9216 = vmatpush3.bf16.msra.mxu1 %v9846_v42 }
 0x60e   :  { %v9443_v0 = vpop.f32.mrf.mxu1  ;;  %v9455_v27 = vpop.f32.mrf.mxu0 }
 0x60f   :  { %v8784_v47 = vpack.c.bf16 %v9455_v27, %v9455_v27  ;;  %4718 = vperm.xlu0 %9666, %v9443_v0   ;;  %3931 = vrot.lane.b32.xlu1 %v9443_v0, %s10665_s21 }
 0x610   :  { %v4034_v23 = vpop.f32.mrf.mxu0  ;;  %v12545_v58 = vpop.f32.mrf.mxu1 }
 0x611   :  { %4099 = vst.msk [vmem:[#allocation3 + $0x8] sm:$0xf] %vm159_vm2, %v8784_v47  ;;  %v8782_v17 = vpack.c.bf16 %v4034_v23, %v4034_v23 }
 0x612   :  { %v9456_v24 = vpop.f32.mrf.mxu0  ;;  %v12554_v46 = vpop.f32.mrf.mxu1 }
 0x613   :  { %4097 = vst.msk [vmem:[#allocation3] sm:$0xf] %vm159_vm2, %v8782_v17  ;;  %v8785_v39 = vpack.c.bf16 %v9456_v24, %v9456_v24  ;;  %9672 = vset.pattern.permute.xlu0 %v14230_v45  ;;  %4114 = vperm.xlu1 %9669, %v9443_v0  }
 0x614   :  { %v4037_v1 = vpop.f32.mrf.mxu0  ;;  %5322 = vperm.xlu0 %9672, %v9443_v0   ;;  %v12559_v26 = vpop.f32.mrf.mxu1 }
 0x615   :  { %4100 = vst.msk [vmem:[#allocation3 + $0xc] sm:$0xf] %vm159_vm2, %v8785_v39  ;;  %v8783_v40 = vpack.c.bf16 %v4037_v1, %v4037_v1 }
 0x617   :  { %4098 = vst.msk [vmem:[#allocation3 + $0x4] sm:$0xf] %vm159_vm2, %v8783_v40  ;;  %9670 = vset.pattern.permute.xlu1 %v14231_v29 }
 0x618   :  { %9673 = vset.pattern.permute.xlu0 %v14232_v12  ;;  %4416 = vperm.xlu1 %9670, %v9443_v0  }
 0x619   :  { %5624 = vperm.xlu0 %9673, %v9443_v0  }
 0x61c   :  { %9671 = vset.pattern.permute.xlu1 %v14233_v13 }
 0x61d   :  { %9675 = vset.pattern.permute.xlu0 %v14234_v6  ;;  %5020 = vperm.xlu1 %9671, %v9443_v0  }
 0x61e   :  { %6228 = vperm.xlu0 %9675, %v9443_v0  }
 0x621   :  { %9674 = vset.pattern.permute.xlu1 %v14235_v63 }
 0x622   :  { %5926 = vperm.xlu1 %9674, %v9443_v0   ;;  %3927 = vrot.lane.b32.xlu0 %v12545_v58, %s10665_s21 }
 0x623   :  { %9676 = vset.pattern.permute.xlu0 %v14236_v31 }
 0x626   :  { %9677 = vset.pattern.permute.xlu1 %v14231_v29  ;;  %4106 = vperm.xlu0 %9676, %v12545_v58  }
 0x627   :  { %4408 = vperm.xlu1 %9677, %v12545_v58  }
 0x62a   :  { %9679 = vset.pattern.permute.xlu0 %v14233_v13 }
 0x62b   :  { %9678 = vset.pattern.permute.xlu1 %v14237_v18  ;;  %5012 = vperm.xlu0 %9679, %v12545_v58  }
 0x62c   :  { %4710 = vperm.xlu1 %9678, %v12545_v58  }
 0x62e   :  { %v12562_v53 = vpop.f32.mrf.mxu1  ;;  %v9459_v55 = vpop.f32.mrf.mxu0 }
 0x62f   :  { %v8788_v11 = vpack.c.bf16 %v9459_v55, %v9459_v55  ;;  %9680 = vset.pattern.permute.xlu0 %v14230_v45 }
 0x630   :  { %v4050_v44 = vpop.f32.mrf.mxu0  ;;  %5314 = vperm.xlu0 %9680, %v12545_v58   ;;  %3933 = vrot.lane.b32.xlu1 %v12554_v46, %s10665_s21  ;;  %v12568_v50 = vpop.f32.mrf.mxu1 }
 0x631   :  { %4103 = vst.msk [vmem:[#allocation3 + $0x18] sm:$0xf] %vm159_vm2, %v8788_v11  ;;  %v8786_v16 = vpack.c.bf16 %v4050_v44, %v4050_v44  ;;  %9685 = vset.pattern.permute.xlu1 %v14231_v29 }
 0x632   :  { %v12572_v51 = vpop.f32.mrf.mxu1  ;;  %v9460_v57 = vpop.f32.mrf.mxu0 }
 0x633   :  { %4101 = vst.msk [vmem:[#allocation3 + $0x10] sm:$0xf] %vm159_vm2, %v8786_v16  ;;  %v8789_v3 = vpack.c.bf16 %v9460_v57, %v9460_v57 }
 0x634   :  { %v4053_v25 = vpop.f32.mrf.mxu0  ;;  %9681 = vset.pattern.permute.xlu0 %v14232_v12  ;;  %4420 = vperm.xlu1 %9685, %v12554_v46   ;;  %v12577_v43 = vpop.f32.mrf.mxu1 }
 0x635   :  { %4104 = vst.msk [vmem:[#allocation3 + $0x1c] sm:$0xf] %vm159_vm2, %v8789_v3  ;;  %v8787_v28 = vpack.c.bf16 %v4053_v25, %v4053_v25  ;;  %5616 = vperm.xlu0 %9681, %v12545_v58  }
 0x636   :  { %v9467_v61 = vpop.f32.mrf.mxu1  ;;  %v9479_v56 = vpop.f32.mrf.mxu0 }
 0x637   :  { %4102 = vst.msk [vmem:[#allocation3 + $0x14] sm:$0xf] %vm159_vm2, %v8787_v28  ;;  %v8800_v22 = vpack.c.bf16 %v9467_v61, %v9467_v61  ;;  %v8816_v4 = vpack.c.bf16 %v9479_v56, %v9479_v56 }
 0x638   :  { %v4638_v62 = vpop.f32.mrf.mxu0  ;;  %9686 = vset.pattern.permute.xlu1 %v14237_v18  ;;  %v4336_v49 = vpop.f32.mrf.mxu1 }
 0x639   :  { %4401 = vst.msk [vmem:[#allocation3 + $0x48] sm:$0xf] %vm159_vm2, %v8800_v22  ;;  %4703 = vst.msk [vmem:[#allocation3 + $0x88] sm:$0xf] %vm159_vm2, %v8816_v4  ;;  %v8814_v8 = vpack.c.bf16 %v4638_v62, %v4638_v62  ;;  %v8798_v54 = vpack.c.bf16 %v4336_v49, %v4336_v49  ;;  %9682 = vset.pattern.permute.xlu0 %v14235_v63  ;;  %4722 = vperm.xlu1 %9686, %v12554_v46  }
 0x63a   :  { %v9480_v5 = vpop.f32.mrf.mxu0  ;;  %5918 = vperm.xlu0 %9682, %v12545_v58   ;;  %v9468_v9 = vpop.f32.mrf.mxu1 }
 0x63b   :  { %4701 = vst.msk [vmem:[#allocation3 + $0x80] sm:$0xf] %vm159_vm2, %v8814_v8  ;;  %4399 = vst.msk [vmem:[#allocation3 + $0x40] sm:$0xf] %vm159_vm2, %v8798_v54  ;;  %v8817_v36 = vpack.c.bf16 %v9480_v5, %v9480_v5  ;;  %v8801_v32 = vpack.c.bf16 %v9468_v9, %v9468_v9 }
 0x63c   :  { %v4339_v41 = vpop.f32.mrf.mxu1  ;;  %v4641_v35 = vpop.f32.mrf.mxu0 }
 0x63d   :  { %4704 = vst.msk [vmem:[#allocation3 + $0x8c] sm:$0xf] %vm159_vm2, %v8817_v36  ;;  %4402 = vst.msk [vmem:[#allocation3 + $0x4c] sm:$0xf] %vm159_vm2, %v8801_v32  ;;  %v8799_v59 = vpack.c.bf16 %v4339_v41, %v4339_v41  ;;  %v8815_v42 = vpack.c.bf16 %v4641_v35, %v4641_v35  ;;  %3929 = vrot.lane.b32.xlu1 %v12559_v26, %s10665_s21 }
 0x63e   :  { %v9483_v0 = vpop.f32.mrf.mxu0  ;;  %9683 = vset.pattern.permute.xlu0 %v14234_v6  ;;  %v9471_v27 = vpop.f32.mrf.mxu1  ;;  %9692 = vset.pattern.permute.xlu1 %v14236_v31 }
 0x63f   :  { %4400 = vst.msk [vmem:[#allocation3 + $0x44] sm:$0xf] %vm159_vm2, %v8799_v59  ;;  %4702 = vst.msk [vmem:[#allocation3 + $0x84] sm:$0xf] %vm159_vm2, %v8815_v42  ;;  %v8820_v47 = vpack.c.bf16 %v9483_v0, %v9483_v0  ;;  %v8804_v23 = vpack.c.bf16 %v9471_v27, %v9471_v27  ;;  %6220 = vperm.xlu0 %9683, %v12545_v58   ;;  %v9835_v42 = vld [vmem:[#allocation3 + $0x18] sm:$0xff]  }
 0x640   :  { %v4654_v17 = vpop.f32.mrf.mxu0  ;;  %v4352_v24 = vpop.f32.mrf.mxu1 }
 0x641   :  { %4707 = vst.msk [vmem:[#allocation3 + $0x98] sm:$0xf] %vm159_vm2, %v8820_v47  ;;  %4405 = vst.msk [vmem:[#allocation3 + $0x58] sm:$0xf] %vm159_vm2, %v8804_v23  ;;  %v8818_v39 = vpack.c.bf16 %v4654_v17, %v4654_v17  ;;  %v8802_v1 = vpack.c.bf16 %v4352_v24, %v4352_v24  ;;  %4110 = vperm.xlu1 %9692, %v12559_v26  }
 0x642   :  { %v9472_v40 = vpop.f32.mrf.mxu1  ;;  %v9484_v55 = vpop.f32.mrf.mxu0 }
 0x643   :  { %4705 = vst.msk [vmem:[#allocation3 + $0x90] sm:$0xf] %vm159_vm2, %v8818_v39  ;;  %4403 = vst.msk [vmem:[#allocation3 + $0x50] sm:$0xf] %vm159_vm2, %v8802_v1  ;;  %v8805_v11 = vpack.c.bf16 %v9472_v40, %v9472_v40  ;;  %v8821_v44 = vpack.c.bf16 %v9484_v55, %v9484_v55  ;;  %9684 = vset.pattern.permute.xlu0 %v14236_v31  ;;  %v9839_v55 = vld [vmem:[#allocation3 + $0x10] sm:$0xff]  }
 0x644   :  { %v4657_v58 = vpop.f32.mrf.mxu0  ;;  %4118 = vperm.xlu0 %9684, %v12554_v46   ;;  %v4355_v16 = vpop.f32.mrf.mxu1 }
 0x645   :  { %4406 = vst.msk [vmem:[#allocation3 + $0x5c] sm:$0xf] %vm159_vm2, %v8805_v11  ;;  %4708 = vst.msk [vmem:[#allocation3 + $0x9c] sm:$0xf] %vm159_vm2, %v8821_v44  ;;  %v8819_v57 = vpack.c.bf16 %v4657_v58, %v4657_v58  ;;  %v8803_v3 = vpack.c.bf16 %v4355_v16, %v4355_v16  ;;  %9694 = vset.pattern.permute.xlu1 %v14237_v18  ;;  %v9840_v58 = vld [vmem:[#allocation3 + $0x48] sm:$0xff]  }
 0x646   :  { %v9503_v25 = vpop.f32.mrf.mxu0  ;;  %4714 = vperm.xlu1 %9694, %v12559_v26   ;;  %v9491_v28 = vpop.f32.mrf.mxu1 }
 0x647   :  { %4706 = vst.msk [vmem:[#allocation3 + $0x94] sm:$0xf] %vm159_vm2, %v8819_v57  ;;  %4404 = vst.msk [vmem:[#allocation3 + $0x54] sm:$0xf] %vm159_vm2, %v8803_v3  ;;  %v8848_v61 = vpack.c.bf16 %v9503_v25, %v9503_v25  ;;  %v8832_v56 = vpack.c.bf16 %v9491_v28, %v9491_v28 }
 0x648   :  { %v5242_v22 = vpop.f32.mrf.mxu0  ;;  %9687 = vset.pattern.permute.xlu0 %v14233_v13  ;;  %v4940_v4 = vpop.f32.mrf.mxu1 }
 0x649   :  { %5307 = vst.msk [vmem:[#allocation3 + $0x108] sm:$0xf] %vm159_vm2, %v8848_v61  ;;  %5005 = vst.msk [vmem:[#allocation3 + $0xc8] sm:$0xf] %vm159_vm2, %v8832_v56  ;;  %v8846_v62 = vpack.c.bf16 %v5242_v22, %v5242_v22  ;;  %v8830_v49 = vpack.c.bf16 %v4940_v4, %v4940_v4  ;;  %5024 = vperm.xlu0 %9687, %v12554_v46   ;;  %v9843_v56 = vld [vmem:[#allocation3 + $0x8] sm:$0xff]  }
 0x64a   :  { %v9504_v8 = vpop.f32.mrf.mxu0  ;;  %9695 = vset.pattern.permute.xlu1 %v14233_v13  ;;  %v9492_v54 = vpop.f32.mrf.mxu1 }
 0x64b   :  { %5305 = vst.msk [vmem:[#allocation3 + $0x100] sm:$0xf] %vm159_vm2, %v8846_v62  ;;  %5003 = vst.msk [vmem:[#allocation3 + $0xc0] sm:$0xf] %vm159_vm2, %v8830_v49  ;;  %v8849_v5 = vpack.c.bf16 %v9504_v8, %v9504_v8  ;;  %v8833_v9 = vpack.c.bf16 %v9492_v54, %v9492_v54  ;;  %5016 = vperm.xlu1 %9695, %v12559_v26   ;;  %v9844_v62 = vld [vmem:[#allocation3 + $0x40] sm:$0xff]  }
 0x64c   :  { %v4943_v36 = vpop.f32.mrf.mxu1  ;;  %v5245_v32 = vpop.f32.mrf.mxu0  ;;  %v9833_v41 = vld [vmem:[#allocation3 + $0x58] sm:$0xff]  }
 0x64d   :  { %5308 = vst.msk [vmem:[#allocation3 + $0x10c] sm:$0xf] %vm159_vm2, %v8849_v5  ;;  %5006 = vst.msk [vmem:[#allocation3 + $0xcc] sm:$0xf] %vm159_vm2, %v8833_v9  ;;  %v8831_v35 = vpack.c.bf16 %v4943_v36, %v4943_v36  ;;  %v8847_v59 = vpack.c.bf16 %v5245_v32, %v5245_v32  ;;  %9688 = vset.pattern.permute.xlu0 %v14230_v45  ;;  %9177 = vmatprep.subr.bf16.mxu0 %v9833_v41  ;;  %v9847_v32 = vld [vmem:[#allocation3] sm:$0xff]  }
 0x64e   :  { %v9507_v0 = vpop.f32.mrf.mxu0  ;;  %5326 = vperm.xlu0 %9688, %v12554_v46   ;;  %v9495_v27 = vpop.f32.mrf.mxu1  ;;  %v9836_v47 = vld [vmem:[#allocation3 + $0x50] sm:$0xff]   ;;  %9178 = vmatpush3.bf16.msra.mxu0 %v9835_v42 }
 0x64f   :  { %5004 = vst.msk [vmem:[#allocation3 + $0xc4] sm:$0xf] %vm159_vm2, %v8831_v35  ;;  %5306 = vst.msk [vmem:[#allocation3 + $0x104] sm:$0xf] %vm159_vm2, %v8847_v59  ;;  %v8852_v23 = vpack.c.bf16 %v9507_v0, %v9507_v0  ;;  %v8836_v17 = vpack.c.bf16 %v9495_v27, %v9495_v27  ;;  %9701 = vset.pattern.permute.xlu1 %v14231_v29  ;;  %9179 = vmatprep.subr.bf16.mxu0 %v9836_v47 }
 0x650   :  { %v5258_v24 = vpop.f32.mrf.mxu0  ;;  %4432 = vperm.xlu1 %9701, %v12562_v53   ;;  %v4956_v39 = vpop.f32.mrf.mxu1 }
 0x651   :  { %5311 = vst.msk [vmem:[#allocation3 + $0x118] sm:$0xf] %vm159_vm2, %v8852_v23  ;;  %5009 = vst.msk [vmem:[#allocation3 + $0xd8] sm:$0xf] %vm159_vm2, %v8836_v17  ;;  %v8850_v1 = vpack.c.bf16 %v5258_v24, %v5258_v24  ;;  %v8834_v40 = vpack.c.bf16 %v4956_v39, %v4956_v39  ;;  %v9849_v24 = vld [vmem:[#allocation3 + $0x98] sm:$0xff]  }
 0x652   :  { %v9508_v11 = vpop.f32.mrf.mxu0  ;;  %9689 = vset.pattern.permute.xlu0 %v14232_v12  ;;  %v9496_v44 = vpop.f32.mrf.mxu1  ;;  %9180 = vmatpush3.bf16.msra.mxu0 %v9839_v55 }
 0x653   :  { %5309 = vst.msk [vmem:[#allocation3 + $0x110] sm:$0xf] %vm159_vm2, %v8850_v1  ;;  %5007 = vst.msk [vmem:[#allocation3 + $0xd0] sm:$0xf] %vm159_vm2, %v8834_v40  ;;  %v8853_v16 = vpack.c.bf16 %v9508_v11, %v9508_v11  ;;  %v8837_v57 = vpack.c.bf16 %v9496_v44, %v9496_v44  ;;  %5628 = vperm.xlu0 %9689, %v12554_v46   ;;  %9181 = vmatprep.subr.bf16.mxu0 %v9840_v58 }
 0x654   :  { %v5261_v3 = vpop.f32.mrf.mxu0  ;;  %9702 = vset.pattern.permute.xlu1 %v14237_v18  ;;  %v4959_v25 = vpop.f32.mrf.mxu1 }
 0x655   :  { %5312 = vst.msk [vmem:[#allocation3 + $0x11c] sm:$0xf] %vm159_vm2, %v8853_v16  ;;  %5010 = vst.msk [vmem:[#allocation3 + $0xdc] sm:$0xf] %vm159_vm2, %v8837_v57  ;;  %v8851_v28 = vpack.c.bf16 %v5261_v3, %v5261_v3  ;;  %v8835_v61 = vpack.c.bf16 %v4959_v25, %v4959_v25  ;;  %4734 = vperm.xlu1 %9702, %v12562_v53   ;;  %v9851_v57 = vld [vmem:[#allocation3 + $0x90] sm:$0xff]  }
 0x656   :  { %v9515_v22 = vpop.f32.mrf.mxu1  ;;  %v9527_v4 = vpop.f32.mrf.mxu0  ;;  %9182 = vmatpush3.bf16.msra.mxu0 %v9843_v56 }
 0x657   :  { %5310 = vst.msk [vmem:[#allocation3 + $0x114] sm:$0xf] %vm159_vm2, %v8851_v28  ;;  %5008 = vst.msk [vmem:[#allocation3 + $0xd4] sm:$0xf] %vm159_vm2, %v8835_v61  ;;  %v8864_v49 = vpack.c.bf16 %v9515_v22, %v9515_v22  ;;  %v8880_v8 = vpack.c.bf16 %v9527_v4, %v9527_v4  ;;  %9690 = vset.pattern.permute.xlu0 %v14235_v63  ;;  %9183 = vmatprep.subr.bf16.mxu0 %v9844_v62  ;;  %v9852_v28 = vld [vmem:[#allocation3 + $0xc8] sm:$0xff]  }
 0x658   :  { %v5846_v54 = vpop.f32.mrf.mxu0  ;;  %5930 = vperm.xlu0 %9690, %v12554_v46   ;;  %v5544_v5 = vpop.f32.mrf.mxu1 }
 0x659   :  { %5609 = vst.msk [vmem:[#allocation3 + $0x148] sm:$0xf] %vm159_vm2, %v8864_v49  ;;  %5911 = vst.msk [vmem:[#allocation3 + $0x188] sm:$0xf] %vm159_vm2, %v8880_v8  ;;  %v8878_v9 = vpack.c.bf16 %v5846_v54, %v5846_v54  ;;  %v8862_v36 = vpack.c.bf16 %v5544_v5, %v5544_v5  ;;  %9705 = vset.pattern.permute.xlu1 %v14232_v12  ;;  %v9853_v8 = vld [vmem:[#allocation3 + $0x88] sm:$0xff]   ;;  %v9854_v5 = vld [vmem:[#allocation3 + $0xc0] sm:$0xff]  }
 0x65a   :  { %v9528_v41 = vpop.f32.mrf.mxu0  ;;  %5640 = vperm.xlu1 %9705, %v12562_v53   ;;  %v9516_v35 = vpop.f32.mrf.mxu1  ;;  %9184 = vmatpush3.bf16.msra.mxu0 %v9847_v32 }
 0x65b   :  { %5909 = vst.msk [vmem:[#allocation3 + $0x180] sm:$0xf] %vm159_vm2, %v8878_v9  ;;  %5607 = vst.msk [vmem:[#allocation3 + $0x140] sm:$0xf] %vm159_vm2, %v8862_v36  ;;  %v8881_v59 = vpack.c.bf16 %v9528_v41, %v9528_v41  ;;  %v8865_v42 = vpack.c.bf16 %v9516_v35, %v9516_v35  ;;  %v9855_v41 = vld [vmem:[#allocation3 + $0x80] sm:$0xff]  }
 0x65c   :  { %v5849_v0 = vpop.f32.mrf.mxu0  ;;  %9691 = vset.pattern.permute.xlu0 %v14234_v6  ;;  %v5547_v27 = vpop.f32.mrf.mxu1  ;;  %v9848_v47 = vld [vmem:[#allocation3 + $0xd8] sm:$0xff]  }
 0x65d   :  { %5912 = vst.msk [vmem:[#allocation3 + $0x18c] sm:$0xf] %vm159_vm2, %v8881_v59  ;;  %5610 = vst.msk [vmem:[#allocation3 + $0x14c] sm:$0xf] %vm159_vm2, %v8865_v42  ;;  %v8879_v23 = vpack.c.bf16 %v5849_v0, %v5849_v0  ;;  %v8863_v17 = vpack.c.bf16 %v5547_v27, %v5547_v27  ;;  %6232 = vperm.xlu0 %9691, %v12554_v46   ;;  %9217 = vmatprep.subr.bf16.mxu1 %v9848_v47 }
 0x65e   :  { %v9531_v39 = vpop.f32.mrf.mxu0  ;;  %9706 = vset.pattern.permute.xlu1 %v14235_v63  ;;  %v9519_v1 = vpop.f32.mrf.mxu1  ;;  %v9850_v40 = vld [vmem:[#allocation3 + $0xd0] sm:$0xff]   ;;  %9218 = vmatpush3.bf16.msra.mxu1 %v9849_v24 }
 0x65f   :  { %5910 = vst.msk [vmem:[#allocation3 + $0x184] sm:$0xf] %vm159_vm2, %v8879_v23  ;;  %5608 = vst.msk [vmem:[#allocation3 + $0x144] sm:$0xf] %vm159_vm2, %v8863_v17  ;;  %v8884_v55 = vpack.c.bf16 %v9531_v39, %v9531_v39  ;;  %v8868_v11 = vpack.c.bf16 %v9519_v1, %v9519_v1  ;;  %5942 = vperm.xlu1 %9706, %v12562_v53   ;;  %9219 = vmatprep.subr.bf16.mxu1 %v9850_v40 }
 0x660   :  { %v5560_v44 = vpop.f32.mrf.mxu1  ;;  %v5862_v58 = vpop.f32.mrf.mxu0 }
 0x661   :  { %5915 = vst.msk [vmem:[#allocation3 + $0x198] sm:$0xf] %vm159_vm2, %v8884_v55  ;;  %5613 = vst.msk [vmem:[#allocation3 + $0x158] sm:$0xf] %vm159_vm2, %v8868_v11  ;;  %v8866_v46 = vpack.c.bf16 %v5560_v44, %v5560_v44  ;;  %v8882_v16 = vpack.c.bf16 %v5862_v58, %v5862_v58  ;;  %9693 = vset.pattern.permute.xlu0 %v14231_v29 }
 0x662   :  { %v9532_v3 = vpop.f32.mrf.mxu0  ;;  %4412 = vperm.xlu0 %9693, %v12559_v26   ;;  %v9520_v25 = vpop.f32.mrf.mxu1  ;;  %9220 = vmatpush3.bf16.msra.mxu1 %v9851_v57 }
 0x663   :  { %5611 = vst.msk [vmem:[#allocation3 + $0x150] sm:$0xf] %vm159_vm2, %v8866_v46  ;;  %5913 = vst.msk [vmem:[#allocation3 + $0x190] sm:$0xf] %vm159_vm2, %v8882_v16  ;;  %v8885_v61 = vpack.c.bf16 %v9532_v3, %v9532_v3  ;;  %v8869_v56 = vpack.c.bf16 %v9520_v25, %v9520_v25  ;;  %9708 = vset.pattern.permute.xlu1 %v14236_v31  ;;  %9221 = vmatprep.subr.bf16.mxu1 %v9852_v28 }
 0x664   :  { %v5865_v22 = vpop.f32.mrf.mxu0  ;;  %4122 = vperm.xlu1 %9708, %v12568_v50   ;;  %v5563_v4 = vpop.f32.mrf.mxu1 }
 0x665   :  { %5916 = vst.msk [vmem:[#allocation3 + $0x19c] sm:$0xf] %vm159_vm2, %v8885_v61  ;;  %5614 = vst.msk [vmem:[#allocation3 + $0x15c] sm:$0xf] %vm159_vm2, %v8869_v56  ;;  %v8883_v62 = vpack.c.bf16 %v5865_v22, %v5865_v22  ;;  %v8867_v49 = vpack.c.bf16 %v5563_v4, %v5563_v4 }
 0x666   :  { %9696 = vset.pattern.permute.xlu0 %v14230_v45  ;;  %v9539_v54 = vpop.f32.mrf.mxu1  ;;  %9222 = vmatpush3.bf16.msra.mxu1 %v9853_v8 }
 0x667   :  { %5914 = vst.msk [vmem:[#allocation3 + $0x194] sm:$0xf] %vm159_vm2, %v8883_v62  ;;  %5612 = vst.msk [vmem:[#allocation3 + $0x154] sm:$0xf] %vm159_vm2, %v8867_v49  ;;  %v8896_v9 = vpack.c.bf16 %v9539_v54, %v9539_v54  ;;  %5318 = vperm.xlu0 %9696, %v12559_v26   ;;  %9223 = vmatprep.subr.bf16.mxu1 %v9854_v5 }
 0x668   :  { %9710 = vset.pattern.permute.xlu1 %v14237_v18  ;;  %v6148_v36 = vpop.f32.mrf.mxu1 }
 0x669   :  { %6213 = vst.msk [vmem:[#allocation3 + $0x1c8] sm:$0xf] %vm159_vm2, %v8896_v9  ;;  %v8894_v32 = vpack.c.bf16 %v6148_v36, %v6148_v36  ;;  %4726 = vperm.xlu1 %9710, %v12568_v50  }
 0x66a   :  { %v9540_v35 = vpop.f32.mrf.mxu1  ;;  %9224 = vmatpush3.bf16.msra.mxu1 %v9855_v41 }
 0x66b   :  { %6211 = vst.msk [vmem:[#allocation3 + $0x1c0] sm:$0xf] %vm159_vm2, %v8894_v32  ;;  %v8897_v59 = vpack.c.bf16 %v9540_v35, %v9540_v35  ;;  %9697 = vset.pattern.permute.xlu0 %v14232_v12 }
 0x66c   :  { %5620 = vperm.xlu0 %9697, %v12559_v26   ;;  %v6151_v42 = vpop.f32.mrf.mxu1 }
 0x66d   :  { %6214 = vst.msk [vmem:[#allocation3 + $0x1cc] sm:$0xf] %vm159_vm2, %v8897_v59  ;;  %v8895_v0 = vpack.c.bf16 %v6151_v42, %v6151_v42  ;;  %9711 = vset.pattern.permute.xlu1 %v14233_v13 }
 0x66e   :  { %5028 = vperm.xlu1 %9711, %v12568_v50   ;;  %v9543_v27 = vpop.f32.mrf.mxu1 }
 0x66f   :  { %6212 = vst.msk [vmem:[#allocation3 + $0x1c4] sm:$0xf] %vm159_vm2, %v8895_v0  ;;  %v8900_v47 = vpack.c.bf16 %v9543_v27, %v9543_v27 }
 0x670   :  { %9698 = vset.pattern.permute.xlu0 %v14235_v63  ;;  %v6164_v23 = vpop.f32.mrf.mxu1 }
 0x671   :  { %6217 = vst.msk [vmem:[#allocation3 + $0x1d8] sm:$0xf] %vm159_vm2, %v8900_v47  ;;  %v8898_v17 = vpack.c.bf16 %v6164_v23, %v6164_v23  ;;  %5922 = vperm.xlu0 %9698, %v12559_v26  }
 0x672   :  { %9714 = vset.pattern.permute.xlu1 %v14235_v63  ;;  %v9544_v24 = vpop.f32.mrf.mxu1 }
 0x673   :  { %6215 = vst.msk [vmem:[#allocation3 + $0x1d0] sm:$0xf] %vm159_vm2, %v8898_v17  ;;  %v8901_v39 = vpack.c.bf16 %v9544_v24, %v9544_v24  ;;  %5934 = vperm.xlu1 %9714, %v12568_v50  }
 0x674   :  { %v6167_v1 = vpop.f32.mrf.mxu1 }
 0x675   :  { %6218 = vst.msk [vmem:[#allocation3 + $0x1dc] sm:$0xf] %vm159_vm2, %v8901_v39  ;;  %v8899_v40 = vpack.c.bf16 %v6167_v1, %v6167_v1  ;;  %9699 = vset.pattern.permute.xlu0 %v14234_v6 }
 0x676   :  { %6224 = vperm.xlu0 %9699, %v12559_v26  }
 0x677   :  { %6216 = vst.msk [vmem:[#allocation3 + $0x1d4] sm:$0xf] %vm159_vm2, %v8899_v40  ;;  %9715 = vset.pattern.permute.xlu1 %v14234_v6 }
 0x678   :  { %6236 = vperm.xlu1 %9715, %v12568_v50  }
 0x67a   :  { %3939 = vrot.lane.b32.xlu0 %v12562_v53, %s10665_s21 }
 0x67b   :  { %9700 = vset.pattern.permute.xlu0 %v14236_v31 }
 0x67c   :  { %3941 = vrot.lane.b32.xlu1 %v12572_v51, %s10665_s21 }
 0x67d   :  { %9716 = vset.pattern.permute.xlu1 %v14236_v31 }
 0x67e   :  { %4130 = vperm.xlu0 %9700, %v12562_v53  }
 0x680   :  { %4134 = vperm.xlu1 %9716, %v12572_v51  }
 0x681   :  { %v12707_v26 = vpop.permute.xlu1 %3931 }
 0x682   :  { %9703 = vset.pattern.permute.xlu0 %v14233_v13 }
 0x683   :  { %5036 = vperm.xlu0 %9703, %v12562_v53  }
 0x684   :  { %9718 = vset.pattern.permute.xlu1 %v14237_v18 }
 0x685   :  { %4738 = vperm.xlu1 %9718, %v12572_v51  }
 0x687   :  { %9704 = vset.pattern.permute.xlu0 %v14230_v45 }
 0x688   :  { %5338 = vperm.xlu0 %9704, %v12562_v53  }
 0x689   :  { %9719 = vset.pattern.permute.xlu1 %v14233_v13 }
 0x68a   :  { %v12709_v55 = vpop.permute.xlu0 %4718  ;;  %5040 = vperm.xlu1 %9719, %v12572_v51  }
 0x68c   :  { %9707 = vset.pattern.permute.xlu0 %v14234_v6 }
 0x68d   :  { %6244 = vperm.xlu0 %9707, %v12562_v53  }
 0x68e   :  { %v12714_v11 = vpop.permute.xlu1 %4114  ;;  %9720 = vset.pattern.permute.xlu1 %v14230_v45 }
 0x68f   :  { %v12717_v44 = vpop.permute.xlu0 %5322  ;;  %5342 = vperm.xlu1 %9720, %v12572_v51  }
 0x691   :  { %3935 = vrot.lane.b32.xlu0 %v12568_v50, %s10665_s21 }
 0x692   :  { %9709 = vset.pattern.permute.xlu0 %v14231_v29 }
 0x693   :  { %v12723_v58 = vpop.permute.xlu1 %4416  ;;  %9722 = vset.pattern.permute.xlu1 %v14235_v63 }
 0x694   :  { %v12726_v46 = vpop.permute.xlu0 %5624  ;;  %5946 = vperm.xlu1 %9722, %v12572_v51  }
 0x695   :  { %4424 = vperm.xlu0 %9709, %v12568_v50  }
 0x698   :  { %v12730_v53 = vpop.permute.xlu1 %5020  ;;  %9723 = vset.pattern.permute.xlu1 %v14234_v6 }
 0x699   :  { %v12733_v16 = vpop.permute.xlu0 %6228  ;;  %9712 = vset.pattern.permute.xlu0 %v14230_v45  ;;  %6248 = vperm.xlu1 %9723, %v12572_v51  }
 0x69a   :  { %14238 = vst [vmem:[#allocation37_spill] sm:$0xff] %v12733_v16  ;;  %5330 = vperm.xlu0 %9712, %v12568_v50  }
 0x69d   :  { %v12738_v57 = vpop.permute.xlu1 %5926  ;;  %v3928_v3 = vpop.permute.xlu0 %3927  ;;  %3937 = vrot.lane.b32.xlu1 %v12577_v43, %s10665_s21 }
 0x69e   :  { %14239 = vst [vmem:[#allocation27_spill] sm:$0xff] %v12738_v57  ;;  %9713 = vset.pattern.permute.xlu0 %v14232_v12  ;;  %9724 = vset.pattern.permute.xlu1 %v14236_v31 }
 0x69f   :  { %5632 = vperm.xlu0 %9713, %v12568_v50  }
 0x6a1   :  { %v12745_v25 = vpop.permute.xlu0 %4106  ;;  %4126 = vperm.xlu1 %9724, %v12577_v43  }
 0x6a2   :  { %v12748_v28 = vpop.permute.xlu1 %4408 }
 0x6a3   :  { %9717 = vset.pattern.permute.xlu0 %v14231_v29 }
 0x6a4   :  { %4436 = vperm.xlu0 %9717, %v12572_v51  }
 0x6a5   :  { %9725 = vset.pattern.permute.xlu1 %v14231_v29 }
 0x6a6   :  { %v12753_v61 = vpop.permute.xlu0 %5012  ;;  %4428 = vperm.xlu1 %9725, %v12577_v43  }
 0x6a7   :  { %v12756_v56 = vpop.permute.xlu1 %4710 }
 0x6a8   :  { %9721 = vset.pattern.permute.xlu0 %v14232_v12 }
 0x6a9   :  { %5644 = vperm.xlu0 %9721, %v12572_v51  }
 0x6aa   :  { %9727 = vset.pattern.permute.xlu1 %v14233_v13 }
 0x6ab   :  { %v12761_v31 = vpop.permute.xlu0 %5314  ;;  %v3934_v50 = vpop.permute.xlu1 %3933  ;;  %5032 = vperm.xlu1 %9727, %v12577_v43  }
 0x6ad   :  { %9726 = vset.pattern.permute.xlu0 %v14237_v18 }
 0x6ae   :  { %4730 = vperm.xlu0 %9726, %v12577_v43  }
 0x6af   :  { %v12766_v29 = vpop.permute.xlu1 %4420  ;;  %9728 = vset.pattern.permute.xlu1 %v14230_v45 }
 0x6b0   :  { %v12769_v22 = vpop.permute.xlu0 %5616  ;;  %5334 = vperm.xlu1 %9728, %v12577_v43  }
 0x6b2   :  { %9730 = vset.pattern.permute.xlu0 %v14235_v63 }
 0x6b3   :  { %5938 = vperm.xlu0 %9730, %v12577_v43  }
 0x6b4   :  { %v12774_v13 = vpop.permute.xlu1 %4722  ;;  %9729 = vset.pattern.permute.xlu1 %v14232_v12 }
 0x6b5   :  { %v12777_v51 = vpop.permute.xlu0 %5918  ;;  %5636 = vperm.xlu1 %9729, %v12577_v43  }
 0x6b7   :  { %9732 = vset.pattern.permute.xlu0 %v14234_v6 }
 0x6b8   :  { %v3930_v18 = vpop.permute.xlu1 %3929 }
 0x6b9   :  { %9731 = vset.pattern.permute.xlu1 %v14234_v6 }
 0x6ba   :  { %v12782_v45 = vpop.permute.xlu0 %6220  ;;  %6240 = vperm.xlu1 %9731, %v12577_v43  }
 0x6bc   :  { %v4111_v63 = vpop.permute.xlu1 %4110 }
 0x6bf   :  { %v12785_v4 = vpop.permute.xlu0 %4118 }
 0x6c1   :  { %v4715_v62 = vpop.permute.xlu1 %4714 }
 0x6c4   :  { %v12787_v49 = vpop.permute.xlu0 %5024 }
 0x6c6   :  { %v12789_v12 = vpop.permute.xlu1 %5016 }
 0x6c9   :  { %v12791_v8 = vpop.permute.xlu0 %5326 }
 0x6cb   :  { %v12793_v54 = vpop.permute.xlu1 %4432 }
 0x6ce   :  { %v12795_v5 = vpop.permute.xlu0 %5628 }
 0x6d0   :  { %v12797_v9 = vpop.permute.xlu1 %4734 }
 0x6d3   :  { %v12799_v6 = vpop.permute.xlu0 %5930 }
 0x6d4   :  { %14240 = vst [vmem:[#allocation38_spill] sm:$0xff] %v12799_v6 }
 0x6d5   :  { %v12801_v36 = vpop.permute.xlu1 %5640 }
 0x6d6   :  { %14241 = vst [vmem:[#allocation28_spill] sm:$0xff] %v12801_v36  ;;  %v14258_v36 = vsub.s32 3, %v14254_v20 }
 0x6d8   :  { %v12803_v43 = vpop.permute.xlu0 %6232 }
 0x6d9   :  { %14242 = vst [vmem:[#allocation42_spill] sm:$0xff] %v12803_v43 }
 0x6da   :  { %v12805_v32 = vpop.permute.xlu1 %5942 }
 0x6db   :  { %14243 = vst [vmem:[#allocation35_spill] sm:$0xff] %v12805_v32 }
 0x6dd   :  { %v4413_v41 = vpop.permute.xlu0 %4412 }
 0x6df   :  { %v12807_v35 = vpop.permute.xlu1 %4122 }
 0x6e2   :  { %v12809_v59 = vpop.permute.xlu0 %5318 }
 0x6e3   :  { %3951 = vxpose.xlu1.b32.start [1/8] (short) (narrow) %v3928_v3, 8 }
 0x6e4   :  { %v12811_v42 = vpop.permute.xlu1 %4726 }
 0x6e7   :  { %v12813_v0 = vpop.permute.xlu0 %5620  ;;  %3952 = vxpose.xlu1.b32.cont [2/8] (short) (narrow) %v3930_v18, 8 }
 0x6e9   :  { %v12815_v27 = vpop.permute.xlu1 %5028 }
 0x6eb   :  { %3953 = vxpose.xlu1.b32.cont [3/8] (short) (narrow) %v12707_v26, 8 }
 0x6ec   :  { %v12818_v47 = vpop.permute.xlu0 %5922 }
 0x6ee   :  { %v12820_v23 = vpop.permute.xlu1 %5934 }
 0x6ef   :  { %14244 = vst [vmem:[#allocation32_spill] sm:$0xff] %v12820_v23  ;;  %3954 = vxpose.xlu1.b32.cont [4/8] (short) (narrow) %v3934_v50, 8 }
 0x6f1   :  { %v12822_v17 = vpop.permute.xlu0 %6224 }
 0x6f3   :  { %v12824_v24 = vpop.permute.xlu1 %6236 }
 0x6f4   :  { %14245 = vst [vmem:[#allocation49_spill] sm:$0xff] %v12824_v24 }
 0x6f5   :  { %v3940_v39 = vpop.permute.xlu0 %3939 }
 0x6f7   :  { %v3942_v1 = vpop.permute.xlu1 %3941 }
 0x6f9   :  { %v12826_v40 = vpop.permute.xlu0 %4130 }
 0x6fb   :  { %v12828_v3 = vpop.permute.xlu1 %4134 }
 0x6fe   :  { %v12830_v18 = vpop.permute.xlu0 %5036 }
 0x700   :  { %v12832_v34 = vpop.permute.xlu1 %4738 }
 0x703   :  { %v12834_v26 = vpop.permute.xlu0 %5338 }
 0x704   :  { %14246 = vst [vmem:[#allocation33_spill] sm:$0xff] %v12834_v26 }
 0x705   :  { %v12836_v30 = vpop.permute.xlu1 %5040 }
 0x708   :  { %v12838_v2 = vpop.permute.xlu0 %6244 }
 0x709   :  { %14247 = vst [vmem:[#allocation45_spill] sm:$0xff] %v12838_v2 }
 0x70a   :  { %v12840_v50 = vpop.permute.xlu1 %5342 }
 0x70b   :  { %14248 = vst [vmem:[#allocation50_spill] sm:$0xff] %v12840_v50 }
 0x70c   :  { %v3936_v19 = vpop.permute.xlu0 %3935 }
 0x70d   :  { %3955 = vxpose.xlu1.b32.cont [5/8] (short) (narrow) %v3936_v19, 8 }
 0x70f   :  { %v12842_v21 = vpop.permute.xlu1 %5946 }
 0x710   :  { %14249 = vst [vmem:[#allocation48_spill] sm:$0xff] %v12842_v21  ;;  %v12890_v26 = vpop.permute.xlu0 %4424 }
 0x714   :  { %v12844_v7 = vpop.permute.xlu1 %6248 }
 0x715   :  { %14250 = vst [vmem:[#allocation29_spill] sm:$0xff] %v12844_v7  ;;  %v14257_v7 = vsub.s32 2, %v14254_v20 }
 0x718   :  { %v3938_v33 = vpop.permute.xlu1 %3937 }
 0x719   :  { %3956 = vxpose.xlu1.b32.cont [6/8] (short) (narrow) %v3938_v33, 8  ;;  %v14255_v33 = vsub.s32 0, %v14254_v20 }
 0x71c   :  { %v12846_v37 = vpop.permute.xlu1 %4126 }
 0x71d   :  { %3957 = vxpose.xlu1.b32.cont [7/8] (short) (narrow) %v3940_v39, 8 }
 0x721   :  { %3958 = vxpose.xlu1.b32.end [8/8] (short) (narrow) %v3942_v1, 8  ;;  %v12848_v52 = vpop.permute.xlu1 %4428  ;;  %v14256_v1 = vsub.s32 1, %v14254_v20 }
 0x726   :  { %v12850_v60 = vpop.permute.xlu1 %5032 }
 0x72b   :  { %v12852_v38 = vpop.permute.xlu1 %5334 }
 0x72c   :  { %14251 = vst [vmem:[#allocation39_spill] sm:$0xff] %v12852_v38 }
 0x730   :  { %v12854_v48 = vpop.permute.xlu1 %5636 }
 0x731   :  { %14252 = vst [vmem:[#allocation31_spill] sm:$0xff] %v12854_v48 }
 0x735   :  { %v12856_v14 = vpop.permute.xlu1 %6240 }
 0x736   :  { %14253 = vst [vmem:[#allocation41_spill] sm:$0xff] %v12856_v14 }
 0x781   :  { %v3967_v19 = vpop.trf.xlu1 }
 0x782   :  { %v12859_v15 = vsel %vm466_vm1, %v3967_v19, 0.0 }
 0x783   :  { %v12864_v39 = vrot.slane %v12859_v15, %v14255_v33  ;;  %v12869_v10 = vrot.slane %v12859_v15, %v14256_v1  ;;  %v12874_v2 = vrot.slane %v12859_v15, %v14257_v7  ;;  %v12885_v1 = vrot.slane %v12859_v15, %v14258_v36 }
 0x785   :  { %v4142_v21 = vadd.f32 %v12864_v39, %v4111_v63  ;;  %v4141_v19 = vadd.f32 %v12864_v39, %v12745_v25  ;;  %v4443_v32 = vadd.f32 %v12869_v10, %v12748_v28  ;;  %v4444_v33 = vadd.f32 %v12869_v10, %v4413_v41 }
 0x786   :  { %v4745_v50 = vadd.f32 %v12874_v2, %v12756_v56  ;;  %v4746_v7 = vadd.f32 %v12874_v2, %v4715_v62  ;;  %v5047_v38 = vadd.f32 %v12885_v1, %v12753_v61  ;;  %v5048_v36 = vadd.f32 %v12885_v1, %v12789_v12  ;;  %v12899_v56 = vld [vmem:[%s14132_s2 + $0x8] sm:$0xff] }
 0x787   :  { %v4150_v63 = vmul.f32 0.2, %v4142_v21  ;;  %v4149_v14 = vmul.f32 0.2, %v4141_v19  ;;  %v4451_v25 = vmul.f32 0.2, %v4443_v32 }
 0x788   :  { %v4452_v24 = vmul.f32 0.2, %v4444_v33  ;;  %v4753_v48 = vmul.f32 0.2, %v4745_v50  ;;  %v4754_v41 = vmul.f32 0.2, %v4746_v7 }
 0x789   :  { %v4158_v23 = vmax.f32 %v4142_v21, %v4150_v63  ;;  %v4157_v28 = vmax.f32 %v4141_v19, %v4149_v14  ;;  %v12907_v14 = vld [vmem:[%s14132_s2] sm:$0xff]  ;;  %v4459_v61 = vmax.f32 %v4443_v32, %v4451_v25  ;;  %v12912_v63 = vpop.permute.xlu0 %5330  ;;  %v5056_v16 = vmul.f32 0.2, %v5048_v36 }
 0x78a   :  { %v4460_v19 = vmax.f32 %v4444_v33, %v4452_v24  ;;  %v4761_v12 = vmax.f32 %v4745_v50, %v4753_v48  ;;  %v4762_v43 = vmax.f32 %v4746_v7, %v4754_v41  ;;  %v4143_v32 = vadd.f32 %v12864_v39, %v12714_v11 }
 0x78b   :  { %v12902_v62 = vadd.f32 %v12899_v56, %v4158_v23  ;;  %v12910_v21 = vadd.f32 %v12907_v14, %v4157_v28  ;;  %v5055_v23 = vmul.f32 0.2, %v5047_v38  ;;  %v12917_v6 = vadd.f32 %v12907_v14, %v4459_v61 }
 0x78c   :  { %v12920_v57 = vadd.f32 %v12899_v56, %v4460_v19  ;;  %v4144_v24 = vadd.f32 %v12864_v39, %v12785_v4  ;;  %v12929_v48 = vadd.f32 %v12907_v14, %v4761_v12  ;;  %v12932_v50 = vadd.f32 %v12899_v56, %v4762_v43 }
 0x78d   :  { %4175 = vmax.xlane.f32.xlu0 %v12902_v62  ;;  %4173 = vmax.xlane.f32.xlu1 %v12910_v21  ;;  %v5063_v33 = vmax.f32 %v5047_v38, %v5055_v23  ;;  %v5064_v7 = vmax.f32 %v5048_v36, %v5056_v16  ;;  %v12934_v25 = vpop.permute.xlu0 %5632  ;;  %v4151_v28 = vmul.f32 0.2, %v4143_v32  ;;  %v4445_v11 = vadd.f32 %v12869_v10, %v12723_v58 }
 0x78e   :  { %14259 = vst [vmem:[#allocation30_spill] sm:$0xff] %v12920_v57  ;;  %14260 = vst [vmem:[#allocation43_spill] sm:$0xff] %v12929_v48  ;;  %v4152_v41 = vmul.f32 0.2, %v4144_v24  ;;  %v4446_v4 = vadd.f32 %v12869_v10, %v12766_v29  ;;  %v4747_v16 = vadd.f32 %v12874_v2, %v12709_v55  ;;  %v4748_v43 = vadd.f32 %v12874_v2, %v12774_v13  ;;  %v12963_v13 = vld [vmem:[%s14132_s2 + $0x10] sm:$0xff] }
 0x78f   :  { %14261 = vst [vmem:[#allocation44_spill] sm:$0xff] %v12932_v50  ;;  %v12943_v61 = vadd.f32 %v12907_v14, %v5063_v33  ;;  %v12946_v38 = vadd.f32 %v12899_v56, %v5064_v7  ;;  %v4159_v58 = vmax.f32 %v4143_v32, %v4151_v28  ;;  %v4453_v19 = vmul.f32 0.2, %v4445_v11 }
 0x790   :  { %v4160_v36 = vmax.f32 %v4144_v24, %v4152_v41  ;;  %v4454_v29 = vmul.f32 0.2, %v4446_v4  ;;  %v4755_v23 = vmul.f32 0.2, %v4747_v16  ;;  %v4756_v33 = vmul.f32 0.2, %v4748_v43 }
 0x791   :  { %4475 = vmax.xlane.f32.xlu0 %v12917_v6  ;;  %4477 = vmax.xlane.f32.xlu1 %v12920_v57  ;;  %14262 = vst [vmem:[#allocation51_spill] sm:$0xff] %v12943_v61  ;;  %14263 = vst [vmem:[#allocation52_spill] sm:$0xff] %v12946_v38  ;;  %v12952_v12 = vpop.permute.xlu0 %4436  ;;  %v5049_v7 = vadd.f32 %v12885_v1, %v12730_v53  ;;  %v5050_v55 = vadd.f32 %v12885_v1, %v12787_v49  ;;  %v12971_v24 = vld [vmem:[%s14132_s2 + $0x18] sm:$0xff] }
 0x792   :  { %v12966_v32 = vadd.f32 %v12963_v13, %v4159_v58  ;;  %v12974_v28 = vadd.f32 %v12971_v24, %v4160_v36  ;;  %v4461_v53 = vmax.f32 %v4445_v11, %v4453_v19  ;;  %v4462_v41 = vmax.f32 %v4446_v4, %v4454_v29 }
 0x793   :  { %v4763_v49 = vmax.f32 %v4747_v16, %v4755_v23  ;;  %v4145_v11 = vadd.f32 %v12864_v39, %v12807_v35  ;;  %v4146_v4 = vadd.f32 %v12864_v39, %v12846_v37  ;;  %v4447_v35 = vadd.f32 %v12869_v10, %v12890_v26 }
 0x794   :  { %v12984_v57 = vadd.f32 %v12971_v24, %v4462_v41  ;;  %v4448_v37 = vadd.f32 %v12869_v10, %v12848_v52 }
 0x795   :  { %4777 = vmax.xlane.f32.xlu0 %v12929_v48  ;;  %4779 = vmax.xlane.f32.xlu1 %v12932_v50  ;;  %v5058_v50 = vmul.f32 0.2, %v5050_v55  ;;  %v12978_v58 = vpop.permute.xlu0 %5644  ;;  %v12981_v48 = vadd.f32 %v12963_v13, %v4461_v53  ;;  %v12993_v16 = vadd.f32 %v12963_v13, %v4763_v49  ;;  %v4153_v29 = vmul.f32 0.2, %v4145_v11 }
 0x796   :  { %v4154_v23 = vmul.f32 0.2, %v4146_v4  ;;  %v4456_v52 = vmul.f32 0.2, %v4448_v37 }
 0x797   :  { %v5066_v19 = vmax.f32 %v5050_v55, %v5058_v50  ;;  %v4749_v50 = vadd.f32 %v12874_v2, %v12811_v42  ;;  %v4161_v26 = vmax.f32 %v4145_v11, %v4153_v29  ;;  %v4455_v55 = vmul.f32 0.2, %v4447_v35  ;;  %v13022_v42 = vld [vmem:[%s14132_s2 + $0x20] sm:$0xff] }
 0x799   :  { %5079 = vmax.xlane.f32.xlu0 %v12943_v61  ;;  %5081 = vmax.xlane.f32.xlu1 %v12946_v38  ;;  %v4764_v38 = vmax.f32 %v4748_v43, %v4756_v33  ;;  %v5057_v61 = vmul.f32 0.2, %v5049_v7  ;;  %v4731_v33 = vpop.permute.xlu0 %4730  ;;  %v4757_v41 = vmul.f32 0.2, %v4749_v50  ;;  %v13025_v11 = vadd.f32 %v13022_v42, %v4161_v26 }
 0x79b   :  { %v12996_v43 = vadd.f32 %v12971_v24, %v4764_v38  ;;  %v5065_v36 = vmax.f32 %v5049_v7, %v5057_v61  ;;  %v13008_v38 = vadd.f32 %v12971_v24, %v5066_v19  ;;  %v4750_v61 = vadd.f32 %v12874_v2, %v4731_v33 }
 0x79c   :  { %v4162_v7 = vmax.f32 %v4146_v4, %v4154_v23  ;;  %v5052_v19 = vadd.f32 %v12885_v1, %v12850_v60  ;;  %v13030_v4 = vld [vmem:[%s14132_s2 + $0x28] sm:$0xff]  ;;  %v4464_v23 = vmax.f32 %v4448_v37, %v4456_v52  ;;  %v4765_v60 = vmax.f32 %v4749_v50, %v4757_v41 }
 0x79d   :  { %4177 = vmax.xlane.f32.xlu0 %v12966_v32  ;;  %4179 = vmax.xlane.f32.xlu1 %v12974_v28  ;;  %14264 = vst [vmem:[#allocation46_spill] sm:$0xff] %v12996_v43  ;;  %v13005_v53 = vadd.f32 %v12963_v13, %v5065_v36  ;;  %14266 = vst [vmem:[#allocation56_spill] sm:$0xff] %v13008_v38  ;;  %v4758_v49 = vmul.f32 0.2, %v4750_v61  ;;  %v5051_v36 = vadd.f32 %v12885_v1, %v12815_v27 }
 0x79e   :  { %v13033_v29 = vadd.f32 %v13030_v4, %v4162_v7  ;;  %v4463_v27 = vmax.f32 %v4447_v35, %v4455_v55  ;;  %v4147_v7 = vadd.f32 %v12864_v39, %v12826_v40  ;;  %v4148_v35 = vadd.f32 %v12864_v39, %v12828_v3 }
 0x79f   :  { %14265 = vst [vmem:[#allocation55_spill] sm:$0xff] %v13005_v53  ;;  %v4766_v33 = vmax.f32 %v4750_v61, %v4758_v49  ;;  %v13050_v37 = vadd.f32 %v13022_v42, %v4765_v60  ;;  %v4449_v40 = vadd.f32 %v12869_v10, %v12793_v54  ;;  %v4450_v3 = vadd.f32 %v12869_v10, %v12952_v12 }
 0x7a0   :  { %v13038_v26 = vadd.f32 %v13022_v42, %v4463_v27  ;;  %v4155_v52 = vmul.f32 0.2, %v4147_v7  ;;  %v4156_v41 = vmul.f32 0.2, %v4148_v35  ;;  %v14267_v12 = vsub.s32 4, %v14254_v20 }
 0x7a1   :  { %4479 = vmax.xlane.f32.xlu0 %v12981_v48  ;;  %4481 = vmax.xlane.f32.xlu1 %v12984_v57  ;;  %v13053_v50 = vadd.f32 %v13030_v4, %v4766_v33  ;;  %v4458_v10 = vmul.f32 0.2, %v4450_v3 }
 0x7a2   :  { %v4163_v54 = vmax.f32 %v4147_v7, %v4155_v52  ;;  %v13074_v27 = vrot.slane %v12859_v15, %v14267_v12  ;;  %v13093_v7 = vld [vmem:[%s14132_s2 + $0x38] sm:$0xff] }
 0x7a5   :  { %4781 = vmax.xlane.f32.xlu0 %v12993_v16  ;;  %4783 = vmax.xlane.f32.xlu1 %v12996_v43  ;;  %v13041_v43 = vadd.f32 %v13030_v4, %v4464_v23 }
 0x7a9   :  { %5083 = vmax.xlane.f32.xlu0 %v13005_v53  ;;  %5085 = vmax.xlane.f32.xlu1 %v13008_v38  ;;  %v5059_v38 = vmul.f32 0.2, %v5051_v36  ;;  %v5060_v53 = vmul.f32 0.2, %v5052_v19 }
 0x7ab   :  { %v5067_v61 = vmax.f32 %v5051_v36, %v5059_v38  ;;  %v5068_v55 = vmax.f32 %v5052_v19, %v5060_v53  ;;  %v4751_v53 = vadd.f32 %v12874_v2, %v12797_v9  ;;  %v4752_v38 = vadd.f32 %v12874_v2, %v12832_v34  ;;  %v13085_v34 = vld [vmem:[%s14132_s2 + $0x30] sm:$0xff] }
 0x7ac   :  { %v4164_v36 = vmax.f32 %v4148_v35, %v4156_v41  ;;  %v4457_v19 = vmul.f32 0.2, %v4449_v40  ;;  %v5053_v9 = vadd.f32 %v12885_v1, %v12830_v18  ;;  %v5054_v2 = vadd.f32 %v12885_v1, %v12836_v30 }
 0x7ad   :  { %4181 = vmax.xlane.f32.xlu0 %v13025_v11  ;;  %4183 = vmax.xlane.f32.xlu1 %v13033_v29  ;;  %v13062_v39 = vadd.f32 %v13022_v42, %v5067_v61  ;;  %v13065_v49 = vadd.f32 %v13030_v4, %v5068_v55  ;;  %v4759_v23 = vmul.f32 0.2, %v4751_v53  ;;  %v4760_v60 = vmul.f32 0.2, %v4752_v38 }
 0x7ae   :  { %v13088_v33 = vadd.f32 %v13085_v34, %v4163_v54  ;;  %v13096_v35 = vadd.f32 %v13093_v7, %v4164_v36  ;;  %v4465_v18 = vmax.f32 %v4449_v40, %v4457_v19  ;;  %v4466_v61 = vmax.f32 %v4450_v3, %v4458_v10 }
 0x7af   :  { %v14268_v30 = vsub.s32 5, %v14254_v20  ;;  %v4767_v55 = vmax.f32 %v4751_v53, %v4759_v23  ;;  %v4768_v52 = vmax.f32 %v4752_v38, %v4760_v60  ;;  %v5061_v41 = vmul.f32 0.2, %v5053_v9 }
 0x7b0   :  { %v5062_v54 = vmul.f32 0.2, %v5054_v2  ;;  %v13106_v12 = vadd.f32 %v13085_v34, %v4465_v18  ;;  %v13109_v36 = vadd.f32 %v13093_v7, %v4466_v61  ;;  %v5349_v40 = vadd.f32 %v13074_v27, %v12761_v31 }
 0x7b1   :  { %4483 = vmax.xlane.f32.xlu0 %v13038_v26  ;;  %4485 = vmax.xlane.f32.xlu1 %v13041_v43  ;;  %v13101_v1 = vrot.slane %v12859_v15, %v14268_v30  ;;  %v5350_v3 = vadd.f32 %v13074_v27, %v12809_v59  ;;  %v14269_v19 = vsub.s32 6, %v14254_v20  ;;  %v13123_v53 = vadd.f32 %v13085_v34, %v4767_v55 }
 0x7b2   :  { %v13126_v38 = vadd.f32 %v13093_v7, %v4768_v52  ;;  %v5069_v23 = vmax.f32 %v5053_v9, %v5061_v41  ;;  %v5070_v31 = vmax.f32 %v5054_v2, %v5062_v54  ;;  %v5357_v60 = vmul.f32 0.2, %v5349_v40 }
 0x7b3   :  { %v13118_v10 = vrot.slane %v12859_v15, %v14269_v19  ;;  %v5358_v18 = vmul.f32 0.2, %v5350_v3  ;;  %v5651_v59 = vadd.f32 %v13101_v1, %v12769_v22  ;;  %v5652_v61 = vadd.f32 %v13101_v1, %v12813_v0 }
 0x7b4   :  { %v14270_v30 = vsub.s32 7, %v14254_v20  ;;  %v13140_v9 = vadd.f32 %v13085_v34, %v5069_v23  ;;  %v13143_v2 = vadd.f32 %v13093_v7, %v5070_v31  ;;  %v5365_v20 = vmax.f32 %v5349_v40, %v5357_v60 }
 0x7b5   :  { %4785 = vmax.xlane.f32.xlu0 %v13050_v37  ;;  %4787 = vmax.xlane.f32.xlu1 %v13053_v50  ;;  %v5953_v22 = vadd.f32 %v13118_v10, %v12777_v51  ;;  %v5954_v0 = vadd.f32 %v13118_v10, %v12818_v47  ;;  %v5366_v55 = vmax.f32 %v5350_v3, %v5358_v18  ;;  %v5660_v52 = vmul.f32 0.2, %v5652_v61 }
 0x7b6   :  { %v13135_v19 = vrot.slane %v12859_v15, %v14270_v30  ;;  %14271 = vst [vmem:[#allocation57_spill] sm:$0xff] %v13143_v2  ;;  %v5659_v15 = vmul.f32 0.2, %v5651_v59  ;;  %v13156_v51 = vadd.f32 %v12907_v14, %v5365_v20  ;;  %v5351_v20 = vadd.f32 %v13074_v27, %v12717_v44 }
 0x7b7   :  { %v5961_v41 = vmul.f32 0.2, %v5953_v22  ;;  %v5962_v54 = vmul.f32 0.2, %v5954_v0  ;;  %v13159_v47 = vadd.f32 %v12899_v56, %v5366_v55  ;;  %v5668_v3 = vmax.f32 %v5652_v61, %v5660_v52 }
 0x7b8   :  { %v6255_v23 = vadd.f32 %v13135_v19, %v12782_v45  ;;  %v6256_v31 = vadd.f32 %v13135_v19, %v12822_v17  ;;  %v5667_v40 = vmax.f32 %v5651_v59, %v5659_v15  ;;  %v5352_v59 = vadd.f32 %v13074_v27, %v12791_v8 }
 0x7b9   :  { %5087 = vmax.xlane.f32.xlu0 %v13062_v39  ;;  %5089 = vmax.xlane.f32.xlu1 %v13065_v49  ;;  %v5969_v60 = vmax.f32 %v5953_v22, %v5961_v41  ;;  %v5970_v18 = vmax.f32 %v5954_v0, %v5962_v54  ;;  %v13167_v17 = vadd.f32 %v12899_v56, %v5668_v3  ;;  %v5359_v15 = vmul.f32 0.2, %v5351_v20 }
 0x7ba   :  { %v6263_v30 = vmul.f32 0.2, %v6255_v23  ;;  %v13164_v45 = vadd.f32 %v12907_v14, %v5667_v40  ;;  %v5360_v52 = vmul.f32 0.2, %v5352_v59  ;;  %v5653_v44 = vadd.f32 %v13101_v1, %v12726_v46 }
 0x7bb   :  { %v13176_v61 = vadd.f32 %v12907_v14, %v5969_v60  ;;  %v13179_v22 = vadd.f32 %v12899_v56, %v5970_v18  ;;  %v5654_v8 = vadd.f32 %v13101_v1, %v12795_v5  ;;  %v5367_v46 = vmax.f32 %v5351_v20, %v5359_v15 }
 0x7bc   :  { %v6271_v0 = vmax.f32 %v6255_v23, %v6263_v30  ;;  %v14274_v23 = vld [vmem:[#allocation27_spill] sm:$0xff]  ;;  %v5368_v3 = vmax.f32 %v5352_v59, %v5360_v52  ;;  %v5661_v60 = vmul.f32 0.2, %v5653_v44  ;;  %v14276_v30 = vld [vmem:[#allocation37_spill] sm:$0xff] }
 0x7bd   :  { %4185 = vmax.xlane.f32.xlu0 %v13088_v33  ;;  %4187 = vmax.xlane.f32.xlu1 %v13096_v35  ;;  %v5662_v5 = vmul.f32 0.2, %v5654_v8 }
 0x7be   :  { %v13188_v41 = vadd.f32 %v12907_v14, %v6271_v0  ;;  %v14277_v0 = vld [vmem:[#allocation42_spill] sm:$0xff]  ;;  %v13207_v20 = vadd.f32 %v12971_v24, %v5368_v3  ;;  %v5669_v59 = vmax.f32 %v5653_v44, %v5661_v60  ;;  %v14279_v3 = vld [vmem:[#allocation39_spill] sm:$0xff] }
 0x7bf   :  { %v5670_v15 = vmax.f32 %v5654_v8, %v5662_v5  ;;  %v5354_v44 = vadd.f32 %v13074_v27, %v14279_v3 }
 0x7c0   :  { %14272 = vst [vmem:[#allocation58_spill] sm:$0xff] %v13188_v41 }
 0x7c1   :  { %4487 = vmax.xlane.f32.xlu0 %v13106_v12  ;;  %4489 = vmax.xlane.f32.xlu1 %v13109_v36 }
 0x7c5   :  { %4789 = vmax.xlane.f32.xlu0 %v13123_v53  ;;  %4791 = vmax.xlane.f32.xlu1 %v13126_v38 }
 0x7c9   :  { %5091 = vmax.xlane.f32.xlu0 %v13140_v9  ;;  %5093 = vmax.xlane.f32.xlu1 %v13143_v2  ;;  %v6264_v2 = vmul.f32 0.2, %v6256_v31 }
 0x7cb   :  { %v6272_v55 = vmax.f32 %v6256_v31, %v6264_v2  ;;  %v5955_v2 = vadd.f32 %v13118_v10, %v14274_v23  ;;  %v14275_v31 = vld [vmem:[#allocation38_spill] sm:$0xff]  ;;  %v13204_v23 = vadd.f32 %v12963_v13, %v5367_v46  ;;  %v5353_v46 = vadd.f32 %v13074_v27, %v12912_v63 }
 0x7cc   :  { %v5956_v40 = vadd.f32 %v13118_v10, %v14275_v31  ;;  %v5655_v63 = vadd.f32 %v13101_v1, %v12934_v25 }
 0x7cd   :  { %5381 = vmax.xlane.f32.xlu0 %v13156_v51  ;;  %5383 = vmax.xlane.f32.xlu1 %v13159_v47  ;;  %v13191_v54 = vadd.f32 %v12899_v56, %v6272_v55  ;;  %v5963_v18 = vmul.f32 0.2, %v5955_v2  ;;  %v6257_v56 = vadd.f32 %v13135_v19, %v14276_v30  ;;  %v6258_v55 = vadd.f32 %v13135_v19, %v14277_v0 }
 0x7ce   :  { %v5964_v14 = vmul.f32 0.2, %v5956_v40  ;;  %v13212_v30 = vadd.f32 %v12963_v13, %v5669_v59  ;;  %v13215_v0 = vadd.f32 %v12971_v24, %v5670_v15  ;;  %v5361_v5 = vmul.f32 0.2, %v5353_v46  ;;  %v5939_v15 = vpop.permute.xlu0 %5938 }
 0x7cf   :  { %14273 = vst [vmem:[#allocation59_spill] sm:$0xff] %v13191_v54  ;;  %v5971_v52 = vmax.f32 %v5955_v2, %v5963_v18  ;;  %v5362_v18 = vmul.f32 0.2, %v5354_v44  ;;  %v5663_v3 = vmul.f32 0.2, %v5655_v63 }
 0x7d0   :  { %v5972_v31 = vmax.f32 %v5956_v40, %v5964_v14  ;;  %14278 = vst [vmem:[#allocation27_spill] sm:$0xff] %v13215_v0  ;;  %v14282_v14 = vld [vmem:[#allocation31_spill] sm:$0xff]  ;;  %v5369_v25 = vmax.f32 %v5353_v46, %v5361_v5 }
 0x7d1   :  { %5683 = vmax.xlane.f32.xlu0 %v13164_v45  ;;  %5685 = vmax.xlane.f32.xlu1 %v13167_v17  ;;  %v13224_v8 = vadd.f32 %v12963_v13, %v5971_v52  ;;  %v5656_v59 = vadd.f32 %v13101_v1, %v14282_v14 }
 0x7d2   :  { %v13227_v2 = vadd.f32 %v12971_v24, %v5972_v31 }
 0x7d3   :  { %14280 = vst [vmem:[#allocation38_spill] sm:$0xff] %v13224_v8  ;;  %v5664_v14 = vmul.f32 0.2, %v5656_v59 }
 0x7d4   :  { %14281 = vst [vmem:[#allocation37_spill] sm:$0xff] %v13227_v2 }
 0x7d5   :  { %5985 = vmax.xlane.f32.xlu0 %v13176_v61  ;;  %5987 = vmax.xlane.f32.xlu1 %v13179_v22  ;;  %v5672_v5 = vmax.f32 %v5656_v59, %v5664_v14  ;;  %v14290_v14 = vld [vmem:[#allocation28_spill] sm:$0xff] }
 0x7d9   :  { %6287 = vmax.xlane.f32.xlu0 %v13188_v41  ;;  %6289 = vmax.xlane.f32.xlu1 %v13191_v54  ;;  %v6265_v54 = vmul.f32 0.2, %v6257_v56  ;;  %v6266_v41 = vmul.f32 0.2, %v6258_v55 }
 0x7db   :  { %v6273_v40 = vmax.f32 %v6257_v56, %v6265_v54  ;;  %v6274_v60 = vmax.f32 %v6258_v55, %v6266_v41  ;;  %v14285_v41 = vld [vmem:[#allocation32_spill] sm:$0xff]  ;;  %v5958_v56 = vadd.f32 %v13118_v10, %v5939_v15  ;;  %v5370_v55 = vmax.f32 %v5354_v44, %v5362_v18 }
 0x7dc   :  { %v5957_v54 = vadd.f32 %v13118_v10, %v14285_v41  ;;  %v13251_v41 = vadd.f32 %v13022_v42, %v5369_v25  ;;  %v5671_v44 = vmax.f32 %v5655_v63, %v5663_v3  ;;  %v14288_v25 = vld [vmem:[#allocation33_spill] sm:$0xff] }
 0x7dd   :  { %5385 = vmax.xlane.f32.xlu0 %v13204_v23  ;;  %5387 = vmax.xlane.f32.xlu1 %v13207_v20  ;;  %v13236_v52 = vadd.f32 %v12963_v13, %v6273_v40  ;;  %v13239_v31 = vadd.f32 %v12971_v24, %v6274_v60  ;;  %v14286_v13 = vld [vmem:[#allocation49_spill] sm:$0xff]  ;;  %v13254_v46 = vadd.f32 %v13030_v4, %v5370_v55 }
 0x7de   :  { %v6259_v40 = vadd.f32 %v13135_v19, %v14286_v13  ;;  %v14287_v24 = vld [vmem:[#allocation41_spill] sm:$0xff]  ;;  %v13259_v13 = vadd.f32 %v13022_v42, %v5671_v44  ;;  %v5355_v55 = vadd.f32 %v13074_v27, %v14288_v25  ;;  %v5657_v44 = vadd.f32 %v13101_v1, %v14290_v14 }
 0x7df   :  { %14283 = vst [vmem:[#allocation42_spill] sm:$0xff] %v13236_v52  ;;  %14284 = vst [vmem:[#allocation39_spill] sm:$0xff] %v13239_v31  ;;  %v6260_v60 = vadd.f32 %v13135_v19, %v14287_v24  ;;  %v13262_v24 = vadd.f32 %v13030_v4, %v5672_v5 }
 0x7e0   :  { %v5665_v25 = vmul.f32 0.2, %v5657_v44 }
 0x7e1   :  { %5687 = vmax.xlane.f32.xlu0 %v13212_v30  ;;  %5689 = vmax.xlane.f32.xlu1 %v13215_v0  ;;  %v14289_v0 = vld [vmem:[#allocation50_spill] sm:$0xff] }
 0x7e2   :  { %v5356_v63 = vadd.f32 %v13074_v27, %v14289_v0  ;;  %v5658_v27 = vadd.f32 %v13101_v1, %v12978_v58 }
 0x7e4   :  { %v5364_v3 = vmul.f32 0.2, %v5356_v63  ;;  %v5666_v58 = vmul.f32 0.2, %v5658_v27 }
 0x7e5   :  { %5989 = vmax.xlane.f32.xlu0 %v13224_v8  ;;  %5991 = vmax.xlane.f32.xlu1 %v13227_v2  ;;  %v5965_v2 = vmul.f32 0.2, %v5957_v54  ;;  %v5966_v8 = vmul.f32 0.2, %v5958_v56 }
 0x7e7   :  { %v5973_v18 = vmax.f32 %v5957_v54, %v5965_v2  ;;  %v5974_v15 = vmax.f32 %v5958_v56, %v5966_v8  ;;  %v5363_v56 = vmul.f32 0.2, %v5355_v55 }
 0x7e9   :  { %6291 = vmax.xlane.f32.xlu0 %v13236_v52  ;;  %6293 = vmax.xlane.f32.xlu1 %v13239_v31  ;;  %v6267_v31 = vmul.f32 0.2, %v6259_v40  ;;  %v6268_v52 = vmul.f32 0.2, %v6260_v60  ;;  %v13271_v8 = vadd.f32 %v13022_v42, %v5973_v18  ;;  %v13274_v2 = vadd.f32 %v13030_v4, %v5974_v15 }
 0x7ea   :  { %v5371_v18 = vmax.f32 %v5355_v55, %v5363_v56  ;;  %v5372_v15 = vmax.f32 %v5356_v63, %v5364_v3  ;;  %v5673_v55 = vmax.f32 %v5657_v44, %v5665_v25  ;;  %v5674_v63 = vmax.f32 %v5658_v27, %v5666_v58 }
 0x7eb   :  { %v6275_v59 = vmax.f32 %v6259_v40, %v6267_v31  ;;  %v6276_v54 = vmax.f32 %v6260_v60, %v6268_v52  ;;  %v14291_v31 = vld [vmem:[#allocation35_spill] sm:$0xff]  ;;  %v14292_v40 = vld [vmem:[#allocation48_spill] sm:$0xff] }
 0x7ec   :  { %v5959_v52 = vadd.f32 %v13118_v10, %v14291_v31  ;;  %v5960_v60 = vadd.f32 %v13118_v10, %v14292_v40  ;;  %v13299_v31 = vadd.f32 %v13085_v34, %v5371_v18  ;;  %v13302_v10 = vadd.f32 %v13093_v7, %v5372_v15 }
 0x7ed   :  { %5389 = vmax.xlane.f32.xlu0 %v13251_v41  ;;  %5391 = vmax.xlane.f32.xlu1 %v13254_v46  ;;  %v13283_v0 = vadd.f32 %v13022_v42, %v6275_v59  ;;  %v13286_v5 = vadd.f32 %v13030_v4, %v6276_v54  ;;  %v14293_v59 = vld [vmem:[#allocation45_spill] sm:$0xff]  ;;  %v13307_v40 = vadd.f32 %v13085_v34, %v5673_v55 }
 0x7ee   :  { %v5967_v1 = vmul.f32 0.2, %v5959_v52  ;;  %v5968_v42 = vmul.f32 0.2, %v5960_v60  ;;  %v6261_v4 = vadd.f32 %v13135_v19, %v14293_v59  ;;  %v14294_v54 = vld [vmem:[#allocation29_spill] sm:$0xff]  ;;  %v13310_v59 = vadd.f32 %v13093_v7, %v5674_v63 }
 0x7ef   :  { %v6262_v14 = vadd.f32 %v13135_v19, %v14294_v54 }
 0x7f0   :  { %v5975_v56 = vmax.f32 %v5959_v52, %v5967_v1  ;;  %v6269_v3 = vmul.f32 0.2, %v6261_v4  ;;  %v5976_v19 = vmax.f32 %v5960_v60, %v5968_v42 }
 0x7f1   :  { %5691 = vmax.xlane.f32.xlu0 %v13259_v13  ;;  %5693 = vmax.xlane.f32.xlu1 %v13262_v24  ;;  %v6270_v18 = vmul.f32 0.2, %v6262_v14 }
 0x7f2   :  { %v13315_v44 = vadd.f32 %v13085_v34, %v5975_v56  ;;  %v13318_v27 = vadd.f32 %v13093_v7, %v5976_v19  ;;  %v6277_v52 = vmax.f32 %v6261_v4, %v6269_v3  ;;  %v14296_v56 = vld [vmem:[#allocation30_spill] sm:$0xff] }
 0x7f3   :  { %v6278_v15 = vmax.f32 %v6262_v14, %v6270_v18 }
 0x7f4   :  { %v13323_v25 = vadd.f32 %v13085_v34, %v6277_v52 }
 0x7f5   :  { %5993 = vmax.xlane.f32.xlu0 %v13271_v8  ;;  %5995 = vmax.xlane.f32.xlu1 %v13274_v2  ;;  %v13326_v60 = vadd.f32 %v13093_v7, %v6278_v15  ;;  %v14297_v15 = vld [vmem:[#allocation43_spill] sm:$0xff] }
 0x7f7   :  { %14295 = vst [vmem:[#allocation31_spill] sm:$0xff] %v13326_v60 }
 0x7f9   :  { %6295 = vmax.xlane.f32.xlu0 %v13283_v0  ;;  %6297 = vmax.xlane.f32.xlu1 %v13286_v5 }
 0x7fd   :  { %5393 = vmax.xlane.f32.xlu0 %v13299_v31  ;;  %5395 = vmax.xlane.f32.xlu1 %v13302_v10 }
 0x801   :  { %5695 = vmax.xlane.f32.xlu0 %v13307_v40  ;;  %5697 = vmax.xlane.f32.xlu1 %v13310_v59 }
 0x805   :  { %5997 = vmax.xlane.f32.xlu0 %v13315_v44  ;;  %5999 = vmax.xlane.f32.xlu1 %v13318_v27 }
 0x809   :  { %6299 = vmax.xlane.f32.xlu0 %v13323_v25  ;;  %6301 = vmax.xlane.f32.xlu1 %v13326_v60 }
 0x816   :  { %v4176_v58 = vpop.xlane.xlu0 %4175  ;;  %v4174_v1 = vpop.xlane.xlu1 %4173 }
 0x817   :  { %v4190_v42 = vsub.f32 %v12902_v62, %v4176_v58  ;;  %v4189_v4 = vsub.f32 %v12910_v21, %v4174_v1  ;;  %v14298_v62 = vld [vmem:[#allocation44_spill] sm:$0xff] }
 0x819   :  { %v4199_v54 = vmul.f32 1.442695, %v4190_v42  ;;  %v4197_v14 = vmul.f32 1.442695, %v4189_v4 }
 0x81a   :  { %v4476_v55 = vpop.xlane.xlu0 %4475  ;;  %v4478_v63 = vpop.xlane.xlu1 %4477 }
 0x81b   :  { %10150 = vpow2.f32 %v4199_v54  ;;  %v4491_v34 = vsub.f32 %v12917_v6, %v4476_v55  ;;  %v4492_v7 = vsub.f32 %v14296_v56, %v4478_v63  ;;  %v14299_v54 = vld [vmem:[#allocation51_spill] sm:$0xff]  ;;  %v14300_v55 = vld [vmem:[#allocation52_spill] sm:$0xff] }
 0x81c   :  { %10152 = vpow2.f32 %v4197_v14 }
 0x81d   :  { %v4499_v3 = vmul.f32 1.442695, %v4491_v34  ;;  %v4501_v19 = vmul.f32 1.442695, %v4492_v7 }
 0x81e   :  { %v4778_v18 = vpop.xlane.xlu0 %4777  ;;  %v4780_v52 = vpop.xlane.xlu1 %4779 }
 0x81f   :  { %10154 = vpow2.f32 %v4499_v3  ;;  %v4793_v60 = vsub.f32 %v14297_v15, %v4778_v18  ;;  %v4794_v58 = vsub.f32 %v14298_v62, %v4780_v52 }
 0x820   :  { %10156 = vpow2.f32 %v4501_v19 }
 0x821   :  { %v4801_v21 = vmul.f32 1.442695, %v4793_v60  ;;  %v4803_v1 = vmul.f32 1.442695, %v4794_v58 }
 0x822   :  { %v5080_v42 = vpop.xlane.xlu0 %5079  ;;  %v5082_v4 = vpop.xlane.xlu1 %5081 }
 0x823   :  { %10158 = vpow2.f32 %v4801_v21  ;;  %v5095_v6 = vsub.f32 %v14299_v54, %v5080_v42  ;;  %v5096_v63 = vsub.f32 %v14300_v55, %v5082_v4 }
 0x824   :  { %10160 = vpow2.f32 %v4803_v1 }
 0x825   :  { %v5103_v14 = vmul.f32 1.442695, %v5095_v6  ;;  %v5105_v34 = vmul.f32 1.442695, %v5096_v63  ;;  %v14301_v63 = vld [vmem:[#allocation46_spill] sm:$0xff] }
 0x826   :  { %v4178_v56 = vpop.xlane.xlu0 %4177  ;;  %v4180_v7 = vpop.xlane.xlu1 %4179 }
 0x827   :  { %10162 = vpow2.f32 %v5103_v14  ;;  %v4191_v3 = vsub.f32 %v12966_v32, %v4178_v56  ;;  %v4192_v18 = vsub.f32 %v12974_v28, %v4180_v7 }
 0x828   :  { %v13340_v19 = vpop.eup %10150  ;;  %10164 = vpow2.f32 %v5105_v34 }
 0x829   :  { %v13342_v60 = vpop.eup %10152  ;;  %v4201_v52 = vmul.f32 1.442695, %v4191_v3  ;;  %v4203_v15 = vmul.f32 1.442695, %v4192_v18  ;;  %4215 = vadd.xlane.f32.xlu1 %v13340_v19  ;;  %v14302_v18 = vld [vmem:[#allocation55_spill] sm:$0xff] }
 0x82a   :  { %4213 = vadd.xlane.f32.xlu0 %v13342_v60  ;;  %v4480_v62 = vpop.xlane.xlu0 %4479  ;;  %v4482_v58 = vpop.xlane.xlu1 %4481 }
 0x82b   :  { %10166 = vpow2.f32 %v4201_v52  ;;  %v4493_v21 = vsub.f32 %v12981_v48, %v4480_v62  ;;  %v4494_v32 = vsub.f32 %v12984_v57, %v4482_v58 }
 0x82c   :  { %v13348_v1 = vpop.eup %10154  ;;  %10168 = vpow2.f32 %v4203_v15  ;;  %v14303_v15 = vld [vmem:[#allocation56_spill] sm:$0xff] }
 0x82d   :  { %v13350_v28 = vpop.eup %10156  ;;  %v4503_v42 = vmul.f32 1.442695, %v4493_v21  ;;  %v4505_v4 = vmul.f32 1.442695, %v4494_v32 }
 0x82e   :  { %4515 = vadd.xlane.f32.xlu0 %v13348_v1  ;;  %4517 = vadd.xlane.f32.xlu1 %v13350_v28  ;;  %v4782_v54 = vpop.xlane.xlu0 %4781  ;;  %v4784_v6 = vpop.xlane.xlu1 %4783 }
 0x82f   :  { %10170 = vpow2.f32 %v4503_v42  ;;  %v4795_v55 = vsub.f32 %v12993_v16, %v4782_v54  ;;  %v4796_v48 = vsub.f32 %v14301_v63, %v4784_v6 }
 0x830   :  { %v13356_v14 = vpop.eup %10158  ;;  %10172 = vpow2.f32 %v4505_v4 }
 0x831   :  { %v13358_v57 = vpop.eup %10160  ;;  %v4805_v34 = vmul.f32 1.442695, %v4795_v55  ;;  %v4807_v56 = vmul.f32 1.442695, %v4796_v48 }
 0x832   :  { %4817 = vadd.xlane.f32.xlu0 %v13356_v14  ;;  %4819 = vadd.xlane.f32.xlu1 %v13358_v57  ;;  %v5084_v7 = vpop.xlane.xlu0 %5083  ;;  %v5086_v3 = vpop.xlane.xlu1 %5085 }
 0x833   :  { %10174 = vpow2.f32 %v4805_v34  ;;  %v5097_v52 = vsub.f32 %v14302_v18, %v5084_v7  ;;  %v5098_v16 = vsub.f32 %v14303_v15, %v5086_v3 }
 0x834   :  { %v13364_v62 = vpop.eup %10162  ;;  %10176 = vpow2.f32 %v4807_v56 }
 0x835   :  { %v13366_v58 = vpop.eup %10164  ;;  %v5107_v21 = vmul.f32 1.442695, %v5097_v52  ;;  %v5109_v32 = vmul.f32 1.442695, %v5098_v16 }
 0x836   :  { %5119 = vadd.xlane.f32.xlu0 %v13364_v62  ;;  %5121 = vadd.xlane.f32.xlu1 %v13366_v58  ;;  %v4182_v42 = vpop.xlane.xlu0 %4181  ;;  %v4184_v4 = vpop.xlane.xlu1 %4183 }
 0x837   :  { %10178 = vpow2.f32 %v5107_v21  ;;  %v4193_v54 = vsub.f32 %v13025_v11, %v4182_v42  ;;  %v4194_v6 = vsub.f32 %v13033_v29, %v4184_v4 }
 0x838   :  { %v13372_v55 = vpop.eup %10166  ;;  %10180 = vpow2.f32 %v5109_v32 }
 0x839   :  { %v13374_v63 = vpop.eup %10168  ;;  %v4205_v48 = vmul.f32 1.442695, %v4193_v54  ;;  %v4207_v34 = vmul.f32 1.442695, %v4194_v6 }
 0x83a   :  { %4217 = vadd.xlane.f32.xlu0 %v13372_v55  ;;  %4219 = vadd.xlane.f32.xlu1 %v13374_v63  ;;  %v4484_v56 = vpop.xlane.xlu0 %4483  ;;  %v4486_v7 = vpop.xlane.xlu1 %4485 }
 0x83b   :  { %10182 = vpow2.f32 %v4205_v48  ;;  %v4495_v3 = vsub.f32 %v13038_v26, %v4484_v56  ;;  %v4496_v11 = vsub.f32 %v13041_v43, %v4486_v7 }
 0x83c   :  { %v13380_v18 = vpop.eup %10170  ;;  %10184 = vpow2.f32 %v4207_v34 }
 0x83d   :  { %v13382_v29 = vpop.eup %10172  ;;  %v4507_v52 = vmul.f32 1.442695, %v4495_v3  ;;  %v4509_v15 = vmul.f32 1.442695, %v4496_v11 }
 0x83e   :  { %4519 = vadd.xlane.f32.xlu0 %v13380_v18  ;;  %4521 = vadd.xlane.f32.xlu1 %v13382_v29  ;;  %v4786_v16 = vpop.xlane.xlu0 %4785  ;;  %v4788_v21 = vpop.xlane.xlu1 %4787 }
 0x83f   :  { %10186 = vpow2.f32 %v4507_v52  ;;  %v4797_v32 = vsub.f32 %v13050_v37, %v4786_v16  ;;  %v4798_v26 = vsub.f32 %v13053_v50, %v4788_v21 }
 0x840   :  { %v13388_v42 = vpop.eup %10174  ;;  %10188 = vpow2.f32 %v4509_v15 }
 0x841   :  { %v13390_v43 = vpop.eup %10176  ;;  %v4809_v4 = vmul.f32 1.442695, %v4797_v32  ;;  %v4811_v54 = vmul.f32 1.442695, %v4798_v26 }
 0x842   :  { %4821 = vadd.xlane.f32.xlu0 %v13388_v42  ;;  %4823 = vadd.xlane.f32.xlu1 %v13390_v43  ;;  %v5088_v6 = vpop.xlane.xlu0 %5087  ;;  %v5090_v48 = vpop.xlane.xlu1 %5089 }
 0x843   :  { %10190 = vpow2.f32 %v4809_v4  ;;  %v5099_v34 = vsub.f32 %v13062_v39, %v5088_v6  ;;  %v5100_v37 = vsub.f32 %v13065_v49, %v5090_v48 }
 0x844   :  { %v13396_v56 = vpop.eup %10178  ;;  %10192 = vpow2.f32 %v4811_v54 }
 0x845   :  { %v13398_v50 = vpop.eup %10180  ;;  %v5111_v7 = vmul.f32 1.442695, %v5099_v34  ;;  %v5113_v3 = vmul.f32 1.442695, %v5100_v37 }
 0x846   :  { %5123 = vadd.xlane.f32.xlu0 %v13396_v56  ;;  %5125 = vadd.xlane.f32.xlu1 %v13398_v50  ;;  %v4186_v11 = vpop.xlane.xlu0 %4185  ;;  %v4188_v52 = vpop.xlane.xlu1 %4187 }
 0x847   :  { %10194 = vpow2.f32 %v5111_v7  ;;  %v4195_v15 = vsub.f32 %v13088_v33, %v4186_v11  ;;  %v4196_v39 = vsub.f32 %v13096_v35, %v4188_v52 }
 0x848   :  { %v13404_v16 = vpop.eup %10182  ;;  %10196 = vpow2.f32 %v5113_v3 }
 0x849   :  { %v13406_v49 = vpop.eup %10184  ;;  %v4209_v21 = vmul.f32 1.442695, %v4195_v15  ;;  %v4211_v32 = vmul.f32 1.442695, %v4196_v39 }
 0x84a   :  { %4221 = vadd.xlane.f32.xlu0 %v13404_v16  ;;  %4223 = vadd.xlane.f32.xlu1 %v13406_v49  ;;  %v4488_v26 = vpop.xlane.xlu0 %4487  ;;  %v4490_v4 = vpop.xlane.xlu1 %4489 }
 0x84b   :  { %10198 = vpow2.f32 %v4209_v21  ;;  %v4497_v54 = vsub.f32 %v13106_v12, %v4488_v26  ;;  %v4498_v33 = vsub.f32 %v13109_v36, %v4490_v4  ;;  %v14304_v26 = vld [vmem:[#allocation57_spill] sm:$0xff] }
 0x84c   :  { %v13412_v6 = vpop.eup %10186  ;;  %10200 = vpow2.f32 %v4211_v32 }
 0x84d   :  { %v13414_v35 = vpop.eup %10188  ;;  %v4511_v48 = vmul.f32 1.442695, %v4497_v54  ;;  %v4513_v34 = vmul.f32 1.442695, %v4498_v33 }
 0x84e   :  { %4523 = vadd.xlane.f32.xlu0 %v13412_v6  ;;  %4525 = vadd.xlane.f32.xlu1 %v13414_v35  ;;  %v4790_v37 = vpop.xlane.xlu0 %4789  ;;  %v4792_v7 = vpop.xlane.xlu1 %4791 }
 0x84f   :  { %10202 = vpow2.f32 %v4511_v48  ;;  %v4799_v3 = vsub.f32 %v13123_v53, %v4790_v37  ;;  %v4800_v12 = vsub.f32 %v13126_v38, %v4792_v7 }
 0x850   :  { %v13420_v11 = vpop.eup %10190  ;;  %10204 = vpow2.f32 %v4513_v34 }
 0x851   :  { %v13422_v36 = vpop.eup %10192  ;;  %v4813_v52 = vmul.f32 1.442695, %v4799_v3  ;;  %v4815_v15 = vmul.f32 1.442695, %v4800_v12 }
 0x852   :  { %4825 = vadd.xlane.f32.xlu0 %v13420_v11  ;;  %4827 = vadd.xlane.f32.xlu1 %v13422_v36  ;;  %v5092_v39 = vpop.xlane.xlu0 %5091  ;;  %v5094_v21 = vpop.xlane.xlu1 %5093 }
 0x853   :  { %10206 = vpow2.f32 %v4813_v52  ;;  %v5101_v32 = vsub.f32 %v13140_v9, %v5092_v39  ;;  %v5102_v53 = vsub.f32 %v14304_v26, %v5094_v21 }
 0x854   :  { %v13428_v4 = vpop.eup %10194  ;;  %10208 = vpow2.f32 %v4815_v15 }
 0x855   :  { %v13430_v38 = vpop.eup %10196  ;;  %v5115_v54 = vmul.f32 1.442695, %v5101_v32  ;;  %v5117_v33 = vmul.f32 1.442695, %v5102_v53 }
 0x856   :  { %5127 = vadd.xlane.f32.xlu0 %v13428_v4  ;;  %5129 = vadd.xlane.f32.xlu1 %v13430_v38  ;;  %v5382_v48 = vpop.xlane.xlu0 %5381  ;;  %v5384_v34 = vpop.xlane.xlu1 %5383 }
 0x857   :  { %10210 = vpow2.f32 %v5115_v54  ;;  %v5397_v37 = vsub.f32 %v13156_v51, %v5382_v48  ;;  %v5398_v9 = vsub.f32 %v13159_v47, %v5384_v34 }
 0x858   :  { %v13436_v7 = vpop.eup %10198  ;;  %10212 = vpow2.f32 %v5117_v33 }
 0x859   :  { %v13438_v3 = vpop.eup %10200  ;;  %v5405_v12 = vmul.f32 1.442695, %v5397_v37  ;;  %v5407_v52 = vmul.f32 1.442695, %v5398_v9 }
 0x85a   :  { %4225 = vadd.xlane.f32.xlu0 %v13436_v7  ;;  %4227 = vadd.xlane.f32.xlu1 %v13438_v3  ;;  %v5684_v15 = vpop.xlane.xlu0 %5683  ;;  %v5686_v39 = vpop.xlane.xlu1 %5685 }
 0x85b   :  { %10214 = vpow2.f32 %v5405_v12  ;;  %v5699_v21 = vsub.f32 %v13164_v45, %v5684_v15  ;;  %v5700_v51 = vsub.f32 %v13167_v17, %v5686_v39  ;;  %v14305_v15 = vld [vmem:[#allocation58_spill] sm:$0xff] }
 0x85c   :  { %v13444_v32 = vpop.eup %10202  ;;  %10216 = vpow2.f32 %v5407_v52 }
 0x85d   :  { %v13446_v47 = vpop.eup %10204  ;;  %v5707_v26 = vmul.f32 1.442695, %v5699_v21  ;;  %v5709_v53 = vmul.f32 1.442695, %v5700_v51  ;;  %v14306_v21 = vld [vmem:[#allocation59_spill] sm:$0xff] }
 0x85e   :  { %4527 = vadd.xlane.f32.xlu0 %v13444_v32  ;;  %4529 = vadd.xlane.f32.xlu1 %v13446_v47  ;;  %v5986_v54 = vpop.xlane.xlu0 %5985  ;;  %v5988_v33 = vpop.xlane.xlu1 %5987 }
 0x85f   :  { %10218 = vpow2.f32 %v5707_v26  ;;  %v6001_v48 = vsub.f32 %v13176_v61, %v5986_v54  ;;  %v6002_v45 = vsub.f32 %v13179_v22, %v5988_v33 }
 0x860   :  { %v13452_v34 = vpop.eup %10206  ;;  %10220 = vpow2.f32 %v5709_v53 }
 0x861   :  { %v13454_v17 = vpop.eup %10208  ;;  %v6009_v37 = vmul.f32 1.442695, %v6001_v48  ;;  %v6011_v9 = vmul.f32 1.442695, %v6002_v45 }
 0x862   :  { %4829 = vadd.xlane.f32.xlu0 %v13452_v34  ;;  %4831 = vadd.xlane.f32.xlu1 %v13454_v17  ;;  %v6288_v12 = vpop.xlane.xlu0 %6287  ;;  %v6290_v52 = vpop.xlane.xlu1 %6289 }
 0x863   :  { %10222 = vpow2.f32 %v6009_v37  ;;  %v6303_v39 = vsub.f32 %v14305_v15, %v6288_v12  ;;  %v6304_v61 = vsub.f32 %v14306_v21, %v6290_v52  ;;  %v9856_v37 = vld [vmem:[#allocation3 + $0x178] sm:$0xff]  }
 0x864   :  { %v13460_v51 = vpop.eup %10210  ;;  %10224 = vpow2.f32 %v6011_v9  ;;  %9249 = vmatprep.subr.bf16.mxu0 %v9856_v37  ;;  %v14311_v37 = vld [vmem:[#allocation38_spill] sm:$0xff] }
 0x865   :  { %v13462_v22 = vpop.eup %10212  ;;  %v6311_v26 = vmul.f32 1.442695, %v6303_v39  ;;  %v6313_v53 = vmul.f32 1.442695, %v6304_v61  ;;  %v14308_v61 = vld [vmem:[#allocation27_spill] sm:$0xff] }
 0x866   :  { %5131 = vadd.xlane.f32.xlu0 %v13460_v51  ;;  %5133 = vadd.xlane.f32.xlu1 %v13462_v22  ;;  %v5386_v54 = vpop.xlane.xlu0 %5385  ;;  %v5388_v33 = vpop.xlane.xlu1 %5387 }
 0x867   :  { %10226 = vpow2.f32 %v6311_v26  ;;  %v5399_v48 = vsub.f32 %v13204_v23, %v5386_v54  ;;  %v5400_v45 = vsub.f32 %v13207_v20, %v5388_v33 }
 0x868   :  { %v13468_v12 = vpop.eup %10214  ;;  %10228 = vpow2.f32 %v6313_v53 }
 0x869   :  { %v13470_v9 = vpop.eup %10216  ;;  %v5409_v52 = vmul.f32 1.442695, %v5399_v48  ;;  %v5411_v15 = vmul.f32 1.442695, %v5400_v45 }
 0x86a   :  { %14307 = vst [vmem:[#allocation32_spill] sm:$0xff] %v13470_v9  ;;  %5421 = vadd.xlane.f32.xlu0 %v13468_v12  ;;  %5423 = vadd.xlane.f32.xlu1 %v13470_v9  ;;  %v5688_v39 = vpop.xlane.xlu0 %5687  ;;  %v5690_v21 = vpop.xlane.xlu1 %5689  ;;  %v14312_v9 = vld [vmem:[#allocation37_spill] sm:$0xff] }
 0x86b   :  { %10230 = vpow2.f32 %v5409_v52  ;;  %v5701_v23 = vsub.f32 %v13212_v30, %v5688_v39  ;;  %v5702_v20 = vsub.f32 %v14308_v61, %v5690_v21  ;;  %v9861_v39 = vld [vmem:[#allocation3 + $0x1f8] sm:$0xff]  }
 0x86c   :  { %v13476_v26 = vpop.eup %10218  ;;  %10232 = vpow2.f32 %v5411_v15  ;;  %9289 = vmatprep.subr.bf16.mxu1 %v9861_v39 }
 0x86d   :  { %14309 = vst [vmem:[#allocation49_spill] sm:$0xff] %v13476_v26  ;;  %v13478_v53 = vpop.eup %10220  ;;  %v5711_v54 = vmul.f32 1.442695, %v5701_v23  ;;  %v5713_v33 = vmul.f32 1.442695, %v5702_v20 }
 0x86e   :  { %14310 = vst [vmem:[#allocation41_spill] sm:$0xff] %v13478_v53  ;;  %5723 = vadd.xlane.f32.xlu0 %v13476_v26  ;;  %5725 = vadd.xlane.f32.xlu1 %v13478_v53  ;;  %v5990_v48 = vpop.xlane.xlu0 %5989  ;;  %v5992_v45 = vpop.xlane.xlu1 %5991 }
 0x86f   :  { %10234 = vpow2.f32 %v5711_v54  ;;  %v6003_v52 = vsub.f32 %v14311_v37, %v5990_v48  ;;  %v6004_v30 = vsub.f32 %v14312_v9, %v5992_v45  ;;  %v14313_v54 = vld [vmem:[#allocation42_spill] sm:$0xff]  ;;  %v14314_v37 = vld [vmem:[#allocation39_spill] sm:$0xff] }
 0x870   :  { %v13484_v21 = vpop.eup %10222  ;;  %10236 = vpow2.f32 %v5713_v33 }
 0x871   :  { %v13486_v15 = vpop.eup %10224  ;;  %v6013_v61 = vmul.f32 1.442695, %v6003_v52  ;;  %v6015_v23 = vmul.f32 1.442695, %v6004_v30 }
 0x872   :  { %6025 = vadd.xlane.f32.xlu0 %v13484_v21  ;;  %6027 = vadd.xlane.f32.xlu1 %v13486_v15  ;;  %v6292_v20 = vpop.xlane.xlu0 %6291  ;;  %v6294_v53 = vpop.xlane.xlu1 %6293 }
 0x873   :  { %10238 = vpow2.f32 %v6013_v61  ;;  %v6305_v48 = vsub.f32 %v14313_v54, %v6292_v20  ;;  %v6306_v9 = vsub.f32 %v14314_v37, %v6294_v53 }
 0x874   :  { %v13492_v45 = vpop.eup %10226  ;;  %10240 = vpow2.f32 %v6015_v23 }
 0x875   :  { %v13494_v33 = vpop.eup %10228  ;;  %v6315_v26 = vmul.f32 1.442695, %v6305_v48  ;;  %v6317_v52 = vmul.f32 1.442695, %v6306_v9 }
 0x876   :  { %6327 = vadd.xlane.f32.xlu0 %v13492_v45  ;;  %6329 = vadd.xlane.f32.xlu1 %v13494_v33  ;;  %v5390_v30 = vpop.xlane.xlu0 %5389  ;;  %v5392_v39 = vpop.xlane.xlu1 %5391 }
 0x877   :  { %10242 = vpow2.f32 %v6315_v26  ;;  %v5401_v61 = vsub.f32 %v13251_v41, %v5390_v30  ;;  %v5402_v20 = vsub.f32 %v13254_v46, %v5392_v39 }
 0x878   :  { %v13500_v54 = vpop.eup %10230  ;;  %10244 = vpow2.f32 %v6317_v52 }
 0x879   :  { %v13502_v53 = vpop.eup %10232  ;;  %v5413_v23 = vmul.f32 1.442695, %v5401_v61  ;;  %v5415_v37 = vmul.f32 1.442695, %v5402_v20 }
 0x87a   :  { %5425 = vadd.xlane.f32.xlu0 %v13500_v54  ;;  %5427 = vadd.xlane.f32.xlu1 %v13502_v53  ;;  %v5692_v48 = vpop.xlane.xlu0 %5691  ;;  %v5694_v9 = vpop.xlane.xlu1 %5693 }
 0x87b   :  { %10246 = vpow2.f32 %v5413_v23  ;;  %v5703_v26 = vsub.f32 %v13259_v13, %v5692_v48  ;;  %v5704_v41 = vsub.f32 %v13262_v24, %v5694_v9 }
 0x87c   :  { %v13508_v30 = vpop.eup %10234  ;;  %10248 = vpow2.f32 %v5415_v37 }
 0x87d   :  { %v13510_v46 = vpop.eup %10236  ;;  %v5715_v52 = vmul.f32 1.442695, %v5703_v26  ;;  %v5717_v39 = vmul.f32 1.442695, %v5704_v41 }
 0x87e   :  { %5727 = vadd.xlane.f32.xlu0 %v13508_v30  ;;  %5729 = vadd.xlane.f32.xlu1 %v13510_v46  ;;  %v5994_v61 = vpop.xlane.xlu0 %5993  ;;  %v5996_v20 = vpop.xlane.xlu1 %5995 }
 0x87f   :  { %10250 = vpow2.f32 %v5715_v52  ;;  %v6005_v23 = vsub.f32 %v13271_v8, %v5994_v61  ;;  %v6006_v13 = vsub.f32 %v13274_v2, %v5996_v20 }
 0x880   :  { %v13516_v48 = vpop.eup %10238  ;;  %10252 = vpow2.f32 %v5717_v39 }
 0x881   :  { %v13518_v24 = vpop.eup %10240  ;;  %v6017_v37 = vmul.f32 1.442695, %v6005_v23  ;;  %v6019_v9 = vmul.f32 1.442695, %v6006_v13 }
 0x882   :  { %6029 = vadd.xlane.f32.xlu0 %v13516_v48  ;;  %6031 = vadd.xlane.f32.xlu1 %v13518_v24  ;;  %v6296_v26 = vpop.xlane.xlu0 %6295  ;;  %v6298_v41 = vpop.xlane.xlu1 %6297 }
 0x883   :  { %10254 = vpow2.f32 %v6017_v37  ;;  %v6307_v52 = vsub.f32 %v13283_v0, %v6296_v26  ;;  %v6308_v8 = vsub.f32 %v13286_v5, %v6298_v41 }
 0x884   :  { %v13524_v61 = vpop.eup %10242  ;;  %10256 = vpow2.f32 %v6019_v9 }
 0x885   :  { %v13526_v2 = vpop.eup %10244  ;;  %v6319_v39 = vmul.f32 1.442695, %v6307_v52  ;;  %v6321_v20 = vmul.f32 1.442695, %v6308_v8 }
 0x886   :  { %6331 = vadd.xlane.f32.xlu0 %v13524_v61  ;;  %6333 = vadd.xlane.f32.xlu1 %v13526_v2  ;;  %v5394_v23 = vpop.xlane.xlu0 %5393  ;;  %v5396_v13 = vpop.xlane.xlu1 %5395 }
 0x887   :  { %10258 = vpow2.f32 %v6319_v39  ;;  %v5403_v37 = vsub.f32 %v13299_v31, %v5394_v23  ;;  %v5404_v0 = vsub.f32 %v13302_v10, %v5396_v13 }
 0x888   :  { %v13532_v26 = vpop.eup %10246  ;;  %10260 = vpow2.f32 %v6321_v20 }
 0x889   :  { %v13534_v5 = vpop.eup %10248  ;;  %v5417_v9 = vmul.f32 1.442695, %v5403_v37  ;;  %v5419_v41 = vmul.f32 1.442695, %v5404_v0 }
 0x88a   :  { %5429 = vadd.xlane.f32.xlu0 %v13532_v26  ;;  %5431 = vadd.xlane.f32.xlu1 %v13534_v5  ;;  %v5696_v52 = vpop.xlane.xlu0 %5695  ;;  %v5698_v8 = vpop.xlane.xlu1 %5697 }
 0x88b   :  { %10262 = vpow2.f32 %v5417_v9  ;;  %v5705_v39 = vsub.f32 %v13307_v40, %v5696_v52  ;;  %v5706_v31 = vsub.f32 %v13310_v59, %v5698_v8 }
 0x88c   :  { %v13540_v23 = vpop.eup %10250  ;;  %10264 = vpow2.f32 %v5419_v41 }
 0x88d   :  { %v13542_v10 = vpop.eup %10252  ;;  %v5719_v20 = vmul.f32 1.442695, %v5705_v39  ;;  %v5721_v13 = vmul.f32 1.442695, %v5706_v31 }
 0x88e   :  { %14315 = vst [vmem:[#allocation33_spill] sm:$0xff] %v13542_v10  ;;  %5731 = vadd.xlane.f32.xlu0 %v13540_v23  ;;  %5733 = vadd.xlane.f32.xlu1 %v13542_v10  ;;  %v5998_v37 = vpop.xlane.xlu0 %5997  ;;  %v6000_v0 = vpop.xlane.xlu1 %5999  ;;  %v14317_v10 = vld [vmem:[#allocation31_spill] sm:$0xff] }
 0x88f   :  { %10266 = vpow2.f32 %v5719_v20  ;;  %v6007_v9 = vsub.f32 %v13315_v44, %v5998_v37  ;;  %v6008_v40 = vsub.f32 %v13318_v27, %v6000_v0 }
 0x890   :  { %v13548_v52 = vpop.eup %10254  ;;  %10268 = vpow2.f32 %v5721_v13 }
 0x891   :  { %v13550_v59 = vpop.eup %10256  ;;  %v6021_v41 = vmul.f32 1.442695, %v6007_v9  ;;  %v6023_v8 = vmul.f32 1.442695, %v6008_v40 }
 0x892   :  { %14316 = vst [vmem:[#allocation50_spill] sm:$0xff] %v13550_v59  ;;  %6033 = vadd.xlane.f32.xlu0 %v13548_v52  ;;  %6035 = vadd.xlane.f32.xlu1 %v13550_v59  ;;  %v6300_v39 = vpop.xlane.xlu0 %6299  ;;  %v6302_v31 = vpop.xlane.xlu1 %6301 }
 0x893   :  { %10270 = vpow2.f32 %v6021_v41  ;;  %v6309_v20 = vsub.f32 %v13323_v25, %v6300_v39  ;;  %v6310_v44 = vsub.f32 %v14317_v10, %v6302_v31 }
 0x894   :  { %v13556_v37 = vpop.eup %10258  ;;  %10272 = vpow2.f32 %v6023_v8 }
 0x895   :  { %14318 = vst [vmem:[#allocation28_spill] sm:$0xff] %v13556_v37  ;;  %v13558_v27 = vpop.eup %10260  ;;  %v6323_v13 = vmul.f32 1.442695, %v6309_v20  ;;  %v6325_v0 = vmul.f32 1.442695, %v6310_v44 }
 0x896   :  { %14319 = vst [vmem:[#allocation35_spill] sm:$0xff] %v13558_v27  ;;  %6335 = vadd.xlane.f32.xlu0 %v13556_v37  ;;  %6337 = vadd.xlane.f32.xlu1 %v13558_v27 }
 0x897   :  { %10274 = vpow2.f32 %v6323_v13 }
 0x898   :  { %v13562_v9 = vpop.eup %10262  ;;  %10276 = vpow2.f32 %v6325_v0 }
 0x899   :  { %14320 = vst [vmem:[#allocation48_spill] sm:$0xff] %v13562_v9  ;;  %v13564_v40 = vpop.eup %10264 }
 0x89a   :  { %14321 = vst [vmem:[#allocation45_spill] sm:$0xff] %v13564_v40  ;;  %5433 = vadd.xlane.f32.xlu0 %v13562_v9  ;;  %5435 = vadd.xlane.f32.xlu1 %v13564_v40 }
 0x89c   :  { %v13568_v25 = vpop.eup %10266 }
 0x89d   :  { %14322 = vst [vmem:[#allocation29_spill] sm:$0xff] %v13568_v25  ;;  %v13570_v10 = vpop.eup %10268 }
 0x89e   :  { %14323 = vst [vmem:[#allocation30_spill] sm:$0xff] %v13570_v10  ;;  %5735 = vadd.xlane.f32.xlu0 %v13568_v25  ;;  %5737 = vadd.xlane.f32.xlu1 %v13570_v10 }
 0x8a0   :  { %v13574_v41 = vpop.eup %10270 }
 0x8a1   :  { %14324 = vst [vmem:[#allocation43_spill] sm:$0xff] %v13574_v41  ;;  %v13576_v8 = vpop.eup %10272 }
 0x8a2   :  { %14325 = vst [vmem:[#allocation44_spill] sm:$0xff] %v13576_v8  ;;  %6037 = vadd.xlane.f32.xlu0 %v13574_v41  ;;  %6039 = vadd.xlane.f32.xlu1 %v13576_v8 }
 0x8a4   :  { %v13580_v39 = vpop.eup %10274 }
 0x8a5   :  { %14326 = vst [vmem:[#allocation51_spill] sm:$0xff] %v13580_v39  ;;  %v13582_v31 = vpop.eup %10276 }
 0x8a6   :  { %14327 = vst [vmem:[#allocation52_spill] sm:$0xff] %v13582_v31  ;;  %6339 = vadd.xlane.f32.xlu0 %v13580_v39  ;;  %6341 = vadd.xlane.f32.xlu1 %v13582_v31 }
 0x8b2   :  { %v4216_v20 = vpop.xlane.xlu1 %4215 }
 0x8b3   :  { %v4214_v44 = vpop.xlane.xlu0 %4213  ;;  %10278 = vrcp.f32 %v4216_v20 }
 0x8b4   :  { %10280 = vrcp.f32 %v4214_v44 }
 0x8b7   :  { %v4516_v13 = vpop.xlane.xlu0 %4515  ;;  %v4518_v0 = vpop.xlane.xlu1 %4517 }
 0x8b8   :  { %10282 = vrcp.f32 %v4516_v13 }
 0x8b9   :  { %10284 = vrcp.f32 %v4518_v0 }
 0x8bb   :  { %v4818_v10 = vpop.xlane.xlu0 %4817  ;;  %v4820_v41 = vpop.xlane.xlu1 %4819 }
 0x8bc   :  { %10286 = vrcp.f32 %v4818_v10 }
 0x8bd   :  { %10288 = vrcp.f32 %v4820_v41 }
 0x8bf   :  { %v5120_v8 = vpop.xlane.xlu0 %5119  ;;  %v5122_v25 = vpop.xlane.xlu1 %5121 }
 0x8c0   :  { %v10279_v40 = vpop.eup %10278  ;;  %10290 = vrcp.f32 %v5120_v8 }
 0x8c1   :  { %v10281_v9 = vpop.eup %10280  ;;  %v4238_v39 = vmul.f32 %v10279_v40, %v13340_v19  ;;  %10292 = vrcp.f32 %v5122_v25 }
 0x8c2   :  { %v4237_v31 = vmul.f32 %v10281_v9, %v13342_v60 }
 0x8c3   :  { %v8791_v20 = vpack.c.bf16 %v4238_v39, %v4238_v39  ;;  %v4218_v44 = vpop.xlane.xlu0 %4217  ;;  %v4220_v27 = vpop.xlane.xlu1 %4219 }
 0x8c4   :  { %v8790_v37 = vpack.c.bf16 %v4237_v31, %v4237_v31  ;;  %10294 = vrcp.f32 %v4218_v44 }
 0x8c5   :  { %v10283_v13 = vpop.eup %10282  ;;  %4278 = vst [vmem:[#allocation2 + $0x20] sm:$0xf] %v8791_v20  ;;  %10296 = vrcp.f32 %v4220_v27 }
 0x8c6   :  { %v10285_v10 = vpop.eup %10284  ;;  %4277 = vst [vmem:[#allocation2] sm:$0xf] %v8790_v37  ;;  %v4539_v41 = vmul.f32 %v10283_v13, %v13348_v1 }
 0x8c7   :  { %v4540_v8 = vmul.f32 %v10285_v10, %v13350_v28  ;;  %v4520_v0 = vpop.xlane.xlu0 %4519  ;;  %v4522_v59 = vpop.xlane.xlu1 %4521 }
 0x8c8   :  { %v8806_v19 = vpack.c.bf16 %v4539_v41, %v4539_v41  ;;  %10298 = vrcp.f32 %v4520_v0 }
 0x8c9   :  { %v10287_v40 = vpop.eup %10286  ;;  %v8807_v60 = vpack.c.bf16 %v4540_v8, %v4540_v8  ;;  %10300 = vrcp.f32 %v4522_v59 }
 0x8ca   :  { %v10289_v9 = vpop.eup %10288  ;;  %4579 = vst [vmem:[#allocation2 + $0x4] sm:$0xf] %v8806_v19  ;;  %v4841_v25 = vmul.f32 %v10287_v40, %v13356_v14 }
 0x8cb   :  { %4580 = vst [vmem:[#allocation2 + $0x24] sm:$0xf] %v8807_v60  ;;  %v4842_v27 = vmul.f32 %v10289_v9, %v13358_v57  ;;  %v4822_v39 = vpop.xlane.xlu0 %4821  ;;  %v4824_v37 = vpop.xlane.xlu1 %4823 }
 0x8cc   :  { %v8822_v31 = vpack.c.bf16 %v4841_v25, %v4841_v25  ;;  %10302 = vrcp.f32 %v4822_v39 }
 0x8cd   :  { %v10291_v1 = vpop.eup %10290  ;;  %v8823_v28 = vpack.c.bf16 %v4842_v27, %v4842_v27  ;;  %10304 = vrcp.f32 %v4824_v37  ;;  %v9857_v27 = vld [vmem:[#allocation3 + $0x138] sm:$0xff]   ;;  %v9858_v37 = vld [vmem:[#allocation3 + $0x170] sm:$0xff]  }
 0x8ce   :  { %v10293_v20 = vpop.eup %10292  ;;  %4881 = vst [vmem:[#allocation2 + $0x8] sm:$0xf] %v8822_v31  ;;  %v5143_v44 = vmul.f32 %v10291_v1, %v13364_v62 }
 0x8cf   :  { %4882 = vst [vmem:[#allocation2 + $0x28] sm:$0xf] %v8823_v28  ;;  %v5144_v59 = vmul.f32 %v10293_v20, %v13366_v58  ;;  %v5124_v13 = vpop.xlane.xlu0 %5123  ;;  %v5126_v10 = vpop.xlane.xlu1 %5125 }
 0x8d0   :  { %v8838_v14 = vpack.c.bf16 %v5143_v44, %v5143_v44  ;;  %10306 = vrcp.f32 %v5124_v13 }
 0x8d1   :  { %v10295_v41 = vpop.eup %10294  ;;  %v8839_v57 = vpack.c.bf16 %v5144_v59, %v5144_v59  ;;  %10308 = vrcp.f32 %v5126_v10  ;;  %v6399_v8 = vld [vmem:[#allocation2] sm:$0xff]  ;;  %v9859_v59 = vld [vmem:[#allocation3 + $0x130] sm:$0xff]   ;;  %v9860_v10 = vld [vmem:[#allocation3 + $0x168] sm:$0xff]  }
 0x8d2   :  { %v10297_v0 = vpop.eup %10296  ;;  %5183 = vst [vmem:[#allocation2 + $0xc] sm:$0xf] %v8838_v14  ;;  %v4239_v19 = vmul.f32 %v10295_v41, %v13372_v55  ;;  %v6403_v40 = vld [vmem:[#allocation2 + $0x20] sm:$0xff] }
 0x8d3   :  { %5184 = vst [vmem:[#allocation2 + $0x2c] sm:$0xf] %v8839_v57  ;;  %v4240_v60 = vmul.f32 %v10297_v0, %v13374_v63  ;;  %v4222_v62 = vpop.xlane.xlu0 %4221  ;;  %v4224_v9 = vpop.xlane.xlu1 %4223  ;;  %v8527_v25 = vcombine.low %v6399_v8, %v6403_v40  ;;  %v8528_v58 = vcombine.high %v6399_v8, %v6403_v40 }
 0x8d4   :  { %v8792_v39 = vpack.c.bf16 %v4239_v19, %v4239_v19  ;;  %10310 = vrcp.f32 %v4222_v62 }
 0x8d5   :  { %v10299_v31 = vpop.eup %10298  ;;  %v8793_v1 = vpack.c.bf16 %v4240_v60, %v4240_v60  ;;  %10312 = vrcp.f32 %v4224_v9  ;;  %7135 = vmatprep.mubr.bf16.mxu0 %v8528_v58  ;;  %v9862_v9 = vld [vmem:[#allocation3 + $0x128] sm:$0xff]  }
 0x8d6   :  { %v10301_v28 = vpop.eup %10300  ;;  %4279 = vst [vmem:[#allocation2 + $0x40] sm:$0xf] %v8792_v39  ;;  %v4541_v55 = vmul.f32 %v10299_v31, %v13380_v18  ;;  %7136 = vmatmul.mubr.bf16.vlgmr.msra.gmra.mxu0 %v8527_v25  ;;  %v9863_v25 = vld [vmem:[#allocation3 + $0x1b8] sm:$0xff]   ;;  %v9865_v39 = vld [vmem:[#allocation3 + $0x1f0] sm:$0xff]  }
 0x8d7   :  { %4280 = vst [vmem:[#allocation2 + $0x60] sm:$0xf] %v8793_v1  ;;  %v4542_v63 = vmul.f32 %v10301_v28, %v13382_v29  ;;  %9250 = vmatpush3.bf16.msra.mxu0 %v9857_v27  ;;  %v4524_v20 = vpop.xlane.xlu0 %4523  ;;  %v4526_v44 = vpop.xlane.xlu1 %4525  ;;  %v9864_v27 = vld [vmem:[#allocation3 + $0x160] sm:$0xff]  }
 0x8d8   :  { %v8808_v13 = vpack.c.bf16 %v4541_v55, %v4541_v55  ;;  %10314 = vrcp.f32 %v4524_v20  ;;  %9251 = vmatprep.subr.bf16.mxu0 %v9858_v37  ;;  %v9867_v20 = vld [vmem:[#allocation3 + $0x1b0] sm:$0xff]  }
 0x8d9   :  { %v10303_v14 = vpop.eup %10302  ;;  %v8809_v41 = vpack.c.bf16 %v4542_v63, %v4542_v63  ;;  %10316 = vrcp.f32 %v4526_v44  ;;  %v6400_v57 = vld [vmem:[#allocation2 + $0x8] sm:$0xff]  ;;  %v9866_v63 = vld [vmem:[#allocation3 + $0x120] sm:$0xff]  }
 0x8da   :  { %v10305_v8 = vpop.eup %10304  ;;  %4581 = vst [vmem:[#allocation2 + $0x44] sm:$0xf] %v8808_v13  ;;  %v4843_v18 = vmul.f32 %v10303_v14, %v13388_v42  ;;  %v6404_v0 = vld [vmem:[#allocation2 + $0x28] sm:$0xff] }
 0x8db   :  { %4582 = vst [vmem:[#allocation2 + $0x64] sm:$0xf] %v8809_v41  ;;  %v4844_v29 = vmul.f32 %v10305_v8, %v13390_v43  ;;  %9252 = vmatpush3.bf16.msra.mxu0 %v9859_v59  ;;  %v4826_v19 = vpop.xlane.xlu0 %4825  ;;  %v4828_v40 = vpop.xlane.xlu1 %4827  ;;  %v8529_v60 = vcombine.low %v6400_v57, %v6404_v0  ;;  %v8530_v62 = vcombine.high %v6400_v57, %v6404_v0  ;;  %v9869_v59 = vld [vmem:[#allocation3 + $0x1e8] sm:$0xff]  }
 0x8dc   :  { %v8824_v58 = vpack.c.bf16 %v4843_v18, %v4843_v18  ;;  %10318 = vrcp.f32 %v4826_v19  ;;  %9253 = vmatprep.subr.bf16.mxu0 %v9860_v10 }
 0x8dd   :  { %v10307_v37 = vpop.eup %10306  ;;  %v8825_v31 = vpack.c.bf16 %v4844_v29, %v4844_v29  ;;  %10320 = vrcp.f32 %v4828_v40  ;;  %7200 = vmatprep.mubr.bf16.mxu1 %v8530_v62  ;;  %v9871_v40 = vld [vmem:[#allocation3 + $0x1a8] sm:$0xff]   ;;  %v9873_v62 = vld [vmem:[#allocation3 + $0x1e0] sm:$0xff]  }
 0x8de   :  { %v10309_v42 = vpop.eup %10308  ;;  %4883 = vst [vmem:[#allocation2 + $0x48] sm:$0xf] %v8824_v58  ;;  %v5145_v43 = vmul.f32 %v10307_v37, %v13396_v56  ;;  %7201 = vmatmul.mubr.bf16.vlgmr.msra.gmra.mxu1 %v8529_v60 }
 0x8df   :  { %4884 = vst [vmem:[#allocation2 + $0x68] sm:$0xf] %v8825_v31  ;;  %v5146_v1 = vmul.f32 %v10309_v42, %v13398_v50  ;;  %9254 = vmatpush3.bf16.msra.mxu0 %v9862_v9  ;;  %9290 = vmatpush3.bf16.msra.mxu1 %v9863_v25  ;;  %v5128_v28 = vpop.xlane.xlu0 %5127  ;;  %v5130_v55 = vpop.xlane.xlu1 %5129  ;;  %v9868_v50 = vld [vmem:[#allocation3 + $0x158] sm:$0xff]   ;;  %v9875_v42 = vld [vmem:[#allocation3 + $0x1a0] sm:$0xff]  }
 0x8e0   :  { %v8840_v44 = vpack.c.bf16 %v5145_v43, %v5145_v43  ;;  %10322 = vrcp.f32 %v5128_v28  ;;  %9255 = vmatprep.subr.bf16.mxu0 %v9864_v27  ;;  %9291 = vmatprep.subr.bf16.mxu1 %v9865_v39  ;;  %v9872_v27 = vld [vmem:[#allocation3 + $0x150] sm:$0xff]  }
 0x8e1   :  { %v10311_v13 = vpop.eup %10310  ;;  %v8841_v10 = vpack.c.bf16 %v5146_v1, %v5146_v1  ;;  %10324 = vrcp.f32 %v5130_v55  ;;  %v6407_v14 = vld [vmem:[#allocation2 + $0x40] sm:$0xff]  ;;  %v9874_v55 = vld [vmem:[#allocation3 + $0x110] sm:$0xff]  }
 0x8e2   :  { %v10313_v56 = vpop.eup %10312  ;;  %5185 = vst [vmem:[#allocation2 + $0x4c] sm:$0xf] %v8840_v44  ;;  %v4241_v41 = vmul.f32 %v10311_v13, %v13404_v16  ;;  %v6411_v57 = vld [vmem:[#allocation2 + $0x60] sm:$0xff]  ;;  %v9870_v16 = vld [vmem:[#allocation3 + $0x118] sm:$0xff]   ;;  %v9876_v44 = vld [vmem:[#allocation3 + $0x148] sm:$0xff]  }
 0x8e3   :  { %5186 = vst [vmem:[#allocation2 + $0x6c] sm:$0xf] %v8841_v10  ;;  %v4242_v8 = vmul.f32 %v10313_v56, %v13406_v49  ;;  %9256 = vmatpush3.bf16.msra.mxu0 %v9866_v63  ;;  %9292 = vmatpush3.bf16.msra.mxu1 %v9867_v20  ;;  %v4226_v18 = vpop.xlane.xlu0 %4225  ;;  %v4228_v0 = vpop.xlane.xlu1 %4227  ;;  %v8536_v29 = vcombine.high %v6407_v14, %v6411_v57 }
 0x8e4   :  { %v8535_v19 = vcombine.low %v6407_v14, %v6411_v57  ;;  %v8794_v60 = vpack.c.bf16 %v4241_v41, %v4241_v41  ;;  %9257 = vmatprep.subr.bf16.mxu0 %v9868_v50  ;;  %10326 = vrcp.f32 %v4226_v18  ;;  %9293 = vmatprep.subr.bf16.mxu1 %v9869_v59  ;;  %v9879_v18 = vld [vmem:[#allocation3 + $0x198] sm:$0xff]  }
 0x8e5   :  { %v10315_v9 = vpop.eup %10314  ;;  %v8795_v25 = vpack.c.bf16 %v4242_v8, %v4242_v8  ;;  %10328 = vrcp.f32 %v4228_v0  ;;  %7143 = vmatprep.mubr.bf16.mxu0 %v8536_v29  ;;  %v9880_v29 = vld [vmem:[#allocation3 + $0x140] sm:$0xff]  }
 0x8e6   :  { %v10317_v58 = vpop.eup %10316  ;;  %4281 = vst [vmem:[#allocation2 + $0x80] sm:$0xf] %v8794_v60  ;;  %v4543_v49 = vmul.f32 %v10315_v9, %v13412_v6  ;;  %7144 = vmatmul.mubr.bf16.gmra.mxu0 %v8535_v19  ;;  %v9881_v19 = vld [vmem:[#allocation3 + $0x1d0] sm:$0xff]  }
 0x8e7   :  { %4282 = vst [vmem:[#allocation2 + $0xa0] sm:$0xf] %v8795_v25  ;;  %v4544_v39 = vmul.f32 %v10317_v58, %v13414_v35  ;;  %9258 = vmatpush3.bf16.msra.mxu0 %v9870_v16  ;;  %9294 = vmatpush3.bf16.msra.mxu1 %v9871_v40  ;;  %v4528_v37 = vpop.xlane.xlu0 %4527  ;;  %v4530_v31 = vpop.xlane.xlu1 %4529  ;;  %v9877_v35 = vld [vmem:[#allocation3 + $0x1d8] sm:$0xff]   ;;  %v9882_v58 = vld [vmem:[#allocation3 + $0x100] sm:$0xff]  }
 0x8e8   :  { %v8810_v43 = vpack.c.bf16 %v4543_v49, %v4543_v49  ;;  %9259 = vmatprep.subr.bf16.mxu0 %v9872_v27  ;;  %10330 = vrcp.f32 %v4528_v37  ;;  %9295 = vmatprep.subr.bf16.mxu1 %v9873_v62  ;;  %v9883_v49 = vld [vmem:[#allocation3 + $0x190] sm:$0xff]   ;;  %v9884_v37 = vld [vmem:[#allocation3 + $0x1c8] sm:$0xff]  }
 0x8e9   :  { %v10319_v1 = vpop.eup %10318  ;;  %v8811_v28 = vpack.c.bf16 %v4544_v39, %v4544_v39  ;;  %10332 = vrcp.f32 %v4530_v31  ;;  %v6408_v63 = vld [vmem:[#allocation2 + $0x48] sm:$0xff] }
 0x8ea   :  { %v10321_v6 = vpop.eup %10320  ;;  %4583 = vst [vmem:[#allocation2 + $0x84] sm:$0xf] %v8810_v43  ;;  %v4845_v20 = vmul.f32 %v10319_v1, %v13420_v11  ;;  %v6412_v59 = vld [vmem:[#allocation2 + $0x68] sm:$0xff] }
 0x8eb   :  { %4584 = vst [vmem:[#allocation2 + $0xa4] sm:$0xf] %v8811_v28  ;;  %v4846_v13 = vmul.f32 %v10321_v6, %v13422_v36  ;;  %9260 = vmatpush3.bf16.msra.mxu0 %v9874_v55  ;;  %9296 = vmatpush3.bf16.msra.mxu1 %v9875_v42  ;;  %v4830_v10 = vpop.xlane.xlu0 %4829  ;;  %v4832_v14 = vpop.xlane.xlu1 %4831  ;;  %v8537_v56 = vcombine.low %v6408_v63, %v6412_v59  ;;  %v9878_v11 = vld [vmem:[#allocation3 + $0x108] sm:$0xff]  }
 0x8ec   :  { %v8538_v41 = vcombine.high %v6408_v63, %v6412_v59  ;;  %v8826_v50 = vpack.c.bf16 %v4845_v20, %v4845_v20  ;;  %9261 = vmatprep.subr.bf16.mxu0 %v9876_v44  ;;  %9297 = vmatprep.subr.bf16.mxu1 %v9877_v35  ;;  %10334 = vrcp.f32 %v4830_v10  ;;  %v9885_v20 = vld [vmem:[#allocation3 + $0x188] sm:$0xff]  }
 0x8ed   :  { %v10323_v57 = vpop.eup %10322  ;;  %v8827_v8 = vpack.c.bf16 %v4846_v13, %v4846_v13  ;;  %10336 = vrcp.f32 %v4832_v14 }
 0x8ee   :  { %7208 = vmatprep.mubr.bf16.mxu1 %v8538_v41  ;;  %v10325_v0 = vpop.eup %10324  ;;  %4885 = vst [vmem:[#allocation2 + $0x88] sm:$0xf] %v8826_v50  ;;  %v5147_v36 = vmul.f32 %v10323_v57, %v13428_v4  ;;  %v9887_v41 = vld [vmem:[#allocation3 + $0x180] sm:$0xff]  }
 0x8ef   :  { %7209 = vmatmul.mubr.bf16.gmra.mxu1 %v8537_v56  ;;  %4886 = vst [vmem:[#allocation2 + $0xa8] sm:$0xf] %v8827_v8  ;;  %v5148_v40 = vmul.f32 %v10325_v0, %v13430_v38  ;;  %9262 = vmatpush3.bf16.msra.mxu0 %v9878_v11  ;;  %v5132_v60 = vpop.xlane.xlu0 %5131  ;;  %v5134_v62 = vpop.xlane.xlu1 %5133 }
 0x8f0   :  { %9298 = vmatpush3.bf16.msra.mxu1 %v9879_v18  ;;  %v8842_v9 = vpack.c.bf16 %v5147_v36, %v5147_v36  ;;  %9263 = vmatprep.subr.bf16.mxu0 %v9880_v29  ;;  %10338 = vrcp.f32 %v5132_v60 }
 0x8f1   :  { %9299 = vmatprep.subr.bf16.mxu1 %v9881_v19  ;;  %v10327_v25 = vpop.eup %10326  ;;  %v8843_v16 = vpack.c.bf16 %v5148_v40, %v5148_v40  ;;  %10340 = vrcp.f32 %v5134_v62  ;;  %v6415_v4 = vld [vmem:[#allocation2 + $0x80] sm:$0xff] }
 0x8f2   :  { %v10329_v27 = vpop.eup %10328  ;;  %5187 = vst [vmem:[#allocation2 + $0x8c] sm:$0xf] %v8842_v9  ;;  %v4243_v39 = vmul.f32 %v10327_v25, %v13436_v7  ;;  %v6419_v38 = vld [vmem:[#allocation2 + $0xa0] sm:$0xff] }
 0x8f3   :  { %5188 = vst [vmem:[#allocation2 + $0xac] sm:$0xf] %v8843_v16  ;;  %v4244_v31 = vmul.f32 %v10329_v27, %v13438_v3  ;;  %9264 = vmatpush3.bf16.msra.mxu0 %v9882_v58  ;;  %v5422_v42 = vpop.xlane.xlu0 %5421  ;;  %v5424_v43 = vpop.xlane.xlu1 %5423  ;;  %v8544_v1 = vcombine.high %v6415_v4, %v6419_v38  ;;  %v8543_v28 = vcombine.low %v6415_v4, %v6419_v38  ;;  %v9886_v3 = vld [vmem:[#allocation3 + $0x1c0] sm:$0xff]  }
 0x8f4   :  { %9300 = vmatpush3.bf16.msra.mxu1 %v9883_v49  ;;  %v8796_v55 = vpack.c.bf16 %v4243_v39, %v4243_v39  ;;  %10342 = vrcp.f32 %v5422_v42 }
 0x8f5   :  { %9301 = vmatprep.subr.bf16.mxu1 %v9884_v37  ;;  %v10331_v63 = vpop.eup %10330  ;;  %v8797_v6 = vpack.c.bf16 %v4244_v31, %v4244_v31  ;;  %10344 = vrcp.f32 %v5424_v43  ;;  %7151 = vmatprep.mubr.bf16.mxu0 %v8544_v1  ;;  %v14328_v37 = vld [vmem:[#allocation32_spill] sm:$0xff] }
 0x8f6   :  { %v10333_v7 = vpop.eup %10332  ;;  %4283 = vst [vmem:[#allocation2 + $0xc0] sm:$0xf] %v8796_v55  ;;  %v4545_v44 = vmul.f32 %v10331_v63, %v13444_v32  ;;  %7152 = vmatmul.mubr.bf16.gmra.mxu0 %v8543_v28  ;;  %v14329_v63 = vld [vmem:[#allocation49_spill] sm:$0xff] }
 0x8f7   :  { %4284 = vst [vmem:[#allocation2 + $0xe0] sm:$0xf] %v8797_v6  ;;  %v4546_v35 = vmul.f32 %v10333_v7, %v13446_v47  ;;  %v5724_v59 = vpop.xlane.xlu0 %5723  ;;  %v5726_v13 = vpop.xlane.xlu1 %5725 }
 0x8f8   :  { %9302 = vmatpush3.bf16.msra.mxu1 %v9885_v20  ;;  %v8812_v10 = vpack.c.bf16 %v4545_v44, %v4545_v44  ;;  %10346 = vrcp.f32 %v5724_v59 }
 0x8f9   :  { %9303 = vmatprep.subr.bf16.mxu1 %v9886_v3  ;;  %v10335_v14 = vpop.eup %10334  ;;  %v8813_v56 = vpack.c.bf16 %v4546_v35, %v4546_v35  ;;  %10348 = vrcp.f32 %v5726_v13  ;;  %v6416_v50 = vld [vmem:[#allocation2 + $0x88] sm:$0xff] }
 0x8fa   :  { %v10337_v57 = vpop.eup %10336  ;;  %4585 = vst [vmem:[#allocation2 + $0xc4] sm:$0xf] %v8812_v10  ;;  %v4847_v32 = vmul.f32 %v10335_v14, %v13452_v34  ;;  %v6420_v8 = vld [vmem:[#allocation2 + $0xa8] sm:$0xff] }
 0x8fb   :  { %4586 = vst [vmem:[#allocation2 + $0xe4] sm:$0xf] %v8813_v56  ;;  %v4848_v11 = vmul.f32 %v10337_v57, %v13454_v17  ;;  %v6026_v47 = vpop.xlane.xlu0 %6025  ;;  %v6028_v18 = vpop.xlane.xlu1 %6027  ;;  %v8545_v0 = vcombine.low %v6416_v50, %v6420_v8  ;;  %v8546_v36 = vcombine.high %v6416_v50, %v6420_v8 }
 0x8fc   :  { %9304 = vmatpush3.bf16.msra.mxu1 %v9887_v41  ;;  %v8828_v29 = vpack.c.bf16 %v4847_v32, %v4847_v32  ;;  %10350 = vrcp.f32 %v6026_v47 }
 0x8fd   :  { %v10339_v19 = vpop.eup %10338  ;;  %v8829_v40 = vpack.c.bf16 %v4848_v11, %v4848_v11  ;;  %10352 = vrcp.f32 %v6028_v18  ;;  %7216 = vmatprep.mubr.bf16.mxu1 %v8546_v36 }
 0x8fe   :  { %v10341_v60 = vpop.eup %10340  ;;  %4887 = vst [vmem:[#allocation2 + $0xc8] sm:$0xf] %v8828_v29  ;;  %v5149_v62 = vmul.f32 %v10339_v19, %v13460_v51  ;;  %7217 = vmatmul.mubr.bf16.gmra.mxu1 %v8545_v0 }
 0x8ff   :  { %4888 = vst [vmem:[#allocation2 + $0xe8] sm:$0xf] %v8829_v40  ;;  %v5150_v34 = vmul.f32 %v10341_v60, %v13462_v22  ;;  %v6328_v17 = vpop.xlane.xlu0 %6327  ;;  %v6330_v9 = vpop.xlane.xlu1 %6329 }
 0x900   :  { %v8844_v25 = vpack.c.bf16 %v5149_v62, %v5149_v62  ;;  %10354 = vrcp.f32 %v6328_v17 }
 0x901   :  { %v10343_v16 = vpop.eup %10342  ;;  %v8845_v58 = vpack.c.bf16 %v5150_v34, %v5150_v34  ;;  %10356 = vrcp.f32 %v6330_v9  ;;  %v6423_v49 = vld [vmem:[#allocation2 + $0xc0] sm:$0xff] }
 0x902   :  { %v10345_v4 = vpop.eup %10344  ;;  %5189 = vst [vmem:[#allocation2 + $0xcc] sm:$0xf] %v8844_v25  ;;  %v5445_v27 = vmul.f32 %v10343_v16, %v13468_v12  ;;  %v6427_v39 = vld [vmem:[#allocation2 + $0xe0] sm:$0xff] }
 0x903   :  { %5190 = vst [vmem:[#allocation2 + $0xec] sm:$0xf] %v8845_v58  ;;  %v5446_v51 = vmul.f32 %v10345_v4, %v14328_v37  ;;  %v5426_v38 = vpop.xlane.xlu0 %5425  ;;  %v5428_v31 = vpop.xlane.xlu1 %5427  ;;  %v8551_v42 = vcombine.low %v6423_v49, %v6427_v39  ;;  %v8552_v22 = vcombine.high %v6423_v49, %v6427_v39  ;;  %v14330_v12 = vld [vmem:[#allocation41_spill] sm:$0xff] }
 0x904   :  { %v8854_v43 = vpack.c.bf16 %v5445_v27, %v5445_v27  ;;  %10358 = vrcp.f32 %v5426_v38 }
 0x905   :  { %v10347_v1 = vpop.eup %10346  ;;  %v8855_v28 = vpack.c.bf16 %v5446_v51, %v5446_v51  ;;  %10360 = vrcp.f32 %v5428_v31  ;;  %7159 = vmatprep.mubr.bf16.mxu0 %v8552_v22 }
 0x906   :  { %v10349_v55 = vpop.eup %10348  ;;  %5485 = vst [vmem:[#allocation2 + $0x10] sm:$0xf] %v8854_v43  ;;  %v5747_v6 = vmul.f32 %v10347_v1, %v14329_v63  ;;  %7160 = vmatmul.mubr.bf16.gmra.mxu0 %v8551_v42 }
 0x907   :  { %5486 = vst [vmem:[#allocation2 + $0x30] sm:$0xf] %v8855_v28  ;;  %v5748_v20 = vmul.f32 %v10349_v55, %v14330_v12  ;;  %v5728_v7 = vpop.xlane.xlu0 %5727  ;;  %v5730_v44 = vpop.xlane.xlu1 %5729 }
 0x908   :  { %v8870_v3 = vpack.c.bf16 %v5747_v6, %v5747_v6  ;;  %10362 = vrcp.f32 %v5728_v7 }
 0x909   :  { %v10351_v35 = vpop.eup %10350  ;;  %v8871_v59 = vpack.c.bf16 %v5748_v20, %v5748_v20  ;;  %10364 = vrcp.f32 %v5730_v44  ;;  %v6424_v13 = vld [vmem:[#allocation2 + $0xc8] sm:$0xff] }
 0x90a   :  { %v10353_v10 = vpop.eup %10352  ;;  %5787 = vst [vmem:[#allocation2 + $0x14] sm:$0xf] %v8870_v3  ;;  %v6049_v14 = vmul.f32 %v10351_v35, %v13484_v21  ;;  %v6428_v56 = vld [vmem:[#allocation2 + $0xe8] sm:$0xff] }
 0x90b   :  { %5788 = vst [vmem:[#allocation2 + $0x34] sm:$0xf] %v8871_v59  ;;  %v6050_v41 = vmul.f32 %v10353_v10, %v13486_v15  ;;  %v6030_v50 = vpop.xlane.xlu0 %6029  ;;  %v6032_v57 = vpop.xlane.xlu1 %6031  ;;  %v8553_v32 = vcombine.low %v6424_v13, %v6428_v56  ;;  %v8554_v8 = vcombine.high %v6424_v13, %v6428_v56 }
 0x90c   :  { %v8886_v11 = vpack.c.bf16 %v6049_v14, %v6049_v14  ;;  %10366 = vrcp.f32 %v6030_v50 }
 0x90d   :  { %v10355_v47 = vpop.eup %10354  ;;  %v8887_v18 = vpack.c.bf16 %v6050_v41, %v6050_v41  ;;  %10368 = vrcp.f32 %v6032_v57  ;;  %7224 = vmatprep.mubr.bf16.mxu1 %v8554_v8 }
 0x90e   :  { %v10357_v0 = vpop.eup %10356  ;;  %6089 = vst [vmem:[#allocation2 + $0x18] sm:$0xf] %v8886_v11  ;;  %v6351_v36 = vmul.f32 %v10355_v47, %v13492_v45  ;;  %7225 = vmatmul.mubr.bf16.gmra.mxu1 %v8553_v32  ;;  %v9888_v11 = vld [vmem:[#allocation13 + $0x8] sm:$0xff]  }
 0x90f   :  { %6090 = vst [vmem:[#allocation2 + $0x38] sm:$0xf] %v8887_v18  ;;  %v6352_v21 = vmul.f32 %v10357_v0, %v13494_v33  ;;  %v6332_v29 = vpop.xlane.xlu0 %6331  ;;  %v6334_v15 = vpop.xlane.xlu1 %6333  ;;  %9557 = vmatprep.subr.bf16.mxu1 %v9888_v11 }
 0x910   :  { %v8902_v19 = vpack.c.bf16 %v6351_v36, %v6351_v36  ;;  %10370 = vrcp.f32 %v6332_v29 }
 0x911   :  { %v10359_v40 = vpop.eup %10358  ;;  %v8903_v60 = vpack.c.bf16 %v6352_v21, %v6352_v21  ;;  %10372 = vrcp.f32 %v6334_v15  ;;  %v6401_v62 = vld [vmem:[#allocation2 + $0x10] sm:$0xff] }
 0x912   :  { %v10361_v34 = vpop.eup %10360  ;;  %6391 = vst [vmem:[#allocation2 + $0x1c] sm:$0xf] %v8902_v19  ;;  %v5447_v17 = vmul.f32 %v10359_v40, %v13500_v54  ;;  %v6405_v9 = vld [vmem:[#allocation2 + $0x30] sm:$0xff] }
 0x913   :  { %6392 = vst [vmem:[#allocation2 + $0x3c] sm:$0xf] %v8903_v60  ;;  %v5448_v45 = vmul.f32 %v10361_v34, %v13502_v53  ;;  %v5430_v25 = vpop.xlane.xlu0 %5429  ;;  %v5432_v16 = vpop.xlane.xlu1 %5431  ;;  %v8531_v58 = vcombine.low %v6401_v62, %v6405_v9  ;;  %v8532_v33 = vcombine.high %v6401_v62, %v6405_v9  ;;  %v9889_v19 = vld [vmem:[#allocation13] sm:$0xff]  }
 0x914   :  { %v8856_v49 = vpack.c.bf16 %v5447_v17, %v5447_v17  ;;  %10374 = vrcp.f32 %v5430_v25 }
 0x915   :  { %v10363_v4 = vpop.eup %10362  ;;  %v8857_v27 = vpack.c.bf16 %v5448_v45, %v5448_v45  ;;  %10376 = vrcp.f32 %v5432_v16  ;;  %7265 = vmatprep.mubr.bf16.mxu0 %v8532_v33  ;;  %v14332_v45 = vld [vmem:[#allocation50_spill] sm:$0xff] }
 0x916   :  { %v10365_v39 = vpop.eup %10364  ;;  %5487 = vst [vmem:[#allocation2 + $0x50] sm:$0xf] %v8856_v49  ;;  %v5749_v37 = vmul.f32 %v10363_v4, %v13508_v30  ;;  %7266 = vmatmul.mubr.bf16.vlgmr.msra.gmra.mxu0 %v8531_v58 }
 0x917   :  { %5488 = vst [vmem:[#allocation2 + $0x70] sm:$0xf] %v8857_v27  ;;  %v5750_v54 = vmul.f32 %v10365_v39, %v13510_v46  ;;  %v5732_v51 = vpop.xlane.xlu0 %5731  ;;  %v5734_v53 = vpop.xlane.xlu1 %5733 }
 0x918   :  { %v8872_v38 = vpack.c.bf16 %v5749_v37, %v5749_v37  ;;  %10378 = vrcp.f32 %v5732_v51 }
 0x919   :  { %v10367_v31 = vpop.eup %10366  ;;  %v8873_v42 = vpack.c.bf16 %v5750_v54, %v5750_v54  ;;  %10380 = vrcp.f32 %v5734_v53  ;;  %v6402_v22 = vld [vmem:[#allocation2 + $0x18] sm:$0xff] }
 0x91a   :  { %v10369_v43 = vpop.eup %10368  ;;  %5789 = vst [vmem:[#allocation2 + $0x54] sm:$0xf] %v8872_v38  ;;  %v6051_v1 = vmul.f32 %v10367_v31, %v13516_v48  ;;  %v6406_v28 = vld [vmem:[#allocation2 + $0x38] sm:$0xff] }
 0x91b   :  { %5790 = vst [vmem:[#allocation2 + $0x74] sm:$0xf] %v8873_v42  ;;  %v6052_v30 = vmul.f32 %v10369_v43, %v13518_v24  ;;  %v6034_v55 = vpop.xlane.xlu0 %6033  ;;  %v6036_v63 = vpop.xlane.xlu1 %6035  ;;  %v8533_v6 = vcombine.low %v6402_v22, %v6406_v28  ;;  %v8534_v46 = vcombine.high %v6402_v22, %v6406_v28  ;;  %v14333_v54 = vld [vmem:[#allocation28_spill] sm:$0xff] }
 0x91c   :  { %v8888_v12 = vpack.c.bf16 %v6051_v1, %v6051_v1  ;;  %10382 = vrcp.f32 %v6034_v55 }
 0x91d   :  { %v10371_v20 = vpop.eup %10370  ;;  %v8889_v7 = vpack.c.bf16 %v6052_v30, %v6052_v30  ;;  %10384 = vrcp.f32 %v6036_v63  ;;  %7330 = vmatprep.mubr.bf16.mxu1 %v8534_v46  ;;  %v14335_v30 = vld [vmem:[#allocation48_spill] sm:$0xff] }
 0x91e   :  { %v10373_v44 = vpop.eup %10372  ;;  %6091 = vst [vmem:[#allocation2 + $0x58] sm:$0xf] %v8888_v12  ;;  %v6353_v3 = vmul.f32 %v10371_v20, %v13524_v61  ;;  %7331 = vmatmul.mubr.bf16.vlgmr.msra.gmra.mxu1 %v8533_v6  ;;  %v14336_v6 = vld [vmem:[#allocation45_spill] sm:$0xff] }
 0x91f   :  { %6092 = vst [vmem:[#allocation2 + $0x78] sm:$0xf] %v8889_v7  ;;  %v6354_v48 = vmul.f32 %v10373_v44, %v13526_v2  ;;  %v6336_v35 = vpop.xlane.xlu0 %6335  ;;  %v6338_v24 = vpop.xlane.xlu1 %6337  ;;  %9558 = vmatpush3.bf16.msra.mxu1 %v9888_v11 }
 0x920   :  { %v8904_v59 = vpack.c.bf16 %v6353_v3, %v6353_v3  ;;  %10386 = vrcp.f32 %v6336_v35  ;;  %9559 = vmatprep.subr.bf16.mxu1 %v9889_v19  ;;  %v14337_v35 = vld [vmem:[#allocation29_spill] sm:$0xff] }
 0x921   :  { %v10375_v13 = vpop.eup %10374  ;;  %v8905_v10 = vpack.c.bf16 %v6354_v48, %v6354_v48  ;;  %10388 = vrcp.f32 %v6338_v24  ;;  %v6409_v14 = vld [vmem:[#allocation2 + $0x50] sm:$0xff] }
 0x922   :  { %v10377_v56 = vpop.eup %10376  ;;  %6393 = vst [vmem:[#allocation2 + $0x5c] sm:$0xf] %v8904_v59  ;;  %v5449_v41 = vmul.f32 %v10375_v13, %v13532_v26  ;;  %v6413_v50 = vld [vmem:[#allocation2 + $0x70] sm:$0xff] }
 0x923   :  { %6394 = vst [vmem:[#allocation2 + $0x7c] sm:$0xf] %v8905_v10  ;;  %v5450_v61 = vmul.f32 %v10377_v56, %v13534_v5  ;;  %v5434_v57 = vpop.xlane.xlu0 %5433  ;;  %v5436_v32 = vpop.xlane.xlu1 %5435  ;;  %v8539_v8 = vcombine.low %v6409_v14, %v6413_v50  ;;  %v8540_v2 = vcombine.high %v6409_v14, %v6413_v50  ;;  %v14331_v5 = vld [vmem:[#allocation33_spill] sm:$0xff]  ;;  %9560 = vmatpush3.bf16.msra.mxu1 %v9889_v19  ;;  %v14338_v59 = vld [vmem:[#allocation30_spill] sm:$0xff] }
 0x924   :  { %v8858_v47 = vpack.c.bf16 %v5449_v41, %v5449_v41  ;;  %10390 = vrcp.f32 %v5434_v57 }
 0x925   :  { %v10379_v18 = vpop.eup %10378  ;;  %v8859_v0 = vpack.c.bf16 %v5450_v61, %v5450_v61  ;;  %10392 = vrcp.f32 %v5436_v32  ;;  %7273 = vmatprep.mubr.bf16.mxu0 %v8540_v2  ;;  %v14339_v61 = vld [vmem:[#allocation43_spill] sm:$0xff] }
 0x926   :  { %v10381_v36 = vpop.eup %10380  ;;  %5489 = vst [vmem:[#allocation2 + $0x90] sm:$0xf] %v8858_v47  ;;  %v5751_v26 = vmul.f32 %v10379_v18, %v13540_v23  ;;  %7274 = vmatmul.mubr.bf16.gmra.mxu0 %v8539_v8  ;;  %v14340_v8 = vld [vmem:[#allocation44_spill] sm:$0xff] }
 0x927   :  { %5490 = vst [vmem:[#allocation2 + $0xb0] sm:$0xf] %v8859_v0  ;;  %v5752_v21 = vmul.f32 %v10381_v36, %v14331_v5  ;;  %v5736_v29 = vpop.xlane.xlu0 %5735  ;;  %v5738_v15 = vpop.xlane.xlu1 %5737  ;;  %v14341_v5 = vld [vmem:[#allocation51_spill] sm:$0xff] }
 0x928   :  { %v8874_v40 = vpack.c.bf16 %v5751_v26, %v5751_v26  ;;  %10394 = vrcp.f32 %v5736_v29  ;;  %v14342_v29 = vld [vmem:[#allocation52_spill] sm:$0xff] }
 0x929   :  { %v10383_v60 = vpop.eup %10382  ;;  %v8875_v62 = vpack.c.bf16 %v5752_v21, %v5752_v21  ;;  %10396 = vrcp.f32 %v5738_v15  ;;  %v6410_v34 = vld [vmem:[#allocation2 + $0x58] sm:$0xff] }
 0x92a   :  { %v10385_v17 = vpop.eup %10384  ;;  %5791 = vst [vmem:[#allocation2 + $0x94] sm:$0xf] %v8874_v40  ;;  %v6053_v9 = vmul.f32 %v10383_v60, %v13548_v52  ;;  %v6414_v23 = vld [vmem:[#allocation2 + $0x78] sm:$0xff] }
 0x92b   :  { %5792 = vst [vmem:[#allocation2 + $0xb4] sm:$0xf] %v8875_v62  ;;  %v6054_v25 = vmul.f32 %v10385_v17, %v14332_v45  ;;  %v6038_v16 = vpop.xlane.xlu0 %6037  ;;  %v6040_v58 = vpop.xlane.xlu1 %6039  ;;  %v8541_v33 = vcombine.low %v6410_v34, %v6414_v23  ;;  %v8542_v49 = vcombine.high %v6410_v34, %v6414_v23  ;;  %v14334_v52 = vld [vmem:[#allocation35_spill] sm:$0xff]  ;;  %v13658_v23 = vld [vmem:[%s14343_s24 + $0x8] sm:$0xff] }
 0x92c   :  { %v8890_v4 = vpack.c.bf16 %v6053_v9, %v6053_v9  ;;  %10398 = vrcp.f32 %v6038_v16  ;;  %v13653_v9 = vld [vmem:[%s14343_s24] sm:$0xff] }
 0x92d   :  { %v10387_v27 = vpop.eup %10386  ;;  %v8891_v39 = vpack.c.bf16 %v6054_v25, %v6054_v25  ;;  %10400 = vrcp.f32 %v6040_v58  ;;  %7338 = vmatprep.mubr.bf16.mxu1 %v8542_v49  ;;  %v13666_v49 = vld [vmem:[%s14343_s24 + $0x10] sm:$0xff] }
 0x92e   :  { %v10389_v37 = vpop.eup %10388  ;;  %6093 = vst [vmem:[#allocation2 + $0x98] sm:$0xf] %v8890_v4  ;;  %v6355_v51 = vmul.f32 %v10387_v27, %v14333_v54  ;;  %7339 = vmatmul.mubr.bf16.gmra.mxu1 %v8541_v33  ;;  %v7513_v33 = vpack.c.bf16 %v13658_v23, %v13653_v9  ;;  %v13671_v4 = vld [vmem:[%s14343_s24 + $0x18] sm:$0xff]  ;;  %v13676_v27 = vld [vmem:[%s14343_s24 + $0x20] sm:$0xff] }
 0x92f   :  { %6094 = vst [vmem:[#allocation2 + $0xb8] sm:$0xf] %v8891_v39  ;;  %v6356_v53 = vmul.f32 %v10389_v37, %v14334_v52  ;;  %v6340_v38 = vpop.xlane.xlu0 %6339  ;;  %v6342_v31 = vpop.xlane.xlu1 %6341  ;;  %v13681_v39 = vld [vmem:[%s14343_s24 + $0x28] sm:$0xff]  ;;  %v7514_v37 = vpack.c.bf16 %v13671_v4, %v13666_v49  ;;  %v13697_v52 = vld [vmem:[%s14343_s24 + $0x38] sm:$0xff] }
 0x930   :  { %v8906_v42 = vpack.c.bf16 %v6355_v51, %v6355_v51  ;;  %10402 = vrcp.f32 %v6340_v38  ;;  %v7515_v54 = vpack.c.bf16 %v13681_v39, %v13676_v27  ;;  %v13692_v51 = vld [vmem:[%s14343_s24 + $0x30] sm:$0xff]  ;;  %v9890_v38 = vld [vmem:[%s13986_s11 + $0x8] sm:$0xff]  }
 0x931   :  { %v10391_v22 = vpop.eup %10390  ;;  %v8907_v43 = vpack.c.bf16 %v6356_v53, %v6356_v53  ;;  %10404 = vrcp.f32 %v6342_v31  ;;  %v6417_v1 = vld [vmem:[#allocation2 + $0x90] sm:$0xff]  ;;  %v7516_v53 = vpack.c.bf16 %v13697_v52, %v13692_v51  ;;  %v9891_v31 = vld [vmem:[%s13986_s11] sm:$0xff]   ;;  %9545 = vmatprep.subr.bf16.mxu0 %v9890_v38  ;;  %s10673_s11 = smov 32  }
 0x932   :  { %v10393_v28 = vpop.eup %10392  ;;  %6395 = vst [vmem:[#allocation2 + $0x9c] sm:$0xf] %v8906_v42  ;;  %v5451_v55 = vmul.f32 %v10391_v22, %v14335_v30  ;;  %v6421_v63 = vld [vmem:[#allocation2 + $0xb0] sm:$0xff]  ;;  %9546 = vmatpush3.bf16.msra.mxu0 %v9890_v38 }
 0x933   :  { %6396 = vst [vmem:[#allocation2 + $0xbc] sm:$0xf] %v8907_v43  ;;  %v5452_v46 = vmul.f32 %v10393_v28, %v14336_v6  ;;  %v8547_v12 = vcombine.low %v6417_v1, %v6421_v63  ;;  %v8548_v20 = vcombine.high %v6417_v1, %v6421_v63  ;;  %9547 = vmatprep.subr.bf16.mxu0 %v9891_v31 }
 0x934   :  { %v8860_v7 = vpack.c.bf16 %v5451_v55, %v5451_v55 }
 0x935   :  { %v10395_v44 = vpop.eup %10394  ;;  %v8861_v3 = vpack.c.bf16 %v5452_v46, %v5452_v46  ;;  %7281 = vmatprep.mubr.bf16.mxu0 %v8548_v20 }
 0x936   :  { %v10397_v48 = vpop.eup %10396  ;;  %5491 = vst [vmem:[#allocation2 + $0xd0] sm:$0xf] %v8860_v7  ;;  %v5753_v24 = vmul.f32 %v10395_v44, %v14337_v35  ;;  %7282 = vmatmul.mubr.bf16.gmra.mxu0 %v8547_v12 }
 0x937   :  { %5492 = vst [vmem:[#allocation2 + $0xf0] sm:$0xf] %v8861_v3  ;;  %v5754_v13 = vmul.f32 %v10397_v48, %v14338_v59  ;;  %9548 = vmatpush3.bf16.msra.mxu0 %v9891_v31 }
 0x938   :  { %v8876_v10 = vpack.c.bf16 %v5753_v24, %v5753_v24 }
 0x939   :  { %v10399_v14 = vpop.eup %10398  ;;  %v8877_v56 = vpack.c.bf16 %v5754_v13, %v5754_v13  ;;  %v6418_v41 = vld [vmem:[#allocation2 + $0x98] sm:$0xff] }
 0x93a   :  { %v10401_v50 = vpop.eup %10400  ;;  %5793 = vst [vmem:[#allocation2 + $0xd4] sm:$0xf] %v8876_v10  ;;  %v6055_v57 = vmul.f32 %v10399_v14, %v14339_v61  ;;  %v6422_v32 = vld [vmem:[#allocation2 + $0xb8] sm:$0xff] }
 0x93b   :  { %5794 = vst [vmem:[#allocation2 + $0xf4] sm:$0xf] %v8877_v56  ;;  %v6056_v2 = vmul.f32 %v10401_v50, %v14340_v8  ;;  %v8549_v11 = vcombine.low %v6418_v41, %v6422_v32  ;;  %v8550_v47 = vcombine.high %v6418_v41, %v6422_v32 }
 0x93c   :  { %v8892_v18 = vpack.c.bf16 %v6055_v57, %v6055_v57 }
 0x93d   :  { %v10403_v0 = vpop.eup %10402  ;;  %v8893_v36 = vpack.c.bf16 %v6056_v2, %v6056_v2  ;;  %7346 = vmatprep.mubr.bf16.mxu1 %v8550_v47 }
 0x93e   :  { %v10405_v26 = vpop.eup %10404  ;;  %6095 = vst [vmem:[#allocation2 + $0xd8] sm:$0xf] %v8892_v18  ;;  %v6357_v21 = vmul.f32 %v10403_v0, %v14341_v5  ;;  %7347 = vmatmul.mubr.bf16.gmra.mxu1 %v8549_v11 }
 0x93f   :  { %6096 = vst [vmem:[#allocation2 + $0xf8] sm:$0xf] %v8893_v36  ;;  %v6358_v15 = vmul.f32 %v10405_v26, %v14342_v29 }
 0x940   :  { %v8908_v19 = vpack.c.bf16 %v6357_v21, %v6357_v21 }
 0x941   :  { %v8909_v40 = vpack.c.bf16 %v6358_v15, %v6358_v15  ;;  %v6425_v60 = vld [vmem:[#allocation2 + $0xd0] sm:$0xff] }
 0x942   :  { %6397 = vst [vmem:[#allocation2 + $0xdc] sm:$0xf] %v8908_v19  ;;  %v6429_v62 = vld [vmem:[#allocation2 + $0xf0] sm:$0xff] }
 0x943   :  { %6398 = vst [vmem:[#allocation2 + $0xfc] sm:$0xf] %v8909_v40  ;;  %v8555_v34 = vcombine.low %v6425_v60, %v6429_v62  ;;  %v8556_v17 = vcombine.high %v6425_v60, %v6429_v62 }
 0x945   :  { %7289 = vmatprep.mubr.bf16.mxu0 %v8556_v17 }
 0x946   :  { %7290 = vmatmul.mubr.bf16.gmra.mxu0 %v8555_v34 }
 0x949   :  { %v6426_v45 = vld [vmem:[#allocation2 + $0xd8] sm:$0xff] }
 0x94a   :  { %v6430_v25 = vld [vmem:[#allocation2 + $0xf8] sm:$0xff] }
 0x94b   :  { %v8557_v16 = vcombine.low %v6426_v45, %v6430_v25  ;;  %v8558_v58 = vcombine.high %v6426_v45, %v6430_v25  ;;  %v13742_v25 = vld [vmem:[#allocation10] ss:$0 sm:$0xff] }
 0x94d   :  { %7354 = vmatprep.mubr.bf16.mxu1 %v8558_v58 }
 0x94e   :  { %7355 = vmatmul.mubr.bf16.gmra.mxu1 %v8557_v16 }
 0x94f   :  { %9561 = vmatprep.mubr.msk.bf16.mxu1 %vm3841_vm3, %v7513_v33 }
 0x956   :  { %9562 = vmatmul.mubr.msk.bf16.vlgmr.msra.gmra.mxu1 %vm3841_vm3, %v7514_v37  ;;  %v13744_v37 = vld [vmem:[#allocation12] ss:$0 sm:$0xff] }
 0x957   :  { %9565 = vmatprep.mubr.msk.bf16.mxu1 %vm3841_vm3, %v7515_v54 }
 0x95e   :  { %9566 = vmatmul.mubr.msk.bf16.gmra.mxu1 %vm3841_vm3, %v7516_v53 }
 0x996   :  { %v9185_v42 = vpop.f32.mrf.mxu0 }
 0x998   :  { %v9186_v22 = vpop.f32.mrf.mxu0 }
 0x999   :  { %v9187_v5 = vadd.f32 %v9186_v22, %v9185_v42 }
 0x99a   :  { %v9188_v43 = vpop.f32.mrf.mxu0 }
 0x99c   :  { %v9189_v28 = vpop.f32.mrf.mxu0 }
 0x99d   :  { %v9190_v62 = vadd.f32 %v9189_v28, %v9188_v43 }
 0x99e   :  { %v9225_v1 = vpop.f32.mrf.mxu1 }
 0x9a0   :  { %v9226_v30 = vpop.f32.mrf.mxu1 }
 0x9a1   :  { %v9227_v36 = vadd.f32 %v9226_v30, %v9225_v1 }
 0x9a2   :  { %v9228_v63 = vpop.f32.mrf.mxu1 }
 0x9a3   :  { %v7203_v19 = vadd.f32 %v9227_v36, %v9187_v5 }
 0x9a4   :  { %v9229_v46 = vpop.f32.mrf.mxu1 }
 0x9a5   :  { %v9230_v40 = vadd.f32 %v9229_v46, %v9228_v63 }
 0x9a6   :  { %v9191_v55 = vpop.f32.mrf.mxu0 }
 0x9a7   :  { %v7206_v58 = vadd.f32 %v9230_v40, %v9190_v62  ;;  %v14346_v62 = vld [vmem:[#allocation53_spill] sm:$0xff] }
 0x9a8   :  { %v9192_v6 = vpop.f32.mrf.mxu0 }
 0x9aa   :  { %v13708_v12 = vpop.f32.mrf.mxu0 }
 0x9ac   :  { %v9195_v7 = vpop.f32.mrf.mxu0 }
 0x9af   :  { %v9231_v20 = vpop.f32.mrf.mxu1 }
 0x9b1   :  { %v9232_v44 = vpop.f32.mrf.mxu1 }
 0x9b2   :  { %v9233_v63 = vadd.f32 %v9232_v44, %v9231_v20 }
 0x9b3   :  { %v9234_v48 = vpop.f32.mrf.mxu1 }
 0x9b5   :  { %v9235_v24 = vpop.f32.mrf.mxu1 }
 0x9b6   :  { %v13710_v3 = vpop.f32.mrf.mxu0 }
 0x9b8   :  { %v13712_v35 = vpop.f32.mrf.mxu0 }
 0x9ba   :  { %v13714_v59 = vpop.f32.mrf.mxu0 }
 0x9bc   :  { %v13718_v10 = vpop.f32.mrf.mxu0 }
 0x9be   :  { %v13716_v13 = vpop.f32.mrf.mxu1 }
 0x9c0   :  { %v13720_v14 = vpop.f32.mrf.mxu1 }
 0x9c2   :  { %v13724_v41 = vpop.f32.mrf.mxu1 }
 0x9c4   :  { %v13728_v61 = vpop.f32.mrf.mxu1 }
 0x9c6   :  { %v13722_v56 = vpop.f32.mrf.mxu0 }
 0x9c8   :  { %v13726_v50 = vpop.f32.mrf.mxu0 }
 0x9ca   :  { %v13730_v57 = vpop.f32.mrf.mxu0 }
 0x9cc   :  { %v13734_v8 = vpop.f32.mrf.mxu0 }
 0x9ce   :  { %v13732_v32 = vpop.f32.mrf.mxu1 }
 0x9d0   :  { %v13736_v2 = vpop.f32.mrf.mxu1 }
 0x9d2   :  { %v13738_v47 = vpop.f32.mrf.mxu1 }
 0x9d4   :  { %v13740_v26 = vpop.f32.mrf.mxu1 }
 0x9d6   :  { %v9265_v11 = vpop.f32.mrf.mxu0 }
 0x9d8   :  { %v9266_v18 = vpop.f32.mrf.mxu0 }
 0x9d9   :  { %v9267_v21 = vadd.f32 %v9266_v18, %v9265_v11  ;;  %v9193_v18 = vadd.f32 %v9192_v6, %v9191_v55 }
 0x9da   :  { %v9268_v0 = vpop.f32.mrf.mxu0 }
 0x9db   :  { %v7268_v34 = vadd.f32 %v9267_v21, %v7203_v19  ;;  %v14344_v19 = vld [vmem:[#allocation54_spill] sm:$0xff] }
 0x9dc   :  { %v9269_v29 = vpop.f32.mrf.mxu0  ;;  %v14345_v40 = vmax.f32 %v14344_v19, 0.0  ;;  %v14350_v19 = vld [vmem:[#allocation34_spill] sm:$0xff] }
 0x9dd   :  { %v9270_v17 = vadd.f32 %v9269_v29, %v9268_v0  ;;  %v7211_v29 = vadd.f32 %v9233_v63, %v9193_v18  ;;  %v9199_v63 = vadd.f32 %v13712_v35, %v13710_v3 }
 0x9de   :  { %v9305_v15 = vpop.f32.mrf.mxu1 }
 0x9df   :  { %v7271_v53 = vadd.f32 %v9270_v17, %v7206_v58 }
 0x9e0   :  { %v9306_v60 = vpop.f32.mrf.mxu1 }
 0x9e1   :  { %v9307_v45 = vadd.f32 %v9306_v60, %v9305_v15  ;;  %v9236_v15 = vadd.f32 %v9235_v24, %v9234_v48 }
 0x9e2   :  { %v9308_v16 = vpop.f32.mrf.mxu1 }
 0x9e3   :  { %v7333_v33 = vadd.f32 %v9307_v45, %v7268_v34  ;;  %v14347_v34 = vmax.f32 %v14346_v62, 0.0  ;;  %v9196_v45 = vadd.f32 %v9195_v7, %v13708_v12 }
 0x9e4   :  { %v9309_v54 = vpop.f32.mrf.mxu1 }
 0x9e5   :  { %v7370_v38 = vmul.f32 %v13742_v25, %v7333_v33  ;;  %v9310_v31 = vadd.f32 %v9309_v54, %v9308_v16  ;;  %v7214_v6 = vadd.f32 %v9236_v15, %v9196_v45 }
 0x9e6   :  { %v9271_v42 = vpop.f32.mrf.mxu0 }
 0x9e7   :  { %v7385_v22 = vadd.f32 %v13744_v37, %v7370_v38  ;;  %v7336_v1 = vadd.f32 %v9310_v31, %v7271_v53 }
 0x9e8   :  { %v9272_v43 = vpop.f32.mrf.mxu0 }
 0x9e9   :  { %v7371_v28 = vmul.f32 %v13742_v25, %v7336_v1  ;;  %v7393_v46 = vmax.f32 %v7385_v22, 0.0  ;;  %v9273_v36 = vadd.f32 %v9272_v43, %v9271_v42  ;;  %v9239_v43 = vadd.f32 %v13720_v14, %v13716_v13 }
 0x9ea   :  { %v9274_v30 = vpop.f32.mrf.mxu0  ;;  %v9202_v14 = vadd.f32 %v13718_v10, %v13714_v59 }
 0x9eb   :  { %v7386_v11 = vadd.f32 %v13744_v37, %v7371_v28  ;;  %v7401_v60 = vadd.f32 %v7393_v46, %v14345_v40  ;;  %v7276_v20 = vadd.f32 %v9273_v36, %v7211_v29  ;;  %v7219_v36 = vadd.f32 %v9239_v43, %v9199_v63 }
 0x9ec   :  { %v9275_v5 = vpop.f32.mrf.mxu0  ;;  %v14351_v40 = vmax.f32 %v14350_v19, 0.0 }
 0x9ed   :  { %v7394_v0 = vmax.f32 %v7386_v11, 0.0  ;;  %v9276_v44 = vadd.f32 %v9275_v5, %v9274_v30  ;;  %v9242_v5 = vadd.f32 %v13728_v61, %v13724_v41 }
 0x9ee   :  { %v9311_v21 = vpop.f32.mrf.mxu1 }
 0x9ef   :  { %v7402_v17 = vadd.f32 %v7394_v0, %v14347_v34  ;;  %v7279_v48 = vadd.f32 %v9276_v44, %v7214_v6  ;;  %v7222_v45 = vadd.f32 %v9242_v5, %v9202_v14 }
 0x9f0   :  { %v9312_v16 = vpop.f32.mrf.mxu1 }
 0x9f1   :  { %v9313_v58 = vadd.f32 %v9312_v16, %v9311_v21  ;;  %v7409_v33 = vpack.c.bf16 %v7402_v17, %v7401_v60  ;;  %v14348_v21 = vld [vmem:[#allocation47_spill] sm:$0xff] }
 0x9f2   :  { %v9314_v55 = vpop.f32.mrf.mxu1  ;;  %v14349_v29 = vmax.f32 %v14348_v21, 0.0 }
 0x9f3   :  { %v7341_v54 = vadd.f32 %v9313_v58, %v7276_v20  ;;  %9549 = vmatprep.mubr.msk.bf16.mxu0 %vm3841_vm3, %v7409_v33 }
 0x9f4   :  { %v9315_v53 = vpop.f32.mrf.mxu1 }
 0x9f5   :  { %v7372_v24 = vmul.f32 %v13742_v25, %v7341_v54  ;;  %v9316_v38 = vadd.f32 %v9315_v53, %v9314_v55  ;;  %v9245_v54 = vadd.f32 %v13736_v2, %v13732_v32  ;;  %v9208_v2 = vadd.f32 %v13734_v8, %v13730_v57  ;;  %v8632_v57 = vld [vmem:[#allocation16] ss:$0 sm:$0xff] }
 0x9f6   :  { %v9277_v31 = vpop.f32.mrf.mxu0 }
 0x9f7   :  { %v7387_v42 = vadd.f32 %v13744_v37, %v7372_v24  ;;  %v7344_v22 = vadd.f32 %v9316_v38, %v7279_v48  ;;  %v9205_v24 = vadd.f32 %v13726_v50, %v13722_v56 }
 0x9f8   :  { %v9278_v12 = vpop.f32.mrf.mxu0 }
 0x9f9   :  { %v7373_v7 = vmul.f32 %v13742_v25, %v7344_v22  ;;  %v7395_v28 = vmax.f32 %v7387_v42, 0.0  ;;  %v9279_v11 = vadd.f32 %v9278_v12, %v9277_v31  ;;  %v7227_v12 = vadd.f32 %v9245_v54, %v9205_v24  ;;  %v8625_v24 = vld [vmem:[#allocation15] ss:$0 sm:$0xff] }
 0x9fa   :  { %v9280_v1 = vpop.f32.mrf.mxu0 }
 0x9fb   :  { %v7388_v30 = vadd.f32 %v13744_v37, %v7373_v7  ;;  %v7403_v15 = vadd.f32 %v7395_v28, %v14349_v29  ;;  %v7284_v3 = vadd.f32 %v9279_v11, %v7219_v36  ;;  %v9248_v7 = vadd.f32 %v13740_v26, %v13738_v47 }
 0x9fc   :  { %v9281_v18 = vpop.f32.mrf.mxu0 }
 0x9fd   :  { %v7396_v46 = vmax.f32 %v7388_v30, 0.0  ;;  %v9282_v35 = vadd.f32 %v9281_v18, %v9280_v1  ;;  %v14352_v1 = vld [vmem:[#allocation36_spill] sm:$0xff]  ;;  %v14354_v30 = vld [vmem:[#allocation25_spill] sm:$0xff]  ;;  %v7230_v36 = vadd.f32 %v9248_v7, %v9208_v2 }
 0x9fe   :  { %v9317_v0 = vpop.f32.mrf.mxu1  ;;  %v14353_v43 = vmax.f32 %v14352_v1, 0.0  ;;  %v14355_v63 = vmax.f32 %v14354_v30, 0.0 }
 0x9ff   :  { %v7404_v13 = vadd.f32 %v7396_v46, %v14351_v40  ;;  %v7287_v61 = vadd.f32 %v9282_v35, %v7222_v45 }
 0xa00   :  { %v9318_v60 = vpop.f32.mrf.mxu1 }
 0xa01   :  { %v7410_v62 = vpack.c.bf16 %v7404_v13, %v7403_v15  ;;  %v9319_v34 = vadd.f32 %v9318_v60, %v9317_v0 }
 0xa02   :  { %v9320_v17 = vpop.f32.mrf.mxu1 }
 0xa03   :  { %v7349_v16 = vadd.f32 %v9319_v34, %v7284_v3  ;;  %9550 = vmatmul.mubr.msk.bf16.vlgmr.msra.gmra.mxu0 %vm3841_vm3, %v7410_v62 }
 0xa04   :  { %v9321_v41 = vpop.f32.mrf.mxu1 }
 0xa05   :  { %v7374_v20 = vmul.f32 %v13742_v25, %v7349_v16  ;;  %v9322_v44 = vadd.f32 %v9321_v41, %v9320_v17  ;;  %v14356_v41 = vld [vmem:[#allocation40_spill] sm:$0xff] }
 0xa06   :  { %v9283_v58 = vpop.f32.mrf.mxu0 }
 0xa07   :  { %v7389_v33 = vadd.f32 %v13744_v37, %v7374_v20  ;;  %v7352_v55 = vadd.f32 %v9322_v44, %v7287_v61  ;;  %v14357_v61 = vmax.f32 %v14356_v41, 0.0  ;;  %v14358_v44 = vld [vmem:[#allocation26_spill] sm:$0xff] }
 0xa08   :  { %v9284_v59 = vpop.f32.mrf.mxu0 }
 0xa09   :  { %v7375_v10 = vmul.f32 %v13742_v25, %v7352_v55  ;;  %v7397_v53 = vmax.f32 %v7389_v33, 0.0  ;;  %v9285_v31 = vadd.f32 %v9284_v59, %v9283_v58  ;;  %v14359_v58 = vmax.f32 %v14358_v44, 0.0 }
 0xa0a   :  { %v9286_v6 = vpop.f32.mrf.mxu0 }
 0xa0b   :  { %v7390_v48 = vadd.f32 %v13744_v37, %v7375_v10  ;;  %v7405_v28 = vadd.f32 %v7397_v53, %v14353_v43  ;;  %v7292_v11 = vadd.f32 %v9285_v31, %v7227_v12 }
 0xa0c   :  { %v9287_v42 = vpop.f32.mrf.mxu0 }
 0xa0d   :  { %v7398_v38 = vmax.f32 %v7390_v48, 0.0  ;;  %v9288_v56 = vadd.f32 %v9287_v42, %v9286_v6 }
 0xa0e   :  { %v9323_v22 = vpop.f32.mrf.mxu1 }
 0xa0f   :  { %v7406_v32 = vadd.f32 %v7398_v38, %v14355_v63  ;;  %v7295_v26 = vadd.f32 %v9288_v56, %v7230_v36 }
 0xa10   :  { %v9324_v46 = vpop.f32.mrf.mxu1 }
 0xa11   :  { %v9325_v50 = vadd.f32 %v9324_v46, %v9323_v22  ;;  %v7411_v18 = vpack.c.bf16 %v7406_v32, %v7405_v28 }
 0xa12   :  { %v9326_v0 = vpop.f32.mrf.mxu1 }
 0xa13   :  { %v7357_v5 = vadd.f32 %v9325_v50, %v7292_v11  ;;  %9553 = vmatprep.mubr.msk.bf16.mxu0 %vm3841_vm3, %v7411_v18 }
 0xa14   :  { %v9327_v47 = vpop.f32.mrf.mxu1 }
 0xa15   :  { %v7376_v21 = vmul.f32 %v13742_v25, %v7357_v5  ;;  %v9328_v29 = vadd.f32 %v9327_v47, %v9326_v0 }
 0xa16   :  { %v9563_v15 = vpop.f32.mrf.mxu1 }
 0xa17   :  { %v7391_v19 = vadd.f32 %v13744_v37, %v7376_v21  ;;  %v7360_v40 = vadd.f32 %v9328_v29, %v7295_v26  ;;  %v7595_v55 = vadd.f32 %v9563_v15, %v8632_v57 }
 0xa18   :  { %v7586_v8 = vpop.f32.mrf.mxu1 }
 0xa19   :  { %v7377_v13 = vmul.f32 %v13742_v25, %v7360_v40  ;;  %v7587_v14 = vadd.f32 %v8632_v57, %v7586_v8  ;;  %v7399_v62 = vmax.f32 %v7391_v19, 0.0 }
 0xa1a   :  { %v9564_v60 = vpop.f32.mrf.mxu1 }
 0xa1b   :  { %v7392_v3 = vadd.f32 %v13744_v37, %v7377_v13  ;;  %v7598_v35 = vadd.f32 %v9564_v60, %v8632_v57  ;;  %7681 = vrot.lane.b32.xlu0 %v7587_v14, %s10656_s19  ;;  %v7407_v20 = vadd.f32 %v7399_v62, %v14357_v61 }
 0xa1c   :  { %v7589_v34 = vpop.f32.mrf.mxu1 }
 0xa1d   :  { %v7400_v17 = vmax.f32 %v7392_v3, 0.0  ;;  %v7590_v45 = vadd.f32 %v8632_v57, %v7589_v34 }
 0xa1e   :  { %v9567_v16 = vpop.f32.mrf.mxu1 }
 0xa1f   :  { %v7408_v33 = vadd.f32 %v7400_v17, %v14359_v58  ;;  %7683 = vrot.lane.b32.xlu1 %v7590_v45, %s10656_s19  ;;  %7687 = vrot.lane.b32.xlu0 %v7598_v35, %s10656_s19  ;;  %v7611_v53 = vadd.f32 %v9567_v16, %v8632_v57 }
 0xa20   :  { %v7602_v25 = vpop.f32.mrf.mxu1 }
 0xa21   :  { %v7412_v37 = vpack.c.bf16 %v7408_v33, %v7407_v20  ;;  %v7603_v10 = vadd.f32 %v8632_v57, %v7602_v25 }
 0xa22   :  { %v9568_v59 = vpop.f32.mrf.mxu1 }
 0xa23   :  { %9554 = vmatmul.mubr.msk.bf16.gmra.mxu0 %vm3841_vm3, %v7412_v37  ;;  %7685 = vrot.lane.b32.xlu1 %v7595_v55, %s10656_s19  ;;  %v7614_v48 = vadd.f32 %v9568_v59, %v8632_v57 }
 0xa24   :  { %v7605_v6 = vpop.f32.mrf.mxu1 }
 0xa25   :  { %v13803_v54 = vadd.f32 %v8632_v57, %v7605_v6 }
 0xa27   :  { %7689 = vrot.lane.b32.xlu1 %v7603_v10, %s10656_s19  ;;  %7691 = vrot.lane.b32.xlu0 %v13803_v54, %s10656_s19 }
 0xa2b   :  { %7693 = vrot.lane.b32.xlu1 %v7611_v53, %s10656_s19  ;;  %7695 = vrot.lane.b32.xlu0 %v7614_v48, %s10656_s19 }
 0xa91   :  { %v7684_v19 = vpop.permute.xlu1 %7683 }
 0xa95   :  { %v7686_v61 = vpop.permute.xlu1 %7685 }
 0xac3   :  { %v9551_v38 = vpop.f32.mrf.mxu0 }
 0xac4   :  { %v13810_v31 = vadd.f32 %v9551_v38, %v8625_v24 }
 0xac5   :  { %v7482_v42 = vpop.f32.mrf.mxu0 }
 0xac6   :  { %v7619_v22 = vadd.f32 %v7595_v55, %v13810_v31  ;;  %v13813_v12 = vadd.f32 %v8625_v24, %v7482_v42 }
 0xac7   :  { %v9552_v7 = vpop.f32.mrf.mxu0 }
 0xac8   :  { %v8641_v1 = vmul.f32 -1.442695, %v7619_v22  ;;  %v7617_v43 = vadd.f32 %v7587_v14, %v13813_v12  ;;  %v13816_v28 = vadd.f32 %v9552_v7, %v8625_v24 }
 0xac9   :  { %v7485_v30 = vpop.f32.mrf.mxu0 }
 0xaca   :  { %10406 = vpow2.f32 %v8641_v1  ;;  %v8639_v63 = vmul.f32 -1.442695, %v7617_v43  ;;  %v7620_v32 = vadd.f32 %v7598_v35, %v13816_v28  ;;  %v13819_v2 = vadd.f32 %v8625_v24, %v7485_v30  ;;  %v7682_v35 = vpop.permute.xlu0 %7681  ;;  %v7690_v1 = vpop.permute.xlu1 %7689 }
 0xacc   :  { %10408 = vpow2.f32 %v8639_v63  ;;  %v8642_v46 = vmul.f32 -1.442695, %v7620_v32  ;;  %v7618_v11 = vadd.f32 %v7590_v45, %v13819_v2 }
 0xace   :  { %10410 = vpow2.f32 %v8642_v46  ;;  %v8640_v56 = vmul.f32 -1.442695, %v7618_v11  ;;  %v7694_v32 = vpop.permute.xlu1 %7693 }
 0xad0   :  { %10412 = vpow2.f32 %v8640_v56 }
 0xad7   :  { %v10407_v50 = vpop.eup %10406 }
 0xad8   :  { %v7651_v0 = vadd.f32 1.0, %v10407_v50 }
 0xad9   :  { %v10409_v18 = vpop.eup %10408 }
 0xada   :  { %v7649_v36 = vadd.f32 1.0, %v10409_v18 }
 0xadb   :  { %v10411_v5 = vpop.eup %10410 }
 0xadc   :  { %10414 = vrcp.f32 %v7649_v36  ;;  %v7652_v26 = vadd.f32 1.0, %v10411_v5 }
 0xadd   :  { %v10413_v47 = vpop.eup %10412  ;;  %10416 = vrcp.f32 %v7651_v0 }
 0xade   :  { %v7650_v21 = vadd.f32 1.0, %v10413_v47 }
 0xae0   :  { %10418 = vrcp.f32 %v7650_v21 }
 0xae1   :  { %10420 = vrcp.f32 %v7652_v26 }
 0xae3   :  { %v9555_v29 = vpop.f32.mrf.mxu0 }
 0xae4   :  { %v13822_v15 = vadd.f32 %v9555_v29, %v8625_v24 }
 0xae5   :  { %v7498_v40 = vpop.f32.mrf.mxu0 }
 0xae6   :  { %v7623_v57 = vadd.f32 %v7611_v53, %v13822_v15  ;;  %v13825_v8 = vadd.f32 %v8625_v24, %v7498_v40 }
 0xae7   :  { %v9556_v13 = vpop.f32.mrf.mxu0 }
 0xae8   :  { %v8645_v14 = vmul.f32 -1.442695, %v7623_v57  ;;  %v7621_v60 = vadd.f32 %v7603_v10, %v13825_v8  ;;  %v13828_v62 = vadd.f32 %v9556_v13, %v8625_v24  ;;  %v7688_v10 = vpop.permute.xlu0 %7687 }
 0xae9   :  { %v13830_v3 = vpop.eup %10414  ;;  %v7501_v34 = vpop.f32.mrf.mxu0 }
 0xaea   :  { %10422 = vpow2.f32 %v8645_v14  ;;  %v8643_v17 = vmul.f32 -1.442695, %v7621_v60  ;;  %v7705_v45 = vmul.f32 %v13830_v3, %v7682_v35  ;;  %v7624_v16 = vadd.f32 %v7614_v48, %v13828_v62  ;;  %v13834_v41 = vpop.eup %10416 }
 0xaeb   :  { %v13836_v20 = vadd.f32 %v8625_v24, %v7501_v34  ;;  %v7707_v25 = vmul.f32 %v13834_v41, %v7686_v61  ;;  %v9892_v61 = vld [vmem:[%s13990_s15 + $0x8] sm:$0xff]  }
 0xaec   :  { %10424 = vpow2.f32 %v8643_v17  ;;  %v8646_v44 = vmul.f32 -1.442695, %v7624_v16  ;;  %7721 = vrot.lane.b32.xlu1 %v7705_v45, %s10656_s19  ;;  %v7692_v46 = vpop.permute.xlu0 %7691  ;;  %9569 = vmatprep.subr.bf16.mxu0 %v9892_v61 }
 0xaed   :  { %v13839_v58 = vpop.eup %10418  ;;  %v7622_v33 = vadd.f32 %v13803_v54, %v13836_v20  ;;  %9570 = vmatpush3.bf16.msra.mxu0 %v9892_v61 }
 0xaee   :  { %v7706_v55 = vmul.f32 %v13839_v58, %v7684_v19  ;;  %v13845_v37 = vpop.eup %10420  ;;  %10426 = vpow2.f32 %v8646_v44  ;;  %v7763_v44 = vsub.f32 1.0, %v13834_v41 }
 0xaef   :  { %v8644_v59 = vmul.f32 -1.442695, %v7622_v33  ;;  %v7708_v6 = vmul.f32 %v13845_v37, %v7688_v10 }
 0xaf0   :  { %7723 = vrot.lane.b32.xlu0 %v7706_v55, %s10656_s19  ;;  %7725 = vrot.lane.b32.xlu1 %v7707_v25, %s10656_s19  ;;  %v7696_v0 = vpop.permute.xlu0 %7695  ;;  %v7764_v25 = vsub.f32 1.0, %v13845_v37 }
 0xaf1   :  { %10428 = vpow2.f32 %v8644_v59 }
 0xaf4   :  { %7727 = vrot.lane.b32.xlu0 %v7708_v6, %s10656_s19  ;;  %v7761_v6 = vsub.f32 1.0, %v13830_v3 }
 0xaf7   :  { %v10423_v53 = vpop.eup %10422 }
 0xaf8   :  { %v7655_v48 = vadd.f32 1.0, %v10423_v53 }
 0xaf9   :  { %v10425_v54 = vpop.eup %10424 }
 0xafa   :  { %v7653_v24 = vadd.f32 1.0, %v10425_v54 }
 0xafb   :  { %v10427_v38 = vpop.eup %10426 }
 0xafc   :  { %10430 = vrcp.f32 %v7653_v24  ;;  %v7656_v22 = vadd.f32 1.0, %v10427_v38 }
 0xafd   :  { %10432 = vrcp.f32 %v7655_v48 }
 0xafe   :  { %v10429_v42 = vpop.eup %10428 }
 0xaff   :  { %v7654_v7 = vadd.f32 1.0, %v10429_v42 }
 0xb01   :  { %10434 = vrcp.f32 %v7654_v7 }
 0xb02   :  { %10436 = vrcp.f32 %v7656_v22 }
 0xb09   :  { %v13851_v43 = vpop.eup %10430 }
 0xb0a   :  { %v7709_v30 = vmul.f32 %v13851_v43, %v7690_v1  ;;  %v13854_v63 = vpop.eup %10432 }
 0xb0b   :  { %v7711_v56 = vmul.f32 %v13854_v63, %v7694_v32 }
 0xb0c   :  { %7729 = vrot.lane.b32.xlu1 %v7709_v30, %s10656_s19 }
 0xb0e   :  { %v13857_v11 = vpop.eup %10434 }
 0xb0f   :  { %v7710_v50 = vmul.f32 %v13857_v11, %v7692_v46  ;;  %v13861_v18 = vpop.eup %10436 }
 0xb10   :  { %7733 = vrot.lane.b32.xlu1 %v7711_v56, %s10656_s19  ;;  %v7712_v36 = vmul.f32 %v13861_v18, %v7696_v0  ;;  %v7767_v0 = vsub.f32 1.0, %v13854_v63 }
 0xb11   :  { %7731 = vrot.lane.b32.xlu0 %v7710_v50, %s10656_s19 }
 0xb14   :  { %7817 = vrot.lane.b32.xlu1 %v13653_v9, %s10673_s11 }
 0xb15   :  { %7735 = vrot.lane.b32.xlu0 %v7712_v36, %s10656_s19  ;;  %s10674_s19 = smov 96  }
 0xb18   :  { %7821 = vrot.lane.b32.xlu1 %v13666_v49, %s10673_s11 }
 0xb19   :  { %7819 = vrot.lane.b32.xlu0 %v13658_v23, %s10673_s11 }
 0xb1c   :  { %7825 = vrot.lane.b32.xlu1 %v13676_v27, %s10673_s11 }
 0xb1d   :  { %7823 = vrot.lane.b32.xlu0 %v13671_v4, %s10673_s11 }
 0xb21   :  { %7827 = vrot.lane.b32.xlu0 %v13681_v39, %s10673_s11 }
 0xb5e   :  { %v7722_v5 = vpop.permute.xlu1 %7721 }
 0xb5f   :  { %v7745_v21 = vadd.f32 %v7722_v5, %v13813_v12  ;;  %v7765_v5 = vsub.f32 1.0, %v13851_v43 }
 0xb62   :  { %v7724_v47 = vpop.permute.xlu0 %7723  ;;  %v7726_v9 = vpop.permute.xlu1 %7725 }
 0xb63   :  { %v7747_v26 = vadd.f32 %v7726_v9, %v13810_v31  ;;  %v7746_v29 = vadd.f32 %v7724_v47, %v13819_v2  ;;  %v7766_v47 = vsub.f32 1.0, %v13857_v11 }
 0xb65   :  { %10438 = vtanh.f32 %v7747_v26 }
 0xb66   :  { %v7728_v49 = vpop.permute.xlu0 %7727 }
 0xb67   :  { %v7748_v23 = vadd.f32 %v7728_v49, %v13816_v28 }
 0xb69   :  { %10440 = vtanh.f32 %v7748_v23 }
 0xb6a   :  { %10442 = vtanh.f32 %v7745_v21 }
 0xb6b   :  { %10444 = vtanh.f32 %v7746_v29  ;;  %v7768_v29 = vsub.f32 1.0, %v13861_v18 }
 0xb72   :  { %v10439_v4 = vpop.eup %10438 }
 0xb73   :  { %7781 = vrot.lane.b32.xlu1 %v10439_v4, %s10674_s19 }
 0xb76   :  { %v10441_v27 = vpop.eup %10440 }
 0xb77   :  { %v10443_v39 = vpop.eup %10442  ;;  %7783 = vrot.lane.b32.xlu0 %v10441_v27, %s10674_s19 }
 0xb78   :  { %7777 = vrot.lane.b32.xlu1 %v10443_v39, %s10674_s19  ;;  %v10445_v31 = vpop.eup %10444 }
 0xb7b   :  { %7779 = vrot.lane.b32.xlu0 %v10445_v31, %s10674_s19 }
 0xb7e   :  { %v7730_v12 = vpop.permute.xlu1 %7729 }
 0xb7f   :  { %v7749_v40 = vadd.f32 %v7730_v12, %v13825_v8 }
 0xb82   :  { %v7734_v28 = vpop.permute.xlu1 %7733 }
 0xb83   :  { %v7732_v19 = vpop.permute.xlu0 %7731  ;;  %v7751_v2 = vadd.f32 %v7734_v28, %v13822_v15 }
 0xb84   :  { %v7750_v14 = vadd.f32 %v7732_v19, %v13836_v20 }
 0xb85   :  { %10446 = vtanh.f32 %v7751_v2 }
 0xb86   :  { %10448 = vtanh.f32 %v7749_v40  ;;  %v7818_v8 = vpop.permute.xlu1 %7817 }
 0xb87   :  { %v7736_v57 = vpop.permute.xlu0 %7735  ;;  %v7841_v24 = vmul.f32 %v13830_v3, %v7818_v8 }
 0xb88   :  { %v7752_v13 = vadd.f32 %v7736_v57, %v13828_v62 }
 0xb8a   :  { %10450 = vtanh.f32 %v7752_v13  ;;  %v7822_v17 = vpop.permute.xlu1 %7821 }
 0xb8b   :  { %10452 = vtanh.f32 %v7750_v14  ;;  %v7820_v62 = vpop.permute.xlu0 %7819 }
 0xb8c   :  { %v7842_v1 = vmul.f32 %v13839_v58, %v7820_v62 }
 0xb8e   :  { %v7826_v16 = vpop.permute.xlu1 %7825 }
 0xb8f   :  { %v7824_v45 = vpop.permute.xlu0 %7823  ;;  %v7845_v4 = vmul.f32 %v13851_v43, %v7826_v16 }
 0xb90   :  { %v7844_v53 = vmul.f32 %v13845_v37, %v7824_v45 }
 0xb92   :  { %v10447_v60 = vpop.eup %10446 }
 0xb93   :  { %7789 = vrot.lane.b32.xlu1 %v10447_v60, %s10674_s19  ;;  %v10449_v35 = vpop.eup %10448  ;;  %v7828_v20 = vpop.permute.xlu0 %7827 }
 0xb94   :  { %v7846_v27 = vmul.f32 %v13857_v11, %v7828_v20 }
 0xb97   :  { %v10451_v34 = vpop.eup %10450  ;;  %7785 = vrot.lane.b32.xlu1 %v10449_v35, %s10674_s19 }
 0xb98   :  { %7791 = vrot.lane.b32.xlu0 %v10451_v34, %s10674_s19  ;;  %v10453_v15 = vpop.eup %10452 }
 0xb9b   :  { %7829 = vrot.lane.b32.xlu1 %v13692_v51, %s10673_s11  ;;  %v9893_v51 = vld [vmem:[%s13990_s15] sm:$0xff]  }
 0xb9c   :  { %7787 = vrot.lane.b32.xlu0 %v10453_v15, %s10674_s19  ;;  %9571 = vmatprep.subr.bf16.mxu0 %v9893_v51 }
 0xb9d   :  { %9572 = vmatpush3.bf16.msra.mxu0 %v9893_v51 }
 0xba0   :  { %7831 = vrot.lane.b32.xlu0 %v13697_v52, %s10673_s11  ;;  %v7843_v52 = vmul.f32 %v13834_v41, %v7822_v17  ;;  %v7762_v41 = vsub.f32 1.0, %v13839_v58  ;;  %v8647_v17 = vld [vmem:[%s13991_s16] ss:$0 sm:$0xff] }
 0xbe5   :  { %v7782_v33 = vpop.permute.xlu1 %7781 }
 0xbe6   :  { %v7803_v55 = vmul.f32 %v7782_v33, %v7763_v44 }
 0xbe8   :  { %v7851_v59 = vadd.f32 %v7843_v52, %v7803_v55 }
 0xbe9   :  { %v7784_v10 = vpop.permute.xlu0 %7783 }
 0xbea   :  { %v7804_v54 = vmul.f32 %v7784_v10, %v7764_v25  ;;  %v7778_v48 = vpop.permute.xlu1 %7777  ;;  %7869 = vrot.lane.b32.xlu1 %v7851_v59, %s10674_s19 }
 0xbeb   :  { %v7801_v38 = vmul.f32 %v7778_v48, %v7761_v6 }
 0xbec   :  { %v7852_v42 = vadd.f32 %v7844_v53, %v7804_v54 }
 0xbed   :  { %v7849_v22 = vadd.f32 %v7841_v24, %v7801_v38  ;;  %v7780_v7 = vpop.permute.xlu0 %7779 }
 0xbee   :  { %v7802_v30 = vmul.f32 %v7780_v7, %v7762_v41  ;;  %7871 = vrot.lane.b32.xlu0 %v7852_v42, %s10674_s19  ;;  %v7898_v3 = vpack.c.bf16 %v7852_v42, %v7851_v59 }
 0xbef   :  { %7865 = vrot.lane.b32.xlu1 %v7849_v22, %s10674_s19 }
 0xbf0   :  { %v7850_v37 = vadd.f32 %v7842_v1, %v7802_v30 }
 0xbf2   :  { %v7897_v32 = vpack.c.bf16 %v7850_v37, %v7849_v22  ;;  %7867 = vrot.lane.b32.xlu0 %v7850_v37, %s10674_s19 }
 0xbf4   :  { %7916 = vrot.lane.b32.xlu1 %v7897_v32, %s10674_s19 }
 0xbf6   :  { %7918 = vrot.lane.b32.xlu0 %v7898_v3, %s10674_s19 }
 0xc05   :  { %v7790_v46 = vpop.permute.xlu1 %7789 }
 0xc06   :  { %v7807_v36 = vmul.f32 %v7790_v46, %v7767_v0 }
 0xc09   :  { %v7786_v56 = vpop.permute.xlu1 %7785 }
 0xc0a   :  { %v7792_v50 = vpop.permute.xlu0 %7791  ;;  %v7805_v21 = vmul.f32 %v7786_v56, %v7765_v5 }
 0xc0b   :  { %v7808_v31 = vmul.f32 %v7792_v50, %v7768_v29 }
 0xc0c   :  { %v7853_v28 = vadd.f32 %v7845_v4, %v7805_v21 }
 0xc0d   :  { %v7830_v58 = vpop.permute.xlu1 %7829 }
 0xc0e   :  { %v7788_v9 = vpop.permute.xlu0 %7787  ;;  %v7847_v26 = vmul.f32 %v13854_v63, %v7830_v58 }
 0xc0f   :  { %v7806_v49 = vmul.f32 %v7788_v9, %v7766_v47 }
 0xc10   :  { %v7855_v23 = vadd.f32 %v7847_v26, %v7807_v36 }
 0xc11   :  { %v7854_v19 = vadd.f32 %v7846_v27, %v7806_v49 }
 0xc12   :  { %v7832_v39 = vpop.permute.xlu0 %7831  ;;  %7877 = vrot.lane.b32.xlu1 %v7855_v23, %s10674_s19 }
 0xc13   :  { %v7848_v12 = vmul.f32 %v13861_v18, %v7832_v39  ;;  %v7899_v63 = vpack.c.bf16 %v7854_v19, %v7853_v28 }
 0xc15   :  { %v7856_v2 = vadd.f32 %v7848_v12, %v7808_v31 }
 0xc16   :  { %7873 = vrot.lane.b32.xlu1 %v7853_v28, %s10674_s19 }
 0xc17   :  { %7879 = vrot.lane.b32.xlu0 %v7856_v2, %s10674_s19  ;;  %v7900_v43 = vpack.c.bf16 %v7856_v2, %v7855_v23 }
 0xc1a   :  { %7920 = vrot.lane.b32.xlu1 %v7899_v63, %s10674_s19 }
 0xc1b   :  { %7875 = vrot.lane.b32.xlu0 %v7854_v19, %s10674_s19 }
 0xc1f   :  { %7922 = vrot.lane.b32.xlu0 %v7900_v43, %s10674_s19 }
 0xc5c   :  { %v7870_v11 = vpop.permute.xlu1 %7869 }
 0xc5d   :  { %7891 = vst.msk [vmem:[%s13993_s18 + $0x10] sm:$0xff] %vm3841_vm3, %v7870_v11 }
 0xc60   :  { %v7872_v18 = vpop.permute.xlu0 %7871 }
 0xc61   :  { %7892 = vst.msk [vmem:[%s13993_s18 + $0x18] sm:$0xff] %vm3841_vm3, %v7872_v18  ;;  %v7866_v40 = vpop.permute.xlu1 %7865 }
 0xc62   :  { %7889 = vst.msk [vmem:[%s13993_s18] sm:$0xff] %vm3841_vm3, %v7866_v40 }
 0xc64   :  { %v7868_v57 = vpop.permute.xlu0 %7867 }
 0xc65   :  { %7890 = vst.msk [vmem:[%s13993_s18 + $0x8] sm:$0xff] %vm3841_vm3, %v7868_v57 }
 0xc66   :  { %v7917_v13 = vpop.permute.xlu1 %7916 }
 0xc67   :  { %9573 = vmatprep.mubr.msk.bf16.mxu0 %vm3841_vm3, %v7917_v13 }
 0xc68   :  { %v7919_v14 = vpop.permute.xlu0 %7918 }
 0xc69   :  { %9574 = vmatmul.mubr.msk.bf16.vlgmr.msra.gmra.mxu0 %vm3841_vm3, %v7919_v14 }
 0xc84   :  { %v7878_v60 = vpop.permute.xlu1 %7877 }
 0xc85   :  { %7895 = vst.msk [vmem:[%s13993_s18 + $0x30] sm:$0xff] %vm3841_vm3, %v7878_v60 }
 0xc88   :  { %v7874_v35 = vpop.permute.xlu1 %7873 }
 0xc89   :  { %v7880_v34 = vpop.permute.xlu0 %7879  ;;  %7893 = vst.msk [vmem:[%s13993_s18 + $0x20] sm:$0xff] %vm3841_vm3, %v7874_v35 }
 0xc8a   :  { %7896 = vst.msk [vmem:[%s13993_s18 + $0x38] sm:$0xff] %vm3841_vm3, %v7880_v34 }
 0xc8c   :  { %v7921_v15 = vpop.permute.xlu1 %7920 }
 0xc8d   :  { %v7876_v8 = vpop.permute.xlu0 %7875  ;;  %9577 = vmatprep.mubr.msk.bf16.mxu0 %vm3841_vm3, %v7921_v15 }
 0xc8e   :  { %7894 = vst.msk [vmem:[%s13993_s18 + $0x28] sm:$0xff] %vm3841_vm3, %v7876_v8  ;;  %s10675_s18 = smov [#allocation18]  }
 0xc8f   :  { %s8026_s16 = sshll.u32 %s10675_s18, 4  ;;  %s8027_s16 = int_to_ptr.vmem [resolvable:$true] %s8026_s16 }
 0xc90   :  { %s10622_s9 = scalar_lea.vmem %s8027_s16, 1024  ;;  %p10627_p13 = scmp.lt.s32.totalorder %s8027_s16, %s8027_s16 }
 0xc91   :  { %v7923_v62 = vpop.permute.xlu0 %7922  ;;  %p10623_p12 = scmp.ne.s32.totalorder %s8027_s16, %s10622_s9  ;;  %p10628_p0 = scmp.lt.s32.totalorder %s10622_s9, %s10622_s9 }
 0xc92   :  { %9578 = vmatmul.mubr.msk.bf16.gmra.mxu0 %vm3841_vm3, %v7923_v62 }
 0xc93   :  { %p10629_p1 = por %p10628_p0, %p10627_p13 }
 0xc95   :  { %p10630_p2 = pnand %p10629_p1, %p10623_p12 }
 0xd29   :  { %v9575_v45 = vpop.f32.mrf.mxu0 }
 0xd2a   :  { %v7991_v16 = vadd.f32 %v9575_v45, %v8647_v17 }
 0xd2b   :  { %v7982_v61 = vpop.f32.mrf.mxu0 }
 0xd2c   :  { %8015 = vst [vmem:[#allocation18 + $0x10] sm:$0xff] %v7991_v16  ;;  %v7983_v20 = vadd.f32 %v8647_v17, %v7982_v61 }
 0xd2d   :  { %v9576_v44 = vpop.f32.mrf.mxu0 }
 0xd2e   :  { %8013 = vst [vmem:[#allocation18] sm:$0xff] %v7983_v20  ;;  %v7994_v51 = vadd.f32 %v9576_v44, %v8647_v17 }
 0xd2f   :  { %v7985_v33 = vpop.f32.mrf.mxu0 }
 0xd30   :  { %8016 = vst [vmem:[#allocation18 + $0x18] sm:$0xff] %v7994_v51  ;;  %v7986_v52 = vadd.f32 %v8647_v17, %v7985_v33 }
 0xd32   :  { %8014 = vst [vmem:[#allocation18 + $0x8] sm:$0xff] %v7986_v52 }
 0xd52   :  { %v9579_v55 = vpop.f32.mrf.mxu0 }
 0xd53   :  { %v8007_v25 = vadd.f32 %v9579_v55, %v8647_v17 }
 0xd54   :  { %v7998_v59 = vpop.f32.mrf.mxu0 }
 0xd55   :  { %8019 = vst [vmem:[#allocation18 + $0x30] sm:$0xff] %v8007_v25  ;;  %v7999_v10 = vadd.f32 %v8647_v17, %v7998_v59 }
 0xd56   :  { %v9580_v6 = vpop.f32.mrf.mxu0 }
 0xd57   :  { %8017 = vst [vmem:[#allocation18 + $0x20] sm:$0xff] %v7999_v10  ;;  %v8010_v53 = vadd.f32 %v9580_v6, %v8647_v17 }
 0xd58   :  { %v8001_v54 = vpop.f32.mrf.mxu0 }
 0xd59   :  { %8020 = vst [vmem:[#allocation18 + $0x38] sm:$0xff] %v8010_v53  ;;  %v8002_v48 = vadd.f32 %v8647_v17, %v8001_v54 }
 0xd5b   :  { %8018 = vst [vmem:[#allocation18 + $0x28] sm:$0xff] %v8002_v48 }
 0xd5c   :  { %10633 = shalt.err (!%p10630_p2)
}
 0xd5d   :  { %s10676_s30 = smov 128   ;;  %s10677_s6 = smov 8  }
 0xd5e   :  { %8032 = dma.vmem_to_hbm [thread:$0]  %s8027_s16, 1024, %s13992_s17, [#allocation6], %s10676_s30, %s10676_s30, %s10677_s6  }
 0xd5f   :  { %10652 = dma.done.wait [#allocation6], 1024  }
 0xd60   :  { %10653 = vsyncadd [#allocation6], 4294966272 }
 0xd61   :  { %8040 = vsyncpa [#allocation5], 1 }
 0xd62   :  { %8041 = vsyncpa [#allocation8], 1 }
 0xd63   :  { %8042 = vsyncpa [#allocation11], 1 }
 0xd64   :  { %8043 = vsyncpa [#allocation14], 1 }
 0xd65   :  { %8044 = vsyncpa [#allocation17], 1 }
 0xd66   :  { %8045 = vsyncpa [#allocation6], 1 }

</bundles_post_ra>
